<compile_context>
chip_gen: v5e
topology: v5e:2x2
jax: 0.10.0
libtpu: 0.0.40
codegen_flags: <defaults>
</compile_context>

<pallas_src>
import functools

import jax
import jax.numpy as jnp
from jax.experimental import pallas as pl
from jax.experimental.pallas import tpu as pltpu


LANE = 128         # lane width / slab size
HIDDEN = 750       # logical hidden width (nn.Linear(..., 750))
HIDDEN_PAD = 768   # zero-padded hidden width (multiple of 128)


def _round_up(x, m):
    return ((x + m - 1) // m) * m


def _pad_to(x, shape):
    pads = [(0, t - s) for s, t in zip(x.shape, shape)]
    return jnp.pad(x, pads)


def _vae_kernel(
    x_ref,                        # (bb, 384) f32: [state | action | eps] 128-lane slabs
    e1w_ref, e1b_ref,             # (384, Hp) bf16 (eps rows zero), (1, Hp) f32
    e2w_ref, e2b_ref,             # (Hp, Hp)  bf16, (1, Hp) f32
    hw_ref, hb_ref,               # (Hp, 256) bf16: mean cols 0:128, log_std cols 128:256
    d1ws_ref, d1wz_ref, d1b_ref,  # (128, Hp) bf16, (128, Hp) bf16, (1, Hp) f32
    d2w_ref, d2b_ref,             # (Hp, Hp)  bf16, (1, Hp) f32
    d3w_ref, d3b_ref,             # (Hp, 128) bf16, (1, 128) f32
    out_ref,                      # (bb, 384) f32: [u | mean | std] 128-lane slabs
    *,
    max_action: float,
):
    f32 = jnp.float32
    bf16 = jnp.bfloat16

    x = x_ref[...]                       # (bb, 384) f32
    x_bf = x.astype(bf16)
    state_bf = x_bf[:, :LANE]            # lane-aligned state slab (zero padded)
    eps = x[:, 2 * LANE:]                # lane-aligned eps slab, f32, zero past L

    # ----- encoder -----
    # e1(cat([state, action], 1)): eps rows of e1w are zero, so the full packed
    # input can be multiplied directly (no slicing / concat needed).
    h = jnp.dot(x_bf, e1w_ref[...], preferred_element_type=f32) + e1b_ref[...]
    h = jnp.maximum(h, 0.0)                                   # relu(e1(.))
    h = jnp.dot(h.astype(bf16), e2w_ref[...],
                preferred_element_type=f32) + e2b_ref[...]
    h = jnp.maximum(h, 0.0)                                   # relu(e2(.))

    # fused, lane-aligned mean / log_std head
    heads = jnp.dot(h.astype(bf16), hw_ref[...],
                    preferred_element_type=f32) + hb_ref[...]
    mean = heads[:, :LANE]                                    # (bb, 128)
    log_std = jnp.clip(heads[:, LANE:], -4.0, 15.0)
    std = jnp.exp(log_std)                                    # padded cols -> exp(0)=1

    # reparameterization: z = mean + std * randn_like(std)
    # (padded cols: 0 + 1 * 0 = 0, so d1_wz padding stays exact)
    z = mean + std * eps

    # ----- decoder -----
    a = (
        jnp.dot(state_bf, d1ws_ref[...], preferred_element_type=f32)
        + jnp.dot(z.astype(bf16), d1wz_ref[...], preferred_element_type=f32)
        + d1b_ref[...]
    )
    a = jnp.maximum(a, 0.0)                                   # relu(d1(cat(state, z)))
    a = jnp.dot(a.astype(bf16), d2w_ref[...],
                preferred_element_type=f32) + d2b_ref[...]
    a = jnp.maximum(a, 0.0)                                   # relu(d2(.))
    u = jnp.dot(a.astype(bf16), d3w_ref[...],
                preferred_element_type=f32) + d3b_ref[...]
    u = max_action * jnp.tanh(u)                              # padded cols stay 0

    # lane-dense, aligned 128-wide slab writes: [u | mean | std]
    out_ref[:, 0 * LANE:1 * LANE] = u.astype(out_ref.dtype)
    out_ref[:, 1 * LANE:2 * LANE] = mean.astype(out_ref.dtype)
    out_ref[:, 2 * LANE:3 * LANE] = std.astype(out_ref.dtype)


def init_vae_params(key, state_dim, action_dim, latent_dim):
    """Deterministic synthetic parameters (PyTorch-Linear-style uniform init).

    Weights are stored as (in_features, out_features) in bfloat16, laid out in
    128-lane slabs matching the packed kernel input/output, and zero-padded
    from HIDDEN=750 to HIDDEN_PAD=768.  Biases stay f32.
    """
    def linear(k, fan_in, fan_out):
        kw, kb = jax.random.split(k)
        bound = 1.0 / jnp.sqrt(jnp.float32(fan_in))
        w = jax.random.uniform(kw, (fan_in, fan_out), jnp.float32, -bound, bound)
        b = jax.random.uniform(kb, (1, fan_out), jnp.float32, -bound, bound)
        return w, b

    ks = jax.random.split(key, 7)
    S, A, L = state_dim, action_dim, latent_dim
    H, Hp = HIDDEN, HIDDEN_PAD
    bf16 = jnp.bfloat16

    e1_w, e1_b = linear(ks[0], S + A, H)
    e2_w, e2_b = linear(ks[1], H, H)
    mean_w, mean_b = linear(ks[2], H, L)
    ls_w, ls_b = linear(ks[3], H, L)
    d1_w, d1_b = linear(ks[4], S + L, H)
    d2_w, d2_b = linear(ks[5], H, H)
    d3_w, d3_b = linear(ks[6], H, A)

    p = {}

    # e1 weight in slab layout: rows 0:S <- state part, rows 128:128+A <- action
    # part, rows 256:384 (eps slab) stay zero.
    e1w = jnp.zeros((3 * LANE, Hp), jnp.float32)
    e1w = e1w.at[:S, :H].set(e1_w[:S])
    e1w = e1w.at[LANE:LANE + A, :H].set(e1_w[S:S + A])
    p["e1_w"] = e1w.astype(bf16)
    p["e1_b"] = _pad_to(e1_b, (1, Hp))

    p["e2_w"] = _pad_to(e2_w, (Hp, Hp)).astype(bf16)
    p["e2_b"] = _pad_to(e2_b, (1, Hp))

    # fused, lane-aligned mean | log_std head: mean cols 0:128, log_std 128:256
    hw = jnp.zeros((Hp, 2 * LANE), jnp.float32)
    hw = hw.at[:H, :L].set(mean_w)
    hw = hw.at[:H, LANE:LANE + L].set(ls_w)
    p["head_w"] = hw.astype(bf16)
    hb = jnp.zeros((1, 2 * LANE), jnp.float32)
    hb = hb.at[:, :L].set(mean_b)
    hb = hb.at[:, LANE:LANE + L].set(ls_b)
    p["head_b"] = hb

    # d1 weight split into state / latent slabs (avoids in-kernel concat)
    p["d1_ws"] = _pad_to(d1_w[:S, :], (LANE, Hp)).astype(bf16)
    p["d1_wz"] = _pad_to(d1_w[S:, :], (LANE, Hp)).astype(bf16)
    p["d1_b"] = _pad_to(d1_b, (1, Hp))

    p["d2_w"] = _pad_to(d2_w, (Hp, Hp)).astype(bf16)
    p["d2_b"] = _pad_to(d2_b, (1, Hp))

    # d3 weight padded to a full 128-lane output slab (u)
    p["d3_w"] = _pad_to(d3_w, (Hp, LANE)).astype(bf16)
    p["d3_b"] = _pad_to(d3_b, (1, LANE))
    return p


def _pack_inputs(state, action, eps, rows):
    """Build the lane-dense packed input: [state | action | eps] 128-lane slabs."""
    B, S = state.shape
    A = action.shape[1]
    L = eps.shape[1]
    x = jnp.zeros((rows, 3 * LANE), jnp.float32)
    x = x.at[:B, 0:S].set(state.astype(jnp.float32))
    x = x.at[:B, LANE:LANE + A].set(action.astype(jnp.float32))
    x = x.at[:B, 2 * LANE:2 * LANE + L].set(eps.astype(jnp.float32))
    return x


def vae_forward(state, action, eps, params, max_action, *, block_b=512):
    """Returns (u, mean, std) — same semantics as VAE.forward in PyTorch."""
    B, S = state.shape
    A = action.shape[1]
    L = eps.shape[1]
    Hp = HIDDEN_PAD

    # Batch block: multiple of 16 rows (bf16 sublane packing); large batches are
    # split into >=2 tiles so the "parallel" grid axis can feed both v7x
    # TensorCores, capped at block_b (512) to fill the 256-wide MXU on v6e/v7x.
    bb = max(16, min(block_b, _round_up(-(-B // 2), 16)))
    Bp = _round_up(B, bb)

    x = _pack_inputs(state, action, eps, Bp)

    kernel_inputs = (
        x,
        params["e1_w"], params["e1_b"],
        params["e2_w"], params["e2_b"],
        params["head_w"], params["head_b"],
        params["d1_ws"], params["d1_wz"], params["d1_b"],
        params["d2_w"], params["d2_b"],
        params["d3_w"], params["d3_b"],
    )

    def batch_spec(arr):
        return pl.BlockSpec((bb, arr.shape[1]), lambda i: (i, 0))

    def resident_spec(arr):
        # weights/biases: same block for every batch tile -> stay VMEM-resident
        return pl.BlockSpec(arr.shape, lambda i: (0, 0))

    in_specs = [batch_spec(x)] + [resident_spec(w) for w in kernel_inputs[1:]]

    out_width = 3 * LANE
    out_specs = pl.BlockSpec((bb, out_width), lambda i: (i, 0))
    out_shape = jax.ShapeDtypeStruct((Bp, out_width), jnp.float32)

    # advisory cost estimate for XLA's scheduler
    flops = 2 * Bp * (
        3 * LANE * Hp + Hp * Hp + Hp * 2 * LANE          # encoder + fused head
        + LANE * Hp + LANE * Hp + Hp * Hp + Hp * LANE    # decoder
    )
    transcendentals = Bp * 2 * LANE                       # exp + tanh (padded lanes)
    bytes_accessed = (
        sum(int(a.size) * a.dtype.itemsize for a in kernel_inputs)
        + Bp * out_width * 4
    )
    cost = pl.CostEstimate(
        flops=int(flops),
        transcendentals=int(transcendentals),
        bytes_accessed=int(bytes_accessed),
    )

    kernel = functools.partial(_vae_kernel, max_action=float(max_action))

    packed = pl.pallas_call(
        kernel,
        out_shape=out_shape,
        grid_spec=pltpu.PrefetchScalarGridSpec(
            num_scalar_prefetch=0,
            grid=(Bp // bb,),
            in_specs=in_specs,
            out_specs=out_specs,
        ),
        compiler_params=pltpu.CompilerParams(
            dimension_semantics=("parallel",),
            vmem_limit_bytes=32 * 1024 * 1024,   # safe on v5e/v6e/v7x
        ),
        cost_estimate=cost,
    )(*kernel_inputs)

    u = packed[:B, 0:A]
    mean = packed[:B, LANE:LANE + L]
    std = packed[:B, 2 * LANE:2 * LANE + L]
    return u, mean, std


def _reference_forward(state, action, eps, params, max_action):
    """Pure-JAX reference mirroring the kernel math exactly (bf16 matmul inputs,
    f32 accumulation and elementwise), for the correctness check."""
    B, S = state.shape
    A = action.shape[1]
    L = eps.shape[1]
    bf16 = jnp.bfloat16
    f32 = jnp.float32

    def mm(a, w):
        return jnp.dot(a.astype(bf16), w, preferred_element_type=f32)

    x = _pack_inputs(state, action, eps, B)
    h = jax.nn.relu(mm(x, params["e1_w"]) + params["e1_b"])
    h = jax.nn.relu(mm(h, params["e2_w"]) + params["e2_b"])
    heads = mm(h, params["head_w"]) + params["head_b"]
    mean = heads[:, :LANE]
    std = jnp.exp(jnp.clip(heads[:, LANE:], -4.0, 15.0))
    z = mean + std * x[:, 2 * LANE:]
    a = jax.nn.relu(
        mm(x[:, :LANE], params["d1_ws"]) + mm(z, params["d1_wz"]) + params["d1_b"]
    )
    a = jax.nn.relu(mm(a, params["d2_w"]) + params["d2_b"])
    u = max_action * jnp.tanh(mm(a, params["d3_w"]) + params["d3_b"])
    return u[:, :A], mean[:, :L], std[:, :L]


if __name__ == "__main__":
    # small shapes consistent with the module
    batch = 8
    state_dim = 17
    action_dim = 6
    latent_dim = 2 * action_dim  # BCQ convention: latent_dim = 2 * action_dim
    max_action = 1.0

    key = jax.random.PRNGKey(0)
    k_params, k_state, k_action, k_eps = jax.random.split(key, 4)

    params = init_vae_params(k_params, state_dim, action_dim, latent_dim)
    state = jax.random.normal(k_state, (batch, state_dim), jnp.float32)
    action = jax.random.normal(k_action, (batch, action_dim), jnp.float32)
    # torch.randn_like(std) equivalent, generated in the wrapper
    eps = jax.random.normal(k_eps, (batch, latent_dim), jnp.float32)

    u, mean, std = jax.block_until_ready(
        vae_forward(state, action, eps, params, max_action)
    )

    u_ref, mean_ref, std_ref = _reference_forward(
        state, action, eps, params, max_action
    )
    assert u.shape == (batch, action_dim)
    assert mean.shape == (batch, latent_dim)
    assert std.shape == (batch, latent_dim)
    assert jnp.allclose(u, u_ref, atol=2e-3, rtol=2e-3)
    assert jnp.allclose(mean, mean_ref, atol=2e-3, rtol=2e-3)
    assert jnp.allclose(std, std_ref, atol=2e-3, rtol=2e-3)

    print("KERNEL_OK")
</pallas_src>

<mosaic_0001>
module attributes {stable_mosaic.version = 11 : i64} {
  func.func @_vae_kernel(%arg0: i32, %arg1: memref<16x384xf32, #tpu.memory_space<vmem>>, %arg2: memref<384x768xbf16, #tpu.memory_space<vmem>>, %arg3: memref<1x768xf32, #tpu.memory_space<vmem>>, %arg4: memref<768x768xbf16, #tpu.memory_space<vmem>>, %arg5: memref<1x768xf32, #tpu.memory_space<vmem>>, %arg6: memref<768x256xbf16, #tpu.memory_space<vmem>>, %arg7: memref<1x256xf32, #tpu.memory_space<vmem>>, %arg8: memref<128x768xbf16, #tpu.memory_space<vmem>>, %arg9: memref<128x768xbf16, #tpu.memory_space<vmem>>, %arg10: memref<1x768xf32, #tpu.memory_space<vmem>>, %arg11: memref<768x768xbf16, #tpu.memory_space<vmem>>, %arg12: memref<1x768xf32, #tpu.memory_space<vmem>>, %arg13: memref<768x128xbf16, #tpu.memory_space<vmem>>, %arg14: memref<1x128xf32, #tpu.memory_space<vmem>>, %arg15: memref<16x384xf32, #tpu.memory_space<vmem>>) attributes {dimension_semantics = [#tpu.dimension_semantics<parallel>], iteration_bounds = array<i64: 1>, scalar_prefetch = 0 : i64, scratch_operands = 0 : i64, tpu.core_type = #tpu.core_type<tc>, window_params = [{transform_indices = @transform_0, window_bounds = array<i64: 16, 384>}, {pipeline_mode = #tpu.pipeline_mode<synchronous>, transform_indices = @transform_1, window_bounds = array<i64: 384, 768>}, {pipeline_mode = #tpu.pipeline_mode<synchronous>, transform_indices = @transform_2, window_bounds = array<i64: 1, 768>}, {pipeline_mode = #tpu.pipeline_mode<synchronous>, transform_indices = @transform_3, window_bounds = array<i64: 768, 768>}, {pipeline_mode = #tpu.pipeline_mode<synchronous>, transform_indices = @transform_4, window_bounds = array<i64: 1, 768>}, {pipeline_mode = #tpu.pipeline_mode<synchronous>, transform_indices = @transform_5, window_bounds = array<i64: 768, 256>}, {pipeline_mode = #tpu.pipeline_mode<synchronous>, transform_indices = @transform_6, window_bounds = array<i64: 1, 256>}, {pipeline_mode = #tpu.pipeline_mode<synchronous>, transform_indices = @transform_7, window_bounds = array<i64: 128, 768>}, {pipeline_mode = #tpu.pipeline_mode<synchronous>, transform_indices = @transform_8, window_bounds = array<i64: 128, 768>}, {pipeline_mode = #tpu.pipeline_mode<synchronous>, transform_indices = @transform_9, window_bounds = array<i64: 1, 768>}, {pipeline_mode = #tpu.pipeline_mode<synchronous>, transform_indices = @transform_10, window_bounds = array<i64: 768, 768>}, {pipeline_mode = #tpu.pipeline_mode<synchronous>, transform_indices = @transform_11, window_bounds = array<i64: 1, 768>}, {pipeline_mode = #tpu.pipeline_mode<synchronous>, transform_indices = @transform_12, window_bounds = array<i64: 768, 128>}, {pipeline_mode = #tpu.pipeline_mode<synchronous>, transform_indices = @transform_13, window_bounds = array<i64: 1, 128>}, {transform_indices = @transform_14, window_bounds = array<i64: 16, 384>}]} {
    %c0 = arith.constant 0 : index
    %c0_0 = arith.constant 0 : index
    %0 = vector.load %arg1[%c0, %c0_0] : memref<16x384xf32, #tpu.memory_space<vmem>>, vector<16x384xf32>
    %1 = arith.truncf %0 : vector<16x384xf32> to vector<16x384xbf16>
    %2 = vector.extract_strided_slice %1 {offsets = [0, 0], sizes = [16, 128], strides = [1, 1]} : vector<16x384xbf16> to vector<16x128xbf16>
    %3 = vector.extract_strided_slice %0 {offsets = [0, 256], sizes = [16, 128], strides = [1, 1]} : vector<16x384xf32> to vector<16x128xf32>
    %c0_1 = arith.constant 0 : index
    %c0_2 = arith.constant 0 : index
    %4 = vector.load %arg2[%c0_1, %c0_2] : memref<384x768xbf16, #tpu.memory_space<vmem>>, vector<384x768xbf16>
    %cst = arith.constant dense<0.000000e+00> : vector<16x768xf32>
    %5 = tpu.matmul %1, %4, %cst {dimension_numbers = #tpu.dot_dimension_numbers<[1], [0], [0], [1], [0, 0, 1, 1], [], []>} : vector<16x384xbf16>, vector<384x768xbf16>, vector<16x768xf32> -> vector<16x768xf32>
    %c0_3 = arith.constant 0 : index
    %c0_4 = arith.constant 0 : index
    %6 = vector.load %arg3[%c0_3, %c0_4] : memref<1x768xf32, #tpu.memory_space<vmem>>, vector<1x768xf32>
    %7 = vector.broadcast %6 : vector<1x768xf32> to vector<16x768xf32>
    %8 = arith.addf %5, %7 : vector<16x768xf32>
    %cst_5 = arith.constant 0.000000e+00 : f32
    %9 = vector.broadcast %cst_5 : f32 to vector<16x768xf32>
    %10 = arith.maximumf %8, %9 : vector<16x768xf32>
    %11 = arith.truncf %10 : vector<16x768xf32> to vector<16x768xbf16>
    %c0_6 = arith.constant 0 : index
    %c0_7 = arith.constant 0 : index
    %12 = vector.load %arg4[%c0_6, %c0_7] : memref<768x768xbf16, #tpu.memory_space<vmem>>, vector<768x768xbf16>
    %cst_8 = arith.constant dense<0.000000e+00> : vector<16x768xf32>
    %13 = tpu.matmul %11, %12, %cst_8 {dimension_numbers = #tpu.dot_dimension_numbers<[1], [0], [0], [1], [0, 0, 1, 1], [], []>} : vector<16x768xbf16>, vector<768x768xbf16>, vector<16x768xf32> -> vector<16x768xf32>
    %c0_9 = arith.constant 0 : index
    %c0_10 = arith.constant 0 : index
    %14 = vector.load %arg5[%c0_9, %c0_10] : memref<1x768xf32, #tpu.memory_space<vmem>>, vector<1x768xf32>
    %15 = vector.broadcast %14 : vector<1x768xf32> to vector<16x768xf32>
    %16 = arith.addf %13, %15 : vector<16x768xf32>
    %cst_11 = arith.constant 0.000000e+00 : f32
    %17 = vector.broadcast %cst_11 : f32 to vector<16x768xf32>
    %18 = arith.maximumf %16, %17 : vector<16x768xf32>
    %19 = arith.truncf %18 : vector<16x768xf32> to vector<16x768xbf16>
    %c0_12 = arith.constant 0 : index
    %c0_13 = arith.constant 0 : index
    %20 = vector.load %arg6[%c0_12, %c0_13] : memref<768x256xbf16, #tpu.memory_space<vmem>>, vector<768x256xbf16>
    %cst_14 = arith.constant dense<0.000000e+00> : vector<16x256xf32>
    %21 = tpu.matmul %19, %20, %cst_14 {dimension_numbers = #tpu.dot_dimension_numbers<[1], [0], [0], [1], [0, 0, 1, 1], [], []>} : vector<16x768xbf16>, vector<768x256xbf16>, vector<16x256xf32> -> vector<16x256xf32>
    %c0_15 = arith.constant 0 : index
    %c0_16 = arith.constant 0 : index
    %22 = vector.load %arg7[%c0_15, %c0_16] : memref<1x256xf32, #tpu.memory_space<vmem>>, vector<1x256xf32>
    %23 = vector.broadcast %22 : vector<1x256xf32> to vector<16x256xf32>
    %24 = arith.addf %21, %23 : vector<16x256xf32>
    %25 = vector.extract_strided_slice %24 {offsets = [0, 0], sizes = [16, 128], strides = [1, 1]} : vector<16x256xf32> to vector<16x128xf32>
    %26 = vector.extract_strided_slice %24 {offsets = [0, 128], sizes = [16, 128], strides = [1, 1]} : vector<16x256xf32> to vector<16x128xf32>
    %cst_17 = arith.constant -4.000000e+00 : f32
    %cst_18 = arith.constant 1.500000e+01 : f32
    %27 = vector.broadcast %cst_17 : f32 to vector<16x128xf32>
    %28 = arith.maximumf %27, %26 : vector<16x128xf32>
    %29 = vector.broadcast %cst_18 : f32 to vector<16x128xf32>
    %30 = arith.minimumf %29, %28 : vector<16x128xf32>
    %31 = math.exp %30 : vector<16x128xf32>
    %32 = arith.mulf %31, %3 : vector<16x128xf32>
    %33 = arith.addf %25, %32 : vector<16x128xf32>
    %c0_19 = arith.constant 0 : index
    %c0_20 = arith.constant 0 : index
    %34 = vector.load %arg8[%c0_19, %c0_20] : memref<128x768xbf16, #tpu.memory_space<vmem>>, vector<128x768xbf16>
    %cst_21 = arith.constant dense<0.000000e+00> : vector<16x768xf32>
    %35 = tpu.matmul %2, %34, %cst_21 {dimension_numbers = #tpu.dot_dimension_numbers<[1], [0], [0], [1], [0, 0, 1, 1], [], []>} : vector<16x128xbf16>, vector<128x768xbf16>, vector<16x768xf32> -> vector<16x768xf32>
    %36 = arith.truncf %33 : vector<16x128xf32> to vector<16x128xbf16>
    %c0_22 = arith.constant 0 : index
    %c0_23 = arith.constant 0 : index
    %37 = vector.load %arg9[%c0_22, %c0_23] : memref<128x768xbf16, #tpu.memory_space<vmem>>, vector<128x768xbf16>
    %cst_24 = arith.constant dense<0.000000e+00> : vector<16x768xf32>
    %38 = tpu.matmul %36, %37, %cst_24 {dimension_numbers = #tpu.dot_dimension_numbers<[1], [0], [0], [1], [0, 0, 1, 1], [], []>} : vector<16x128xbf16>, vector<128x768xbf16>, vector<16x768xf32> -> vector<16x768xf32>
    %39 = arith.addf %35, %38 : vector<16x768xf32>
    %c0_25 = arith.constant 0 : index
    %c0_26 = arith.constant 0 : index
    %40 = vector.load %arg10[%c0_25, %c0_26] : memref<1x768xf32, #tpu.memory_space<vmem>>, vector<1x768xf32>
    %41 = vector.broadcast %40 : vector<1x768xf32> to vector<16x768xf32>
    %42 = arith.addf %39, %41 : vector<16x768xf32>
    %cst_27 = arith.constant 0.000000e+00 : f32
    %43 = vector.broadcast %cst_27 : f32 to vector<16x768xf32>
    %44 = arith.maximumf %42, %43 : vector<16x768xf32>
    %45 = arith.truncf %44 : vector<16x768xf32> to vector<16x768xbf16>
    %c0_28 = arith.constant 0 : index
    %c0_29 = arith.constant 0 : index
    %46 = vector.load %arg11[%c0_28, %c0_29] : memref<768x768xbf16, #tpu.memory_space<vmem>>, vector<768x768xbf16>
    %cst_30 = arith.constant dense<0.000000e+00> : vector<16x768xf32>
    %47 = tpu.matmul %45, %46, %cst_30 {dimension_numbers = #tpu.dot_dimension_numbers<[1], [0], [0], [1], [0, 0, 1, 1], [], []>} : vector<16x768xbf16>, vector<768x768xbf16>, vector<16x768xf32> -> vector<16x768xf32>
    %c0_31 = arith.constant 0 : index
    %c0_32 = arith.constant 0 : index
    %48 = vector.load %arg12[%c0_31, %c0_32] : memref<1x768xf32, #tpu.memory_space<vmem>>, vector<1x768xf32>
    %49 = vector.broadcast %48 : vector<1x768xf32> to vector<16x768xf32>
    %50 = arith.addf %47, %49 : vector<16x768xf32>
    %cst_33 = arith.constant 0.000000e+00 : f32
    %51 = vector.broadcast %cst_33 : f32 to vector<16x768xf32>
    %52 = arith.maximumf %50, %51 : vector<16x768xf32>
    %53 = arith.truncf %52 : vector<16x768xf32> to vector<16x768xbf16>
    %c0_34 = arith.constant 0 : index
    %c0_35 = arith.constant 0 : index
    %54 = vector.load %arg13[%c0_34, %c0_35] : memref<768x128xbf16, #tpu.memory_space<vmem>>, vector<768x128xbf16>
    %cst_36 = arith.constant dense<0.000000e+00> : vector<16x128xf32>
    %55 = tpu.matmul %53, %54, %cst_36 {dimension_numbers = #tpu.dot_dimension_numbers<[1], [0], [0], [1], [0, 0, 1, 1], [], []>} : vector<16x768xbf16>, vector<768x128xbf16>, vector<16x128xf32> -> vector<16x128xf32>
    %c0_37 = arith.constant 0 : index
    %c0_38 = arith.constant 0 : index
    %56 = vector.load %arg14[%c0_37, %c0_38] : memref<1x128xf32, #tpu.memory_space<vmem>>, vector<1x128xf32>
    %57 = vector.broadcast %56 : vector<1x128xf32> to vector<16x128xf32>
    %58 = arith.addf %55, %57 : vector<16x128xf32>
    %59 = math.tanh %58 : vector<16x128xf32>
    %cst_39 = arith.constant 1.000000e+00 : f32
    %60 = vector.broadcast %cst_39 : f32 to vector<16x128xf32>
    %61 = arith.mulf %60, %59 : vector<16x128xf32>
    %c0_40 = arith.constant 0 : index
    %c0_41 = arith.constant 0 : index
    %62 = vector.load %arg15[%c0_40, %c0_41] : memref<16x384xf32, #tpu.memory_space<vmem>>, vector<16x128xf32>
    tpu.vector_store %arg15[%c0_40, %c0_41], %61 {strides = array<i32>} : memref<16x384xf32, #tpu.memory_space<vmem>>, vector<16x128xf32>,
    %c0_42 = arith.constant 0 : index
    %c128 = arith.constant 128 : index
    %63 = vector.load %arg15[%c0_42, %c128] : memref<16x384xf32, #tpu.memory_space<vmem>>, vector<16x128xf32>
    tpu.vector_store %arg15[%c0_42, %c128], %25 {strides = array<i32>} : memref<16x384xf32, #tpu.memory_space<vmem>>, vector<16x128xf32>,
    %c0_43 = arith.constant 0 : index
    %c256 = arith.constant 256 : index
    %64 = vector.load %arg15[%c0_43, %c256] : memref<16x384xf32, #tpu.memory_space<vmem>>, vector<16x128xf32>
    tpu.vector_store %arg15[%c0_43, %c256], %31 {strides = array<i32>} : memref<16x384xf32, #tpu.memory_space<vmem>>, vector<16x128xf32>,
    return
  }
  func.func @transform_0(%arg0: i32) -> (i32, i32) {
    %c0_i32 = arith.constant 0 : i32
    %c0_i32_0 = arith.constant 0 : i32
    return %arg0, %c0_i32 : i32, i32
  }
  func.func @transform_1(%arg0: i32) -> (i32, i32) {
    %c0_i32 = arith.constant 0 : i32
    %c0_i32_0 = arith.constant 0 : i32
    %c0_i32_1 = arith.constant 0 : i32
    return %c0_i32, %c0_i32_0 : i32, i32
  }
  func.func @transform_2(%arg0: i32) -> (i32, i32) {
    %c0_i32 = arith.constant 0 : i32
    %c0_i32_0 = arith.constant 0 : i32
    %c0_i32_1 = arith.constant 0 : i32
    return %c0_i32, %c0_i32_0 : i32, i32
  }
  func.func @transform_3(%arg0: i32) -> (i32, i32) {
    %c0_i32 = arith.constant 0 : i32
    %c0_i32_0 = arith.constant 0 : i32
    %c0_i32_1 = arith.constant 0 : i32
    return %c0_i32, %c0_i32_0 : i32, i32
  }
  func.func @transform_4(%arg0: i32) -> (i32, i32) {
    %c0_i32 = arith.constant 0 : i32
    %c0_i32_0 = arith.constant 0 : i32
    %c0_i32_1 = arith.constant 0 : i32
    return %c0_i32, %c0_i32_0 : i32, i32
  }
  func.func @transform_5(%arg0: i32) -> (i32, i32) {
    %c0_i32 = arith.constant 0 : i32
    %c0_i32_0 = arith.constant 0 : i32
    %c0_i32_1 = arith.constant 0 : i32
    return %c0_i32, %c0_i32_0 : i32, i32
  }
  func.func @transform_6(%arg0: i32) -> (i32, i32) {
    %c0_i32 = arith.constant 0 : i32
    %c0_i32_0 = arith.constant 0 : i32
    %c0_i32_1 = arith.constant 0 : i32
    return %c0_i32, %c0_i32_0 : i32, i32
  }
  func.func @transform_7(%arg0: i32) -> (i32, i32) {
    %c0_i32 = arith.constant 0 : i32
    %c0_i32_0 = arith.constant 0 : i32
    %c0_i32_1 = arith.constant 0 : i32
    return %c0_i32, %c0_i32_0 : i32, i32
  }
  func.func @transform_8(%arg0: i32) -> (i32, i32) {
    %c0_i32 = arith.constant 0 : i32
    %c0_i32_0 = arith.constant 0 : i32
    %c0_i32_1 = arith.constant 0 : i32
    return %c0_i32, %c0_i32_0 : i32, i32
  }
  func.func @transform_9(%arg0: i32) -> (i32, i32) {
    %c0_i32 = arith.constant 0 : i32
    %c0_i32_0 = arith.constant 0 : i32
    %c0_i32_1 = arith.constant 0 : i32
    return %c0_i32, %c0_i32_0 : i32, i32
  }
  func.func @transform_10(%arg0: i32) -> (i32, i32) {
    %c0_i32 = arith.constant 0 : i32
    %c0_i32_0 = arith.constant 0 : i32
    %c0_i32_1 = arith.constant 0 : i32
    return %c0_i32, %c0_i32_0 : i32, i32
  }
  func.func @transform_11(%arg0: i32) -> (i32, i32) {
    %c0_i32 = arith.constant 0 : i32
    %c0_i32_0 = arith.constant 0 : i32
    %c0_i32_1 = arith.constant 0 : i32
    return %c0_i32, %c0_i32_0 : i32, i32
  }
  func.func @transform_12(%arg0: i32) -> (i32, i32) {
    %c0_i32 = arith.constant 0 : i32
    %c0_i32_0 = arith.constant 0 : i32
    %c0_i32_1 = arith.constant 0 : i32
    return %c0_i32, %c0_i32_0 : i32, i32
  }
  func.func @transform_13(%arg0: i32) -> (i32, i32) {
    %c0_i32 = arith.constant 0 : i32
    %c0_i32_0 = arith.constant 0 : i32
    %c0_i32_1 = arith.constant 0 : i32
    return %c0_i32, %c0_i32_0 : i32, i32
  }
  func.func @transform_14(%arg0: i32) -> (i32, i32) {
    %c0_i32 = arith.constant 0 : i32
    %c0_i32_0 = arith.constant 0 : i32
    return %arg0, %c0_i32 : i32, i32
  }
}

</mosaic_0001>

<bundles_post_ra>
// kernel: tpu_custom_call.1
= control target key start
LH: loop header
LB: loop body
LE: loop exit
PB: predicated region body
PF: predicated region fallthrough
CT: control target
= control target key end

     0   :  { %19 = vsyncpa [#allocation3], 0  ;;  %s13755_s0 = inlined_call_operand.hbm [shape: f32[16,384], index: 0, kind: input, shape index: {}]   ;;  %s13756_s1 = inlined_call_operand.hbm [shape: bf16[384,768], index: 1, kind: input, shape index: {}]   ;;  %s13757_s2 = inlined_call_operand.hbm [shape: f32[1,768], index: 2, kind: input, shape index: {}]   ;;  %s13758_s3 = inlined_call_operand.hbm [shape: bf16[768,768], index: 3, kind: input, shape index: {}]   ;;  %s13759_s4 = inlined_call_operand.hbm [shape: f32[1,768], index: 4, kind: input, shape index: {}]   ;;  %s13760_s5 = inlined_call_operand.hbm [shape: bf16[768,256], index: 5, kind: input, shape index: {}]   ;;  %s13761_s6 = inlined_call_operand.hbm [shape: f32[1,256], index: 6, kind: input, shape index: {}]   ;;  %s13762_s7 = inlined_call_operand.hbm [shape: bf16[128,768], index: 7, kind: input, shape index: {}]   ;;  %s13763_s8 = inlined_call_operand.hbm [shape: bf16[128,768], index: 8, kind: input, shape index: {}]   ;;  %s13764_s9 = inlined_call_operand.hbm [shape: f32[1,768], index: 9, kind: input, shape index: {}]   ;;  %s13765_s10 = inlined_call_operand.hbm [shape: bf16[768,768], index: 10, kind: input, shape index: {}]   ;;  %s13766_s11 = inlined_call_operand.hbm [shape: f32[1,768], index: 11, kind: input, shape index: {}]   ;;  %s13767_s12 = inlined_call_operand.hbm [shape: bf16[768,128], index: 12, kind: input, shape index: {}]   ;;  %s13768_s13 = inlined_call_operand.hbm [shape: f32[1,128], index: 13, kind: input, shape index: {}]   ;;  %s13769_s14 = inlined_call_operand.hbm [shape: f32[16,384], index: 14, kind: output, shape index: {}]  }
   0x1   :  { %20 = vsyncpa [#allocation6], 0 }
   0x2   :  { %21 = vsyncpa [#allocation9], 0 }
   0x3   :  { %22 = vsyncpa [#allocation12], 0 }
   0x4   :  { %23 = vsyncpa [#allocation15], 0 }
   0x5   :  { %24 = vsyncpa [#allocation18], 0 }
   0x6   :  { %25 = vsyncpa [#allocation21], 0 }
   0x7   :  { %26 = vsyncpa [#allocation24], 0 }
   0x8   :  { %27 = vsyncpa [#allocation4], 0  ;;  %s45_s15 = sshll.u32 %s13756_s1, 4  ;;  %s13223_s16 = smov [#allocation5]   ;;  %s46_s15 = int_to_ptr.hbm [resolvable:$true] %s45_s15 }
   0x9   :  { %s47_s17 = sshll.u32 %s13223_s16, 4  ;;  %s69_s20 = sshll.u32 %s13758_s3, 4  ;;  %s48_s17 = int_to_ptr.vmem [resolvable:$true] %s47_s17  ;;  %s70_s20 = int_to_ptr.hbm [resolvable:$true] %s69_s20 }
   0xa   :  { %s13224_s21 = smov 384   ;;  %s13225_s22 = smov 24  }
   0xb   :  { %53 = dma.hbm_to_vmem [thread:$0]  %s46_s15, 18432, %s48_s17, [#allocation6], %s13224_s21, %s13224_s21, %s13225_s22  }
   0xc   :  { %s13226_s23 = smov [#allocation8]   ;;  %s93_s1 = sshll.u32 %s13760_s5, 4  ;;  %s94_s1 = int_to_ptr.hbm [resolvable:$true] %s93_s1 }
   0xd   :  { %s71_s24 = sshll.u32 %s13226_s23, 4  ;;  %s13227_s3 = smov [#allocation11]   ;;  %s72_s24 = int_to_ptr.vmem [resolvable:$true] %s71_s24 }
   0xe   :  { %77 = dma.hbm_to_vmem [thread:$0]  %s70_s20, 36864, %s72_s24, [#allocation9], %s13224_s21, %s13224_s21, %s13225_s22  }
   0xf   :  { %s95_s27 = sshll.u32 %s13227_s3, 4  ;;  %s117_s30 = sshll.u32 %s13762_s7, 4  ;;  %s96_s27 = int_to_ptr.vmem [resolvable:$true] %s95_s27  ;;  %s118_s30 = int_to_ptr.hbm [resolvable:$true] %s117_s30 }
  0x10   :  { %s13228_s15 = smov 128   ;;  %s13229_s16 = smov 8  }
  0x11   :  { %101 = dma.hbm_to_vmem [thread:$0]  %s94_s1, 12288, %s96_s27, [#allocation12], %s13228_s15, %s13228_s15, %s13229_s16  }
  0x12   :  { %s13230_s17 = smov [#allocation14]   ;;  %s144_s23 = sshll.u32 %s13764_s9, 4  ;;  %s145_s23 = int_to_ptr.hbm [resolvable:$true] %s144_s23 }
  0x13   :  { %s119_s18 = sshll.u32 %s13230_s17, 4  ;;  %s168_s7 = sshll.u32 %s13766_s11, 4  ;;  %s120_s18 = int_to_ptr.vmem [resolvable:$true] %s119_s18  ;;  %s169_s7 = int_to_ptr.hbm [resolvable:$true] %s168_s7 }
  0x14   :  { %125 = dma.hbm_to_vmem [thread:$0]  %s118_s30, 6144, %s120_s18, [#allocation15], %s13224_s21, %s13224_s21, %s13225_s22  }
  0x15   :  { %s13231_s25 = smov [#allocation17]   ;;  %s13232_s1 = smov [#allocation20]  }
  0x16   :  { %s146_s26 = sshll.u32 %s13231_s25, 4  ;;  %s170_s3 = sshll.u32 %s13232_s1, 4  ;;  %s147_s26 = int_to_ptr.vmem [resolvable:$true] %s146_s26  ;;  %s171_s3 = int_to_ptr.vmem [resolvable:$true] %s170_s3 }
  0x17   :  { %149 = dma.hbm_to_vmem [thread:$0]  %s145_s23, 96, %s147_s26, [#allocation18]  }
  0x18   :  { %s32_s9 = sshll.u32 %s13755_s0, 4  ;;  %s59_s15 = sshll.u32 %s13757_s2, 4  ;;  %s33_s9 = int_to_ptr.hbm [resolvable:$true] %s32_s9  ;;  %s60_s15 = int_to_ptr.hbm [resolvable:$true] %s59_s15 }
  0x19   :  { %173 = dma.hbm_to_vmem [thread:$0]  %s169_s7, 96, %s171_s3, [#allocation21]  }
  0x1a   :  { %s13233_s16 = smov [#allocation2]   ;;  %s13234_s17 = smov [#allocation7]  }
  0x1b   :  { %s34_s11 = sshll.u32 %s13233_s16, 4  ;;  %s61_s18 = sshll.u32 %s13234_s17, 4  ;;  %s35_s11 = int_to_ptr.vmem [resolvable:$true] %s34_s11  ;;  %s62_s18 = int_to_ptr.vmem [resolvable:$true] %s61_s18 }
  0x1c   :  { %40 = dma.hbm_to_vmem [thread:$0]  %s33_s9, 768, %s35_s11, [#allocation3], %s13224_s21, %s13224_s21, %s13225_s22  }
  0x1d   :  { %s83_s0 = sshll.u32 %s13759_s4, 4  ;;  %s107_s2 = sshll.u32 %s13761_s6, 4  ;;  %s84_s0 = int_to_ptr.hbm [resolvable:$true] %s83_s0  ;;  %s108_s2 = int_to_ptr.hbm [resolvable:$true] %s107_s2 }
  0x1e   :  { %64 = dma.hbm_to_vmem [thread:$0]  %s60_s15, 96, %s62_s18, [#allocation6]  }
  0x1f   :  { %s13235_s24 = smov [#allocation10]   ;;  %s13236_s25 = smov [#allocation13]  }
  0x20   :  { %s85_s7 = sshll.u32 %s13235_s24, 4  ;;  %s109_s26 = sshll.u32 %s13236_s25, 4  ;;  %s86_s7 = int_to_ptr.vmem [resolvable:$true] %s85_s7  ;;  %s110_s26 = int_to_ptr.vmem [resolvable:$true] %s109_s26 }
  0x21   :  { %88 = dma.hbm_to_vmem [thread:$0]  %s84_s0, 96, %s86_s7, [#allocation9]  }
  0x22   :  { %s130_s27 = sshll.u32 %s13763_s8, 4  ;;  %s154_s9 = sshll.u32 %s13765_s10, 4  ;;  %s131_s27 = int_to_ptr.hbm [resolvable:$true] %s130_s27  ;;  %s155_s9 = int_to_ptr.hbm [resolvable:$true] %s154_s9 }
  0x23   :  { %112 = dma.hbm_to_vmem [thread:$0]  %s108_s2, 32, %s110_s26, [#allocation12]  }
  0x24   :  { %s13237_s29 = smov [#allocation16]   ;;  %s13238_s30 = smov [#allocation19]  }
  0x25   :  { %s132_s6 = sshll.u32 %s13237_s29, 4  ;;  %s156_s15 = sshll.u32 %s13238_s30, 4  ;;  %s133_s6 = int_to_ptr.vmem [resolvable:$true] %s132_s6  ;;  %s157_s15 = int_to_ptr.vmem [resolvable:$true] %s156_s15 }
  0x26   :  { %138 = dma.hbm_to_vmem [thread:$0]  %s131_s27, 6144, %s133_s6, [#allocation15], %s13224_s21, %s13224_s21, %s13225_s22  }
  0x27   :  { %s178_s8 = sshll.u32 %s13767_s12, 4  ;;  %s13239_s10 = smov [#allocation22]   ;;  %s179_s8 = int_to_ptr.hbm [resolvable:$true] %s178_s8 }
  0x28   :  { %162 = dma.hbm_to_vmem [thread:$0]  %s155_s9, 36864, %s157_s15, [#allocation18], %s13224_s21, %s13224_s21, %s13225_s22  }
  0x29   :  { %s180_s17 = sshll.u32 %s13239_s10, 4  ;;  %s192_s19 = sshll.u32 %s13768_s13, 4  ;;  %s181_s17 = int_to_ptr.vmem [resolvable:$true] %s180_s17  ;;  %s193_s19 = int_to_ptr.hbm [resolvable:$true] %s192_s19 }
  0x2a   :  { %s13240_s0 = smov 64   ;;  %s13241_s23 = smov 4  }
  0x2b   :  { %186 = dma.hbm_to_vmem [thread:$0]  %s179_s8, 6144, %s181_s17, [#allocation21], %s13240_s0, %s13240_s0, %s13241_s23  }
  0x2c   :  { %s13242_s20 = smov [#allocation23]  }
  0x2d   :  { %s194_s2 = sshll.u32 %s13242_s20, 4  ;;  %s195_s2 = int_to_ptr.vmem [resolvable:$true] %s194_s2 }
  0x2e   :  { %197 = dma.hbm_to_vmem [thread:$0]  %s193_s19, 16, %s195_s2, [#allocation24]  }
  0x2f   :  { %13205 = dma.done.wait [#allocation3], 768  }
  0x30   :  { %13206 = vsyncadd [#allocation3], 4294966528 }
  0x31   :  { %13207 = dma.done.wait [#allocation6], 18528  }
  0x32   :  { %13208 = vsyncadd [#allocation6], 4294948768 }
  0x33   :  { %13209 = dma.done.wait [#allocation9], 36960  }
  0x34   :  { %13210 = vsyncadd [#allocation9], 4294930336 }
  0x35   :  { %13211 = dma.done.wait [#allocation12], 12320  }
  0x36   :  { %13212 = vsyncadd [#allocation12], 4294954976 }
  0x37   :  { %13213 = dma.done.wait [#allocation15], 12288  }
  0x38   :  { %13214 = vsyncadd [#allocation15], 4294955008 }
  0x39   :  { %13215 = dma.done.wait [#allocation18], 36960  }
  0x3a   :  { %13216 = vsyncadd [#allocation18], 4294930336 }
  0x3b   :  { %13217 = dma.done.wait [#allocation21], 6240  }
  0x3c   :  { %13218 = vsyncadd [#allocation21], 4294961056 }
  0x3d   :  { %13219 = dma.done.wait [#allocation24], 16  }
  0x3e   :  { %13220 = vsyncadd [#allocation24], 4294967280  ;;  %v8183_v0 = vld [vmem:[#allocation5 + $0x150] sm:$0xf]  ;;  %v11898_v1 = vld [vmem:[#allocation5 + $0x164] sm:$0xf0] }
  0x3f   :  { %v8375_v2 = vld [vmem:[#allocation5 + $0x2d0] sm:$0xf]  ;;  %v8184_v3 = vor.u32 %v11898_v1, %v8183_v0  ;;  %v11946_v4 = vld [vmem:[#allocation5 + $0x2e4] sm:$0xf0]  ;;  %v11895_v9 = vld [vmem:[#allocation5 + $0x154] sm:$0xf] }
  0x40   :  { %v8567_v5 = vld [vmem:[#allocation5 + $0x450] sm:$0xf]  ;;  %v11994_v6 = vld [vmem:[#allocation5 + $0x464] sm:$0xf0]  ;;  %v8376_v7 = vor.u32 %v11946_v4, %v8375_v2  ;;  %v8185_v10 = vld [vmem:[#allocation5 + $0x168] sm:$0xf0] }
  0x41   :  { %v8568_v8 = vor.u32 %v11994_v6, %v8567_v5  ;;  %v8159_v11 = vld [vmem:[#allocation5 + $0x120] sm:$0xf]  ;;  %1158 = vmatpush.bf16.msra.mxu0 %v8184_v3  ;;  %v8188_v12 = vor.u32 %v11895_v9, %v8185_v10  ;;  %v11892_v13 = vld [vmem:[#allocation5 + $0x134] sm:$0xf0]  ;;  %v11889_v20 = vld [vmem:[#allocation5 + $0x124] sm:$0xf] }
  0x42   :  { %v8351_v14 = vld [vmem:[#allocation5 + $0x2a0] sm:$0xf]  ;;  %v11940_v15 = vld [vmem:[#allocation5 + $0x2b4] sm:$0xf0]  ;;  %1172 = vmatpush.bf16.msra.mxu1 %v8376_v7  ;;  %v8160_v16 = vor.u32 %v11892_v13, %v8159_v11  ;;  %v8161_v22 = vld [vmem:[#allocation5 + $0x138] sm:$0xf0] }
  0x43   :  { %1186 = vmatpush.bf16.msra.mxu2 %v8568_v8  ;;  %v8352_v17 = vor.u32 %v11940_v15, %v8351_v14  ;;  %v8543_v18 = vld [vmem:[#allocation5 + $0x420] sm:$0xf]  ;;  %v11988_v19 = vld [vmem:[#allocation5 + $0x434] sm:$0xf0]  ;;  %1200 = vmatpush.bf16.msra.mxu3 %v8188_v12  ;;  %v8135_v23 = vld [vmem:[#allocation5 + $0xf0] sm:$0xf]  ;;  %v8164_v25 = vor.u32 %v11889_v20, %v8161_v22 }
  0x44   :  { %v8544_v21 = vor.u32 %v11988_v19, %v8543_v18  ;;  %v11886_v24 = vld [vmem:[#allocation5 + $0x104] sm:$0xf0]  ;;  %v8327_v26 = vld [vmem:[#allocation5 + $0x270] sm:$0xf]  ;;  %v11883_v31 = vld [vmem:[#allocation5 + $0xf4] sm:$0xf] }
  0x45   :  { %v11934_v27 = vld [vmem:[#allocation5 + $0x284] sm:$0xf0]  ;;  %v8519_v28 = vld [vmem:[#allocation5 + $0x3f0] sm:$0xf]  ;;  %1159 = vmatpush.bf16.msra.mxu0 %v8160_v16  ;;  %v8136_v29 = vor.u32 %v11886_v24, %v8135_v23  ;;  %v8137_v32 = vld [vmem:[#allocation5 + $0x108] sm:$0xf0] }
  0x46   :  { %v11982_v30 = vld [vmem:[#allocation5 + $0x404] sm:$0xf0]  ;;  %1173 = vmatpush.bf16.msra.mxu1 %v8352_v17  ;;  %v8328_v33 = vor.u32 %v11934_v27, %v8327_v26  ;;  %v8111_v35 = vld [vmem:[#allocation5 + $0xc0] sm:$0xf]  ;;  %v11880_v36 = vld [vmem:[#allocation5 + $0xd4] sm:$0xf0]  ;;  %v8140_v38 = vor.u32 %v11883_v31, %v8137_v32 }
  0x47   :  { %1187 = vmatpush.bf16.msra.mxu2 %v8544_v21  ;;  %v8520_v34 = vor.u32 %v11982_v30, %v8519_v28  ;;  %v8303_v37 = vld [vmem:[#allocation5 + $0x240] sm:$0xf]  ;;  %1201 = vmatpush.bf16.msra.mxu3 %v8164_v25  ;;  %v11928_v39 = vld [vmem:[#allocation5 + $0x254] sm:$0xf0]  ;;  %v11877_v42 = vld [vmem:[#allocation5 + $0xc4] sm:$0xf]  ;;  %v8112_v44 = vor.u32 %v11880_v36, %v8111_v35 }
  0x48   :  { %v8495_v40 = vld [vmem:[#allocation5 + $0x3c0] sm:$0xf]  ;;  %v11976_v41 = vld [vmem:[#allocation5 + $0x3d4] sm:$0xf0]  ;;  %v8113_v43 = vld [vmem:[#allocation5 + $0xd8] sm:$0xf0]  ;;  %v8304_v45 = vor.u32 %v11928_v39, %v8303_v37 }
  0x49   :  { %1160 = vmatpush.bf16.msra.mxu0 %v8136_v29  ;;  %v8496_v46 = vor.u32 %v11976_v41, %v8495_v40  ;;  %v8087_v47 = vld [vmem:[#allocation5 + $0x90] sm:$0xf]  ;;  %v11874_v48 = vld [vmem:[#allocation5 + $0xa4] sm:$0xf0]  ;;  %v8116_v50 = vor.u32 %v11877_v42, %v8113_v43  ;;  %v11871_v54 = vld [vmem:[#allocation5 + $0x94] sm:$0xf] }
  0x4a   :  { %1174 = vmatpush.bf16.msra.mxu1 %v8328_v33  ;;  %v8279_v49 = vld [vmem:[#allocation5 + $0x210] sm:$0xf]  ;;  %v11922_v51 = vld [vmem:[#allocation5 + $0x224] sm:$0xf0]  ;;  %v8089_v55 = vld [vmem:[#allocation5 + $0xa8] sm:$0xf0]  ;;  %v8088_v56 = vor.u32 %v11874_v48, %v8087_v47 }
  0x4b   :  { %1188 = vmatpush.bf16.msra.mxu2 %v8520_v34  ;;  %1202 = vmatpush.bf16.msra.mxu3 %v8140_v38  ;;  %v8471_v52 = vld [vmem:[#allocation5 + $0x390] sm:$0xf]  ;;  %v11970_v53 = vld [vmem:[#allocation5 + $0x3a4] sm:$0xf0]  ;;  %v8280_v57 = vor.u32 %v11922_v51, %v8279_v49  ;;  %v8063_v59 = vld [vmem:[#allocation5 + $0x60] sm:$0xf]  ;;  %v8092_v62 = vor.u32 %v11871_v54, %v8089_v55 }
  0x4c   :  { %v8472_v58 = vor.u32 %v11970_v53, %v8471_v52  ;;  %v11868_v60 = vld [vmem:[#allocation5 + $0x74] sm:$0xf0]  ;;  %v8255_v61 = vld [vmem:[#allocation5 + $0x1e0] sm:$0xf]  ;;  %v11865_v2 = vld [vmem:[#allocation5 + $0x64] sm:$0xf] }
  0x4d   :  { %1161 = vmatpush.bf16.msra.mxu0 %v8112_v44  ;;  %v11916_v63 = vld [vmem:[#allocation5 + $0x1f4] sm:$0xf0]  ;;  %v8447_v0 = vld [vmem:[#allocation5 + $0x360] sm:$0xf]  ;;  %v8065_v3 = vld [vmem:[#allocation5 + $0x78] sm:$0xf0]  ;;  %v8064_v4 = vor.u32 %v11868_v60, %v8063_v59 }
  0x4e   :  { %1175 = vmatpush.bf16.msra.mxu1 %v8304_v45  ;;  %v11964_v1 = vld [vmem:[#allocation5 + $0x374] sm:$0xf0]  ;;  %v8256_v5 = vor.u32 %v11916_v63, %v8255_v61  ;;  %v8039_v7 = vld [vmem:[#allocation5 + $0x30] sm:$0xf]  ;;  %v11862_v8 = vld [vmem:[#allocation5 + $0x44] sm:$0xf0]  ;;  %v8068_v10 = vor.u32 %v11865_v2, %v8065_v3 }
  0x4f   :  { %1189 = vmatpush.bf16.msra.mxu2 %v8496_v46  ;;  %1203 = vmatpush.bf16.msra.mxu3 %v8116_v50  ;;  %v8448_v6 = vor.u32 %v11964_v1, %v8447_v0  ;;  %v8231_v9 = vld [vmem:[#allocation5 + $0x1b0] sm:$0xf]  ;;  %v11910_v11 = vld [vmem:[#allocation5 + $0x1c4] sm:$0xf0]  ;;  %v11859_v14 = vld [vmem:[#allocation5 + $0x34] sm:$0xf]  ;;  %v8040_v16 = vor.u32 %v11862_v8, %v8039_v7 }
  0x50   :  { %v8423_v12 = vld [vmem:[#allocation5 + $0x330] sm:$0xf]  ;;  %v11958_v13 = vld [vmem:[#allocation5 + $0x344] sm:$0xf0]  ;;  %v8041_v15 = vld [vmem:[#allocation5 + $0x48] sm:$0xf0]  ;;  %v8232_v19 = vor.u32 %v11910_v11, %v8231_v9 }
  0x51   :  { %1162 = vmatpush.bf16.msra.mxu0 %v8088_v56  ;;  %v8015_v17 = vld [vmem:[#allocation5] sm:$0xf]  ;;  %v11856_v18 = vld [vmem:[#allocation5 + $0x14] sm:$0xf0]  ;;  %v8424_v20 = vor.u32 %v11958_v13, %v8423_v12  ;;  %v8044_v24 = vor.u32 %v11859_v14, %v8041_v15  ;;  %v11943_v26 = vld [vmem:[#allocation5 + $0x2d4] sm:$0xf] }
  0x52   :  { %1176 = vmatpush.bf16.msra.mxu1 %v8280_v57  ;;  %v8207_v21 = vld [vmem:[#allocation5 + $0x180] sm:$0xf]  ;;  %v11904_v22 = vld [vmem:[#allocation5 + $0x194] sm:$0xf0]  ;;  %v8377_v27 = vld [vmem:[#allocation5 + $0x2e8] sm:$0xf0]  ;;  %v8016_v31 = vor.u32 %v11856_v18, %v8015_v17 }
  0x53   :  { %1190 = vmatpush.bf16.msra.mxu2 %v8472_v58  ;;  %1204 = vmatpush.bf16.msra.mxu3 %v8092_v62  ;;  %v8399_v23 = vld [vmem:[#allocation5 + $0x300] sm:$0xf]  ;;  %v11952_v25 = vld [vmem:[#allocation5 + $0x314] sm:$0xf0]  ;;  %v11991_v28 = vld [vmem:[#allocation5 + $0x454] sm:$0xf]  ;;  %v8208_v35 = vor.u32 %v11904_v22, %v8207_v21  ;;  %v8380_v40 = vor.u32 %v11943_v26, %v8377_v27 }
  0x54   :  { %v8569_v29 = vld [vmem:[#allocation5 + $0x468] sm:$0xf0]  ;;  %v8191_v30 = vld [vmem:[#allocation5 + $0x158] sm:$0xf]  ;;  %v11899_v32 = vld [vmem:[#allocation5 + $0x16c] sm:$0xf0]  ;;  %v8400_v36 = vor.u32 %v11952_v25, %v8399_v23 }
  0x55   :  { %1163 = vmatpush.bf16.msra.mxu0 %v8064_v4  ;;  %v11853_v33 = vld [vmem:[#allocation5 + $0x4] sm:$0xf]  ;;  %v8017_v34 = vld [vmem:[#allocation5 + $0x18] sm:$0xf0]  ;;  %v8383_v37 = vld [vmem:[#allocation5 + $0x2d8] sm:$0xf]  ;;  %v8572_v41 = vor.u32 %v11991_v28, %v8569_v29  ;;  %v8192_v45 = vor.u32 %v11899_v32, %v8191_v30 }
  0x56   :  { %1177 = vmatpush.bf16.msra.mxu1 %v8256_v5  ;;  %v11947_v38 = vld [vmem:[#allocation5 + $0x2ec] sm:$0xf0]  ;;  %v11937_v39 = vld [vmem:[#allocation5 + $0x2a4] sm:$0xf]  ;;  %v8353_v42 = vld [vmem:[#allocation5 + $0x2b8] sm:$0xf0]  ;;  %v8020_v46 = vor.u32 %v11853_v33, %v8017_v34 }
  0x57   :  { %1191 = vmatpush.bf16.msra.mxu2 %v8448_v6  ;;  %1205 = vmatpush.bf16.msra.mxu3 %v8068_v10  ;;  %v256_v43 = vld [vmem:[#allocation2 + $0x10] sm:$0xff]  ;;  %v259_v44 = vld [vmem:[#allocation2 + $0x28] sm:$0xff]  ;;  %v8167_v49 = vld [vmem:[#allocation5 + $0x128] sm:$0xf]  ;;  %v8384_v52 = vor.u32 %v11947_v38, %v8383_v37  ;;  %v8356_v61 = vor.u32 %v11937_v39, %v8353_v42  ;;  %s13243_s12 = smov [#allocation25]   ;;  %s7993_s25 = sshll.u32 %s13769_s14, 4  ;;  %s7994_s25 = int_to_ptr.hbm [resolvable:$true] %s7993_s25 }
  0x58   :  { %v11985_v47 = vld [vmem:[#allocation5 + $0x424] sm:$0xf]  ;;  %v8545_v48 = vld [vmem:[#allocation5 + $0x438] sm:$0xf0]  ;;  %v261_v50 = vpack.c.bf16 %v256_v43, %v256_v43  ;;  %v263_v51 = vpack.c.bf16 %v259_v44, %v259_v44  ;;  %v11893_v53 = vld [vmem:[#allocation5 + $0x13c] sm:$0xf0] }
  0x59   :  { %1164 = vmatpush.bf16.msra.mxu0 %v8040_v16  ;;  %v8359_v54 = vld [vmem:[#allocation5 + $0x2a8] sm:$0xf]  ;;  %v11941_v55 = vld [vmem:[#allocation5 + $0x2bc] sm:$0xf0]  ;;  %v254_v58 = vld [vmem:[#allocation2] sm:$0xff]  ;;  %v8548_v62 = vor.u32 %v11985_v47, %v8545_v48  ;;  %v8168_v2 = vor.u32 %v11893_v53, %v8167_v49  ;;  %s7991_s13 = sshll.u32 %s13243_s12, 4  ;;  %s7992_s13 = int_to_ptr.vmem [resolvable:$true] %s7991_s13 }
  0x5a   :  { %1178 = vmatpush.bf16.msra.mxu1 %v8232_v19  ;;  %v428_v56 = vunpack.c.l.b16 %v261_v50  ;;  %v431_v57 = vunpack.c.l.b16 %v263_v51  ;;  %v255_v59 = vld [vmem:[#allocation2 + $0x8] sm:$0xff]  ;;  %v257_v60 = vld [vmem:[#allocation2 + $0x18] sm:$0xff]  ;;  %v11931_v63 = vld [vmem:[#allocation5 + $0x274] sm:$0xf]  ;;  %v8360_v8 = vor.u32 %v11941_v55, %v8359_v54 }
  0x5b   :  { %1192 = vmatpush.bf16.msra.mxu2 %v8424_v20  ;;  %1206 = vmatpush.bf16.msra.mxu3 %v8044_v24  ;;  %v258_v0 = vld [vmem:[#allocation2 + $0x20] sm:$0xff]  ;;  %v260_v1 = vpack.c.bf16 %v255_v59, %v254_v58  ;;  %v8329_v3 = vld [vmem:[#allocation5 + $0x288] sm:$0xf0]  ;;  %v8143_v9 = vld [vmem:[#allocation5 + $0xf8] sm:$0xf] }
  0x5c   :  { %v11979_v4 = vld [vmem:[#allocation5 + $0x3f4] sm:$0xf]  ;;  %v8521_v5 = vld [vmem:[#allocation5 + $0x408] sm:$0xf0]  ;;  %v13379_v6 = vpack.c.b16 %v431_v57, %v428_v56  ;;  %v262_v7 = vpack.c.bf16 %v258_v0, %v257_v60  ;;  %v11887_v10 = vld [vmem:[#allocation5 + $0x10c] sm:$0xf0]  ;;  %v8332_v17 = vor.u32 %v11931_v63, %v8329_v3 }
  0x5d   :  { %1165 = vmatpush.bf16.msra.mxu0 %v8016_v31  ;;  %v426_v11 = vunpack.c.l.b16 %v260_v1  ;;  %v427_v12 = vunpack.c.h.b16 %v260_v1  ;;  %v8335_v13 = vld [vmem:[#allocation5 + $0x278] sm:$0xf]  ;;  %v11935_v14 = vld [vmem:[#allocation5 + $0x28c] sm:$0xf0]  ;;  %v8524_v18 = vor.u32 %v11979_v4, %v8521_v5  ;;  %v11925_v19 = vld [vmem:[#allocation5 + $0x244] sm:$0xf]  ;;  %v8144_v20 = vor.u32 %v11887_v10, %v8143_v9 }
  0x5e   :  { %1179 = vmatpush.bf16.msra.mxu1 %v8208_v35  ;;  %v429_v15 = vunpack.c.l.b16 %v262_v7  ;;  %v430_v16 = vunpack.c.h.b16 %v262_v7  ;;  %v8305_v21 = vld [vmem:[#allocation5 + $0x258] sm:$0xf0]  ;;  %v11973_v22 = vld [vmem:[#allocation5 + $0x3c4] sm:$0xf]  ;;  %v8336_v26 = vor.u32 %v11935_v14, %v8335_v13  ;;  %v8119_v27 = vld [vmem:[#allocation5 + $0xc8] sm:$0xf] }
  0x5f   :  { %1193 = vmatpush.bf16.msra.mxu2 %v8400_v36  ;;  %1207 = vmatpush.bf16.msra.mxu3 %v8020_v46  ;;  %v8497_v23 = vld [vmem:[#allocation5 + $0x3d8] sm:$0xf0]  ;;  %v11881_v28 = vld [vmem:[#allocation5 + $0xdc] sm:$0xf0]  ;;  %v8311_v29 = vld [vmem:[#allocation5 + $0x248] sm:$0xf]  ;;  %v8308_v31 = vor.u32 %v11925_v19, %v8305_v21 }
  0x60   :  { %v13382_v24 = vpack.c.b16 %v429_v15, %v426_v11  ;;  %v13384_v25 = vpack.c.b16 %v430_v16, %v427_v12  ;;  %v11929_v30 = vld [vmem:[#allocation5 + $0x25c] sm:$0xf0]  ;;  %v8500_v32 = vor.u32 %v11973_v22, %v8497_v23  ;;  %v11919_v33 = vld [vmem:[#allocation5 + $0x214] sm:$0xf]  ;;  %v8120_v34 = vor.u32 %v11881_v28, %v8119_v27  ;;  %v8281_v35 = vld [vmem:[#allocation5 + $0x228] sm:$0xf0] }
  0x61   :  { %1214 = vmatpush.bf16.msrb.mxu0 %v8380_v40  ;;  %v11967_v36 = vld [vmem:[#allocation5 + $0x394] sm:$0xf]  ;;  %v8473_v37 = vld [vmem:[#allocation5 + $0x3a8] sm:$0xf0]  ;;  %v8312_v38 = vor.u32 %v11929_v30, %v8311_v29  ;;  %v8095_v39 = vld [vmem:[#allocation5 + $0x98] sm:$0xf]  ;;  %v8284_v43 = vor.u32 %v11919_v33, %v8281_v35 }
  0x62   :  { %1228 = vmatpush.bf16.msrb.mxu1 %v8572_v41  ;;  %1194 = vmatmul.bf16.vlgmr.msra.gmra.mxu2 %v13379_v6  ;;  %v11875_v40 = vld [vmem:[#allocation5 + $0xac] sm:$0xf0]  ;;  %v8287_v41 = vld [vmem:[#allocation5 + $0x218] sm:$0xf]  ;;  %v8476_v44 = vor.u32 %v11967_v36, %v8473_v37  ;;  %v8257_v47 = vld [vmem:[#allocation5 + $0x1f8] sm:$0xf0] }
  0x63   :  { %1242 = vmatpush.bf16.msrb.mxu2 %v8192_v45  ;;  %1256 = vmatpush.bf16.msrb.mxu3 %v8384_v52  ;;  %v11923_v42 = vld [vmem:[#allocation5 + $0x22c] sm:$0xf0]  ;;  %v11913_v45 = vld [vmem:[#allocation5 + $0x1e4] sm:$0xf]  ;;  %v8096_v46 = vor.u32 %v11875_v40, %v8095_v39  ;;  %v8449_v49 = vld [vmem:[#allocation5 + $0x378] sm:$0xf0] }
  0x64   :  { %1166 = vmatmul.bf16.vlgmr.msra.gmra.mxu0 %v13382_v24  ;;  %1180 = vmatmul.bf16.vlgmr.msra.gmra.mxu1 %v13384_v25  ;;  %v11961_v48 = vld [vmem:[#allocation5 + $0x364] sm:$0xf]  ;;  %v8288_v50 = vor.u32 %v11923_v42, %v8287_v41  ;;  %v8071_v51 = vld [vmem:[#allocation5 + $0x68] sm:$0xf]  ;;  %v11869_v52 = vld [vmem:[#allocation5 + $0x7c] sm:$0xf0]  ;;  %v8260_v55 = vor.u32 %v11913_v45, %v8257_v47 }
  0x65   :  { %1215 = vmatpush.bf16.msrb.mxu0 %v8356_v61  ;;  %1208 = vmatmul.bf16.vlgmr.msra.gmra.mxu3 %v13382_v24  ;;  %v8263_v53 = vld [vmem:[#allocation5 + $0x1e8] sm:$0xf]  ;;  %v11917_v54 = vld [vmem:[#allocation5 + $0x1fc] sm:$0xf0]  ;;  %v8452_v56 = vor.u32 %v11961_v48, %v8449_v49  ;;  %v11907_v57 = vld [vmem:[#allocation5 + $0x1b4] sm:$0xf]  ;;  %v8072_v58 = vor.u32 %v11869_v52, %v8071_v51 }
  0x66   :  { %1229 = vmatpush.bf16.msrb.mxu1 %v8548_v62  ;;  %v8233_v59 = vld [vmem:[#allocation5 + $0x1c8] sm:$0xf0]  ;;  %v11955_v60 = vld [vmem:[#allocation5 + $0x334] sm:$0xf]  ;;  %v8264_v62 = vor.u32 %v11917_v54, %v8263_v53  ;;  %v8047_v63 = vld [vmem:[#allocation5 + $0x38] sm:$0xf] }
  0x67   :  { %1243 = vmatpush.bf16.msrb.mxu2 %v8168_v2  ;;  %1257 = vmatpush.bf16.msrb.mxu3 %v8360_v8  ;;  %v8425_v61 = vld [vmem:[#allocation5 + $0x348] sm:$0xf0]  ;;  %v11863_v0 = vld [vmem:[#allocation5 + $0x4c] sm:$0xf0]  ;;  %v8239_v1 = vld [vmem:[#allocation5 + $0x1b8] sm:$0xf]  ;;  %v8236_v3 = vor.u32 %v11907_v57, %v8233_v59 }
  0x68   :  { %v11911_v2 = vld [vmem:[#allocation5 + $0x1cc] sm:$0xf0]  ;;  %v8428_v4 = vor.u32 %v11955_v60, %v8425_v61  ;;  %v11901_v5 = vld [vmem:[#allocation5 + $0x184] sm:$0xf]  ;;  %v8209_v7 = vld [vmem:[#allocation5 + $0x198] sm:$0xf0]  ;;  %v8048_v9 = vor.u32 %v11863_v0, %v8047_v63 }
  0x69   :  { %1216 = vmatpush.bf16.msrb.mxu0 %v8332_v17  ;;  %v11949_v8 = vld [vmem:[#allocation5 + $0x304] sm:$0xf]  ;;  %v8401_v10 = vld [vmem:[#allocation5 + $0x318] sm:$0xf0]  ;;  %v8023_v11 = vld [vmem:[#allocation5 + $0x8] sm:$0xf]  ;;  %v8240_v13 = vor.u32 %v11911_v2, %v8239_v1 }
  0x6a   :  { %1230 = vmatpush.bf16.msrb.mxu1 %v8524_v18  ;;  %v11857_v12 = vld [vmem:[#allocation5 + $0x1c] sm:$0xf0]  ;;  %v8575_v14 = vld [vmem:[#allocation5 + $0x458] sm:$0xf]  ;;  %v11995_v15 = vld [vmem:[#allocation5 + $0x46c] sm:$0xf0]  ;;  %v8404_v21 = vor.u32 %v11949_v8, %v8401_v10 }
  0x6b   :  { %1244 = vmatpush.bf16.msrb.mxu2 %v8144_v20  ;;  %1258 = vmatpush.bf16.msrb.mxu3 %v8336_v26  ;;  %v11896_v16 = vld [vmem:[#allocation5 + $0x15c] sm:$0xf]  ;;  %v8193_v17 = vld [vmem:[#allocation5 + $0x170] sm:$0xf0]  ;;  %v8212_v20 = vor.u32 %v11901_v5, %v8209_v7  ;;  %v8215_v22 = vld [vmem:[#allocation5 + $0x188] sm:$0xf]  ;;  %v8024_v26 = vor.u32 %v11857_v12, %v8023_v11  ;;  %v8576_v27 = vor.u32 %v11995_v15, %v8575_v14 }
  0x6c   :  { %v11944_v18 = vld [vmem:[#allocation5 + $0x2dc] sm:$0xf]  ;;  %v8385_v19 = vld [vmem:[#allocation5 + $0x2f0] sm:$0xf0]  ;;  %v11905_v23 = vld [vmem:[#allocation5 + $0x19c] sm:$0xf0]  ;;  %v8196_v30 = vor.u32 %v11896_v16, %v8193_v17 }
  0x6d   :  { %1217 = vmatpush.bf16.msrb.mxu0 %v8308_v31  ;;  %v11992_v28 = vld [vmem:[#allocation5 + $0x45c] sm:$0xf]  ;;  %v8577_v29 = vld [vmem:[#allocation5 + $0x470] sm:$0xf0]  ;;  %v8388_v31 = vor.u32 %v11944_v18, %v8385_v19  ;;  %v11989_v33 = vld [vmem:[#allocation5 + $0x43c] sm:$0xf0]  ;;  %v8216_v35 = vor.u32 %v11905_v23, %v8215_v22 }
  0x6e   :  { %1231 = vmatpush.bf16.msrb.mxu1 %v8500_v32  ;;  %v8551_v32 = vld [vmem:[#allocation5 + $0x428] sm:$0xf]  ;;  %v8169_v36 = vld [vmem:[#allocation5 + $0x140] sm:$0xf0]  ;;  %v11938_v37 = vld [vmem:[#allocation5 + $0x2ac] sm:$0xf]  ;;  %v8580_v39 = vor.u32 %v11992_v28, %v8577_v29 }
  0x6f   :  { %1245 = vmatpush.bf16.msrb.mxu2 %v8120_v34  ;;  %1259 = vmatpush.bf16.msrb.mxu3 %v8312_v38  ;;  %v11890_v34 = vld [vmem:[#allocation5 + $0x12c] sm:$0xf]  ;;  %v8361_v38 = vld [vmem:[#allocation5 + $0x2c0] sm:$0xf0]  ;;  %v8552_v40 = vor.u32 %v11989_v33, %v8551_v32  ;;  %v8527_v45 = vld [vmem:[#allocation5 + $0x3f8] sm:$0xf] }
  0x70   :  { %v11986_v41 = vld [vmem:[#allocation5 + $0x42c] sm:$0xf]  ;;  %v8553_v42 = vld [vmem:[#allocation5 + $0x440] sm:$0xf0]  ;;  %v11884_v47 = vld [vmem:[#allocation5 + $0xfc] sm:$0xf] }
  0x71   :  { %1218 = vmatpush.bf16.msrb.mxu0 %v8284_v43  ;;  %v8172_v43 = vor.u32 %v11890_v34, %v8169_v36  ;;  %v8145_v48 = vld [vmem:[#allocation5 + $0x110] sm:$0xf0]  ;;  %v11932_v49 = vld [vmem:[#allocation5 + $0x27c] sm:$0xf]  ;;  %v8556_v51 = vor.u32 %v11986_v41, %v8553_v42  ;;  %v8503_v57 = vld [vmem:[#allocation5 + $0x3c8] sm:$0xf] }
  0x72   :  { %1232 = vmatpush.bf16.msrb.mxu1 %v8476_v44  ;;  %v8364_v44 = vor.u32 %v11938_v37, %v8361_v38  ;;  %v11980_v53 = vld [vmem:[#allocation5 + $0x3fc] sm:$0xf]  ;;  %v8529_v54 = vld [vmem:[#allocation5 + $0x410] sm:$0xf0]  ;;  %v11878_v59 = vld [vmem:[#allocation5 + $0xcc] sm:$0xf] }
  0x73   :  { %1246 = vmatpush.bf16.msrb.mxu2 %v8096_v46  ;;  %1260 = vmatpush.bf16.msrb.mxu3 %v8288_v50  ;;  %v11983_v46 = vld [vmem:[#allocation5 + $0x40c] sm:$0xf0]  ;;  %v8337_v50 = vld [vmem:[#allocation5 + $0x290] sm:$0xf0]  ;;  %v8121_v60 = vld [vmem:[#allocation5 + $0xe0] sm:$0xf0]  ;;  %v8532_v63 = vor.u32 %v11980_v53, %v8529_v54 }
  0x74   :  { %v8528_v52 = vor.u32 %v11983_v46, %v8527_v45  ;;  %v11926_v61 = vld [vmem:[#allocation5 + $0x24c] sm:$0xf]  ;;  %v8505_v2 = vld [vmem:[#allocation5 + $0x3e0] sm:$0xf0]  ;;  %v8479_v5 = vld [vmem:[#allocation5 + $0x398] sm:$0xf] }
  0x75   :  { %1219 = vmatpush.bf16.msrb.mxu0 %v8260_v55  ;;  %v8148_v55 = vor.u32 %v11884_v47, %v8145_v48  ;;  %v11974_v1 = vld [vmem:[#allocation5 + $0x3cc] sm:$0xf]  ;;  %v11971_v7 = vld [vmem:[#allocation5 + $0x3ac] sm:$0xf0]  ;;  %v11872_v8 = vld [vmem:[#allocation5 + $0x9c] sm:$0xf] }
  0x76   :  { %1233 = vmatpush.bf16.msrb.mxu1 %v8452_v56  ;;  %v8340_v56 = vor.u32 %v11932_v49, %v8337_v50  ;;  %v11920_v10 = vld [vmem:[#allocation5 + $0x21c] sm:$0xf]  ;;  %v8289_v11 = vld [vmem:[#allocation5 + $0x230] sm:$0xf0]  ;;  %v8508_v12 = vor.u32 %v11974_v1, %v8505_v2  ;;  %v8455_v18 = vld [vmem:[#allocation5 + $0x368] sm:$0xf] }
  0x77   :  { %1247 = vmatpush.bf16.msrb.mxu2 %v8072_v58  ;;  %1261 = vmatpush.bf16.msrb.mxu3 %v8264_v62  ;;  %v11977_v58 = vld [vmem:[#allocation5 + $0x3dc] sm:$0xf0]  ;;  %v8313_v62 = vld [vmem:[#allocation5 + $0x260] sm:$0xf0]  ;;  %v11968_v14 = vld [vmem:[#allocation5 + $0x39c] sm:$0xf]  ;;  %v8292_v17 = vor.u32 %v11920_v10, %v8289_v11 }
  0x78   :  { %v8504_v0 = vor.u32 %v11977_v58, %v8503_v57  ;;  %v8481_v15 = vld [vmem:[#allocation5 + $0x3b0] sm:$0xf0]  ;;  %v11965_v19 = vld [vmem:[#allocation5 + $0x37c] sm:$0xf0]  ;;  %v11914_v22 = vld [vmem:[#allocation5 + $0x1ec] sm:$0xf] }
  0x79   :  { %1220 = vmatpush.bf16.msrb.mxu0 %v8236_v3  ;;  %v8124_v3 = vor.u32 %v11878_v59, %v8121_v60  ;;  %v8265_v23 = vld [vmem:[#allocation5 + $0x200] sm:$0xf0]  ;;  %v11962_v28 = vld [vmem:[#allocation5 + $0x36c] sm:$0xf]  ;;  %v11959_v33 = vld [vmem:[#allocation5 + $0x34c] sm:$0xf0] }
  0x7a   :  { %1234 = vmatpush.bf16.msrb.mxu1 %v8428_v4  ;;  %v8316_v4 = vor.u32 %v11926_v61, %v8313_v62  ;;  %v8457_v29 = vld [vmem:[#allocation5 + $0x380] sm:$0xf0]  ;;  %v8268_v32 = vor.u32 %v11914_v22, %v8265_v23  ;;  %v11860_v34 = vld [vmem:[#allocation5 + $0x3c] sm:$0xf]  ;;  %v8241_v37 = vld [vmem:[#allocation5 + $0x1d0] sm:$0xf0] }
  0x7b   :  { %1248 = vmatpush.bf16.msrb.mxu2 %v8048_v9  ;;  %1262 = vmatpush.bf16.msrb.mxu3 %v8240_v13  ;;  %v8097_v9 = vld [vmem:[#allocation5 + $0xb0] sm:$0xf0]  ;;  %v8480_v13 = vor.u32 %v11971_v7, %v8479_v5  ;;  %v11908_v36 = vld [vmem:[#allocation5 + $0x1bc] sm:$0xf]  ;;  %v8460_v38 = vor.u32 %v11962_v28, %v8457_v29  ;;  %v8407_v42 = vld [vmem:[#allocation5 + $0x308] sm:$0xf] }
  0x7c   :  { %v8100_v16 = vor.u32 %v11872_v8, %v8097_v9  ;;  %v8433_v41 = vld [vmem:[#allocation5 + $0x350] sm:$0xf0]  ;;  %v8244_v45 = vor.u32 %v11908_v36, %v8241_v37  ;;  %v11854_v46 = vld [vmem:[#allocation5 + $0xc] sm:$0xf]  ;;  %v8025_v47 = vld [vmem:[#allocation5 + $0x20] sm:$0xf0] }
  0x7d   :  { %1221 = vmatpush.bf16.msrb.mxu0 %v8212_v20  ;;  %v11866_v20 = vld [vmem:[#allocation5 + $0x6c] sm:$0xf]  ;;  %v8217_v49 = vld [vmem:[#allocation5 + $0x1a0] sm:$0xf0]  ;;  %v8199_v50 = vld [vmem:[#allocation5 + $0x160] sm:$0xf]  ;;  %v8028_v60 = vor.u32 %v11854_v46, %v8025_v47 }
  0x7e   :  { %1235 = vmatpush.bf16.msrb.mxu1 %v8404_v21  ;;  %v8073_v21 = vld [vmem:[#allocation5 + $0x80] sm:$0xf0]  ;;  %v11902_v48 = vld [vmem:[#allocation5 + $0x18c] sm:$0xf]  ;;  %v8391_v53 = vld [vmem:[#allocation5 + $0x2e0] sm:$0xf] }
  0x7f   :  { %1249 = vmatpush.bf16.msrb.mxu2 %v8024_v26  ;;  %1263 = vmatpush.bf16.msrb.mxu3 %v8216_v35  ;;  %v8484_v26 = vor.u32 %v11968_v14, %v8481_v15  ;;  %v8049_v35 = vld [vmem:[#allocation5 + $0x50] sm:$0xf0]  ;;  %v11948_v54 = vld [vmem:[#allocation5 + $0x2f4] sm:$0xf0]  ;;  %v11950_v58 = vld [vmem:[#allocation5 + $0x30c] sm:$0xf]  ;;  %v8220_v61 = vor.u32 %v11902_v48, %v8217_v49 }
  0x80   :  { %1222 = vmatmul.bf16.vlgmr.msrb.gmra.mxu0 %v13384_v25  ;;  %v11996_v57 = vld [vmem:[#allocation5 + $0x474] sm:$0xf0]  ;;  %v8409_v59 = vld [vmem:[#allocation5 + $0x320] sm:$0xf0]  ;;  %v8201_v1 = vld [vmem:[#allocation5 + $0x178] sm:$0xf0] }
  0x81   :  { %1270 = vmatpush.bf16.msra.mxu0 %v8576_v27  ;;  %1236 = vmatmul.bf16.vlgmr.msrb.gmra.mxu1 %v13379_v6  ;;  %v8456_v27 = vor.u32 %v11965_v19, %v8455_v18  ;;  %v11894_v5 = vld [vmem:[#allocation5 + $0x144] sm:$0xf0]  ;;  %v8367_v7 = vld [vmem:[#allocation5 + $0x2b0] sm:$0xf]  ;;  %v8177_v14 = vld [vmem:[#allocation5 + $0x148] sm:$0xf0] }
  0x82   :  { %1284 = vmatpush.bf16.msra.mxu1 %v8196_v30  ;;  %1250 = vmatmul.bf16.vlgmr.msrb.gmra.mxu2 %v13382_v24  ;;  %v8431_v30 = vld [vmem:[#allocation5 + $0x338] sm:$0xf]  ;;  %v11942_v8 = vld [vmem:[#allocation5 + $0x2c4] sm:$0xf0]  ;;  %v8559_v9 = vld [vmem:[#allocation5 + $0x430] sm:$0xf] }
  0x83   :  { %1298 = vmatpush.bf16.msra.mxu2 %v8388_v31  ;;  %1312 = vmatpush.bf16.msra.mxu3 %v8580_v39  ;;  %v8076_v31 = vor.u32 %v11866_v20, %v8073_v21  ;;  %v11956_v39 = vld [vmem:[#allocation5 + $0x33c] sm:$0xf]  ;;  %v11990_v10 = vld [vmem:[#allocation5 + $0x444] sm:$0xf0]  ;;  %v8368_v15 = vor.u32 %v11942_v8, %v8367_v7  ;;  %v11888_v18 = vld [vmem:[#allocation5 + $0x114] sm:$0xf0] }
  0x84   :  { %1264 = vmatmul.bf16.vlgmr.msrb.gmra.mxu3 %v13384_v25  ;;  %v8343_v19 = vld [vmem:[#allocation5 + $0x280] sm:$0xf]  ;;  %v11936_v20 = vld [vmem:[#allocation5 + $0x294] sm:$0xf0]  ;;  %v8153_v28 = vld [vmem:[#allocation5 + $0x118] sm:$0xf0] }
  0x85   :  { %1271 = vmatpush.bf16.msra.mxu0 %v8552_v40  ;;  %v8432_v40 = vor.u32 %v11959_v33, %v8431_v30  ;;  %v8535_v21 = vld [vmem:[#allocation5 + $0x400] sm:$0xf]  ;;  %v11984_v22 = vld [vmem:[#allocation5 + $0x414] sm:$0xf0]  ;;  %v8344_v29 = vor.u32 %v11936_v20, %v8343_v19  ;;  %v8319_v33 = vld [vmem:[#allocation5 + $0x250] sm:$0xf] }
  0x86   :  { %1285 = vmatpush.bf16.msra.mxu1 %v8172_v43  ;;  %v11953_v43 = vld [vmem:[#allocation5 + $0x31c] sm:$0xf0]  ;;  %v8536_v30 = vor.u32 %v11984_v22, %v8535_v21  ;;  %v11978_v36 = vld [vmem:[#allocation5 + $0x3e4] sm:$0xf0]  ;;  %v11924_v46 = vld [vmem:[#allocation5 + $0x234] sm:$0xf0] }
  0x87   :  { %1299 = vmatpush.bf16.msra.mxu2 %v8364_v44  ;;  %1313 = vmatpush.bf16.msra.mxu3 %v8556_v51  ;;  %v8052_v44 = vor.u32 %v11860_v34, %v8049_v35  ;;  %v11900_v51 = vld [vmem:[#allocation5 + $0x174] sm:$0xf0]  ;;  %v11930_v34 = vld [vmem:[#allocation5 + $0x264] sm:$0xf0]  ;;  %v8511_v35 = vld [vmem:[#allocation5 + $0x3d0] sm:$0xf] }
  0x88   :  { %v8200_v62 = vor.u32 %v11900_v51, %v8199_v50  ;;  %v8487_v47 = vld [vmem:[#allocation5 + $0x3a0] sm:$0xf]  ;;  %v11972_v48 = vld [vmem:[#allocation5 + $0x3b4] sm:$0xf0]  ;;  %v11873_v51 = vld [vmem:[#allocation5 + $0xa4] sm:$0xf] }
  0x89   :  { %1272 = vmatpush.bf16.msra.mxu0 %v8528_v52  ;;  %v8436_v52 = vor.u32 %v11956_v39, %v8433_v41  ;;  %v11879_v39 = vld [vmem:[#allocation5 + $0xd4] sm:$0xf]  ;;  %v8320_v41 = vor.u32 %v11930_v34, %v8319_v33  ;;  %v11912_v7 = vld [vmem:[#allocation5 + $0x1d4] sm:$0xf0]  ;;  %v8439_v8 = vld [vmem:[#allocation5 + $0x340] sm:$0xf] }
  0x8a   :  { %1286 = vmatpush.bf16.msra.mxu1 %v8148_v55  ;;  %v8583_v55 = vld [vmem:[#allocation5 + $0x460] sm:$0xf]  ;;  %v11906_v19 = vld [vmem:[#allocation5 + $0x1a4] sm:$0xf0]  ;;  %v8415_v20 = vld [vmem:[#allocation5 + $0x310] sm:$0xf] }
  0x8b   :  { %1300 = vmatpush.bf16.msra.mxu2 %v8340_v56  ;;  %1314 = vmatpush.bf16.msra.mxu3 %v8532_v63  ;;  %v8408_v56 = vor.u32 %v11953_v43, %v8407_v42  ;;  %v8392_v63 = vor.u32 %v11948_v54, %v8391_v53  ;;  %v8584_v2 = vor.u32 %v11996_v57, %v8583_v55  ;;  %v8103_v43 = vld [vmem:[#allocation5 + $0xa0] sm:$0xf]  ;;  %v8079_v55 = vld [vmem:[#allocation5 + $0x70] sm:$0xf]  ;;  %v11954_v21 = vld [vmem:[#allocation5 + $0x324] sm:$0xf0] }
  0x8c   :  { %v8512_v42 = vor.u32 %v11978_v36, %v8511_v35  ;;  %v8488_v54 = vor.u32 %v11972_v48, %v8487_v47  ;;  %v8271_v57 = vld [vmem:[#allocation5 + $0x1f0] sm:$0xf]  ;;  %v11945_v22 = vld [vmem:[#allocation5 + $0x2e4] sm:$0xf]  ;;  %v8416_v33 = vor.u32 %v11954_v21, %v8415_v20  ;;  %v11939_v36 = vld [vmem:[#allocation5 + $0x2b4] sm:$0xf] }
  0x8d   :  { %1273 = vmatpush.bf16.msra.mxu0 %v8504_v0  ;;  %v11897_v0 = vld [vmem:[#allocation5 + $0x164] sm:$0xf]  ;;  %v12036_v48 = vld [vmem:[#allocation8 + $0x134] sm:$0xf0]  ;;  %v8663_v20 = vld [vmem:[#allocation8 + $0x90] sm:$0xf] }
  0x8e   :  { %1287 = vmatpush.bf16.msra.mxu1 %v8124_v3  ;;  %v8412_v3 = vor.u32 %v11950_v58, %v8409_v59  ;;  %v8204_v11 = vor.u32 %v11897_v0, %v8201_v1  ;;  %v11918_v58 = vld [vmem:[#allocation5 + $0x204] sm:$0xf0]  ;;  %v8463_v59 = vld [vmem:[#allocation5 + $0x370] sm:$0xf]  ;;  %v8081_v0 = vld [vmem:[#allocation5 + $0x88] sm:$0xf0] }
  0x8f   :  { %1301 = vmatpush.bf16.msra.mxu2 %v8316_v4  ;;  %1315 = vmatpush.bf16.msra.mxu3 %v8508_v12  ;;  %v8175_v4 = vld [vmem:[#allocation5 + $0x130] sm:$0xf]  ;;  %v8272_v1 = vor.u32 %v11918_v58, %v8271_v57  ;;  %v8735_v47 = vld [vmem:[#allocation8 + $0x120] sm:$0xf]  ;;  %v8321_v58 = vld [vmem:[#allocation5 + $0x268] sm:$0xf0] }
  0x90   :  { %v8176_v12 = vor.u32 %v11894_v5, %v8175_v4  ;;  %v11864_v4 = vld [vmem:[#allocation5 + $0x54] sm:$0xf0]  ;;  %v8247_v5 = vld [vmem:[#allocation5 + $0x1c0] sm:$0xf]  ;;  %v12030_v57 = vld [vmem:[#allocation8 + $0x104] sm:$0xf0] }
  0x91   :  { %1274 = vmatpush.bf16.msra.mxu0 %v8480_v13  ;;  %v11891_v13 = vld [vmem:[#allocation5 + $0x134] sm:$0xf]  ;;  %v12018_v21 = vld [vmem:[#allocation8 + $0xa4] sm:$0xf0] }
  0x92   :  { %1288 = vmatpush.bf16.msra.mxu1 %v8100_v16  ;;  %v8560_v16 = vor.u32 %v11990_v10, %v8559_v9  ;;  %v8180_v23 = vor.u32 %v11891_v13, %v8177_v14  ;;  %v11960_v9 = vld [vmem:[#allocation5 + $0x354] sm:$0xf0]  ;;  %v11861_v13 = vld [vmem:[#allocation5 + $0x44] sm:$0xf]  ;;  %v8057_v14 = vld [vmem:[#allocation5 + $0x58] sm:$0xf0] }
  0x93   :  { %1302 = vmatpush.bf16.msra.mxu2 %v8292_v17  ;;  %1316 = vmatpush.bf16.msra.mxu3 %v8484_v26  ;;  %v8151_v17 = vld [vmem:[#allocation5 + $0x100] sm:$0xf] }
  0x94   :  { %v8152_v26 = vor.u32 %v11888_v18, %v8151_v17  ;;  %v11858_v17 = vld [vmem:[#allocation5 + $0x24] sm:$0xf0]  ;;  %v8223_v18 = vld [vmem:[#allocation5 + $0x190] sm:$0xf] }
  0x95   :  { %1275 = vmatpush.bf16.msra.mxu0 %v8456_v27  ;;  %v11885_v27 = vld [vmem:[#allocation5 + $0x104] sm:$0xf] }
  0x96   :  { %1289 = vmatpush.bf16.msra.mxu1 %v8076_v31  ;;  %v8127_v31 = vld [vmem:[#allocation5 + $0xd0] sm:$0xf]  ;;  %v8156_v37 = vor.u32 %v11885_v27, %v8153_v28  ;;  %v8585_v27 = vld [vmem:[#allocation5 + $0x478] sm:$0xf0]  ;;  %v8060_v28 = vor.u32 %v11861_v13, %v8057_v14 }
  0x97   :  { %1303 = vmatpush.bf16.msra.mxu2 %v8268_v32  ;;  %1317 = vmatpush.bf16.msra.mxu3 %v8460_v38  ;;  %v11882_v32 = vld [vmem:[#allocation5 + $0xe4] sm:$0xf0] }
  0x98   :  { %v8128_v38 = vor.u32 %v11882_v32, %v8127_v31  ;;  %v8033_v31 = vld [vmem:[#allocation5 + $0x28] sm:$0xf0]  ;;  %v8224_v32 = vor.u32 %v11906_v19, %v8223_v18  ;;  %v11957_v18 = vld [vmem:[#allocation5 + $0x344] sm:$0xf]  ;;  %v8441_v19 = vld [vmem:[#allocation5 + $0x358] sm:$0xf0] }
  0x99   :  { %1276 = vmatpush.bf16.msra.mxu0 %v8432_v40  ;;  %v8129_v40 = vld [vmem:[#allocation5 + $0xe8] sm:$0xf0] }
  0x9a   :  { %1290 = vmatpush.bf16.msra.mxu1 %v8052_v44  ;;  %v11876_v44 = vld [vmem:[#allocation5 + $0xb4] sm:$0xf0]  ;;  %v8132_v49 = vor.u32 %v11879_v39, %v8129_v40  ;;  %v8561_v39 = vld [vmem:[#allocation5 + $0x448] sm:$0xf0] }
  0x9b   :  { %1304 = vmatpush.bf16.msra.mxu2 %v8244_v45  ;;  %1318 = vmatpush.bf16.msra.mxu3 %v8436_v52  ;;  %v8295_v45 = vld [vmem:[#allocation5 + $0x220] sm:$0xf]  ;;  %v8104_v50 = vor.u32 %v11876_v44, %v8103_v43  ;;  %v8105_v52 = vld [vmem:[#allocation5 + $0xb8] sm:$0xf0] }
  0x9c   :  { %v8296_v53 = vor.u32 %v11924_v46, %v8295_v45  ;;  %v11933_v45 = vld [vmem:[#allocation5 + $0x284] sm:$0xf] }
  0x9d   :  { %1277 = vmatpush.bf16.msra.mxu0 %v8408_v56  ;;  %v11870_v56 = vld [vmem:[#allocation5 + $0x84] sm:$0xf0] }
  0x9e   :  { %1291 = vmatpush.bf16.msra.mxu1 %v8028_v60  ;;  %v11966_v60 = vld [vmem:[#allocation5 + $0x384] sm:$0xf0] }
  0x9f   :  { %1305 = vmatpush.bf16.msra.mxu2 %v8220_v61  ;;  %1319 = vmatpush.bf16.msra.mxu3 %v8412_v3  ;;  %v8108_v61 = vor.u32 %v11873_v51, %v8105_v52  ;;  %v8055_v3 = vld [vmem:[#allocation5 + $0x40] sm:$0xf]  ;;  %v8537_v51 = vld [vmem:[#allocation5 + $0x418] sm:$0xf0]  ;;  %v8736_v52 = vor.u32 %v12036_v48, %v8735_v47  ;;  %v8615_v47 = vld [vmem:[#allocation8 + $0x30] sm:$0xf] }
  0xa0   :  { %1278 = vmatmul.bf16.vlgmr.msra.gmra.mxu0 %v13379_v6  ;;  %v12006_v48 = vld [vmem:[#allocation8 + $0x44] sm:$0xf0] }
  0xa1   :  { %1326 = vmatpush.bf16.msrb.mxu0 %v8200_v62  ;;  %1292 = vmatmul.bf16.vlgmr.msra.gmra.mxu1 %v13382_v24  ;;  %v8080_v62 = vor.u32 %v11870_v56, %v8079_v55  ;;  %v11927_v55 = vld [vmem:[#allocation5 + $0x254] sm:$0xf] }
  0xa2   :  { %1340 = vmatpush.bf16.msrb.mxu1 %v8392_v63  ;;  %1306 = vmatmul.bf16.vlgmr.msra.gmra.mxu2 %v13384_v25  ;;  %v11867_v63 = vld [vmem:[#allocation5 + $0x74] sm:$0xf] }
  0xa3   :  { %1354 = vmatpush.bf16.msrb.mxu2 %v8584_v2  ;;  %1368 = vmatpush.bf16.msrb.mxu3 %v8204_v11  ;;  %v8464_v2 = vor.u32 %v11966_v60, %v8463_v59  ;;  %v8084_v10 = vor.u32 %v11867_v63, %v8081_v0  ;;  %v8056_v11 = vor.u32 %v11864_v4, %v8055_v3  ;;  %v8711_v56 = vld [vmem:[#allocation8 + $0xf0] sm:$0xf]  ;;  %v8513_v60 = vld [vmem:[#allocation5 + $0x3e8] sm:$0xf0]  ;;  %v11921_v0 = vld [vmem:[#allocation5 + $0x224] sm:$0xf] }
  0xa4   :  { %1320 = vmatmul.bf16.vlgmr.msra.gmra.mxu3 %v13379_v6  ;;  %v11975_v59 = vld [vmem:[#allocation5 + $0x3d4] sm:$0xf]  ;;  %v8489_v3 = vld [vmem:[#allocation5 + $0x3b8] sm:$0xf0] }
  0xa5   :  { %1327 = vmatpush.bf16.msrb.mxu0 %v8176_v12  ;;  %v8031_v12 = vld [vmem:[#allocation5 + $0x10] sm:$0xf]  ;;  %v8516_v63 = vor.u32 %v11975_v59, %v8513_v60  ;;  %v8591_v59 = vld [vmem:[#allocation8] sm:$0xf]  ;;  %v12000_v60 = vld [vmem:[#allocation8 + $0x14] sm:$0xf0] }
  0xa6   :  { %1341 = vmatpush.bf16.msrb.mxu1 %v8368_v15  ;;  %v8248_v15 = vor.u32 %v11912_v7, %v8247_v5  ;;  %v11915_v7 = vld [vmem:[#allocation5 + $0x1f4] sm:$0xf] }
  0xa7   :  { %1355 = vmatpush.bf16.msrb.mxu2 %v8560_v16  ;;  %1369 = vmatpush.bf16.msrb.mxu3 %v8180_v23  ;;  %v8440_v16 = vor.u32 %v11960_v9, %v8439_v8  ;;  %v8393_v23 = vld [vmem:[#allocation5 + $0x2f8] sm:$0xf0]  ;;  %v8687_v8 = vld [vmem:[#allocation8 + $0xc0] sm:$0xf] }
  0xa8   :  { %v8396_v34 = vor.u32 %v11945_v22, %v8393_v23  ;;  %v12024_v9 = vld [vmem:[#allocation8 + $0xd4] sm:$0xf0]  ;;  %v8951_v22 = vld [vmem:[#allocation8 + $0x2d0] sm:$0xf] }
  0xa9   :  { %1328 = vmatpush.bf16.msrb.mxu0 %v8152_v26  ;;  %v11993_v26 = vld [vmem:[#allocation5 + $0x464] sm:$0xf]  ;;  %v8688_v13 = vor.u32 %v12024_v9, %v8687_v8  ;;  %v11903_v23 = vld [vmem:[#allocation5 + $0x194] sm:$0xf] }
  0xaa   :  { %1342 = vmatpush.bf16.msrb.mxu1 %v8344_v29  ;;  %v8032_v29 = vor.u32 %v11858_v17, %v8031_v12  ;;  %v8588_v35 = vor.u32 %v11993_v26, %v8585_v27  ;;  %v8465_v12 = vld [vmem:[#allocation5 + $0x388] sm:$0xf0]  ;;  %v8249_v17 = vld [vmem:[#allocation5 + $0x1d8] sm:$0xf0]  ;;  %v8664_v27 = vor.u32 %v12018_v21, %v8663_v20  ;;  %v13403_v8 = vld [vmem:[#allocation7] sm:$0x3f] }
  0xab   :  { %1356 = vmatpush.bf16.msrb.mxu2 %v8536_v30  ;;  %1370 = vmatpush.bf16.msrb.mxu3 %v8156_v37  ;;  %v11855_v30 = vld [vmem:[#allocation5 + $0x14] sm:$0xf]  ;;  %v8369_v37 = vld [vmem:[#allocation5 + $0x2c8] sm:$0xf0]  ;;  %v9263_v21 = vld [vmem:[#allocation8 + $0x540] sm:$0xf] }
  0xac   :  { %v8036_v40 = vor.u32 %v11855_v30, %v8033_v31  ;;  %v8372_v43 = vor.u32 %v11939_v36, %v8369_v37  ;;  %v8225_v26 = vld [vmem:[#allocation5 + $0x1a8] sm:$0xf0]  ;;  %v8444_v30 = vor.u32 %v11957_v18, %v8441_v19  ;;  %v12060_v18 = vld [vmem:[#allocation8 + $0x1f4] sm:$0xf0] }
  0xad   :  { %1329 = vmatpush.bf16.msrb.mxu0 %v8128_v38  ;;  %v11987_v38 = vld [vmem:[#allocation5 + $0x434] sm:$0xf]  ;;  %v8417_v36 = vld [vmem:[#allocation5 + $0x328] sm:$0xf0] }
  0xae   :  { %1343 = vmatpush.bf16.msrb.mxu1 %v8320_v41  ;;  %v8759_v41 = vld [vmem:[#allocation8 + $0x150] sm:$0xf]  ;;  %v8564_v44 = vor.u32 %v11987_v38, %v8561_v39  ;;  %v12084_v38 = vld [vmem:[#allocation8 + $0x2b4] sm:$0xf0] }
  0xaf   :  { %1357 = vmatpush.bf16.msrb.mxu2 %v8512_v42  ;;  %1371 = vmatpush.bf16.msrb.mxu3 %v8132_v49  ;;  %v12042_v42 = vld [vmem:[#allocation8 + $0x164] sm:$0xf0]  ;;  %v8345_v49 = vld [vmem:[#allocation5 + $0x298] sm:$0xf0]  ;;  %v9143_v39 = vld [vmem:[#allocation8 + $0x450] sm:$0xf] }
  0xb0   :  { %v8760_v46 = vor.u32 %v12042_v42, %v8759_v41  ;;  %v8228_v42 = vor.u32 %v11903_v23, %v8225_v26  ;;  %v9023_v23 = vld [vmem:[#allocation8 + $0x360] sm:$0xf]  ;;  %v12108_v26 = vld [vmem:[#allocation8 + $0x374] sm:$0xf0] }
  0xb1   :  { %1330 = vmatpush.bf16.msrb.mxu0 %v8104_v50  ;;  %v11981_v50 = vld [vmem:[#allocation5 + $0x404] sm:$0xf] }
  0xb2   :  { %1344 = vmatpush.bf16.msrb.mxu1 %v8296_v53  ;;  %v8348_v53 = vor.u32 %v11933_v45, %v8345_v49  ;;  %v9119_v45 = vld [vmem:[#allocation8 + $0x420] sm:$0xf]  ;;  %v8903_v49 = vld [vmem:[#allocation8 + $0x270] sm:$0xf] }
  0xb3   :  { %1358 = vmatpush.bf16.msrb.mxu2 %v8488_v54  ;;  %1372 = vmatpush.bf16.msrb.mxu3 %v8108_v61  ;;  %v8540_v54 = vor.u32 %v11981_v50, %v8537_v51  ;;  %v8712_v61 = vor.u32 %v12030_v57, %v8711_v56  ;;  %v8616_v51 = vor.u32 %v12006_v48, %v8615_v47  ;;  %v9335_v56 = vld [vmem:[#allocation8 + $0x5d0] sm:$0xf]  ;;  %v12186_v57 = vld [vmem:[#allocation8 + $0x5e4] sm:$0xf0]  ;;  %v9215_v47 = vld [vmem:[#allocation8 + $0x4e0] sm:$0xf] }
  0xb4   :  { %v12156_v48 = vld [vmem:[#allocation8 + $0x4f4] sm:$0xf0] }
  0xb5   :  { %1331 = vmatpush.bf16.msrb.mxu0 %v8080_v62  ;;  %v8324_v62 = vor.u32 %v11927_v55, %v8321_v58  ;;  %v12126_v55 = vld [vmem:[#allocation8 + $0x404] sm:$0xf0]  ;;  %v9336_v58 = vor.u32 %v12186_v57, %v9335_v56  ;;  %v9191_v57 = vld [vmem:[#allocation8 + $0x4b0] sm:$0xf] }
  0xb6   :  { %1345 = vmatpush.bf16.msrb.mxu1 %v8272_v1  ;;  %v8297_v1 = vld [vmem:[#allocation5 + $0x238] sm:$0xf0] }
  0xb7   :  { %1359 = vmatpush.bf16.msrb.mxu2 %v8464_v2  ;;  %1373 = vmatpush.bf16.msrb.mxu3 %v8084_v10  ;;  %v11969_v2 = vld [vmem:[#allocation5 + $0x3a4] sm:$0xf]  ;;  %v8300_v4 = vor.u32 %v11921_v0, %v8297_v1  ;;  %v8273_v10 = vld [vmem:[#allocation5 + $0x208] sm:$0xf0] }
  0xb8   :  { %v8492_v5 = vor.u32 %v11969_v2, %v8489_v3  ;;  %v8276_v14 = vor.u32 %v11915_v7, %v8273_v10  ;;  %v9311_v2 = vld [vmem:[#allocation8 + $0x5a0] sm:$0xf]  ;;  %v12180_v3 = vld [vmem:[#allocation8 + $0x5b4] sm:$0xf0] }
  0xb9   :  { %1332 = vmatpush.bf16.msrb.mxu0 %v8056_v11  ;;  %v11963_v11 = vld [vmem:[#allocation5 + $0x374] sm:$0xf]  ;;  %v9312_v7 = vor.u32 %v12180_v3, %v9311_v2  ;;  %v12234_v2 = vld [vmem:[#allocation8 + $0x764] sm:$0xf0]  ;;  %v9167_v3 = vld [vmem:[#allocation8 + $0x480] sm:$0xf] }
  0xba   :  { %1346 = vmatpush.bf16.msrb.mxu1 %v8248_v15  ;;  %v8468_v15 = vor.u32 %v11963_v11, %v8465_v12  ;;  %v9287_v11 = vld [vmem:[#allocation8 + $0x570] sm:$0xf]  ;;  %v12174_v12 = vld [vmem:[#allocation8 + $0x584] sm:$0xf0] }
  0xbb   :  { %1360 = vmatpush.bf16.msrb.mxu2 %v8440_v16  ;;  %1374 = vmatpush.bf16.msrb.mxu3 %v8060_v28  ;;  %v11909_v16 = vld [vmem:[#allocation5 + $0x1c4] sm:$0xf]  ;;  %v12090_v28 = vld [vmem:[#allocation8 + $0x2e4] sm:$0xf0] }
  0xbc   :  { %v8952_v31 = vor.u32 %v12090_v28, %v8951_v22  ;;  %v12168_v22 = vld [vmem:[#allocation8 + $0x554] sm:$0xf0] }
  0xbd   :  { %1333 = vmatpush.bf16.msrb.mxu0 %v8032_v29  ;;  %v8252_v29 = vor.u32 %v11909_v16, %v8249_v17  ;;  %v410_v16 = vperm.slane %v13403_v8, 0  ;;  %v8831_v17 = vld [vmem:[#allocation8 + $0x1e0] sm:$0xf] }
  0xbe   :  { %1347 = vmatpush.bf16.msrb.mxu1 %v8224_v32  ;;  %v8639_v32 = vld [vmem:[#allocation8 + $0x60] sm:$0xf]  ;;  %v8832_v20 = vor.u32 %v12060_v18, %v8831_v17  ;;  %v12027_v17 = vld [vmem:[#allocation8 + $0xf4] sm:$0xf]  ;;  %v8713_v18 = vld [vmem:[#allocation8 + $0x108] sm:$0xf0] }
  0xbf   :  { %1361 = vmatpush.bf16.msrb.mxu2 %v8416_v33  ;;  %1375 = vmatpush.bf16.msrb.mxu3 %v8036_v40  ;;  %v12012_v33 = vld [vmem:[#allocation8 + $0x74] sm:$0xf0]  ;;  %v12138_v40 = vld [vmem:[#allocation8 + $0x464] sm:$0xf0] }
  0xc0   :  { %1334 = vmatmul.bf16.vlgmr.msrb.gmra.mxu0 %v13382_v24  ;;  %v8640_v37 = vor.u32 %v12012_v33, %v8639_v32  ;;  %v12054_v32 = vld [vmem:[#allocation8 + $0x1c4] sm:$0xf0] }
  0xc1   :  { %1382 = vmatpush.bf16.msra.mxu0 %v8396_v34  ;;  %1348 = vmatmul.bf16.vlgmr.msrb.gmra.mxu1 %v13384_v25  ;;  %v8927_v34 = vld [vmem:[#allocation8 + $0x2a0] sm:$0xf] }
  0xc2   :  { %1396 = vmatpush.bf16.msra.mxu1 %v8588_v35  ;;  %1362 = vmatmul.bf16.vlgmr.msrb.gmra.mxu2 %v13379_v6  ;;  %v11951_v35 = vld [vmem:[#allocation5 + $0x314] sm:$0xf]  ;;  %v8928_v41 = vor.u32 %v12084_v38, %v8927_v34  ;;  %v9024_v34 = vor.u32 %v12108_v26, %v9023_v23  ;;  %v8929_v23 = vld [vmem:[#allocation8 + $0x2b8] sm:$0xf0]  ;;  %v411_v26 = vperm.slane %v13403_v8, 1 }
  0xc3   :  { %3170 = vmatpush.bf16.msra.mxu2 %v8760_v46  ;;  %1376 = vmatmul.bf16.vlgmr.msrb.gmra.mxu3 %v13382_v24  ;;  %v12132_v46 = vld [vmem:[#allocation8 + $0x434] sm:$0xf0] }
  0xc4   :  { %3184 = vmatpush.bf16.msra.mxu3 %v8952_v31  ;;  %v9120_v50 = vor.u32 %v12132_v46, %v9119_v45  ;;  %v8807_v31 = vld [vmem:[#allocation8 + $0x1b0] sm:$0xf] }
  0xc5   :  { %1383 = vmatpush.bf16.msra.mxu0 %v8372_v43  ;;  %v8420_v43 = vor.u32 %v11951_v35, %v8417_v36  ;;  %v8808_v35 = vor.u32 %v12054_v32, %v8807_v31  ;;  %v9239_v36 = vld [vmem:[#allocation8 + $0x510] sm:$0xf]  ;;  %v12222_v32 = vld [vmem:[#allocation8 + $0x704] sm:$0xf0] }
  0xc6   :  { %1397 = vmatpush.bf16.msra.mxu1 %v8564_v44  ;;  %v9144_v44 = vor.u32 %v12138_v40, %v9143_v39  ;;  %v8999_v39 = vld [vmem:[#allocation8 + $0x330] sm:$0xf]  ;;  %v12102_v40 = vld [vmem:[#allocation8 + $0x344] sm:$0xf0] }
  0xc7   :  { %3171 = vmatpush.bf16.msra.mxu2 %v8736_v52  ;;  %v12078_v52 = vld [vmem:[#allocation8 + $0x284] sm:$0xf0]  ;;  %v9000_v45 = vor.u32 %v12102_v40, %v8999_v39  ;;  %v9479_v31 = vld [vmem:[#allocation8 + $0x6f0] sm:$0xf]  ;;  %v8665_v40 = vld [vmem:[#allocation8 + $0xa8] sm:$0xf0] }
  0xc8   :  { %3185 = vmatpush.bf16.msra.mxu3 %v8928_v41 }
  0xc9   :  { %1384 = vmatpush.bf16.msra.mxu0 %v8348_v53  ;;  %v9095_v53 = vld [vmem:[#allocation8 + $0x3f0] sm:$0xf] }
  0xca   :  { %1398 = vmatpush.bf16.msra.mxu1 %v8540_v54  ;;  %v8904_v54 = vor.u32 %v12078_v52, %v8903_v49  ;;  %v9096_v0 = vor.u32 %v12126_v55, %v9095_v53  ;;  %v8975_v49 = vld [vmem:[#allocation8 + $0x300] sm:$0xf]  ;;  %v8761_v55 = vld [vmem:[#allocation8 + $0x168] sm:$0xf0] }
  0xcb   :  { %3172 = vmatpush.bf16.msra.mxu2 %v8712_v61  ;;  %v8879_v61 = vld [vmem:[#allocation8 + $0x240] sm:$0xf] }
  0xcc   :  { %3186 = vmatpush.bf16.msra.mxu3 %v8904_v54  ;;  %v12039_v54 = vld [vmem:[#allocation8 + $0x154] sm:$0xf] }
  0xcd   :  { %1385 = vmatpush.bf16.msra.mxu0 %v8324_v62  ;;  %v8592_v62 = vor.u32 %v12000_v60, %v8591_v59 }
  0xce   :  { %1399 = vmatpush.bf16.msra.mxu1 %v8516_v63  ;;  %v12072_v63 = vld [vmem:[#allocation8 + $0x254] sm:$0xf0] }
  0xcf   :  { %3173 = vmatpush.bf16.msra.mxu2 %v8688_v13  ;;  %v8880_v1 = vor.u32 %v12072_v63, %v8879_v61  ;;  %v9047_v13 = vld [vmem:[#allocation8 + $0x390] sm:$0xf] }
  0xd0   :  { %v9527_v63 = vld [vmem:[#allocation8 + $0x750] sm:$0xf] }
  0xd1   :  { %1386 = vmatpush.bf16.msra.mxu0 %v8300_v4  ;;  %v9071_v4 = vld [vmem:[#allocation8 + $0x3c0] sm:$0xf]  ;;  %3187 = vmatpush.bf16.msra.mxu3 %v8880_v1  ;;  %v8764_v1 = vor.u32 %v12039_v54, %v8761_v55  ;;  %v9431_v54 = vld [vmem:[#allocation8 + $0x690] sm:$0xf]  ;;  %v12210_v55 = vld [vmem:[#allocation8 + $0x6a4] sm:$0xf0] }
  0xd2   :  { %1400 = vmatpush.bf16.msra.mxu1 %v8492_v5  ;;  %v12120_v5 = vld [vmem:[#allocation8 + $0x3d4] sm:$0xf0] }
  0xd3   :  { %3174 = vmatpush.bf16.msra.mxu2 %v8664_v27  ;;  %v9072_v9 = vor.u32 %v12120_v5, %v9071_v4  ;;  %v9264_v27 = vor.u32 %v12168_v22, %v9263_v21  ;;  %v12144_v4 = vld [vmem:[#allocation8 + $0x494] sm:$0xf0]  ;;  %v12033_v5 = vld [vmem:[#allocation8 + $0x124] sm:$0xf] }
  0xd4   :  { %v12081_v22 = vld [vmem:[#allocation8 + $0x2a4] sm:$0xf] }
  0xd5   :  { %1387 = vmatpush.bf16.msra.mxu0 %v8276_v14  ;;  %v12114_v14 = vld [vmem:[#allocation8 + $0x3a4] sm:$0xf0] }
  0xd6   :  { %1401 = vmatpush.bf16.msra.mxu1 %v8468_v15  ;;  %v9288_v15 = vor.u32 %v12174_v12, %v9287_v11  ;;  %v9048_v19 = vor.u32 %v12114_v14, %v9047_v13  ;;  %v9503_v11 = vld [vmem:[#allocation8 + $0x720] sm:$0xf]  ;;  %v12228_v12 = vld [vmem:[#allocation8 + $0x734] sm:$0xf0]  ;;  %v9168_v13 = vor.u32 %v12144_v4, %v9167_v3 }
  0xd7   :  { %3175 = vmatpush.bf16.msra.mxu2 %v8640_v37  ;;  %v12162_v37 = vld [vmem:[#allocation8 + $0x524] sm:$0xf0]  ;;  %v12204_v3 = vld [vmem:[#allocation8 + $0x674] sm:$0xf0] }
  0xd8   :  { %v9240_v41 = vor.u32 %v12162_v37, %v9239_v36  ;;  %v12015_v37 = vld [vmem:[#allocation8 + $0x94] sm:$0xf] }
  0xd9   :  { %1388 = vmatpush.bf16.msra.mxu0 %v8252_v29 }
  0xda   :  { %1402 = vmatpush.bf16.msra.mxu1 %v8444_v30 }
  0xdb   :  { %3176 = vmatpush.bf16.msra.mxu2 %v8616_v51  ;;  %v9216_v51 = vor.u32 %v12156_v48, %v9215_v47  ;;  %v12069_v47 = vld [vmem:[#allocation8 + $0x244] sm:$0xf] }
  0xdd   :  { %1389 = vmatpush.bf16.msra.mxu0 %v8228_v42  ;;  %v8783_v42 = vld [vmem:[#allocation8 + $0x180] sm:$0xf] }
  0xde   :  { %1403 = vmatpush.bf16.msra.mxu1 %v8420_v43  ;;  %v12048_v43 = vld [vmem:[#allocation8 + $0x194] sm:$0xf0] }
  0xdf   :  { %3177 = vmatpush.bf16.msra.mxu2 %v8592_v62  ;;  %v8784_v46 = vor.u32 %v12048_v43, %v8783_v42  ;;  %v9455_v42 = vld [vmem:[#allocation8 + $0x6c0] sm:$0xf]  ;;  %v12216_v43 = vld [vmem:[#allocation8 + $0x6d4] sm:$0xf0] }
  0xe0   :  { %1390 = vmatmul.bf16.vlgmr.msra.gmra.mxu0 %v13384_v25  ;;  %v12066_v25 = vld [vmem:[#allocation8 + $0x224] sm:$0xf0] }
  0xe1   :  { %3198 = vmatpush.bf16.msrb.mxu0 %v9144_v44  ;;  %1404 = vmatmul.bf16.vlgmr.msra.gmra.mxu1 %v13379_v6  ;;  %v8855_v6 = vld [vmem:[#allocation8 + $0x210] sm:$0xf]  ;;  %v1167_v28 = vpop.f32.mrf.mxu0  ;;  %v1181_v29 = vpop.f32.mrf.mxu1 }
  0xe2   :  { %3212 = vmatpush.bf16.msrb.mxu1 %v9336_v58  ;;  %v8856_v10 = vor.u32 %v12066_v25, %v8855_v6  ;;  %v1168_v30 = vadd.f32 %v1167_v28, %v410_v16  ;;  %v12150_v58 = vld [vmem:[#allocation8 + $0x4c4] sm:$0xf0]  ;;  %v9528_v6 = vor.u32 %v12234_v2, %v9527_v63  ;;  %v12087_v25 = vld [vmem:[#allocation8 + $0x2d4] sm:$0xf]  ;;  %v12021_v28 = vld [vmem:[#allocation8 + $0xc4] sm:$0xf] }
  0xe3   :  { %v9192_v62 = vor.u32 %v12150_v58, %v9191_v57  ;;  %v9432_v57 = vor.u32 %v12210_v55, %v9431_v54  ;;  %v12063_v58 = vld [vmem:[#allocation8 + $0x214] sm:$0xf]  ;;  %v9407_v2 = vld [vmem:[#allocation8 + $0x660] sm:$0xf] }
  0xe4   :  { %3188 = vmatpush.bf16.msra.mxu3 %v8856_v10  ;;  %v1182_v38 = vadd.f32 %v1181_v29, %v1168_v30  ;;  %v8953_v10 = vld [vmem:[#allocation8 + $0x2e8] sm:$0xf0]  ;;  %3226 = vmatpush.bf16.msrb.mxu2 %v9528_v6  ;;  %v8689_v29 = vld [vmem:[#allocation8 + $0xd8] sm:$0xf0]  ;;  %v8932_v30 = vor.u32 %v12081_v22, %v8929_v23  ;;  %v12057_v6 = vld [vmem:[#allocation8 + $0x1e4] sm:$0xf] }
  0xe5   :  { %3199 = vmatpush.bf16.msrb.mxu0 %v9120_v50  ;;  %v1195_v33 = vpop.f32.mrf.mxu2  ;;  %v12096_v50 = vld [vmem:[#allocation8 + $0x314] sm:$0xf0]  ;;  %v8692_v36 = vor.u32 %v12021_v28, %v8689_v29  ;;  %v12051_v23 = vld [vmem:[#allocation8 + $0x1b4] sm:$0xf] }
  0xe6   :  { %3213 = vmatpush.bf16.msrb.mxu1 %v9312_v7  ;;  %v1196_v44 = vadd.f32 %v1195_v33, %v1182_v38  ;;  %v8976_v61 = vor.u32 %v12096_v50, %v8975_v49  ;;  %v8737_v7 = vld [vmem:[#allocation8 + $0x138] sm:$0xf0]  ;;  %v9480_v33 = vor.u32 %v12222_v32, %v9479_v31  ;;  %v8905_v38 = vld [vmem:[#allocation8 + $0x288] sm:$0xf0]  ;;  %v8668_v49 = vor.u32 %v12015_v37, %v8665_v40  ;;  %v12009_v50 = vld [vmem:[#allocation8 + $0x64] sm:$0xf] }
  0xe7   :  { %v9359_v31 = vld [vmem:[#allocation8 + $0x600] sm:$0xf]  ;;  %v12192_v32 = vld [vmem:[#allocation8 + $0x614] sm:$0xf0]  ;;  %v12045_v40 = vld [vmem:[#allocation8 + $0x184] sm:$0xf] }
  0xe8   :  { %3189 = vmatpush.bf16.msra.mxu3 %v8832_v20  ;;  %v1410_v59 = vmax.f32 %v1196_v44, 0.0  ;;  %v9504_v20 = vor.u32 %v12228_v12, %v9503_v11  ;;  %v11997_v11 = vld [vmem:[#allocation8 + $0x4] sm:$0xf]  ;;  %v8833_v12 = vld [vmem:[#allocation8 + $0x1f8] sm:$0xf0] }
  0xe9   :  { %3200 = vmatpush.bf16.msrb.mxu0 %v9096_v0  ;;  %v1169_v52 = vpop.f32.mrf.mxu0  ;;  %v1183_v53 = vpop.f32.mrf.mxu1 }
  0xea   :  { %3214 = vmatpush.bf16.msrb.mxu1 %v9288_v15  ;;  %v1170_v56 = vadd.f32 %v1169_v52, %v410_v16  ;;  %v8740_v15 = vor.u32 %v12033_v5, %v8737_v7  ;;  %v1209_v16 = vpop.f32.mrf.mxu3  ;;  %3227 = vmatpush.bf16.msrb.mxu2 %v9504_v20  ;;  %v8641_v52 = vld [vmem:[#allocation8 + $0x78] sm:$0xf0]  ;;  %v9408_v7 = vor.u32 %v12204_v3, %v9407_v2  ;;  %v12282_v20 = vld [vmem:[#allocation8 + $0x8e4] sm:$0xf0] }
  0xec   :  { %3190 = vmatpush.bf16.msra.mxu3 %v8808_v35  ;;  %v1184_v0 = vadd.f32 %v1183_v53, %v1170_v56  ;;  %v1210_v35 = vadd.f32 %v1209_v16, %v411_v26  ;;  %v12198_v16 = vld [vmem:[#allocation8 + $0x644] sm:$0xf0] }
  0xed   :  { %3201 = vmatpush.bf16.msrb.mxu0 %v9072_v9  ;;  %v1197_v60 = vpop.f32.mrf.mxu2 }
  0xee   :  { %3215 = vmatpush.bf16.msrb.mxu1 %v9264_v27  ;;  %v1198_v9 = vadd.f32 %v1197_v60, %v1184_v0  ;;  %v8716_v27 = vor.u32 %v12027_v17, %v8713_v18  ;;  %3228 = vmatpush.bf16.msrb.mxu2 %v9480_v33  ;;  %v8644_v60 = vor.u32 %v12009_v50, %v8641_v52  ;;  %v8617_v0 = vld [vmem:[#allocation8 + $0x48] sm:$0xf0]  ;;  %v12264_v52 = vld [vmem:[#allocation8 + $0x854] sm:$0xf0] }
  0xef   :  { %v9360_v33 = vor.u32 %v12192_v32, %v9359_v31  ;;  %v12231_v32 = vld [vmem:[#allocation8 + $0x754] sm:$0xf] }
  0xf0   :  { %3191 = vmatpush.bf16.msra.mxu3 %v8784_v46  ;;  %v1416_v14 = vmax.f32 %v1198_v9, 0.0 }
  0xf1   :  { %3202 = vmatpush.bf16.msrb.mxu0 %v9048_v19  ;;  %v8956_v19 = vor.u32 %v12087_v25, %v8953_v10 }
  0xf2   :  { %3216 = vmatpush.bf16.msrb.mxu1 %v9240_v41  ;;  %v13406_v21 = vpack.c.bf16 %v1416_v14, %v1410_v59  ;;  %v1211_v46 = vpop.f32.mrf.mxu3  ;;  %v8836_v14 = vor.u32 %v12057_v6, %v8833_v12  ;;  %v9599_v6 = vld [vmem:[#allocation8 + $0x7e0] sm:$0xf] }
  0xf3   :  { %v1212_v56 = vadd.f32 %v1211_v46, %v411_v26  ;;  %v8809_v26 = vld [vmem:[#allocation8 + $0x1c8] sm:$0xf0]  ;;  %v12129_v46 = vld [vmem:[#allocation8 + $0x424] sm:$0xf] }
  0xf4   :  { %3178 = vmatmul.bf16.vlgmr.msra.gmra.mxu2 %v13406_v21 }
  0xf5   :  { %3203 = vmatpush.bf16.msrb.mxu0 %v9024_v34  ;;  %v12075_v34 = vld [vmem:[#allocation8 + $0x274] sm:$0xf] }
  0xf6   :  { %3217 = vmatpush.bf16.msrb.mxu1 %v9216_v51  ;;  %v8908_v41 = vor.u32 %v12075_v34, %v8905_v38  ;;  %v8881_v51 = vld [vmem:[#allocation8 + $0x258] sm:$0xf0]  ;;  %v9695_v34 = vld [vmem:[#allocation8 + $0x8a0] sm:$0xf] }
  0xf7   :  { %v8884_v53 = vor.u32 %v12069_v47, %v8881_v51  ;;  %v9647_v51 = vld [vmem:[#allocation8 + $0x840] sm:$0xf] }
  0xf8   :  { %v9648_v55 = vor.u32 %v12264_v52, %v9647_v51 }
  0xf9   :  { %3204 = vmatpush.bf16.msrb.mxu0 %v9000_v45  ;;  %v9456_v45 = vor.u32 %v12216_v43, %v9455_v42 }
  0xfa   :  { %3218 = vmatpush.bf16.msrb.mxu1 %v9192_v62  ;;  %v8857_v62 = vld [vmem:[#allocation8 + $0x228] sm:$0xf0] }
  0xfb   :  { %3229 = vmatpush.bf16.msrb.mxu2 %v9456_v45  ;;  %v12270_v45 = vld [vmem:[#allocation8 + $0x884] sm:$0xf0] }
  0xfd   :  { %3205 = vmatpush.bf16.msrb.mxu0 %v8976_v61  ;;  %v1223_v39 = vpop.f32.mrf.mxu0  ;;  %v12003_v61 = vld [vmem:[#allocation8 + $0x34] sm:$0xf] }
  0xfe   :  { %3219 = vmatpush.bf16.msrb.mxu1 %v9168_v13  ;;  %v1237_v44 = vpop.f32.mrf.mxu1  ;;  %v1224_v48 = vadd.f32 %v1223_v39, %v1210_v35  ;;  %v8620_v10 = vor.u32 %v12003_v61, %v8617_v0  ;;  %v8593_v13 = vld [vmem:[#allocation8 + $0x18] sm:$0xf0]  ;;  %v12276_v35 = vld [vmem:[#allocation8 + $0x8b4] sm:$0xf0]  ;;  %v9145_v39 = vld [vmem:[#allocation8 + $0x468] sm:$0xf0] }
  0xff   :  { %3230 = vmatpush.bf16.msrb.mxu2 %v9432_v57  ;;  %v8596_v28 = vor.u32 %v11997_v11, %v8593_v13  ;;  %v9696_v38 = vor.u32 %v12276_v35, %v9695_v34  ;;  %v12258_v61 = vld [vmem:[#allocation8 + $0x824] sm:$0xf0]  ;;  %v9049_v11 = vld [vmem:[#allocation8 + $0x3a8] sm:$0xf0] }
 0x100   :  { %v1238_v59 = vadd.f32 %v1237_v44, %v1224_v48  ;;  %v9671_v44 = vld [vmem:[#allocation8 + $0x870] sm:$0xf]  ;;  %v9121_v48 = vld [vmem:[#allocation8 + $0x438] sm:$0xf0] }
 0x101   :  { %3254 = vmatpush.bf16.msra.mxu0 %v8764_v1  ;;  %v8860_v1 = vor.u32 %v12063_v58, %v8857_v62  ;;  %v9672_v47 = vor.u32 %v12270_v45, %v9671_v44  ;;  %v9124_v50 = vor.u32 %v12129_v46, %v9121_v48  ;;  %v12117_v62 = vld [vmem:[#allocation8 + $0x3c4] sm:$0xf] }
 0x102   :  { %3268 = vmatpush.bf16.msra.mxu1 %v8956_v19  ;;  %v1411_v25 = vmax.f32 %v1238_v59, 0.0  ;;  %v9719_v19 = vld [vmem:[#allocation8 + $0x8d0] sm:$0xf]  ;;  %v12225_v46 = vld [vmem:[#allocation8 + $0x724] sm:$0xf] }
 0x103   :  { %3231 = vmatpush.bf16.msrb.mxu2 %v9408_v7  ;;  %v9720_v22 = vor.u32 %v12282_v20, %v9719_v19  ;;  %v12105_v19 = vld [vmem:[#allocation8 + $0x364] sm:$0xf] }
 0x105   :  { %3255 = vmatpush.bf16.msra.mxu0 %v8740_v15  ;;  %v1225_v63 = vpop.f32.mrf.mxu0  ;;  %v9383_v15 = vld [vmem:[#allocation8 + $0x630] sm:$0xf]  ;;  %v1251_v29 = vpop.f32.mrf.mxu2  ;;  %3240 = vmatpush.bf16.msrb.mxu3 %v9720_v22 }
 0x106   :  { %3269 = vmatpush.bf16.msra.mxu1 %v8932_v30  ;;  %v1226_v4 = vadd.f32 %v1225_v63, %v1212_v56  ;;  %v1239_v5 = vpop.f32.mrf.mxu1  ;;  %v9384_v18 = vor.u32 %v12198_v16, %v9383_v15  ;;  %v8812_v30 = vor.u32 %v12051_v23, %v8809_v26  ;;  %v9097_v56 = vld [vmem:[#allocation8 + $0x408] sm:$0xf0]  ;;  %v9025_v26 = vld [vmem:[#allocation8 + $0x378] sm:$0xf0] }
 0x107   :  { %v1265_v37 = vpop.f32.mrf.mxu3  ;;  %v9028_v34 = vor.u32 %v12105_v19, %v9025_v26  ;;  %v9673_v19 = vld [vmem:[#allocation8 + $0x888] sm:$0xf0]  ;;  %v414_v26 = vperm.slane %v13403_v8, 4 }
 0x108   :  { %v1240_v9 = vadd.f32 %v1239_v5, %v1226_v4  ;;  %3232 = vmatpush.bf16.msrb.mxu2 %v9384_v18  ;;  %v413_v4 = vperm.slane %v13403_v8, 3  ;;  %v12246_v18 = vld [vmem:[#allocation8 + $0x7c4] sm:$0xf0] }
 0x109   :  { %3256 = vmatpush.bf16.msra.mxu0 %v8716_v27  ;;  %3241 = vmatpush.bf16.msrb.mxu3 %v9696_v38  ;;  %v12240_v38 = vld [vmem:[#allocation8 + $0x794] sm:$0xf0] }
 0x10a   :  { %3270 = vmatpush.bf16.msra.mxu1 %v8908_v41  ;;  %v1417_v17 = vmax.f32 %v1240_v9, 0.0  ;;  %v8785_v41 = vld [vmem:[#allocation8 + $0x198] sm:$0xf0] }
 0x10b   :  { %v8788_v43 = vor.u32 %v12045_v40, %v8785_v41  ;;  %v12099_v41 = vld [vmem:[#allocation8 + $0x334] sm:$0xf] }
 0x10c   :  { %v13410_v27 = vpack.c.bf16 %v1417_v17, %v1411_v25  ;;  %3233 = vmatpush.bf16.msrb.mxu2 %v9360_v33  ;;  %v12252_v25 = vld [vmem:[#allocation8 + $0x7f4] sm:$0xf0]  ;;  %v9575_v17 = vld [vmem:[#allocation8 + $0x7b0] sm:$0xf]  ;;  %v9529_v33 = vld [vmem:[#allocation8 + $0x768] sm:$0xf0] }
 0x10d   :  { %3257 = vmatpush.bf16.msra.mxu0 %v8692_v36  ;;  %v12135_v36 = vld [vmem:[#allocation8 + $0x454] sm:$0xf]  ;;  %v1253_v54 = vpop.f32.mrf.mxu2  ;;  %3242 = vmatpush.bf16.msrb.mxu3 %v9672_v47  ;;  %v9600_v9 = vor.u32 %v12252_v25, %v9599_v6  ;;  %v9576_v23 = vor.u32 %v12246_v18, %v9575_v17  ;;  %v9505_v47 = vld [vmem:[#allocation8 + $0x738] sm:$0xf0]  ;;  %v12273_v25 = vld [vmem:[#allocation8 + $0x8a4] sm:$0xf] }
 0x10e   :  { %3271 = vmatpush.bf16.msra.mxu1 %v8884_v53  ;;  %3192 = vmatmul.bf16.vlgmr.msra.gmra.mxu3 %v13410_v27  ;;  %v9148_v42 = vor.u32 %v12135_v36, %v9145_v39  ;;  %v12123_v53 = vld [vmem:[#allocation8 + $0x3f4] sm:$0xf]  ;;  %v9532_v39 = vor.u32 %v12231_v32, %v9529_v33  ;;  %v9457_v6 = vld [vmem:[#allocation8 + $0x6d8] sm:$0xf0]  ;;  %v9433_v17 = vld [vmem:[#allocation8 + $0x6a8] sm:$0xf0] }
 0x10f   :  { %v9100_v58 = vor.u32 %v12123_v53, %v9097_v56  ;;  %v1267_v59 = vpop.f32.mrf.mxu3  ;;  %v12219_v53 = vld [vmem:[#allocation8 + $0x6f4] sm:$0xf]  ;;  %v12261_v32 = vld [vmem:[#allocation8 + $0x844] sm:$0xf] }
 0x110   :  { %3282 = vmatpush.bf16.msra.mxu2 %v9148_v42  ;;  %v9001_v42 = vld [vmem:[#allocation8 + $0x348] sm:$0xf0]  ;;  %v12267_v18 = vld [vmem:[#allocation8 + $0x874] sm:$0xf] }
 0x111   :  { %3258 = vmatpush.bf16.msra.mxu0 %v8668_v49  ;;  %v412_v49 = vperm.slane %v13403_v8, 2  ;;  %3243 = vmatpush.bf16.msrb.mxu3 %v9648_v55  ;;  %v9004_v48 = vor.u32 %v12099_v41, %v9001_v42  ;;  %v8977_v55 = vld [vmem:[#allocation8 + $0x318] sm:$0xf0]  ;;  %v12195_v41 = vld [vmem:[#allocation8 + $0x634] sm:$0xf] }
 0x112   :  { %3272 = vmatpush.bf16.msra.mxu1 %v8860_v1  ;;  %v9073_v1 = vld [vmem:[#allocation8 + $0x3d8] sm:$0xf0]  ;;  %v9385_v42 = vld [vmem:[#allocation8 + $0x648] sm:$0xf0] }
 0x113   :  { %v1252_v57 = vadd.f32 %v1251_v29, %v412_v49  ;;  %v1254_v3 = vadd.f32 %v1253_v54, %v412_v49  ;;  %v9076_v7 = vor.u32 %v12117_v62, %v9073_v1  ;;  %v9337_v49 = vld [vmem:[#allocation8 + $0x5e8] sm:$0xf0]  ;;  %v12093_v54 = vld [vmem:[#allocation8 + $0x304] sm:$0xf] }
 0x114   :  { %3283 = vmatpush.bf16.msra.mxu2 %v9124_v50  ;;  %v9721_v1 = vld [vmem:[#allocation8 + $0x8e8] sm:$0xf0] }
 0x115   :  { %3259 = vmatpush.bf16.msra.mxu0 %v8644_v60  ;;  %v9623_v60 = vld [vmem:[#allocation8 + $0x810] sm:$0xf]  ;;  %v1266_v2 = vadd.f32 %v1265_v37, %v1252_v57  ;;  %v1268_v12 = vadd.f32 %v1267_v59, %v1254_v3  ;;  %v9551_v37 = vld [vmem:[#allocation8 + $0x780] sm:$0xf]  ;;  %v9508_v57 = vor.u32 %v12225_v46, %v9505_v47  ;;  %v8980_v59 = vor.u32 %v12093_v54, %v8977_v55  ;;  %v9625_v46 = vld [vmem:[#allocation8 + $0x828] sm:$0xf0] }
 0x116   :  { %3273 = vmatpush.bf16.msra.mxu1 %v8836_v14  ;;  %v9624_v0 = vor.u32 %v12258_v61, %v9623_v60  ;;  %v9552_v40 = vor.u32 %v12240_v38, %v9551_v37  ;;  %v12177_v60 = vld [vmem:[#allocation8 + $0x5a4] sm:$0xf]  ;;  %v9313_v61 = vld [vmem:[#allocation8 + $0x5b8] sm:$0xf0] }
 0x117   :  { %v12153_v47 = vld [vmem:[#allocation8 + $0x4e4] sm:$0xf]  ;;  %v9361_v54 = vld [vmem:[#allocation8 + $0x618] sm:$0xf0] }
 0x118   :  { %3284 = vmatpush.bf16.msra.mxu2 %v9100_v58  ;;  %3244 = vmatpush.bf16.msrb.mxu3 %v9624_v0  ;;  %v9481_v58 = vld [vmem:[#allocation8 + $0x708] sm:$0xf0]  ;;  %v12279_v0 = vld [vmem:[#allocation8 + $0x8d4] sm:$0xf]  ;;  %v12249_v55 = vld [vmem:[#allocation8 + $0x7e4] sm:$0xf] }
 0x119   :  { %3260 = vmatpush.bf16.msra.mxu0 %v8620_v10  ;;  %v12111_v10 = vld [vmem:[#allocation8 + $0x394] sm:$0xf] }
 0x11a   :  { %3274 = vmatpush.bf16.msra.mxu1 %v8812_v30  ;;  %v9052_v15 = vor.u32 %v12111_v10, %v9049_v11  ;;  %v9697_v10 = vld [vmem:[#allocation8 + $0x8b8] sm:$0xf0]  ;;  %v12171_v11 = vld [vmem:[#allocation8 + $0x574] sm:$0xf] }
 0x11c   :  { %3285 = vmatpush.bf16.msra.mxu2 %v9076_v7  ;;  %3245 = vmatpush.bf16.msrb.mxu3 %v9600_v9  ;;  %v12213_v7 = vld [vmem:[#allocation8 + $0x6c4] sm:$0xf] }
 0x11d   :  { %3261 = vmatpush.bf16.msra.mxu0 %v8596_v28  ;;  %v1279_v63 = vpop.f32.mrf.mxu0 }
 0x11e   :  { %3275 = vmatpush.bf16.msra.mxu1 %v8788_v43  ;;  %v1293_v5 = vpop.f32.mrf.mxu1  ;;  %v1280_v13 = vadd.f32 %v1279_v63, %v1266_v2  ;;  %v12183_v43 = vld [vmem:[#allocation8 + $0x5d4] sm:$0xf]  ;;  %v9316_v2 = vor.u32 %v12177_v60, %v9313_v61  ;;  %v9193_v60 = vld [vmem:[#allocation8 + $0x4c8] sm:$0xf0] }
 0x11f   :  { %v1294_v14 = vadd.f32 %v1293_v5, %v413_v4  ;;  %v9340_v51 = vor.u32 %v12183_v43, %v9337_v49  ;;  %v9724_v5 = vor.u32 %v12279_v0, %v9721_v1  ;;  %v12255_v43 = vld [vmem:[#allocation8 + $0x814] sm:$0xf]  ;;  %v12139_v0 = vld [vmem:[#allocation8 + $0x46c] sm:$0xf0] }
 0x120   :  { %3286 = vmatpush.bf16.msra.mxu2 %v9052_v15  ;;  %v1412_v28 = vmax.f32 %v1280_v13, 0.0  ;;  %3246 = vmatpush.bf16.msrb.mxu3 %v9576_v23  ;;  %v9700_v15 = vor.u32 %v12273_v25, %v9697_v10  ;;  %v9577_v25 = vld [vmem:[#allocation8 + $0x7c8] sm:$0xf0]  ;;  %v12141_v10 = vld [vmem:[#allocation8 + $0x484] sm:$0xf] }
 0x124   :  { %3287 = vmatpush.bf16.msra.mxu2 %v9028_v34  ;;  %3247 = vmatpush.bf16.msrb.mxu3 %v9552_v40  ;;  %v9649_v34 = vld [vmem:[#allocation8 + $0x858] sm:$0xf0] }
 0x125   :  { %v1307_v16 = vpop.f32.mrf.mxu2  ;;  %v1281_v20 = vpop.f32.mrf.mxu0  ;;  %v9652_v40 = vor.u32 %v12261_v32, %v9649_v34 }
 0x126   :  { %v1308_v29 = vadd.f32 %v1307_v16, %v1294_v14  ;;  %v1282_v30 = vadd.f32 %v1281_v20, %v1268_v12  ;;  %v1295_v31 = vpop.f32.mrf.mxu1  ;;  %v9289_v12 = vld [vmem:[#allocation8 + $0x588] sm:$0xf0]  ;;  %v9460_v14 = vor.u32 %v12213_v7, %v9457_v6  ;;  %v12207_v16 = vld [vmem:[#allocation8 + $0x694] sm:$0xf]  ;;  %v12165_v20 = vld [vmem:[#allocation8 + $0x544] sm:$0xf] }
 0x127   :  { %v1321_v22 = vpop.f32.mrf.mxu3  ;;  %v1296_v36 = vadd.f32 %v1295_v31, %v413_v4  ;;  %v9484_v4 = vor.u32 %v12219_v53, %v9481_v58  ;;  %v9292_v13 = vor.u32 %v12171_v11, %v9289_v12  ;;  %v9409_v31 = vld [vmem:[#allocation8 + $0x678] sm:$0xf0]  ;;  %v12189_v53 = vld [vmem:[#allocation8 + $0x604] sm:$0xf]  ;;  %v9127_v12 = vld [vmem:[#allocation8 + $0x428] sm:$0xf] }
 0x128   :  { %v1418_v35 = vmax.f32 %v1282_v30, 0.0  ;;  %v1322_v45 = vadd.f32 %v1321_v22, %v1308_v29  ;;  %3288 = vmatpush.bf16.msra.mxu2 %v9004_v48  ;;  %3296 = vmatpush.bf16.msra.mxu3 %v9340_v51  ;;  %v9265_v22 = vld [vmem:[#allocation8 + $0x558] sm:$0xf0]  ;;  %v9676_v29 = vor.u32 %v12267_v18, %v9673_v19  ;;  %v12201_v30 = vld [vmem:[#allocation8 + $0x664] sm:$0xf]  ;;  %v9388_v51 = vor.u32 %v12195_v41, %v9385_v42 }
 0x129   :  { %v9268_v23 = vor.u32 %v12165_v20, %v9265_v22  ;;  %v9217_v48 = vld [vmem:[#allocation8 + $0x4f8] sm:$0xf0]  ;;  %v12043_v18 = vld [vmem:[#allocation8 + $0x16c] sm:$0xf0]  ;;  %v12237_v19 = vld [vmem:[#allocation8 + $0x784] sm:$0xf] }
 0x12a   :  { %v13415_v44 = vpack.c.bf16 %v1418_v35, %v1412_v28  ;;  %v1413_v62 = vmax.f32 %v1322_v45, 0.0  ;;  %v9436_v28 = vor.u32 %v12207_v16, %v9433_v17  ;;  %v12159_v35 = vld [vmem:[#allocation8 + $0x514] sm:$0xf]  ;;  %v9220_v49 = vor.u32 %v12153_v47, %v9217_v48  ;;  %v9601_v58 = vld [vmem:[#allocation8 + $0x7f8] sm:$0xf0] }
 0x12b   :  { %v9169_v11 = vld [vmem:[#allocation8 + $0x498] sm:$0xf0]  ;;  %v8767_v17 = vld [vmem:[#allocation8 + $0x158] sm:$0xf]  ;;  %v12121_v41 = vld [vmem:[#allocation8 + $0x3dc] sm:$0xf0] }
 0x12c   :  { %3206 = vmatmul.bf16.vlgmr.msrb.gmra.mxu0 %v13415_v44  ;;  %3289 = vmatpush.bf16.msra.mxu2 %v8980_v59  ;;  %v12147_v59 = vld [vmem:[#allocation8 + $0x4b4] sm:$0xf]  ;;  %v9319_v42 = vld [vmem:[#allocation8 + $0x5a8] sm:$0xf] }
 0x12d   :  { %v1309_v50 = vpop.f32.mrf.mxu2  ;;  %3310 = vmatpush.bf16.msrb.mxu0 %v9532_v39  ;;  %3297 = vmatpush.bf16.msra.mxu3 %v9316_v2  ;;  %v9412_v39 = vor.u32 %v12201_v30, %v9409_v31  ;;  %v9196_v1 = vor.u32 %v12147_v59, %v9193_v60  ;;  %v9364_v2 = vor.u32 %v12189_v53, %v9361_v54  ;;  %v9343_v30 = vld [vmem:[#allocation8 + $0x5d8] sm:$0xf]  ;;  %v12187_v31 = vld [vmem:[#allocation8 + $0x5ec] sm:$0xf0]  ;;  %v8695_v59 = vld [vmem:[#allocation8 + $0xc8] sm:$0xf] }
 0x12e   :  { %v1310_v52 = vadd.f32 %v1309_v50, %v1296_v36  ;;  %v9241_v36 = vld [vmem:[#allocation8 + $0x528] sm:$0xf0]  ;;  %v9295_v53 = vld [vmem:[#allocation8 + $0x578] sm:$0xf]  ;;  %v12175_v54 = vld [vmem:[#allocation8 + $0x58c] sm:$0xf0] }
 0x12f   :  { %v1323_v56 = vpop.f32.mrf.mxu3  ;;  %v9244_v38 = vor.u32 %v12159_v35, %v9241_v36  ;;  %v12025_v60 = vld [vmem:[#allocation8 + $0xdc] sm:$0xf0] }
 0x130   :  { %v1324_v63 = vadd.f32 %v1323_v56, %v1310_v52  ;;  %v9628_v52 = vor.u32 %v12255_v43, %v9625_v46  ;;  %v12181_v43 = vld [vmem:[#allocation8 + $0x5bc] sm:$0xf0] }
 0x131   :  { %3311 = vmatpush.bf16.msrb.mxu0 %v9508_v57  ;;  %3298 = vmatpush.bf16.msra.mxu3 %v9292_v13  ;;  %v12133_v13 = vld [vmem:[#allocation8 + $0x43c] sm:$0xf0]  ;;  %v9320_v48 = vor.u32 %v12181_v43, %v9319_v42  ;;  %v8959_v43 = vld [vmem:[#allocation8 + $0x2d8] sm:$0xf] }
 0x132   :  { %v1419_v3 = vmax.f32 %v1324_v63, 0.0  ;;  %v9151_v63 = vld [vmem:[#allocation8 + $0x458] sm:$0xf] }
 0x133   :  { %v9152_v6 = vor.u32 %v12139_v0, %v9151_v63  ;;  %v9271_v63 = vld [vmem:[#allocation8 + $0x548] sm:$0xf]  ;;  %v12169_v0 = vld [vmem:[#allocation8 + $0x55c] sm:$0xf0] }
 0x134   :  { %v13418_v9 = vpack.c.bf16 %v1419_v3, %v1413_v62  ;;  %v9604_v3 = vor.u32 %v12249_v55, %v9601_v58  ;;  %v415_v55 = vperm.slane %v13403_v8, 5  ;;  %v9296_v58 = vor.u32 %v12175_v54, %v9295_v53  ;;  %v8599_v54 = vld [vmem:[#allocation8 + $0x8] sm:$0xf] }
 0x135   :  { %3312 = vmatpush.bf16.msrb.mxu0 %v9484_v4  ;;  %3299 = vmatpush.bf16.msra.mxu3 %v9268_v23  ;;  %v12243_v4 = vld [vmem:[#allocation8 + $0x7b4] sm:$0xf]  ;;  %v9128_v23 = vor.u32 %v12133_v13, %v9127_v12  ;;  %v12163_v12 = vld [vmem:[#allocation8 + $0x52c] sm:$0xf0] }
 0x136   :  { %3220 = vmatmul.bf16.vlgmr.msrb.gmra.mxu1 %v13418_v9  ;;  %v9580_v16 = vor.u32 %v12243_v4, %v9577_v25  ;;  %v8696_v4 = vor.u32 %v12025_v60, %v8695_v59  ;;  %v9007_v25 = vld [vmem:[#allocation8 + $0x338] sm:$0xf]  ;;  %v12085_v59 = vld [vmem:[#allocation8 + $0x2bc] sm:$0xf0] }
 0x137   :  { %3324 = vmatpush.bf16.msrb.mxu1 %v9724_v5  ;;  %v9535_v60 = vld [vmem:[#allocation8 + $0x758] sm:$0xf] }
 0x139   :  { %3313 = vmatpush.bf16.msrb.mxu0 %v9460_v14  ;;  %3300 = vmatpush.bf16.msra.mxu3 %v9244_v38  ;;  %v9172_v14 = vor.u32 %v12141_v10, %v9169_v11  ;;  %v8743_v38 = vld [vmem:[#allocation8 + $0x128] sm:$0xf]  ;;  %v12103_v10 = vld [vmem:[#allocation8 + $0x34c] sm:$0xf0]  ;;  %v9247_v11 = vld [vmem:[#allocation8 + $0x518] sm:$0xf] }
 0x13b   :  { %3325 = vmatpush.bf16.msrb.mxu1 %v9700_v15 }
 0x13c   :  { %3262 = vmatmul.bf16.vlgmr.msra.gmra.mxu0 %v13406_v21 }
 0x13d   :  { %v1335_v33 = vpop.f32.mrf.mxu0  ;;  %3314 = vmatpush.bf16.msrb.mxu0 %v9436_v28  ;;  %3301 = vmatpush.bf16.msra.mxu3 %v9220_v49  ;;  %v9103_v28 = vld [vmem:[#allocation8 + $0x3f8] sm:$0xf] }
 0x13e   :  { %v1349_v37 = vpop.f32.mrf.mxu1  ;;  %v1336_v45 = vadd.f32 %v1335_v33, %v414_v26  ;;  %v8768_v33 = vor.u32 %v12043_v18, %v8767_v17  ;;  %v8719_v49 = vld [vmem:[#allocation8 + $0xf8] sm:$0xf]  ;;  %v9248_v17 = vor.u32 %v12163_v12, %v9247_v11  ;;  %v8647_v18 = vld [vmem:[#allocation8 + $0x68] sm:$0xf]  ;;  %v12229_v12 = vld [vmem:[#allocation8 + $0x73c] sm:$0xf0] }
 0x13f   :  { %3326 = vmatpush.bf16.msrb.mxu1 %v9676_v29  ;;  %v12127_v29 = vld [vmem:[#allocation8 + $0x40c] sm:$0xf0]  ;;  %v9511_v11 = vld [vmem:[#allocation8 + $0x728] sm:$0xf] }
 0x140   :  { %v1350_v56 = vadd.f32 %v1349_v37, %v1336_v45  ;;  %v9104_v36 = vor.u32 %v12127_v29, %v9103_v28  ;;  %v9344_v37 = vor.u32 %v12187_v31, %v9343_v30  ;;  %v12157_v28 = vld [vmem:[#allocation8 + $0x4fc] sm:$0xf0]  ;;  %v12040_v30 = vld [vmem:[#allocation8 + $0x15c] sm:$0xf]  ;;  %v8769_v31 = vld [vmem:[#allocation8 + $0x170] sm:$0xf0] }
 0x141   :  { %3315 = vmatpush.bf16.msrb.mxu0 %v9412_v39  ;;  %3302 = vmatpush.bf16.msra.mxu3 %v9196_v1  ;;  %v12037_v39 = vld [vmem:[#allocation8 + $0x13c] sm:$0xf0]  ;;  %v8772_v42 = vor.u32 %v12040_v30, %v8769_v31  ;;  %v12016_v31 = vld [vmem:[#allocation8 + $0x9c] sm:$0xf] }
 0x142   :  { %v8744_v45 = vor.u32 %v12037_v39, %v8743_v38  ;;  %v8623_v39 = vld [vmem:[#allocation8 + $0x38] sm:$0xf] }
 0x143   :  { %3327 = vmatpush.bf16.msrb.mxu1 %v9652_v40  ;;  %v9079_v40 = vld [vmem:[#allocation8 + $0x3c8] sm:$0xf] }
 0x144   :  { %v9080_v47 = vor.u32 %v12121_v41, %v9079_v40  ;;  %v12007_v40 = vld [vmem:[#allocation8 + $0x4c] sm:$0xf0] }
 0x145   :  { %v1363_v50 = vpop.f32.mrf.mxu2  ;;  %v1337_v57 = vpop.f32.mrf.mxu0  ;;  %3316 = vmatpush.bf16.msrb.mxu0 %v9388_v51  ;;  %3303 = vmatpush.bf16.msra.mxu3 %v9172_v14  ;;  %v9055_v51 = vld [vmem:[#allocation8 + $0x398] sm:$0xf] }
 0x146   :  { %v1338_v61 = vadd.f32 %v1337_v57, %v414_v26  ;;  %v1351_v62 = vpop.f32.mrf.mxu1  ;;  %3276 = vmatmul.bf16.vlgmr.msra.gmra.mxu1 %v13410_v27  ;;  %v1364_v5 = vadd.f32 %v1363_v50, %v1350_v56  ;;  %v9553_v26 = vld [vmem:[#allocation8 + $0x798] sm:$0xf0]  ;;  %v1377_v46 = vpop.f32.mrf.mxu3  ;;  %v12031_v50 = vld [vmem:[#allocation8 + $0x10c] sm:$0xf0] }
 0x147   :  { %3328 = vmatpush.bf16.msrb.mxu1 %v9628_v52  ;;  %v9556_v34 = vor.u32 %v12237_v19, %v9553_v26  ;;  %v12115_v52 = vld [vmem:[#allocation8 + $0x3ac] sm:$0xf0]  ;;  %v8720_v56 = vor.u32 %v12031_v50, %v8719_v49  ;;  %v12013_v19 = vld [vmem:[#allocation8 + $0x7c] sm:$0xf0]  ;;  %v9223_v26 = vld [vmem:[#allocation8 + $0x4e8] sm:$0xf]  ;;  %v8624_v50 = vor.u32 %v12007_v40, %v8623_v39 }
 0x148   :  { %v1352_v7 = vadd.f32 %v1351_v62, %v1338_v61  ;;  %v1414_v20 = vmax.f32 %v1364_v5, 0.0  ;;  %v9056_v57 = vor.u32 %v12115_v52, %v9055_v51  ;;  %v9031_v61 = vld [vmem:[#allocation8 + $0x368] sm:$0xf]  ;;  %v12109_v62 = vld [vmem:[#allocation8 + $0x37c] sm:$0xf0]  ;;  %v9272_v5 = vor.u32 %v12169_v0, %v9271_v63 }
 0x149   :  { %3317 = vmatpush.bf16.msrb.mxu0 %v9364_v2  ;;  %v9032_v8 = vor.u32 %v12109_v62, %v9031_v61  ;;  %v9224_v38 = vor.u32 %v12157_v28, %v9223_v26  ;;  %v12034_v51 = vld [vmem:[#allocation8 + $0x12c] sm:$0xf]  ;;  %v8745_v52 = vld [vmem:[#allocation8 + $0x140] sm:$0xf0]  ;;  %v12235_v61 = vld [vmem:[#allocation8 + $0x76c] sm:$0xf0] }
 0x14a   :  { %v8748_v62 = vor.u32 %v12034_v51, %v8745_v52  ;;  %v9175_v63 = vld [vmem:[#allocation8 + $0x488] sm:$0xf]  ;;  %v12145_v0 = vld [vmem:[#allocation8 + $0x49c] sm:$0xf0]  ;;  %v9487_v26 = vld [vmem:[#allocation8 + $0x6f8] sm:$0xf] }
 0x14b   :  { %3329 = vmatpush.bf16.msrb.mxu1 %v9604_v3  ;;  %v1378_v3 = vadd.f32 %v1377_v46, %v415_v55  ;;  %v9199_v46 = vld [vmem:[#allocation8 + $0x4b8] sm:$0xf]  ;;  %v12223_v28 = vld [vmem:[#allocation8 + $0x70c] sm:$0xf0]  ;;  %v8839_v51 = vld [vmem:[#allocation8 + $0x1e8] sm:$0xf] }
 0x14c   :  { %v12067_v39 = vld [vmem:[#allocation8 + $0x22c] sm:$0xf0]  ;;  %v12061_v52 = vld [vmem:[#allocation8 + $0x1fc] sm:$0xf0] }
 0x14d   :  { %v1365_v15 = vpop.f32.mrf.mxu2  ;;  %3366 = vmatpush.bf16.msra.mxu0 %v9152_v6  ;;  %v12019_v6 = vld [vmem:[#allocation8 + $0xac] sm:$0xf0] }
 0x14e   :  { %v1366_v22 = vadd.f32 %v1365_v15, %v1352_v7  ;;  %v8671_v7 = vld [vmem:[#allocation8 + $0x98] sm:$0xf]  ;;  %v1379_v13 = vpop.f32.mrf.mxu3 }
 0x14f   :  { %3330 = vmatpush.bf16.msrb.mxu1 %v9580_v16  ;;  %v8672_v15 = vor.u32 %v12019_v6, %v8671_v7  ;;  %v9008_v16 = vor.u32 %v12103_v10, %v9007_v25  ;;  %v9536_v7 = vor.u32 %v12235_v61, %v9535_v60  ;;  %v8911_v6 = vld [vmem:[#allocation8 + $0x278] sm:$0xf]  ;;  %v9176_v25 = vor.u32 %v12145_v0, %v9175_v63  ;;  %v12079_v10 = vld [vmem:[#allocation8 + $0x28c] sm:$0xf0]  ;;  %v12064_v60 = vld [vmem:[#allocation8 + $0x21c] sm:$0xf] }
 0x150   :  { %v1420_v32 = vmax.f32 %v1366_v22, 0.0  ;;  %v1380_v22 = vadd.f32 %v1379_v13, %v415_v55  ;;  %v12001_v55 = vld [vmem:[#allocation8 + $0x1c] sm:$0xf0]  ;;  %v8865_v61 = vld [vmem:[#allocation8 + $0x230] sm:$0xf0] }
 0x151   :  { %3367 = vmatpush.bf16.msra.mxu0 %v9128_v23  ;;  %v12097_v23 = vld [vmem:[#allocation8 + $0x31c] sm:$0xf0]  ;;  %v8815_v0 = vld [vmem:[#allocation8 + $0x1b8] sm:$0xf] }
 0x152   :  { %v13424_v35 = vpack.c.bf16 %v1420_v32, %v1414_v20  ;;  %v8983_v20 = vld [vmem:[#allocation8 + $0x308] sm:$0xf] }
 0x153   :  { %3331 = vmatpush.bf16.msrb.mxu1 %v9556_v34  ;;  %v8648_v34 = vor.u32 %v12013_v19, %v8647_v18  ;;  %v8937_v18 = vld [vmem:[#allocation8 + $0x2c0] sm:$0xf0]  ;;  %v8912_v19 = vor.u32 %v12079_v10, %v8911_v6  ;;  %v12058_v6 = vld [vmem:[#allocation8 + $0x1ec] sm:$0xf] }
 0x154   :  { %3234 = vmatmul.bf16.vlgmr.msrb.gmra.mxu2 %v13424_v35  ;;  %3318 = vmatmul.bf16.vlgmr.msrb.gmra.mxu0 %v13424_v35 }
 0x155   :  { %3338 = vmatpush.bf16.msrb.mxu2 %v8768_v33  ;;  %3368 = vmatpush.bf16.msra.mxu0 %v9104_v36 }
 0x157   :  { %3380 = vmatpush.bf16.msra.mxu1 %v9344_v37  ;;  %v8984_v37 = vor.u32 %v12097_v23, %v8983_v20  ;;  %v9512_v20 = vor.u32 %v12229_v12, %v9511_v11  ;;  %v12073_v23 = vld [vmem:[#allocation8 + $0x25c] sm:$0xf0]  ;;  %v12232_v11 = vld [vmem:[#allocation8 + $0x75c] sm:$0xf]  ;;  %v9537_v12 = vld [vmem:[#allocation8 + $0x770] sm:$0xf0] }
 0x159   :  { %3339 = vmatpush.bf16.msrb.mxu2 %v8744_v45  ;;  %3369 = vmatpush.bf16.msra.mxu0 %v9080_v47  ;;  %v12091_v45 = vld [vmem:[#allocation8 + $0x2ec] sm:$0xf0] }
 0x15a   :  { %v12151_v47 = vld [vmem:[#allocation8 + $0x4cc] sm:$0xf0]  ;;  %v8960_v53 = vor.u32 %v12091_v45, %v8959_v43  ;;  %v12217_v43 = vld [vmem:[#allocation8 + $0x6dc] sm:$0xf0]  ;;  %v12010_v45 = vld [vmem:[#allocation8 + $0x6c] sm:$0xf] }
 0x15b   :  { %3381 = vmatpush.bf16.msra.mxu1 %v9320_v48 }
 0x15d   :  { %v1391_v1 = vpop.f32.mrf.mxu0  ;;  %3340 = vmatpush.bf16.msrb.mxu2 %v8720_v56  ;;  %3370 = vmatpush.bf16.msra.mxu0 %v9056_v57  ;;  %v8935_v56 = vld [vmem:[#allocation8 + $0x2a8] sm:$0xf] }
 0x15e   :  { %v1405_v2 = vpop.f32.mrf.mxu1  ;;  %v1392_v14 = vadd.f32 %v1391_v1, %v1378_v3  ;;  %v12028_v1 = vld [vmem:[#allocation8 + $0xfc] sm:$0xf]  ;;  %v8721_v3 = vld [vmem:[#allocation8 + $0x110] sm:$0xf0] }
 0x15f   :  { %3382 = vmatpush.bf16.msra.mxu1 %v9296_v58  ;;  %v9200_v58 = vor.u32 %v12151_v47, %v9199_v46  ;;  %v8724_v13 = vor.u32 %v12028_v1, %v8721_v3  ;;  %v8649_v46 = vld [vmem:[#allocation8 + $0x80] sm:$0xf0]  ;;  %v12070_v47 = vld [vmem:[#allocation8 + $0x24c] sm:$0xf]  ;;  %v12055_v1 = vld [vmem:[#allocation8 + $0x1cc] sm:$0xf0]  ;;  %v8868_v3 = vor.u32 %v12064_v60, %v8865_v61 }
 0x160   :  { %v1406_v32 = vadd.f32 %v1405_v2, %v1392_v14  ;;  %v8600_v2 = vor.u32 %v12001_v55, %v8599_v54  ;;  %v9439_v55 = vld [vmem:[#allocation8 + $0x698] sm:$0xf]  ;;  %v8816_v10 = vor.u32 %v12055_v1, %v8815_v0  ;;  %v9129_v60 = vld [vmem:[#allocation8 + $0x440] sm:$0xf0]  ;;  %v12214_v61 = vld [vmem:[#allocation8 + $0x6cc] sm:$0xf] }
 0x161   :  { %3341 = vmatpush.bf16.msrb.mxu2 %v8696_v4  ;;  %3371 = vmatpush.bf16.msra.mxu0 %v9032_v8  ;;  %v12088_v4 = vld [vmem:[#allocation8 + $0x2dc] sm:$0xf]  ;;  %v8961_v8 = vld [vmem:[#allocation8 + $0x2f0] sm:$0xf0]  ;;  %v9705_v0 = vld [vmem:[#allocation8 + $0x8c0] sm:$0xf0] }
 0x162   :  { %v1415_v48 = vmax.f32 %v1406_v32, 0.0  ;;  %v8964_v14 = vor.u32 %v12088_v4, %v8961_v8  ;;  %v8673_v32 = vld [vmem:[#allocation8 + $0xb0] sm:$0xf0]  ;;  %v9415_v4 = vld [vmem:[#allocation8 + $0x668] sm:$0xf] }
 0x163   :  { %3383 = vmatpush.bf16.msra.mxu1 %v9272_v5  ;;  %v8936_v5 = vor.u32 %v12085_v59, %v8935_v56  ;;  %v8676_v40 = vor.u32 %v12016_v31, %v8673_v32  ;;  %v12211_v56 = vld [vmem:[#allocation8 + $0x6ac] sm:$0xf0]  ;;  %v8625_v59 = vld [vmem:[#allocation8 + $0x50] sm:$0xf0]  ;;  %v12205_v8 = vld [vmem:[#allocation8 + $0x67c] sm:$0xf0] }
 0x164   :  { %3290 = vmatmul.bf16.vlgmr.msra.gmra.mxu2 %v13415_v44  ;;  %v9440_v63 = vor.u32 %v12211_v56, %v9439_v55  ;;  %v9513_v31 = vld [vmem:[#allocation8 + $0x740] sm:$0xf0]  ;;  %v12271_v55 = vld [vmem:[#allocation8 + $0x88c] sm:$0xf0] }
 0x165   :  { %v1393_v29 = vpop.f32.mrf.mxu0  ;;  %3342 = vmatpush.bf16.msrb.mxu2 %v8672_v15  ;;  %3372 = vmatpush.bf16.msra.mxu0 %v9008_v16  ;;  %v12022_v15 = vld [vmem:[#allocation8 + $0xcc] sm:$0xf]  ;;  %v8697_v16 = vld [vmem:[#allocation8 + $0xe0] sm:$0xf0] }
 0x166   :  { %v1394_v33 = vadd.f32 %v1393_v29, %v1380_v22  ;;  %v1407_v36 = vpop.f32.mrf.mxu1  ;;  %v8887_v22 = vld [vmem:[#allocation8 + $0x248] sm:$0xf]  ;;  %v8700_v29 = vor.u32 %v12022_v15, %v8697_v16  ;;  %v12049_v15 = vld [vmem:[#allocation8 + $0x19c] sm:$0xf0]  ;;  %v9391_v16 = vld [vmem:[#allocation8 + $0x638] sm:$0xf] }
 0x167   :  { %3384 = vmatpush.bf16.msra.mxu1 %v9248_v17  ;;  %v12082_v17 = vld [vmem:[#allocation8 + $0x2ac] sm:$0xf] }
 0x168   :  { %v1408_v41 = vadd.f32 %v1407_v36, %v1394_v33  ;;  %v8940_v30 = vor.u32 %v12082_v17, %v8937_v18  ;;  %v12076_v33 = vld [vmem:[#allocation8 + $0x27c] sm:$0xf]  ;;  %v8888_v36 = vor.u32 %v12073_v23, %v8887_v22  ;;  %v12283_v22 = vld [vmem:[#allocation8 + $0x8ec] sm:$0xf0]  ;;  %v9540_v23 = vor.u32 %v12232_v11, %v9537_v12  ;;  %v9681_v12 = vld [vmem:[#allocation8 + $0x890] sm:$0xf0] }
 0x169   :  { %3343 = vmatpush.bf16.msrb.mxu2 %v8648_v34  ;;  %3373 = vmatpush.bf16.msra.mxu0 %v8984_v37  ;;  %v8913_v34 = vld [vmem:[#allocation8 + $0x290] sm:$0xf0]  ;;  %v9488_v37 = vor.u32 %v12223_v28, %v9487_v26  ;;  %v12052_v26 = vld [vmem:[#allocation8 + $0x1bc] sm:$0xf] }
 0x16a   :  { %v1421_v49 = vmax.f32 %v1408_v41, 0.0  ;;  %v8916_v41 = vor.u32 %v12076_v33, %v8913_v34  ;;  %v8817_v28 = vld [vmem:[#allocation8 + $0x1d0] sm:$0xf0]  ;;  %v9367_v34 = vld [vmem:[#allocation8 + $0x608] sm:$0xf] }
 0x16b   :  { %3385 = vmatpush.bf16.msra.mxu1 %v9224_v38  ;;  %v8863_v38 = vld [vmem:[#allocation8 + $0x218] sm:$0xf]  ;;  %v12268_v11 = vld [vmem:[#allocation8 + $0x87c] sm:$0xf] }
 0x16c   :  { %v13430_v57 = vpack.c.bf16 %v1421_v49, %v1415_v48  ;;  %3374 = vmatmul.bf16.vlgmr.msra.gmra.mxu0 %v13415_v44  ;;  %v8889_v48 = vld [vmem:[#allocation8 + $0x260] sm:$0xf0]  ;;  %v8864_v49 = vor.u32 %v12067_v39, %v8863_v38  ;;  %v8820_v38 = vor.u32 %v12052_v26, %v8817_v28  ;;  %v12277_v39 = vld [vmem:[#allocation8 + $0x8bc] sm:$0xf0]  ;;  %v12262_v26 = vld [vmem:[#allocation8 + $0x84c] sm:$0xf] }
 0x16d   :  { %3422 = vmatpush.bf16.msrb.mxu0 %v8772_v42  ;;  %3344 = vmatpush.bf16.msrb.mxu2 %v8624_v50  ;;  %v9463_v42 = vld [vmem:[#allocation8 + $0x6c8] sm:$0xf]  ;;  %v8892_v54 = vor.u32 %v12070_v47, %v8889_v48  ;;  %v9489_v47 = vld [vmem:[#allocation8 + $0x710] sm:$0xf0]  ;;  %v12280_v48 = vld [vmem:[#allocation8 + $0x8dc] sm:$0xf] }
 0x16e   :  { %3248 = vmatmul.bf16.vlgmr.msrb.gmra.mxu3 %v13430_v57  ;;  %3332 = vmatmul.bf16.vlgmr.msrb.gmra.mxu1 %v13430_v57  ;;  %v9464_v50 = vor.u32 %v12217_v43, %v9463_v42  ;;  %v12046_v43 = vld [vmem:[#allocation8 + $0x18c] sm:$0xf]  ;;  %v9657_v28 = vld [vmem:[#allocation8 + $0x860] sm:$0xf0] }
 0x16f   :  { %3352 = vmatpush.bf16.msrb.mxu3 %v8960_v53  ;;  %3386 = vmatpush.bf16.msra.mxu1 %v9200_v58  ;;  %v8652_v53 = vor.u32 %v12010_v45, %v8649_v46  ;;  %v12004_v58 = vld [vmem:[#allocation8 + $0x3c] sm:$0xf]  ;;  %v8793_v45 = vld [vmem:[#allocation8 + $0x1a0] sm:$0xf0] }
 0x170   :  { %v12220_v46 = vld [vmem:[#allocation8 + $0x6fc] sm:$0xf] }
 0x171   :  { %3423 = vmatpush.bf16.msrb.mxu0 %v8748_v62  ;;  %3345 = vmatpush.bf16.msrb.mxu2 %v8600_v2  ;;  %v8840_v62 = vor.u32 %v12061_v52, %v8839_v51  ;;  %v8628_v2 = vor.u32 %v12004_v58, %v8625_v59  ;;  %v9492_v56 = vor.u32 %v12220_v46, %v9489_v47  ;;  %v12130_v59 = vld [vmem:[#allocation8 + $0x42c] sm:$0xf]  ;;  %v12247_v46 = vld [vmem:[#allocation8 + $0x7cc] sm:$0xf0] }
 0x173   :  { %3353 = vmatpush.bf16.msrb.mxu3 %v8936_v5  ;;  %3387 = vmatpush.bf16.msra.mxu1 %v9176_v25  ;;  %v11998_v5 = vld [vmem:[#allocation8 + $0xc] sm:$0xf]  ;;  %v8841_v25 = vld [vmem:[#allocation8 + $0x200] sm:$0xf0] }
 0x174   :  { %3346 = vmatmul.bf16.vlgmr.msrb.gmra.mxu2 %v13406_v21  ;;  %v8844_v18 = vor.u32 %v12058_v6, %v8841_v25  ;;  %v9105_v6 = vld [vmem:[#allocation8 + $0x410] sm:$0xf0]  ;;  %v12208_v25 = vld [vmem:[#allocation8 + $0x69c] sm:$0xf] }
 0x175   :  { %3394 = vmatpush.bf16.msra.mxu2 %v9536_v7  ;;  %3424 = vmatpush.bf16.msrb.mxu0 %v8724_v13  ;;  %v8601_v7 = vld [vmem:[#allocation8 + $0x20] sm:$0xf0]  ;;  %v9416_v13 = vor.u32 %v12205_v8, %v9415_v4  ;;  %v12265_v4 = vld [vmem:[#allocation8 + $0x85c] sm:$0xf0] }
 0x176   :  { %v8604_v17 = vor.u32 %v11998_v5, %v8601_v7  ;;  %v12124_v7 = vld [vmem:[#allocation8 + $0x3fc] sm:$0xf] }
 0x177   :  { %3436 = vmatpush.bf16.msrb.mxu1 %v8964_v14  ;;  %3354 = vmatpush.bf16.msrb.mxu3 %v8912_v19  ;;  %v8791_v14 = vld [vmem:[#allocation8 + $0x188] sm:$0xf]  ;;  %v12199_v19 = vld [vmem:[#allocation8 + $0x64c] sm:$0xf0] }
 0x178   :  { %v9392_v32 = vor.u32 %v12199_v19, %v9391_v16  ;;  %v12259_v16 = vld [vmem:[#allocation8 + $0x82c] sm:$0xf0]  ;;  %v12118_v19 = vld [vmem:[#allocation8 + $0x3cc] sm:$0xf] }
 0x179   :  { %3395 = vmatpush.bf16.msra.mxu2 %v9512_v20  ;;  %3425 = vmatpush.bf16.msrb.mxu0 %v8700_v29  ;;  %v9727_v20 = vld [vmem:[#allocation8 + $0x8d8] sm:$0xf]  ;;  %v8792_v29 = vor.u32 %v12049_v15, %v8791_v14  ;;  %v9108_v14 = vor.u32 %v12124_v7, %v9105_v6  ;;  %v9135_v6 = vld [vmem:[#allocation8 + $0x430] sm:$0xf] }
 0x17a   :  { %v9728_v33 = vor.u32 %v12283_v22, %v9727_v20  ;;  %v9631_v15 = vld [vmem:[#allocation8 + $0x818] sm:$0xf]  ;;  %v9081_v20 = vld [vmem:[#allocation8 + $0x3e0] sm:$0xf0]  ;;  %v12202_v22 = vld [vmem:[#allocation8 + $0x66c] sm:$0xf] }
 0x17b   :  { %3437 = vmatpush.bf16.msrb.mxu1 %v8940_v30  ;;  %3355 = vmatpush.bf16.msrb.mxu3 %v8888_v36  ;;  %v12226_v30 = vld [vmem:[#allocation8 + $0x72c] sm:$0xf]  ;;  %v12193_v36 = vld [vmem:[#allocation8 + $0x61c] sm:$0xf0] }
 0x17c   :  { %v9516_v42 = vor.u32 %v12226_v30, %v9513_v31  ;;  %v9084_v30 = vor.u32 %v12118_v19, %v9081_v20  ;;  %v9607_v31 = vld [vmem:[#allocation8 + $0x7e8] sm:$0xf]  ;;  %v12238_v20 = vld [vmem:[#allocation8 + $0x78c] sm:$0xf] }
 0x17d   :  { %3396 = vmatpush.bf16.msra.mxu2 %v9488_v37  ;;  %3426 = vmatpush.bf16.msrb.mxu0 %v8676_v40  ;;  %v9703_v37 = vld [vmem:[#allocation8 + $0x8a8] sm:$0xf]  ;;  %v12136_v40 = vld [vmem:[#allocation8 + $0x45c] sm:$0xf] }
 0x17e   :  { %3304 = vmatmul.bf16.vlgmr.msra.gmra.mxu3 %v13418_v9  ;;  %3388 = vmatmul.bf16.vlgmr.msra.gmra.mxu1 %v13418_v9  ;;  %v9704_v51 = vor.u32 %v12277_v39, %v9703_v37  ;;  %v9057_v37 = vld [vmem:[#allocation8 + $0x3b0] sm:$0xf0] }
 0x17f   :  { %3438 = vmatpush.bf16.msrb.mxu1 %v8916_v41  ;;  %3356 = vmatpush.bf16.msrb.mxu3 %v8864_v49  ;;  %v9153_v41 = vld [vmem:[#allocation8 + $0x470] sm:$0xf0] }
 0x180   :  { %v9729_v49 = vld [vmem:[#allocation8 + $0x8f0] sm:$0xf0]  ;;  %v9156_v52 = vor.u32 %v12136_v40, %v9153_v41  ;;  %v12256_v40 = vld [vmem:[#allocation8 + $0x81c] sm:$0xf] }
 0x181   :  { %3397 = vmatpush.bf16.msra.mxu2 %v9464_v50  ;;  %3427 = vmatpush.bf16.msrb.mxu0 %v8652_v53  ;;  %v9368_v50 = vor.u32 %v12193_v36, %v9367_v34  ;;  %v8796_v53 = vor.u32 %v12046_v43, %v8793_v45  ;;  %v9732_v58 = vor.u32 %v12280_v48, %v9729_v49  ;;  %v12112_v36 = vld [vmem:[#allocation8 + $0x39c] sm:$0xf]  ;;  %v9393_v39 = vld [vmem:[#allocation8 + $0x650] sm:$0xf0]  ;;  %v9583_v45 = vld [vmem:[#allocation8 + $0x7b8] sm:$0xf] }
 0x182   :  { %v9660_v34 = vor.u32 %v12262_v26, %v9657_v28  ;;  %v9633_v41 = vld [vmem:[#allocation8 + $0x830] sm:$0xf0]  ;;  %v9060_v43 = vor.u32 %v12112_v36, %v9057_v37  ;;  %v12106_v49 = vld [vmem:[#allocation8 + $0x36c] sm:$0xf]  ;;  %v12128_v26 = vld [vmem:[#allocation8 + $0x414] sm:$0xf0] }
 0x183   :  { %3439 = vmatpush.bf16.msrb.mxu1 %v8892_v54  ;;  %3357 = vmatpush.bf16.msrb.mxu3 %v8840_v62  ;;  %v9679_v54 = vld [vmem:[#allocation8 + $0x878] sm:$0xf]  ;;  %v9465_v62 = vld [vmem:[#allocation8 + $0x6e0] sm:$0xf0]  ;;  %v9636_v48 = vor.u32 %v12256_v40, %v9633_v41  ;;  %v9351_v28 = vld [vmem:[#allocation8 + $0x5e0] sm:$0xf] }
 0x184   :  { %v9680_v1 = vor.u32 %v12271_v55, %v9679_v54  ;;  %v9468_v8 = vor.u32 %v12214_v61, %v9465_v62  ;;  %v9609_v54 = vld [vmem:[#allocation8 + $0x800] sm:$0xf0]  ;;  %v9584_v55 = vor.u32 %v12247_v46, %v9583_v45  ;;  %v12241_v61 = vld [vmem:[#allocation8 + $0x79c] sm:$0xf0]  ;;  %v12100_v62 = vld [vmem:[#allocation8 + $0x33c] sm:$0xf] }
 0x185   :  { %3398 = vmatpush.bf16.msra.mxu2 %v9440_v63  ;;  %3428 = vmatpush.bf16.msrb.mxu0 %v8628_v2  ;;  %v12274_v63 = vld [vmem:[#allocation8 + $0x8ac] sm:$0xf]  ;;  %v9132_v2 = vor.u32 %v12130_v59, %v9129_v60  ;;  %v9559_v60 = vld [vmem:[#allocation8 + $0x788] sm:$0xf]  ;;  %v9297_v36 = vld [vmem:[#allocation8 + $0x590] sm:$0xf0] }
 0x186   :  { %v9708_v5 = vor.u32 %v12274_v63, %v9705_v0  ;;  %v9560_v7 = vor.u32 %v12241_v61, %v9559_v60  ;;  %v12038_v40 = vld [vmem:[#allocation8 + $0x144] sm:$0xf0]  ;;  %v9087_v41 = vld [vmem:[#allocation8 + $0x3d0] sm:$0xf]  ;;  %v12160_v61 = vld [vmem:[#allocation8 + $0x51c] sm:$0xf] }
 0x187   :  { %3440 = vmatpush.bf16.msrb.mxu1 %v8868_v3  ;;  %3358 = vmatpush.bf16.msrb.mxu3 %v8816_v10  ;;  %v9655_v3 = vld [vmem:[#allocation8 + $0x848] sm:$0xf]  ;;  %v9441_v10 = vld [vmem:[#allocation8 + $0x6b0] sm:$0xf0] }
 0x188   :  { %v12182_v45 = vld [vmem:[#allocation8 + $0x5c4] sm:$0xf0] }
 0x189   :  { %3399 = vmatpush.bf16.msra.mxu2 %v9416_v13  ;;  %3429 = vmatpush.bf16.msrb.mxu0 %v8604_v17  ;;  %v9656_v13 = vor.u32 %v12265_v4, %v9655_v3  ;;  %v9444_v17 = vor.u32 %v12208_v25, %v9441_v10  ;;  %v9345_v3 = vld [vmem:[#allocation8 + $0x5f0] sm:$0xf0]  ;;  %v12134_v25 = vld [vmem:[#allocation8 + $0x444] sm:$0xf0] }
 0x18a   :  { %v9136_v19 = vor.u32 %v12134_v25, %v9135_v6  ;;  %v12154_v25 = vld [vmem:[#allocation8 + $0x4ec] sm:$0xf] }
 0x18b   :  { %3441 = vmatpush.bf16.msrb.mxu1 %v8844_v18  ;;  %3359 = vmatpush.bf16.msrb.mxu3 %v8792_v29  ;;  %v9684_v18 = vor.u32 %v12268_v11, %v9681_v12  ;;  %v9632_v29 = vor.u32 %v12259_v16, %v9631_v15  ;;  %v12094_v12 = vld [vmem:[#allocation8 + $0x30c] sm:$0xf]  ;;  %v9321_v16 = vld [vmem:[#allocation8 + $0x5c0] sm:$0xf0] }
 0x18c   :  { %3430 = vmatmul.bf16.vlgmr.msrb.gmra.mxu0 %v13406_v21 }
 0x18d   :  { %3478 = vmatpush.bf16.msra.mxu0 %v9540_v23  ;;  %3400 = vmatpush.bf16.msra.mxu2 %v9392_v32  ;;  %v9417_v23 = vld [vmem:[#allocation8 + $0x680] sm:$0xf0]  ;;  %v12253_v32 = vld [vmem:[#allocation8 + $0x7fc] sm:$0xf0] }
 0x18e   :  { %3360 = vmatmul.bf16.vlgmr.msrb.gmra.mxu3 %v13410_v27 }
 0x18f   :  { %3408 = vmatpush.bf16.msra.mxu3 %v9728_v33  ;;  %3442 = vmatpush.bf16.msrb.mxu1 %v8820_v38  ;;  %v9420_v33 = vor.u32 %v12202_v22, %v9417_v23  ;;  %v12196_v38 = vld [vmem:[#allocation8 + $0x63c] sm:$0xf]  ;;  %v9561_v22 = vld [vmem:[#allocation8 + $0x7a0] sm:$0xf0]  ;;  %v9111_v23 = vld [vmem:[#allocation8 + $0x400] sm:$0xf] }
 0x190   :  { %v9396_v47 = vor.u32 %v12196_v38, %v9393_v39  ;;  %v9112_v37 = vor.u32 %v12128_v26, %v9111_v23  ;;  %v8751_v39 = vld [vmem:[#allocation8 + $0x130] sm:$0xf]  ;;  %v9201_v23 = vld [vmem:[#allocation8 + $0x4d0] sm:$0xf0] }
 0x191   :  { %3479 = vmatpush.bf16.msra.mxu0 %v9516_v42  ;;  %3401 = vmatpush.bf16.msra.mxu2 %v9368_v50  ;;  %v9608_v42 = vor.u32 %v12253_v32, %v9607_v31  ;;  %v9033_v50 = vld [vmem:[#allocation8 + $0x380] sm:$0xf0] }
 0x192   :  { %v9036_v59 = vor.u32 %v12106_v49, %v9033_v50  ;;  %v9273_v49 = vld [vmem:[#allocation8 + $0x560] sm:$0xf0] }
 0x193   :  { %3409 = vmatpush.bf16.msra.mxu3 %v9704_v51  ;;  %3443 = vmatpush.bf16.msrb.mxu1 %v8796_v53  ;;  %v12190_v51 = vld [vmem:[#allocation8 + $0x60c] sm:$0xf] }
 0x194   :  { %3402 = vmatmul.bf16.vlgmr.msra.gmra.mxu2 %v13424_v35  ;;  %v12250_v53 = vld [vmem:[#allocation8 + $0x7ec] sm:$0xf] }
 0x195   :  { %3450 = vmatpush.bf16.msrb.mxu2 %v9156_v52  ;;  %3480 = vmatpush.bf16.msra.mxu0 %v9492_v56  ;;  %v9369_v52 = vld [vmem:[#allocation8 + $0x620] sm:$0xf0]  ;;  %v9159_v56 = vld [vmem:[#allocation8 + $0x460] sm:$0xf]  ;;  %v9612_v0 = vor.u32 %v12250_v53, %v9609_v54  ;;  %v12032_v53 = vld [vmem:[#allocation8 + $0x114] sm:$0xf0] }
 0x196   :  { %3444 = vmatmul.bf16.vlgmr.msrb.gmra.mxu1 %v13410_v27  ;;  %v9372_v63 = vor.u32 %v12190_v51, %v9369_v52  ;;  %v8727_v52 = vld [vmem:[#allocation8 + $0x100] sm:$0xf] }
 0x197   :  { %3492 = vmatpush.bf16.msra.mxu1 %v9732_v58  ;;  %3410 = vmatpush.bf16.msra.mxu3 %v9680_v1  ;;  %v12140_v58 = vld [vmem:[#allocation8 + $0x474] sm:$0xf0]  ;;  %v9009_v1 = vld [vmem:[#allocation8 + $0x350] sm:$0xf0]  ;;  %v9063_v54 = vld [vmem:[#allocation8 + $0x3a0] sm:$0xf]  ;;  %v8728_v60 = vor.u32 %v12032_v53, %v8727_v52 }
 0x198   :  { %v9160_v4 = vor.u32 %v12140_v58, %v9159_v56  ;;  %v9012_v10 = vor.u32 %v12100_v62, %v9009_v1  ;;  %v9303_v56 = vld [vmem:[#allocation8 + $0x580] sm:$0xf]  ;;  %v12176_v58 = vld [vmem:[#allocation8 + $0x594] sm:$0xf0]  ;;  %v9249_v62 = vld [vmem:[#allocation8 + $0x530] sm:$0xf0] }
 0x199   :  { %3451 = vmatpush.bf16.msrb.mxu2 %v9132_v2  ;;  %3481 = vmatpush.bf16.msra.mxu0 %v9468_v8  ;;  %v12184_v2 = vld [vmem:[#allocation8 + $0x5dc] sm:$0xf]  ;;  %v8703_v1 = vld [vmem:[#allocation8 + $0xd0] sm:$0xf]  ;;  %v12035_v53 = vld [vmem:[#allocation8 + $0x134] sm:$0xf] }
 0x19a   :  { %v12244_v8 = vld [vmem:[#allocation8 + $0x7bc] sm:$0xf]  ;;  %v9348_v11 = vor.u32 %v12184_v2, %v9345_v3  ;;  %v12026_v2 = vld [vmem:[#allocation8 + $0xe4] sm:$0xf0]  ;;  %v9039_v3 = vld [vmem:[#allocation8 + $0x370] sm:$0xf] }
 0x19b   :  { %3493 = vmatpush.bf16.msra.mxu1 %v9708_v5  ;;  %3411 = vmatpush.bf16.msra.mxu3 %v9656_v13  ;;  %v9585_v5 = vld [vmem:[#allocation8 + $0x7d0] sm:$0xf0]  ;;  %v8985_v13 = vld [vmem:[#allocation8 + $0x320] sm:$0xf0]  ;;  %v8704_v6 = vor.u32 %v12026_v2, %v8703_v1  ;;  %v9183_v2 = vld [vmem:[#allocation8 + $0x490] sm:$0xf] }
 0x19c   :  { %v9588_v15 = vor.u32 %v12244_v8, %v9585_v5  ;;  %v9279_v8 = vld [vmem:[#allocation8 + $0x550] sm:$0xf]  ;;  %v12170_v5 = vld [vmem:[#allocation8 + $0x564] sm:$0xf0] }
 0x19d   :  { %3452 = vmatpush.bf16.msrb.mxu2 %v9108_v14  ;;  %3482 = vmatpush.bf16.msra.mxu0 %v9444_v17  ;;  %v12178_v14 = vld [vmem:[#allocation8 + $0x5ac] sm:$0xf]  ;;  %v8775_v17 = vld [vmem:[#allocation8 + $0x160] sm:$0xf] }
 0x19e   :  { %v9324_v31 = vor.u32 %v12178_v14, %v9321_v16  ;;  %v12020_v14 = vld [vmem:[#allocation8 + $0xb4] sm:$0xf0] }
 0x19f   :  { %3494 = vmatpush.bf16.msra.mxu1 %v9684_v18  ;;  %3412 = vmatpush.bf16.msra.mxu3 %v9632_v29  ;;  %v12044_v18 = vld [vmem:[#allocation8 + $0x174] sm:$0xf0] }
 0x1a0   :  { %v12188_v29 = vld [vmem:[#allocation8 + $0x5f4] sm:$0xf0]  ;;  %v8776_v32 = vor.u32 %v12044_v18, %v8775_v17  ;;  %v9255_v17 = vld [vmem:[#allocation8 + $0x520] sm:$0xf] }
 0x1a1   :  { %3453 = vmatpush.bf16.msrb.mxu2 %v9084_v30  ;;  %3483 = vmatpush.bf16.msra.mxu0 %v9420_v33  ;;  %v8988_v30 = vor.u32 %v12094_v12, %v8985_v13  ;;  %v9564_v33 = vor.u32 %v12238_v20, %v9561_v22  ;;  %v9352_v38 = vor.u32 %v12188_v29, %v9351_v28  ;;  %v8679_v13 = vld [vmem:[#allocation8 + $0xa0] sm:$0xf]  ;;  %v12104_v16 = vld [vmem:[#allocation8 + $0x354] sm:$0xf0]  ;;  %v12148_v22 = vld [vmem:[#allocation8 + $0x4bc] sm:$0xf] }
 0x1a2   :  { %v9280_v12 = vor.u32 %v12170_v5, %v9279_v8  ;;  %v12164_v18 = vld [vmem:[#allocation8 + $0x534] sm:$0xf0]  ;;  %v8680_v20 = vor.u32 %v12020_v14, %v8679_v13  ;;  %v8655_v29 = vld [vmem:[#allocation8 + $0x70] sm:$0xf]  ;;  %v8729_v8 = vld [vmem:[#allocation8 + $0x118] sm:$0xf0] }
 0x1a3   :  { %3495 = vmatpush.bf16.msra.mxu1 %v9660_v34  ;;  %3413 = vmatpush.bf16.msra.mxu3 %v9608_v42  ;;  %v12172_v34 = vld [vmem:[#allocation8 + $0x57c] sm:$0xf]  ;;  %v12122_v42 = vld [vmem:[#allocation8 + $0x3e4] sm:$0xf0]  ;;  %v9256_v28 = vor.u32 %v12164_v18, %v9255_v17  ;;  %v12089_v5 = vld [vmem:[#allocation8 + $0x2e4] sm:$0xf] }
 0x1a4   :  { %v9300_v46 = vor.u32 %v12172_v34, %v9297_v36  ;;  %v9088_v50 = vor.u32 %v12122_v42, %v9087_v41  ;;  %v12158_v34 = vld [vmem:[#allocation8 + $0x504] sm:$0xf0]  ;;  %v9204_v36 = vor.u32 %v12148_v22, %v9201_v23  ;;  %v9177_v41 = vld [vmem:[#allocation8 + $0x4a0] sm:$0xf0]  ;;  %v8631_v42 = vld [vmem:[#allocation8 + $0x40] sm:$0xf] }
 0x1a5   :  { %3454 = vmatpush.bf16.msrb.mxu2 %v9060_v43  ;;  %3484 = vmatpush.bf16.msra.mxu0 %v9396_v47  ;;  %v9327_v43 = vld [vmem:[#allocation8 + $0x5b0] sm:$0xf]  ;;  %v8752_v47 = vor.u32 %v12038_v40, %v8751_v39  ;;  %v12142_v40 = vld [vmem:[#allocation8 + $0x48c] sm:$0xf]  ;;  %v12080_v13 = vld [vmem:[#allocation8 + $0x294] sm:$0xf0] }
 0x1a6   :  { %v9328_v51 = vor.u32 %v12182_v45, %v9327_v43  ;;  %v9180_v52 = vor.u32 %v12142_v40, %v9177_v41  ;;  %v12230_v17 = vld [vmem:[#allocation8 + $0x744] sm:$0xf0]  ;;  %v12023_v18 = vld [vmem:[#allocation8 + $0xd4] sm:$0xf]  ;;  %v8945_v22 = vld [vmem:[#allocation8 + $0x2c8] sm:$0xf0] }
 0x1a7   :  { %3496 = vmatpush.bf16.msra.mxu1 %v9636_v48  ;;  %3414 = vmatpush.bf16.msra.mxu3 %v9584_v55  ;;  %v12166_v48 = vld [vmem:[#allocation8 + $0x54c] sm:$0xf]  ;;  %v12116_v55 = vld [vmem:[#allocation8 + $0x3b4] sm:$0xf0]  ;;  %v8871_v41 = vld [vmem:[#allocation8 + $0x220] sm:$0xf] }
 0x1a9   :  { %3455 = vmatpush.bf16.msrb.mxu2 %v9036_v59  ;;  %3485 = vmatpush.bf16.msra.mxu0 %v9372_v63  ;;  %v9276_v59 = vor.u32 %v12166_v48, %v9273_v49  ;;  %v9064_v63 = vor.u32 %v12116_v55, %v9063_v54  ;;  %v12092_v48 = vld [vmem:[#allocation8 + $0x2f4] sm:$0xf0]  ;;  %v8753_v54 = vld [vmem:[#allocation8 + $0x148] sm:$0xf0] }
 0x1aa   :  { %v8756_v1 = vor.u32 %v12035_v53, %v8753_v54  ;;  %v8847_v54 = vld [vmem:[#allocation8 + $0x1f0] sm:$0xf] }
 0x1ab   :  { %3497 = vmatpush.bf16.msra.mxu1 %v9612_v0  ;;  %3415 = vmatpush.bf16.msra.mxu3 %v9560_v7  ;;  %v9304_v0 = vor.u32 %v12176_v58, %v9303_v56  ;;  %v9252_v7 = vor.u32 %v12160_v61, %v9249_v62  ;;  %v8607_v58 = vld [vmem:[#allocation8 + $0x10] sm:$0xf]  ;;  %v12086_v62 = vld [vmem:[#allocation8 + $0x2c4] sm:$0xf0] }
 0x1ac   :  { %3486 = vmatmul.bf16.vlgmr.msra.gmra.mxu0 %v13424_v35 }
 0x1ad   :  { %3534 = vmatpush.bf16.msrb.mxu0 %v9160_v4  ;;  %3456 = vmatpush.bf16.msrb.mxu2 %v9012_v10  ;;  %v12110_v4 = vld [vmem:[#allocation8 + $0x384] sm:$0xf0]  ;;  %v9225_v10 = vld [vmem:[#allocation8 + $0x500] sm:$0xf0] }
 0x1ae   :  { %3416 = vmatmul.bf16.vlgmr.msra.gmra.mxu3 %v13430_v57 }
 0x1af   :  { %3464 = vmatpush.bf16.msrb.mxu3 %v9348_v11  ;;  %3498 = vmatpush.bf16.msra.mxu1 %v9588_v15  ;;  %v9040_v11 = vor.u32 %v12110_v4, %v9039_v3  ;;  %v9015_v15 = vld [vmem:[#allocation8 + $0x340] sm:$0xf]  ;;  %v12146_v3 = vld [vmem:[#allocation8 + $0x4a4] sm:$0xf0]  ;;  %v12029_v4 = vld [vmem:[#allocation8 + $0x104] sm:$0xf] }
 0x1b0   :  { %v9016_v26 = vor.u32 %v12104_v16, %v9015_v15  ;;  %v8732_v14 = vor.u32 %v12029_v4, %v8729_v8  ;;  %v9519_v16 = vld [vmem:[#allocation8 + $0x730] sm:$0xf]  ;;  %v12056_v4 = vld [vmem:[#allocation8 + $0x1d4] sm:$0xf0] }
 0x1b1   :  { %3535 = vmatpush.bf16.msrb.mxu0 %v9136_v19  ;;  %3457 = vmatpush.bf16.msrb.mxu2 %v8988_v30  ;;  %v9228_v19 = vor.u32 %v12154_v25, %v9225_v10  ;;  %v12014_v30 = vld [vmem:[#allocation8 + $0x84] sm:$0xf0] }
 0x1b2   :  { %v8656_v39 = vor.u32 %v12014_v30, %v8655_v29  ;;  %v12074_v29 = vld [vmem:[#allocation8 + $0x264] sm:$0xf0] }
 0x1b3   :  { %3465 = vmatpush.bf16.msrb.mxu3 %v9324_v31  ;;  %3499 = vmatpush.bf16.msra.mxu1 %v9564_v33  ;;  %v8991_v31 = vld [vmem:[#allocation8 + $0x310] sm:$0xf] }
 0x1b4   :  { %3458 = vmatmul.bf16.vlgmr.msrb.gmra.mxu2 %v13415_v44  ;;  %v9231_v33 = vld [vmem:[#allocation8 + $0x4f0] sm:$0xf] }
 0x1b5   :  { %3506 = vmatpush.bf16.msra.mxu2 %v8776_v32  ;;  %3536 = vmatpush.bf16.msrb.mxu0 %v9112_v37  ;;  %v12098_v32 = vld [vmem:[#allocation8 + $0x324] sm:$0xf0]  ;;  %v12041_v37 = vld [vmem:[#allocation8 + $0x164] sm:$0xf]  ;;  %v9232_v45 = vor.u32 %v12158_v34, %v9231_v33  ;;  %v12224_v33 = vld [vmem:[#allocation8 + $0x714] sm:$0xf0] }
 0x1b6   :  { %3500 = vmatmul.bf16.vlgmr.msra.gmra.mxu1 %v13430_v57  ;;  %v8992_v43 = vor.u32 %v12098_v32, %v8991_v31  ;;  %v9495_v32 = vld [vmem:[#allocation8 + $0x700] sm:$0xf]  ;;  %v12017_v34 = vld [vmem:[#allocation8 + $0xa4] sm:$0xf] }
 0x1b7   :  { %3548 = vmatpush.bf16.msrb.mxu1 %v9352_v38  ;;  %3466 = vmatpush.bf16.msrb.mxu3 %v9300_v46  ;;  %v8777_v38 = vld [vmem:[#allocation8 + $0x178] sm:$0xf0]  ;;  %v12008_v46 = vld [vmem:[#allocation8 + $0x54] sm:$0xf0]  ;;  %v9496_v40 = vor.u32 %v12224_v33, %v9495_v32  ;;  %v13450_v32 = vpop.f32.mrf.mxu2 }
 0x1b8   :  { %v8780_v49 = vor.u32 %v12041_v37, %v8777_v38  ;;  %v8632_v55 = vor.u32 %v12008_v46, %v8631_v42  ;;  %v12077_v37 = vld [vmem:[#allocation8 + $0x284] sm:$0xf]  ;;  %v8921_v38 = vld [vmem:[#allocation8 + $0x298] sm:$0xf0]  ;;  %v12068_v42 = vld [vmem:[#allocation8 + $0x234] sm:$0xf0] }
 0x1b9   :  { %3507 = vmatpush.bf16.msra.mxu2 %v8752_v47  ;;  %3537 = vmatpush.bf16.msrb.mxu0 %v9088_v50  ;;  %v8967_v47 = vld [vmem:[#allocation8 + $0x2e0] sm:$0xf]  ;;  %v9471_v46 = vld [vmem:[#allocation8 + $0x6d0] sm:$0xf] }
 0x1ba   :  { %v9207_v50 = vld [vmem:[#allocation8 + $0x4c0] sm:$0xf]  ;;  %v8968_v56 = vor.u32 %v12092_v48, %v8967_v47  ;;  %v12218_v47 = vld [vmem:[#allocation8 + $0x6e4] sm:$0xf0]  ;;  %v12011_v48 = vld [vmem:[#allocation8 + $0x74] sm:$0xf] }
 0x1bb   :  { %3549 = vmatpush.bf16.msrb.mxu1 %v9328_v51  ;;  %3467 = vmatpush.bf16.msrb.mxu3 %v9276_v59  ;;  %v12152_v51 = vld [vmem:[#allocation8 + $0x4d4] sm:$0xf0]  ;;  %v12002_v59 = vld [vmem:[#allocation8 + $0x24] sm:$0xf0]  ;;  %v9472_v53 = vor.u32 %v12218_v47, %v9471_v46  ;;  %v9161_v46 = vld [vmem:[#allocation8 + $0x478] sm:$0xf0] }
 0x1bc   :  { %v9208_v61 = vor.u32 %v12152_v51, %v9207_v50  ;;  %v12071_v50 = vld [vmem:[#allocation8 + $0x254] sm:$0xf]  ;;  %v8897_v51 = vld [vmem:[#allocation8 + $0x268] sm:$0xf0] }
 0x1bd   :  { %3508 = vmatpush.bf16.msra.mxu2 %v8728_v60  ;;  %3538 = vmatpush.bf16.msrb.mxu0 %v9064_v63  ;;  %v8943_v60 = vld [vmem:[#allocation8 + $0x2b0] sm:$0xf]  ;;  %v9543_v63 = vld [vmem:[#allocation8 + $0x760] sm:$0xf] }
 0x1be   :  { %v8944_v25 = vor.u32 %v12086_v62, %v8943_v60  ;;  %v12212_v60 = vld [vmem:[#allocation8 + $0x6b4] sm:$0xf0]  ;;  %v8633_v62 = vld [vmem:[#allocation8 + $0x58] sm:$0xf0] }
 0x1bf   :  { %3550 = vmatpush.bf16.msrb.mxu1 %v9304_v0  ;;  %3468 = vmatpush.bf16.msrb.mxu3 %v9252_v7  ;;  %v12236_v0 = vld [vmem:[#allocation8 + $0x774] sm:$0xf0]  ;;  %v8969_v7 = vld [vmem:[#allocation8 + $0x2f8] sm:$0xf0] }
 0x1c0   :  { %v9544_v10 = vor.u32 %v12236_v0, %v9543_v63  ;;  %v8972_v15 = vor.u32 %v12089_v5, %v8969_v7  ;;  %v12065_v63 = vld [vmem:[#allocation8 + $0x224] sm:$0xf]  ;;  %v8873_v0 = vld [vmem:[#allocation8 + $0x238] sm:$0xf0]  ;;  %v9423_v7 = vld [vmem:[#allocation8 + $0x670] sm:$0xf] }
 0x1c1   :  { %3509 = vmatpush.bf16.msra.mxu2 %v8704_v6  ;;  %3539 = vmatpush.bf16.msrb.mxu0 %v9040_v11  ;;  %v8608_v6 = vor.u32 %v12002_v59, %v8607_v58  ;;  %v9184_v11 = vor.u32 %v12146_v3, %v9183_v2  ;;  %v8900_v58 = vor.u32 %v12071_v50, %v8897_v51  ;;  %v9447_v59 = vld [vmem:[#allocation8 + $0x6a0] sm:$0xf]  ;;  %v12221_v50 = vld [vmem:[#allocation8 + $0x704] sm:$0xf]  ;;  %v13452_v51 = vpop.f32.mrf.mxu3 }
 0x1c2   :  { %v9448_v2 = vor.u32 %v12212_v60, %v9447_v59  ;;  %v8823_v3 = vld [vmem:[#allocation8 + $0x1c0] sm:$0xf]  ;;  %v8876_v5 = vor.u32 %v12065_v63, %v8873_v0  ;;  %v12131_v0 = vld [vmem:[#allocation8 + $0x434] sm:$0xf] }
 0x1c3   :  { %3551 = vmatpush.bf16.msrb.mxu1 %v9280_v12  ;;  %3469 = vmatpush.bf16.msrb.mxu3 %v9228_v19  ;;  %v8919_v12 = vld [vmem:[#allocation8 + $0x280] sm:$0xf]  ;;  %v8705_v19 = vld [vmem:[#allocation8 + $0xe8] sm:$0xf0] }
 0x1c4   :  { %v8920_v23 = vor.u32 %v12080_v13, %v8919_v12  ;;  %v8708_v30 = vor.u32 %v12023_v18, %v8705_v19  ;;  %v8849_v12 = vld [vmem:[#allocation8 + $0x208] sm:$0xf0]  ;;  %v8824_v13 = vor.u32 %v12056_v4, %v8823_v3  ;;  %v12050_v18 = vld [vmem:[#allocation8 + $0x1a4] sm:$0xf0]  ;;  %v9399_v19 = vld [vmem:[#allocation8 + $0x640] sm:$0xf] }
 0x1c5   :  { %3510 = vmatpush.bf16.msra.mxu2 %v8680_v20  ;;  %3540 = vmatpush.bf16.msrb.mxu0 %v9016_v26  ;;  %v12083_v20 = vld [vmem:[#allocation8 + $0x2b4] sm:$0xf]  ;;  %v9520_v26 = vor.u32 %v12230_v17, %v9519_v16  ;;  %v8799_v17 = vld [vmem:[#allocation8 + $0x190] sm:$0xf]  ;;  %v9687_v60 = vld [vmem:[#allocation8 + $0x880] sm:$0xf] }
 0x1c6   :  { %v8948_v31 = vor.u32 %v12083_v20, %v8945_v22  ;;  %v8800_v33 = vor.u32 %v12050_v18, %v8799_v17  ;;  %v9473_v3 = vld [vmem:[#allocation8 + $0x6e8] sm:$0xf0]  ;;  %v12275_v4 = vld [vmem:[#allocation8 + $0x8b4] sm:$0xf]  ;;  %v12269_v17 = vld [vmem:[#allocation8 + $0x884] sm:$0xf] }
 0x1c7   :  { %3552 = vmatpush.bf16.msrb.mxu1 %v9256_v28  ;;  %3470 = vmatpush.bf16.msrb.mxu3 %v9204_v36  ;;  %v8895_v28 = vld [vmem:[#allocation8 + $0x250] sm:$0xf]  ;;  %v8681_v36 = vld [vmem:[#allocation8 + $0xb8] sm:$0xf0] }
 0x1c8   :  { %v9689_v18 = vld [vmem:[#allocation8 + $0x898] sm:$0xf0] }
 0x1c9   :  { %3511 = vmatpush.bf16.msra.mxu2 %v8656_v39  ;;  %3541 = vmatpush.bf16.msrb.mxu0 %v8992_v43  ;;  %v8896_v39 = vor.u32 %v12074_v29, %v8895_v28  ;;  %v8684_v43 = vor.u32 %v12017_v34, %v8681_v36  ;;  %v12284_v28 = vld [vmem:[#allocation8 + $0x8f4] sm:$0xf0]  ;;  %v12227_v34 = vld [vmem:[#allocation8 + $0x734] sm:$0xf]  ;;  %v9521_v36 = vld [vmem:[#allocation8 + $0x748] sm:$0xf0] }
 0x1ca   :  { %v9524_v47 = vor.u32 %v12227_v34, %v9521_v36  ;;  %v12203_v34 = vld [vmem:[#allocation8 + $0x674] sm:$0xf]  ;;  %v9425_v36 = vld [vmem:[#allocation8 + $0x688] sm:$0xf0] }
 0x1cb   :  { %3553 = vmatpush.bf16.msrb.mxu1 %v9232_v45  ;;  %3471 = vmatpush.bf16.msrb.mxu3 %v9180_v52  ;;  %v8924_v45 = vor.u32 %v12077_v37, %v8921_v38  ;;  %v8872_v52 = vor.u32 %v12068_v42, %v8871_v41  ;;  %v9711_v41 = vld [vmem:[#allocation8 + $0x8b0] sm:$0xf] }
 0x1cc   :  { %3542 = vmatmul.bf16.vlgmr.msrb.gmra.mxu0 %v13415_v44 }
 0x1cd   :  { %3590 = vmatpush.bf16.msra.mxu0 %v8780_v49  ;;  %3512 = vmatpush.bf16.msra.mxu2 %v8632_v55  ;;  %v8657_v49 = vld [vmem:[#allocation8 + $0x88] sm:$0xf0]  ;;  %v12062_v55 = vld [vmem:[#allocation8 + $0x204] sm:$0xf0] }
 0x1ce   :  { %3472 = vmatmul.bf16.vlgmr.msrb.gmra.mxu3 %v13418_v9 }
 0x1cf   :  { %3520 = vmatpush.bf16.msra.mxu3 %v8968_v56  ;;  %3554 = vmatpush.bf16.msrb.mxu1 %v9208_v61  ;;  %v8660_v56 = vor.u32 %v12011_v48, %v8657_v49  ;;  %v12005_v61 = vld [vmem:[#allocation8 + $0x44] sm:$0xf]  ;;  %v12047_v48 = vld [vmem:[#allocation8 + $0x194] sm:$0xf]  ;;  %v8801_v49 = vld [vmem:[#allocation8 + $0x1a8] sm:$0xf0] }
 0x1d0   :  { %v8636_v8 = vor.u32 %v12005_v61, %v8633_v62  ;;  %v8804_v59 = vor.u32 %v12047_v48, %v8801_v49  ;;  %v12272_v61 = vld [vmem:[#allocation8 + $0x894] sm:$0xf0]  ;;  %v12197_v48 = vld [vmem:[#allocation8 + $0x644] sm:$0xf]  ;;  %v9401_v49 = vld [vmem:[#allocation8 + $0x658] sm:$0xf0] }
 0x1d1   :  { %3591 = vmatpush.bf16.msra.mxu0 %v8756_v1  ;;  %3513 = vmatpush.bf16.msra.mxu2 %v8608_v6  ;;  %v8848_v1 = vor.u32 %v12062_v55, %v8847_v54  ;;  %v12206_v6 = vld [vmem:[#allocation8 + $0x684] sm:$0xf0]  ;;  %v9737_v54 = vld [vmem:[#allocation8 + $0x8f8] sm:$0xf0] }
 0x1d2   :  { %v9424_v16 = vor.u32 %v12206_v6, %v9423_v7  ;;  %v9663_v6 = vld [vmem:[#allocation8 + $0x850] sm:$0xf] }
 0x1d3   :  { %3521 = vmatpush.bf16.msra.mxu3 %v8944_v25  ;;  %3555 = vmatpush.bf16.msrb.mxu1 %v9184_v11  ;;  %v11999_v25 = vld [vmem:[#allocation8 + $0x14] sm:$0xf] }
 0x1d4   :  { %3514 = vmatmul.bf16.vlgmr.msra.gmra.mxu2 %v13406_v21  ;;  %v12059_v11 = vld [vmem:[#allocation8 + $0x1f4] sm:$0xf] }
 0x1d5   :  { %3562 = vmatpush.bf16.msrb.mxu2 %v9544_v10  ;;  %3592 = vmatpush.bf16.msra.mxu0 %v8732_v14  ;;  %v8609_v10 = vld [vmem:[#allocation8 + $0x28] sm:$0xf0]  ;;  %v12233_v14 = vld [vmem:[#allocation8 + $0x764] sm:$0xf]  ;;  %v8852_v22 = vor.u32 %v12059_v11, %v8849_v12 }
 0x1d6   :  { %3556 = vmatmul.bf16.vlgmr.msrb.gmra.mxu1 %v13418_v9  ;;  %v8612_v20 = vor.u32 %v11999_v25, %v8609_v10  ;;  %v12266_v25 = vld [vmem:[#allocation8 + $0x864] sm:$0xf0]  ;;  %v12125_v12 = vld [vmem:[#allocation8 + $0x404] sm:$0xf] }
 0x1d7   :  { %3604 = vmatpush.bf16.msra.mxu1 %v8972_v15  ;;  %3522 = vmatpush.bf16.msra.mxu3 %v8920_v23  ;;  %v9545_v15 = vld [vmem:[#allocation8 + $0x778] sm:$0xf0]  ;;  %v12200_v23 = vld [vmem:[#allocation8 + $0x654] sm:$0xf0] }
 0x1d8   :  { %v9548_v29 = vor.u32 %v12233_v14, %v9545_v15  ;;  %v9400_v37 = vor.u32 %v12200_v23, %v9399_v19  ;;  %v12209_v14 = vld [vmem:[#allocation8 + $0x6a4] sm:$0xf]  ;;  %v13458_v15 = vpop.f32.mrf.mxu0  ;;  %v9664_v19 = vor.u32 %v12266_v25, %v9663_v6  ;;  %v9567_v25 = vld [vmem:[#allocation8 + $0x790] sm:$0xf] }
 0x1d9   :  { %3563 = vmatpush.bf16.msrb.mxu2 %v9520_v26  ;;  %3593 = vmatpush.bf16.msra.mxu0 %v8708_v30  ;;  %v9735_v26 = vld [vmem:[#allocation8 + $0x8e0] sm:$0xf]  ;;  %v12053_v30 = vld [vmem:[#allocation8 + $0x1c4] sm:$0xf] }
 0x1da   :  { %v9736_v38 = vor.u32 %v12284_v28, %v9735_v26  ;;  %v9639_v26 = vld [vmem:[#allocation8 + $0x820] sm:$0xf]  ;;  %v12260_v28 = vld [vmem:[#allocation8 + $0x834] sm:$0xf0] }
 0x1db   :  { %3605 = vmatpush.bf16.msra.mxu1 %v8948_v31  ;;  %3523 = vmatpush.bf16.msra.mxu3 %v8896_v39  ;;  %v8825_v31 = vld [vmem:[#allocation8 + $0x1d8] sm:$0xf0]  ;;  %v9375_v39 = vld [vmem:[#allocation8 + $0x610] sm:$0xf] }
 0x1dc   :  { %v8828_v42 = vor.u32 %v12053_v30, %v8825_v31  ;;  %v9692_v30 = vor.u32 %v12269_v17, %v9689_v18  ;;  %v12119_v31 = vld [vmem:[#allocation8 + $0x3d4] sm:$0xf]  ;;  %v9353_v17 = vld [vmem:[#allocation8 + $0x5f8] sm:$0xf0] }
 0x1dd   :  { %3564 = vmatpush.bf16.msrb.mxu2 %v9496_v40  ;;  %3594 = vmatpush.bf16.msra.mxu0 %v8684_v43  ;;  %v12194_v40 = vld [vmem:[#allocation8 + $0x624] sm:$0xf0] }
 0x1de   :  { %v12278_v43 = vld [vmem:[#allocation8 + $0x8c4] sm:$0xf0]  ;;  %v9376_v55 = vor.u32 %v12194_v40, %v9375_v39 }
 0x1df   :  { %3606 = vmatpush.bf16.msra.mxu1 %v8924_v45  ;;  %3524 = vmatpush.bf16.msra.mxu3 %v8872_v52  ;;  %v12137_v45 = vld [vmem:[#allocation8 + $0x464] sm:$0xf]  ;;  %v9497_v52 = vld [vmem:[#allocation8 + $0x718] sm:$0xf0] }
 0x1e0   :  { %v9500_v62 = vor.u32 %v12221_v50, %v9497_v52  ;;  %v12257_v50 = vld [vmem:[#allocation8 + $0x824] sm:$0xf]  ;;  %v9641_v52 = vld [vmem:[#allocation8 + $0x838] sm:$0xf0] }
 0x1e1   :  { %3565 = vmatpush.bf16.msrb.mxu2 %v9472_v53  ;;  %3595 = vmatpush.bf16.msra.mxu0 %v8660_v56  ;;  %v12281_v53 = vld [vmem:[#allocation8 + $0x8e4] sm:$0xf]  ;;  %v9712_v56 = vor.u32 %v12278_v43, %v9711_v41  ;;  %v9615_v41 = vld [vmem:[#allocation8 + $0x7f0] sm:$0xf]  ;;  %v9428_v43 = vor.u32 %v12203_v34, %v9425_v36  ;;  %v12095_v34 = vld [vmem:[#allocation8 + $0x314] sm:$0xf] }
 0x1e2   :  { %v9740_v63 = vor.u32 %v12281_v53, %v9737_v54  ;;  %v13468_v54 = vpop.f32.mrf.mxu0  ;;  %v8993_v36 = vld [vmem:[#allocation8 + $0x328] sm:$0xf0] }
 0x1e3   :  { %3607 = vmatpush.bf16.msra.mxu1 %v8900_v58  ;;  %3525 = vmatpush.bf16.msra.mxu3 %v8848_v1  ;;  %v9164_v58 = vor.u32 %v12137_v45, %v9161_v46  ;;  %v9137_v1 = vld [vmem:[#allocation8 + $0x448] sm:$0xf0]  ;;  %v12113_v46 = vld [vmem:[#allocation8 + $0x3a4] sm:$0xf] }
 0x1e4   :  { %v9140_v7 = vor.u32 %v12131_v0, %v9137_v1  ;;  %v12191_v0 = vld [vmem:[#allocation8 + $0x614] sm:$0xf] }
 0x1e5   :  { %3566 = vmatpush.bf16.msrb.mxu2 %v9448_v2  ;;  %3596 = vmatpush.bf16.msra.mxu0 %v8636_v8  ;;  %v12215_v2 = vld [vmem:[#allocation8 + $0x6d4] sm:$0xf]  ;;  %v9713_v8 = vld [vmem:[#allocation8 + $0x8c8] sm:$0xf0] }
 0x1e6   :  { %v9476_v10 = vor.u32 %v12215_v2, %v9473_v3  ;;  %v9716_v11 = vor.u32 %v12275_v4, %v9713_v8  ;;  %v9377_v2 = vld [vmem:[#allocation8 + $0x628] sm:$0xf0]  ;;  %v12251_v3 = vld [vmem:[#allocation8 + $0x7f4] sm:$0xf] }
 0x1e7   :  { %3608 = vmatpush.bf16.msra.mxu1 %v8876_v5  ;;  %3526 = vmatpush.bf16.msra.mxu3 %v8824_v13  ;;  %v9688_v5 = vor.u32 %v12272_v61, %v9687_v60  ;;  %v9113_v13 = vld [vmem:[#allocation8 + $0x418] sm:$0xf0]  ;;  %v9404_v60 = vor.u32 %v12197_v48, %v9401_v49  ;;  %v9644_v61 = vor.u32 %v12257_v50, %v9641_v52  ;;  %v9617_v4 = vld [vmem:[#allocation8 + $0x808] sm:$0xf0]  ;;  %v9911_v48 = vld [vmem:[#allocation11 + $0x150] sm:$0xf] }
 0x1e8   :  { %v9116_v23 = vor.u32 %v12125_v12, %v9113_v13  ;;  %v9380_v12 = vor.u32 %v12191_v0, %v9377_v2  ;;  %v9620_v13 = vor.u32 %v12251_v3, %v9617_v4  ;;  %v12328_v49 = vld [vmem:[#allocation11 + $0x154] sm:$0xf0]  ;;  %v8996_v52 = vor.u32 %v12095_v34, %v8993_v36  ;;  %v9903_v0 = vld [vmem:[#allocation11 + $0x140] sm:$0xf]  ;;  %v12326_v2 = vld [vmem:[#allocation11 + $0x144] sm:$0xf0] }
 0x1e9   :  { %3567 = vmatpush.bf16.msrb.mxu2 %v9424_v16  ;;  %3597 = vmatpush.bf16.msra.mxu0 %v8612_v20  ;;  %v9449_v16 = vld [vmem:[#allocation8 + $0x6b8] sm:$0xf0]  ;;  %v13462_v20 = vpop.f32.mrf.mxu3  ;;  %v12155_v36 = vld [vmem:[#allocation8 + $0x4f4] sm:$0xf] }
 0x1eb   :  { %3609 = vmatpush.bf16.msra.mxu1 %v8852_v22  ;;  %3527 = vmatpush.bf16.msra.mxu3 %v8800_v33  ;;  %v13464_v22 = vpop.f32.mrf.mxu1  ;;  %v9089_v33 = vld [vmem:[#allocation8 + $0x3e8] sm:$0xf0] }
 0x1ec   :  { %3598 = vmatmul.bf16.vlgmr.msra.gmra.mxu0 %v13406_v21  ;;  %v13456_v21 = vpop.f32.mrf.mxu2  ;;  %v9092_v40 = vor.u32 %v12119_v31, %v9089_v33 }
 0x1ed   :  { %3646 = vmatpush.bf16.msrb.mxu0 %v9548_v29  ;;  %3568 = vmatpush.bf16.msrb.mxu2 %v9400_v37  ;;  %v9452_v29 = vor.u32 %v12209_v14, %v9449_v16  ;;  %v12263_v37 = vld [vmem:[#allocation8 + $0x854] sm:$0xf]  ;;  %v9017_v14 = vld [vmem:[#allocation8 + $0x358] sm:$0xf0]  ;;  %v12185_v16 = vld [vmem:[#allocation8 + $0x5e4] sm:$0xf] }
 0x1ee   :  { %3528 = vmatmul.bf16.vlgmr.msra.gmra.mxu3 %v13410_v27  ;;  %v9356_v33 = vor.u32 %v12185_v16, %v9353_v17  ;;  %v13492_v16 = vld [vmem:[#allocation10] sm:$0x3f] }
 0x1ef   :  { %3576 = vmatpush.bf16.msrb.mxu3 %v9736_v38  ;;  %3610 = vmatpush.bf16.msra.mxu1 %v8828_v42  ;;  %v9665_v38 = vld [vmem:[#allocation8 + $0x868] sm:$0xf0]  ;;  %v12254_v42 = vld [vmem:[#allocation8 + $0x804] sm:$0xf0] }
 0x1f0   :  { %v9668_v45 = vor.u32 %v12263_v37, %v9665_v38  ;;  %v9616_v53 = vor.u32 %v12254_v42, %v9615_v41  ;;  %v12179_v38 = vld [vmem:[#allocation8 + $0x5b4] sm:$0xf]  ;;  %v13476_v41 = vpop.f32.mrf.mxu0 }
 0x1f1   :  { %3647 = vmatpush.bf16.msrb.mxu0 %v9524_v47  ;;  %3569 = vmatpush.bf16.msrb.mxu2 %v9376_v55  ;;  %v9065_v47 = vld [vmem:[#allocation8 + $0x3b8] sm:$0xf0]  ;;  %v13470_v55 = vpop.f32.mrf.mxu3 }
 0x1f3   :  { %3577 = vmatpush.bf16.msrb.mxu3 %v9712_v56  ;;  %3611 = vmatpush.bf16.msra.mxu1 %v8804_v59  ;;  %v9068_v56 = vor.u32 %v12113_v46, %v9065_v47  ;;  %v12248_v59 = vld [vmem:[#allocation8 + $0x7d4] sm:$0xf0]  ;;  %v13472_v1 = vpop.f32.mrf.mxu1  ;;  %v9569_v46 = vld [vmem:[#allocation8 + $0x7a8] sm:$0xf0] }
 0x1f4   :  { %3570 = vmatmul.bf16.vlgmr.msrb.gmra.mxu2 %v13424_v35  ;;  %v13466_v39 = vpop.f32.mrf.mxu2 }
 0x1f5   :  { %3618 = vmatpush.bf16.msra.mxu2 %v9164_v58  ;;  %3648 = vmatpush.bf16.msrb.mxu0 %v9500_v62  ;;  %v9591_v58 = vld [vmem:[#allocation8 + $0x7c0] sm:$0xf]  ;;  %v12107_v62 = vld [vmem:[#allocation8 + $0x374] sm:$0xf] }
 0x1f6   :  { %3612 = vmatmul.bf16.vlgmr.msra.gmra.mxu1 %v13410_v27  ;;  %v9640_v27 = vor.u32 %v12260_v28, %v9639_v26  ;;  %v9592_v8 = vor.u32 %v12248_v59, %v9591_v58  ;;  %v12173_v59 = vld [vmem:[#allocation8 + $0x584] sm:$0xf] }
 0x1f7   :  { %3660 = vmatpush.bf16.msrb.mxu1 %v9740_v63  ;;  %3578 = vmatpush.bf16.msrb.mxu3 %v9688_v5  ;;  %v9041_v63 = vld [vmem:[#allocation8 + $0x388] sm:$0xf0]  ;;  %v9927_v5 = vld [vmem:[#allocation11 + $0x170] sm:$0xf] }
 0x1f8   :  { %v9044_v6 = vor.u32 %v12107_v62, %v9041_v63  ;;  %v12298_v62 = vld [vmem:[#allocation11 + $0x64] sm:$0xf0]  ;;  %v9912_v63 = vor.u32 %v12328_v49, %v9911_v48 }
 0x1f9   :  { %3619 = vmatpush.bf16.msra.mxu2 %v9140_v7  ;;  %3649 = vmatpush.bf16.msrb.mxu0 %v9476_v10  ;;  %v12332_v7 = vld [vmem:[#allocation11 + $0x174] sm:$0xf0]  ;;  %v12242_v10 = vld [vmem:[#allocation8 + $0x7a4] sm:$0xf0]  ;;  %v13478_v42 = vpop.f32.mrf.mxu3 }
 0x1fa   :  { %v9928_v26 = vor.u32 %v12332_v7, %v9927_v5  ;;  %v9568_v28 = vor.u32 %v12242_v10, %v9567_v25  ;;  %v9281_v5 = vld [vmem:[#allocation8 + $0x568] sm:$0xf0]  ;;  %v9783_v7 = vld [vmem:[#allocation11 + $0x50] sm:$0xf]  ;;  %v9904_v25 = vor.u32 %v12326_v2, %v9903_v0 }
 0x1fb   :  { %3661 = vmatpush.bf16.msrb.mxu1 %v9716_v11  ;;  %3579 = vmatpush.bf16.msrb.mxu3 %v9664_v19  ;;  %v12101_v11 = vld [vmem:[#allocation8 + $0x344] sm:$0xf]  ;;  %v13480_v50 = vpop.f32.mrf.mxu1  ;;  %v9895_v10 = vld [vmem:[#allocation11 + $0x130] sm:$0xf]  ;;  %v12290_v2 = vld [vmem:[#allocation11 + $0x24] sm:$0xf0] }
 0x1fc   :  { %v13474_v18 = vpop.f32.mrf.mxu2  ;;  %v12245_v19 = vld [vmem:[#allocation8 + $0x7c4] sm:$0xf]  ;;  %v9020_v31 = vor.u32 %v12101_v11, %v9017_v14  ;;  %v12324_v11 = vld [vmem:[#allocation11 + $0x134] sm:$0xf0] }
 0x1fd   :  { %3620 = vmatpush.bf16.msra.mxu2 %v9116_v23  ;;  %3650 = vmatpush.bf16.msrb.mxu0 %v9452_v29  ;;  %v9593_v23 = vld [vmem:[#allocation8 + $0x7d8] sm:$0xf0]  ;;  %v9919_v29 = vld [vmem:[#allocation11 + $0x160] sm:$0xf] }
 0x1fe   :  { %v9596_v37 = vor.u32 %v12245_v19, %v9593_v23  ;;  %v12161_v19 = vld [vmem:[#allocation8 + $0x524] sm:$0xf]  ;;  %v9257_v23 = vld [vmem:[#allocation8 + $0x538] sm:$0xf0] }
 0x1ff   :  { %3662 = vmatpush.bf16.msrb.mxu1 %v9692_v30  ;;  %3580 = vmatpush.bf16.msrb.mxu3 %v9640_v27  ;;  %v12330_v30 = vld [vmem:[#allocation11 + $0x164] sm:$0xf0]  ;;  %v9260_v34 = vor.u32 %v12161_v19, %v9257_v23  ;;  %v9751_v19 = vld [vmem:[#allocation11 + $0x10] sm:$0xf] }
 0x200   :  { %v9329_v27 = vld [vmem:[#allocation8 + $0x5c8] sm:$0xf0]  ;;  %v9920_v47 = vor.u32 %v12330_v30, %v9919_v29  ;;  %v9896_v29 = vor.u32 %v12324_v11, %v9895_v10  ;;  %v9887_v30 = vld [vmem:[#allocation11 + $0x120] sm:$0xf] }
 0x201   :  { %3621 = vmatpush.bf16.msra.mxu2 %v9092_v40  ;;  %3651 = vmatpush.bf16.msrb.mxu0 %v9428_v43  ;;  %v9799_v40 = vld [vmem:[#allocation11 + $0x70] sm:$0xf]  ;;  %v12300_v43 = vld [vmem:[#allocation11 + $0x74] sm:$0xf0]  ;;  %v12346_v10 = vld [vmem:[#allocation11 + $0x1e4] sm:$0xf0] }
 0x203   :  { %3663 = vmatpush.bf16.msrb.mxu1 %v9668_v45  ;;  %3581 = vmatpush.bf16.msrb.mxu3 %v9616_v53  ;;  %v12239_v45 = vld [vmem:[#allocation8 + $0x794] sm:$0xf]  ;;  %v9332_v53 = vor.u32 %v12179_v38, %v9329_v27 }
 0x204   :  { %v9572_v58 = vor.u32 %v12239_v45, %v9569_v46  ;;  %v13484_v3 = vpop.f32.mrf.mxu2  ;;  %v9767_v27 = vld [vmem:[#allocation11 + $0x30] sm:$0xf]  ;;  %v12320_v46 = vld [vmem:[#allocation11 + $0x114] sm:$0xf0] }
 0x205   :  { %3622 = vmatpush.bf16.msra.mxu2 %v9068_v56  ;;  %3652 = vmatpush.bf16.msrb.mxu0 %v9404_v60  ;;  %v9800_v56 = vor.u32 %v12300_v43, %v9799_v40  ;;  %v9305_v60 = vld [vmem:[#allocation8 + $0x598] sm:$0xf0]  ;;  %v9879_v45 = vld [vmem:[#allocation11 + $0x110] sm:$0xf] }
 0x206   :  { %v9308_v4 = vor.u32 %v12173_v59, %v9305_v60  ;;  %v12292_v40 = vld [vmem:[#allocation11 + $0x34] sm:$0xf0] }
 0x207   :  { %3664 = vmatpush.bf16.msrb.mxu1 %v9644_v61  ;;  %3582 = vmatpush.bf16.msrb.mxu3 %v9592_v8  ;;  %v9791_v61 = vld [vmem:[#allocation11 + $0x60] sm:$0xf]  ;;  %v12167_v8 = vld [vmem:[#allocation8 + $0x554] sm:$0xf]  ;;  %v9209_v59 = vld [vmem:[#allocation8 + $0x4d8] sm:$0xf0] }
 0x208   :  { %v9284_v14 = vor.u32 %v12167_v8, %v9281_v5  ;;  %v12318_v8 = vld [vmem:[#allocation11 + $0x104] sm:$0xf0]  ;;  %v12299_v5 = vld [vmem:[#allocation11 + $0x74] sm:$0xf] }
 0x209   :  { %3623 = vmatpush.bf16.msra.mxu2 %v9044_v6  ;;  %3653 = vmatpush.bf16.msrb.mxu0 %v9380_v12  ;;  %v12296_v6 = vld [vmem:[#allocation11 + $0x54] sm:$0xf0]  ;;  %v13487_v12 = vpop.f32.mrf.mxu0 }
 0x20a   :  { %v9784_v17 = vor.u32 %v12296_v6, %v9783_v7 }
 0x20b   :  { %3665 = vmatpush.bf16.msrb.mxu1 %v9620_v13  ;;  %3583 = vmatpush.bf16.msrb.mxu3 %v9568_v28  ;;  %v13489_v13 = vpop.f32.mrf.mxu3  ;;  %v9775_v28 = vld [vmem:[#allocation11 + $0x40] sm:$0xf] }
 0x20c   :  { %3654 = vmatmul.bf16.vlgmr.msrb.gmra.mxu0 %v13424_v35  ;;  %v9792_v35 = vor.u32 %v12298_v62, %v9791_v61  ;;  %v13497_v38 = vpop.f32.mrf.mxu2 }
 0x20d   :  { %4302 = vmatpush.bf16.msra.mxu0 %v9928_v26  ;;  %3624 = vmatpush.bf16.msra.mxu2 %v9020_v31  ;;  %v13494_v26 = vpop.f32.mrf.mxu1  ;;  %v12322_v31 = vld [vmem:[#allocation11 + $0x124] sm:$0xf0] }
 0x20e   :  { %3584 = vmatmul.bf16.vlgmr.msrb.gmra.mxu3 %v13430_v57  ;;  %v9888_v43 = vor.u32 %v12322_v31, %v9887_v30  ;;  %v9863_v30 = vld [vmem:[#allocation11 + $0xf0] sm:$0xf] }
 0x20f   :  { %3632 = vmatpush.bf16.msra.mxu3 %v9356_v33  ;;  %3666 = vmatpush.bf16.msrb.mxu1 %v9596_v37  ;;  %v1718_v33 = vperm.slane %v13492_v16, 0  ;;  %v9233_v37 = vld [vmem:[#allocation8 + $0x508] sm:$0xf0] }
 0x210   :  { %v9236_v49 = vor.u32 %v12155_v36, %v9233_v37 }
 0x211   :  { %4303 = vmatpush.bf16.msra.mxu0 %v9920_v47  ;;  %3625 = vmatpush.bf16.msra.mxu2 %v8996_v52  ;;  %v3182_v47 = vadd.f32 %v13456_v21, %v1718_v33  ;;  %v13500_v48 = vpop.f32.mrf.mxu0  ;;  %v9991_v52 = vld [vmem:[#allocation11 + $0x1f0] sm:$0xf]  ;;  %v3180_v61 = vadd.f32 %v13450_v32, %v1718_v33  ;;  %v9759_v21 = vld [vmem:[#allocation11 + $0x20] sm:$0xf]  ;;  %v12297_v33 = vld [vmem:[#allocation11 + $0x64] sm:$0xf] }
 0x212   :  { %v9760_v11 = vor.u32 %v12290_v2, %v9759_v21  ;;  %v12342_v21 = vld [vmem:[#allocation11 + $0x1c4] sm:$0xf0] }
 0x213   :  { %3633 = vmatpush.bf16.msra.mxu3 %v9332_v53  ;;  %3667 = vmatpush.bf16.msrb.mxu1 %v9572_v58  ;;  %v12348_v53 = vld [vmem:[#allocation11 + $0x1f4] sm:$0xf0]  ;;  %v12149_v58 = vld [vmem:[#allocation8 + $0x4c4] sm:$0xf]  ;;  %v3196_v62 = vadd.f32 %v13462_v20, %v3182_v47  ;;  %v13506_v0 = vpop.f32.mrf.mxu3  ;;  %v3194_v7 = vadd.f32 %v13452_v51, %v3180_v61 }
 0x214   :  { %3626 = vmatmul.bf16.vlgmr.msra.gmra.mxu2 %v13415_v44  ;;  %v12294_v44 = vld [vmem:[#allocation11 + $0x44] sm:$0xf0]  ;;  %v9992_v60 = vor.u32 %v12348_v53, %v9991_v52  ;;  %v9212_v32 = vor.u32 %v12149_v58, %v9209_v59  ;;  %v9983_v20 = vld [vmem:[#allocation11 + $0x1e0] sm:$0xf]  ;;  %v12316_v51 = vld [vmem:[#allocation11 + $0xf4] sm:$0xf0]  ;;  %v13514_v36 = vpop.f32.mrf.mxu2 }
 0x215   :  { %4274 = vmatpush.bf16.msrb.mxu2 %v9800_v56  ;;  %4304 = vmatpush.bf16.msra.mxu0 %v9912_v63  ;;  %v9768_v56 = vor.u32 %v12292_v40, %v9767_v27  ;;  %v13504_v63 = vpop.f32.mrf.mxu1  ;;  %v3210_v6 = vadd.f32 %v13468_v54, %v3196_v62  ;;  %v9984_v23 = vor.u32 %v12346_v10, %v9983_v20  ;;  %v9793_v27 = vld [vmem:[#allocation11 + $0x68] sm:$0xf0]  ;;  %v12344_v40 = vld [vmem:[#allocation11 + $0x1d4] sm:$0xf0]  ;;  %v12286_v52 = vld [vmem:[#allocation11 + $0x4] sm:$0xf0] }
 0x216   :  { %3668 = vmatmul.bf16.vlgmr.msrb.gmra.mxu1 %v13430_v57  ;;  %v9776_v57 = vor.u32 %v12294_v44, %v9775_v28  ;;  %v3208_v28 = vadd.f32 %v13458_v15, %v3194_v7  ;;  %v9975_v15 = vld [vmem:[#allocation11 + $0x1d0] sm:$0xf]  ;;  %v12314_v53 = vld [vmem:[#allocation11 + $0xe4] sm:$0xf0]  ;;  %v12295_v58 = vld [vmem:[#allocation11 + $0x54] sm:$0xf] }
 0x217   :  { %3634 = vmatpush.bf16.msra.mxu3 %v9308_v4  ;;  %v9880_v4 = vor.u32 %v12320_v46, %v9879_v45  ;;  %4316 = vmatpush.bf16.msra.mxu1 %v9992_v60  ;;  %v3224_v44 = vadd.f32 %v13472_v1, %v3210_v6  ;;  %v9743_v45 = vld [vmem:[#allocation11] sm:$0xf]  ;;  %v9976_v46 = vor.u32 %v12344_v40, %v9975_v15  ;;  %v9785_v62 = vld [vmem:[#allocation11 + $0x58] sm:$0xf0]  ;;  %v9847_v7 = vld [vmem:[#allocation11 + $0xd0] sm:$0xf] }
 0x218   :  { %v12312_v6 = vld [vmem:[#allocation11 + $0xd4] sm:$0xf0]  ;;  %v9777_v20 = vld [vmem:[#allocation11 + $0x48] sm:$0xf0] }
 0x219   :  { %4275 = vmatpush.bf16.msrb.mxu2 %v9792_v35  ;;  %4305 = vmatpush.bf16.msra.mxu0 %v9904_v25  ;;  %v9871_v35 = vld [vmem:[#allocation11 + $0x100] sm:$0xf]  ;;  %v9801_v25 = vld [vmem:[#allocation11 + $0x78] sm:$0xf0]  ;;  %v12336_v15 = vld [vmem:[#allocation11 + $0x194] sm:$0xf0] }
 0x21a   :  { %v9872_v54 = vor.u32 %v12318_v8, %v9871_v35  ;;  %v9804_v31 = vor.u32 %v12299_v5, %v9801_v25  ;;  %v9959_v35 = vld [vmem:[#allocation11 + $0x1b0] sm:$0xf]  ;;  %v12340_v8 = vld [vmem:[#allocation11 + $0x1b4] sm:$0xf0]  ;;  %v12293_v25 = vld [vmem:[#allocation11 + $0x44] sm:$0xf] }
 0x21b   :  { %3635 = vmatpush.bf16.msra.mxu3 %v9284_v14  ;;  %v12143_v14 = vld [vmem:[#allocation8 + $0x494] sm:$0xf]  ;;  %4317 = vmatpush.bf16.msra.mxu1 %v9984_v23  ;;  %v3361_v61 = vpop.f32.mrf.mxu3  ;;  %v9960_v10 = vor.u32 %v12340_v8, %v9959_v35  ;;  %v9753_v35 = vld [vmem:[#allocation11 + $0x18] sm:$0xf0]  ;;  %v9935_v8 = vld [vmem:[#allocation11 + $0x180] sm:$0xf] }
 0x21d   :  { %4276 = vmatpush.bf16.msrb.mxu2 %v9784_v17  ;;  %4306 = vmatpush.bf16.msra.mxu0 %v9896_v29  ;;  %v9185_v17 = vld [vmem:[#allocation8 + $0x4a8] sm:$0xf0]  ;;  %v12288_v29 = vld [vmem:[#allocation11 + $0x14] sm:$0xf0]  ;;  %v13521_v60 = vpop.f32.mrf.mxu1 }
 0x21e   :  { %v9188_v37 = vor.u32 %v12143_v14, %v9185_v17  ;;  %v9752_v1 = vor.u32 %v12288_v29, %v9751_v19  ;;  %v9848_v14 = vor.u32 %v12312_v6, %v9847_v7  ;;  %v1719_v17 = vperm.slane %v13492_v16, 1 }
 0x21f   :  { %3636 = vmatpush.bf16.msra.mxu3 %v9260_v34  ;;  %v3222_v34 = vadd.f32 %v13464_v22, %v3208_v28  ;;  %4318 = vmatpush.bf16.msra.mxu1 %v9976_v46  ;;  %v3349_v28 = vpop.f32.mrf.mxu2  ;;  %v9780_v29 = vor.u32 %v12293_v25, %v9777_v20  ;;  %v12308_v46 = vld [vmem:[#allocation11 + $0xb4] sm:$0xf0]  ;;  %v9815_v20 = vld [vmem:[#allocation11 + $0x90] sm:$0xf] }
 0x220   :  { %v3264_v40 = vadd.f32 %v13476_v41, %v1719_v17 }
 0x221   :  { %4277 = vmatpush.bf16.msrb.mxu2 %v9776_v57  ;;  %4307 = vmatpush.bf16.msra.mxu0 %v9888_v43  ;;  %v3238_v57 = vadd.f32 %v13474_v18, %v3224_v44  ;;  %v9864_v43 = vor.u32 %v12316_v51, %v9863_v30  ;;  %v3236_v47 = vadd.f32 %v13466_v39, %v3222_v34  ;;  %v9855_v18 = vld [vmem:[#allocation11 + $0xe0] sm:$0xf]  ;;  %v12291_v30 = vld [vmem:[#allocation11 + $0x34] sm:$0xf] }
 0x222   :  { %v9967_v39 = vld [vmem:[#allocation11 + $0x1c0] sm:$0xf]  ;;  %v9856_v2 = vor.u32 %v12314_v53, %v9855_v18  ;;  %v3266_v51 = vadd.f32 %v13487_v12, %v1719_v17  ;;  %v9831_v12 = vld [vmem:[#allocation11 + $0xb0] sm:$0xf]  ;;  %v3278_v18 = vadd.f32 %v13480_v50, %v3264_v40  ;;  %v12289_v53 = vld [vmem:[#allocation11 + $0x24] sm:$0xf] }
 0x223   :  { %3637 = vmatpush.bf16.msra.mxu3 %v9236_v49  ;;  %v13517_v49 = vpop.f32.mrf.mxu0  ;;  %v3252_v22 = vadd.f32 %v13478_v42, %v3238_v57  ;;  %v3250_v59 = vadd.f32 %v13470_v55, %v3236_v47  ;;  %v9744_v42 = vor.u32 %v12286_v52, %v9743_v45  ;;  %v9788_v55 = vor.u32 %v12295_v58, %v9785_v62  ;;  %v9839_v44 = vld [vmem:[#allocation11 + $0xc0] sm:$0xf]  ;;  %v3363_v45 = vpop.f32.mrf.mxu3  ;;  %v12287_v50 = vld [vmem:[#allocation11 + $0x14] sm:$0xf] }
 0x224   :  { %v9832_v41 = vor.u32 %v12308_v46, %v9831_v12  ;;  %v9756_v17 = vor.u32 %v12287_v50, %v9753_v35 }
 0x225   :  { %4278 = vmatpush.bf16.msrb.mxu2 %v9768_v56  ;;  %4308 = vmatpush.bf16.msra.mxu0 %v9880_v4  ;;  %v9796_v56 = vor.u32 %v12297_v33, %v9793_v27  ;;  %v9968_v4 = vor.u32 %v12342_v21, %v9967_v39  ;;  %v3680_v5 = vmax.f32 %v3252_v22, 0.0  ;;  %v12338_v33 = vld [vmem:[#allocation11 + $0x1a4] sm:$0xf0]  ;;  %v9943_v27 = vld [vmem:[#allocation11 + $0x190] sm:$0xf] }
 0x226   :  { %v9944_v58 = vor.u32 %v12336_v15, %v9943_v27  ;;  %v9823_v21 = vld [vmem:[#allocation11 + $0xa0] sm:$0xf] }
 0x227   :  { %3638 = vmatpush.bf16.msra.mxu3 %v9212_v32  ;;  %v3674_v32 = vmax.f32 %v3250_v59, 0.0  ;;  %4319 = vmatpush.bf16.msra.mxu1 %v9968_v4  ;;  %v3403_v39 = vpop.f32.mrf.mxu2 }
 0x229   :  { %4279 = vmatpush.bf16.msrb.mxu2 %v9760_v11  ;;  %4309 = vmatpush.bf16.msra.mxu0 %v9872_v54  ;;  %v1720_v11 = vperm.slane %v13492_v16, 2  ;;  %v13526_v23 = vpack.c.bf16 %v3680_v5, %v3674_v32  ;;  %v9769_v54 = vld [vmem:[#allocation11 + $0x38] sm:$0xf0]  ;;  %v12334_v5 = vld [vmem:[#allocation11 + $0x184] sm:$0xf0] }
 0x22a   :  { %v9772_v52 = vor.u32 %v12291_v30, %v9769_v54  ;;  %v12313_v30 = vld [vmem:[#allocation11 + $0xe4] sm:$0xf]  ;;  %v9807_v54 = vld [vmem:[#allocation11 + $0x80] sm:$0xf] }
 0x22b   :  { %3639 = vmatpush.bf16.msra.mxu3 %v9188_v37  ;;  %v3375_v19 = vpop.f32.mrf.mxu0  ;;  %4320 = vmatpush.bf16.msra.mxu1 %v9960_v10  ;;  %v3348_v34 = vadd.f32 %v13514_v36, %v1720_v11  ;;  %v3350_v47 = vadd.f32 %v3349_v28, %v1720_v11  ;;  %v12304_v10 = vld [vmem:[#allocation11 + $0x94] sm:$0xf0]  ;;  %v12285_v28 = vld [vmem:[#allocation11 + $0x4] sm:$0xf] }
 0x22d   :  { %4358 = vmatpush.bf16.msrb.mxu0 %v9804_v31  ;;  %4280 = vmatpush.bf16.msrb.mxu2 %v9752_v1  ;;  %v9951_v31 = vld [vmem:[#allocation11 + $0x1a0] sm:$0xf]  ;;  %v3280_v1 = vadd.f32 %v13494_v26, %v3266_v51  ;;  %v3362_v22 = vadd.f32 %v3361_v61, %v3348_v34  ;;  %v3364_v59 = vadd.f32 %v3363_v45, %v3350_v47  ;;  %v12306_v61 = vld [vmem:[#allocation11 + $0xa4] sm:$0xf0]  ;;  %v9857_v51 = vld [vmem:[#allocation11 + $0xe8] sm:$0xf0] }
 0x22e   :  { %3640 = vmatmul.bf16.vlgmr.msra.gmra.mxu3 %v13418_v9  ;;  %v12310_v9 = vld [vmem:[#allocation11 + $0xc4] sm:$0xf0]  ;;  %v9952_v37 = vor.u32 %v12338_v33, %v9951_v31  ;;  %v3292_v26 = vadd.f32 %v13484_v3, %v3278_v18  ;;  %v9824_v6 = vor.u32 %v12306_v61, %v9823_v21  ;;  %v9936_v3 = vor.u32 %v12334_v5, %v9935_v8  ;;  %v9825_v21 = vld [vmem:[#allocation11 + $0xa8] sm:$0xf0]  ;;  %v10055_v5 = vld [vmem:[#allocation11 + $0x270] sm:$0xf] }
 0x22f   :  { %4288 = vmatpush.bf16.msrb.mxu3 %v9864_v43  ;;  %v9840_v57 = vor.u32 %v12310_v9, %v9839_v44  ;;  %v3389_v43 = vpop.f32.mrf.mxu1  ;;  %v3294_v36 = vadd.f32 %v13497_v38, %v3280_v1  ;;  %v9745_v44 = vld [vmem:[#allocation11 + $0x8] sm:$0xf0]  ;;  %v12302_v31 = vld [vmem:[#allocation11 + $0x84] sm:$0xf0]  ;;  %v9860_v33 = vor.u32 %v12313_v30, %v9857_v51  ;;  %v12311_v1 = vld [vmem:[#allocation11 + $0xd4] sm:$0xf] }
 0x230   :  { %4321 = vmatpush.bf16.msra.mxu1 %v9952_v37  ;;  %v3306_v38 = vadd.f32 %v13489_v13, %v3292_v26  ;;  %v3405_v37 = vpop.f32.mrf.mxu2  ;;  %v9808_v40 = vor.u32 %v12302_v31, %v9807_v54  ;;  %v9833_v26 = vld [vmem:[#allocation11 + $0xb8] sm:$0xf0] }
 0x231   :  { %4359 = vmatpush.bf16.msrb.mxu0 %v9796_v56  ;;  %4281 = vmatpush.bf16.msrb.mxu2 %v9744_v42  ;;  %v9761_v56 = vld [vmem:[#allocation11 + $0x28] sm:$0xf0]  ;;  %v3308_v62 = vadd.f32 %v13506_v0, %v3294_v36  ;;  %v3376_v42 = vadd.f32 %v3375_v19, %v3362_v22  ;;  %v9865_v0 = vld [vmem:[#allocation11 + $0xf8] sm:$0xf0]  ;;  %v3417_v25 = vpop.f32.mrf.mxu3 }
 0x232   :  { %v3320_v13 = vadd.f32 %v13500_v48, %v3306_v38  ;;  %v9841_v36 = vld [vmem:[#allocation11 + $0xc8] sm:$0xf0] }
 0x233   :  { %4289 = vmatpush.bf16.msrb.mxu3 %v9856_v2  ;;  %v9764_v2 = vor.u32 %v12289_v53, %v9761_v56  ;;  %v3377_v4 = vpop.f32.mrf.mxu0  ;;  %v3322_v32 = vadd.f32 %v13517_v49, %v3308_v62 }
 0x234   :  { %4282 = vmatmul.bf16.vlgmr.msrb.gmra.mxu2 %v13526_v23  ;;  %4322 = vmatpush.bf16.msra.mxu1 %v9944_v58  ;;  %v3378_v7 = vadd.f32 %v3377_v4, %v3364_v59  ;;  %v3334_v48 = vadd.f32 %v13504_v63, %v3320_v13  ;;  %v12309_v63 = vld [vmem:[#allocation11 + $0xc4] sm:$0xf]  ;;  %v1721_v4 = vperm.slane %v13492_v16, 3 }
 0x235   :  { %4360 = vmatpush.bf16.msrb.mxu0 %v9788_v55  ;;  %v12315_v55 = vld [vmem:[#allocation11 + $0xf4] sm:$0xf]  ;;  %v3336_v49 = vadd.f32 %v13521_v60, %v3322_v32  ;;  %v9844_v56 = vor.u32 %v12309_v63, %v9841_v36  ;;  %v12354_v36 = vld [vmem:[#allocation11 + $0x224] sm:$0xf0] }
 0x236   :  { %v9868_v11 = vor.u32 %v12315_v55, %v9865_v0  ;;  %v3675_v47 = vmax.f32 %v3334_v48, 0.0  ;;  %v12301_v55 = vld [vmem:[#allocation11 + $0x84] sm:$0xf]  ;;  %v9809_v0 = vld [vmem:[#allocation11 + $0x88] sm:$0xf0] }
 0x237   :  { %4290 = vmatpush.bf16.msrb.mxu3 %v9848_v14  ;;  %v3390_v14 = vadd.f32 %v3389_v43, %v3376_v42  ;;  %v3391_v19 = vpop.f32.mrf.mxu1  ;;  %v9849_v43 = vld [vmem:[#allocation11 + $0xd8] sm:$0xf0]  ;;  %v3681_v45 = vmax.f32 %v3336_v49, 0.0  ;;  %v12303_v42 = vld [vmem:[#allocation11 + $0x94] sm:$0xf] }
 0x238   :  { %4323 = vmatpush.bf16.msra.mxu1 %v9936_v3  ;;  %v3392_v9 = vadd.f32 %v3391_v19, %v3378_v7  ;;  %v9852_v46 = vor.u32 %v12311_v1, %v9849_v43  ;;  %v3459_v35 = vpop.f32.mrf.mxu2  ;;  %v12364_v7 = vld [vmem:[#allocation11 + $0x274] sm:$0xf0] }
 0x239   :  { %4361 = vmatpush.bf16.msrb.mxu0 %v9780_v29  ;;  %v9816_v29 = vor.u32 %v12304_v10, %v9815_v20  ;;  %v3404_v34 = vadd.f32 %v3403_v39, %v3390_v14  ;;  %v3419_v12 = vpop.f32.mrf.mxu3  ;;  %v13542_v53 = vpack.c.bf16 %v3681_v45, %v3675_v47  ;;  %v12305_v39 = vld [vmem:[#allocation11 + $0xa4] sm:$0xf]  ;;  %v10047_v20 = vld [vmem:[#allocation11 + $0x260] sm:$0xf]  ;;  %v12362_v10 = vld [vmem:[#allocation11 + $0x264] sm:$0xf0] }
 0x23a   :  { %v3406_v27 = vadd.f32 %v3405_v37, %v3392_v9  ;;  %v9828_v61 = vor.u32 %v12305_v39, %v9825_v21  ;;  %v10039_v9 = vld [vmem:[#allocation11 + $0x250] sm:$0xf]  ;;  %v12363_v37 = vld [vmem:[#allocation11 + $0x274] sm:$0xf]  ;;  %v12361_v47 = vld [vmem:[#allocation11 + $0x264] sm:$0xf] }
 0x23b   :  { %4291 = vmatpush.bf16.msrb.mxu3 %v9840_v57  ;;  %v9748_v57 = vor.u32 %v12285_v28, %v9745_v44  ;;  %v3418_v15 = vadd.f32 %v3417_v25, %v3404_v34  ;;  %v3431_v22 = vpop.f32.mrf.mxu0  ;;  %v9812_v25 = vor.u32 %v12301_v55, %v9809_v0  ;;  %v12358_v34 = vld [vmem:[#allocation11 + $0x244] sm:$0xf0]  ;;  %v10023_v45 = vld [vmem:[#allocation11 + $0x230] sm:$0xf]  ;;  %v10025_v0 = vld [vmem:[#allocation11 + $0x238] sm:$0xf0] }
 0x23c   :  { %4372 = vmatpush.bf16.msrb.mxu1 %v9868_v11  ;;  %v3420_v60 = vadd.f32 %v3419_v12, %v3406_v27  ;;  %v3432_v3 = vadd.f32 %v3431_v22, %v1721_v4  ;;  %v10057_v27 = vld [vmem:[#allocation11 + $0x278] sm:$0xf0]  ;;  %v12356_v12 = vld [vmem:[#allocation11 + $0x234] sm:$0xf0]  ;;  %v10049_v22 = vld [vmem:[#allocation11 + $0x268] sm:$0xf0] }
 0x23d   :  { %4362 = vmatpush.bf16.msrb.mxu0 %v9772_v52  ;;  %v3676_v52 = vmax.f32 %v3418_v15, 0.0  ;;  %v10052_v63 = vor.u32 %v12361_v47, %v10049_v22  ;;  %v9897_v22 = vld [vmem:[#allocation11 + $0x138] sm:$0xf0] }
 0x23e   :  { %v3682_v18 = vmax.f32 %v3420_v60, 0.0  ;;  %v10024_v60 = vor.u32 %v12356_v12, %v10023_v45  ;;  %v1722_v45 = vperm.slane %v13492_v16, 4 }
 0x23f   :  { %4292 = vmatpush.bf16.msrb.mxu3 %v9832_v41  ;;  %v3445_v58 = vpop.f32.mrf.mxu1  ;;  %v12307_v41 = vld [vmem:[#allocation11 + $0xb4] sm:$0xf] }
 0x240   :  { %4373 = vmatpush.bf16.msrb.mxu1 %v9860_v33  ;;  %v13544_v59 = vpack.c.bf16 %v3682_v18, %v3676_v52  ;;  %v9836_v62 = vor.u32 %v12307_v41, %v9833_v26  ;;  %v3446_v32 = vadd.f32 %v3445_v58, %v3432_v3  ;;  %v3461_v30 = vpop.f32.mrf.mxu2  ;;  %v10031_v33 = vld [vmem:[#allocation11 + $0x240] sm:$0xf]  ;;  %v12359_v26 = vld [vmem:[#allocation11 + $0x254] sm:$0xf] }
 0x241   :  { %4363 = vmatpush.bf16.msrb.mxu0 %v9764_v2  ;;  %v9817_v2 = vld [vmem:[#allocation11 + $0x98] sm:$0xf0]  ;;  %v10032_v48 = vor.u32 %v12358_v34, %v10031_v33  ;;  %v10015_v52 = vld [vmem:[#allocation11 + $0x220] sm:$0xf]  ;;  %v12355_v3 = vld [vmem:[#allocation11 + $0x234] sm:$0xf] }
 0x242   :  { %4310 = vmatmul.bf16.vlgmr.msra.gmra.mxu0 %v13544_v59  ;;  %v9820_v8 = vor.u32 %v12303_v42, %v9817_v2  ;;  %v3460_v13 = vadd.f32 %v3459_v35, %v3446_v32  ;;  %v10016_v41 = vor.u32 %v12354_v36, %v10015_v52  ;;  %v12352_v42 = vld [vmem:[#allocation11 + $0x214] sm:$0xf0]  ;;  %v12357_v2 = vld [vmem:[#allocation11 + $0x244] sm:$0xf]  ;;  %v12350_v35 = vld [vmem:[#allocation11 + $0x204] sm:$0xf0]  ;;  %v10028_v32 = vor.u32 %v12355_v3, %v10025_v0 }
 0x243   :  { %4293 = vmatpush.bf16.msrb.mxu3 %v9824_v6  ;;  %v3433_v50 = vpop.f32.mrf.mxu0  ;;  %v10056_v6 = vor.u32 %v12364_v7, %v10055_v5  ;;  %v12331_v7 = vld [vmem:[#allocation11 + $0x174] sm:$0xf] }
 0x244   :  { %4374 = vmatpush.bf16.msrb.mxu1 %v9852_v46  ;;  %v3434_v28 = vadd.f32 %v3433_v50, %v1721_v4  ;;  %v10033_v4 = vld [vmem:[#allocation11 + $0x248] sm:$0xf0]  ;;  %v12379_v52 = vld [vmem:[#allocation11 + $0x2f4] sm:$0xf] }
 0x245   :  { %4364 = vmatpush.bf16.msrb.mxu0 %v9756_v17  ;;  %4330 = vmatpush.bf16.msra.mxu2 %v10056_v6  ;;  %v10048_v17 = vor.u32 %v12362_v10, %v10047_v20  ;;  %v9929_v6 = vld [vmem:[#allocation11 + $0x178] sm:$0xf0]  ;;  %v12380_v20 = vld [vmem:[#allocation11 + $0x2f4] sm:$0xf0]  ;;  %v12329_v10 = vld [vmem:[#allocation11 + $0x164] sm:$0xf] }
 0x246   :  { %v9932_v55 = vor.u32 %v12331_v7, %v9929_v6 }
 0x247   :  { %4294 = vmatpush.bf16.msrb.mxu3 %v9816_v29  ;;  %v3447_v38 = vpop.f32.mrf.mxu1  ;;  %v12360_v29 = vld [vmem:[#allocation11 + $0x254] sm:$0xf0] }
 0x248   :  { %4375 = vmatpush.bf16.msrb.mxu1 %v9844_v56  ;;  %v10040_v51 = vor.u32 %v12360_v29, %v10039_v9  ;;  %v3448_v49 = vadd.f32 %v3447_v38, %v3434_v28  ;;  %v9999_v38 = vld [vmem:[#allocation11 + $0x200] sm:$0xf]  ;;  %v12378_v9 = vld [vmem:[#allocation11 + $0x2e4] sm:$0xf0]  ;;  %v12327_v29 = vld [vmem:[#allocation11 + $0x154] sm:$0xf] }
 0x249   :  { %4365 = vmatpush.bf16.msrb.mxu0 %v9748_v57  ;;  %4331 = vmatpush.bf16.msra.mxu2 %v10048_v17  ;;  %v10000_v5 = vor.u32 %v12350_v35, %v9999_v38  ;;  %v12353_v17 = vld [vmem:[#allocation11 + $0x224] sm:$0xf]  ;;  %v12319_v38 = vld [vmem:[#allocation11 + $0x114] sm:$0xf]  ;;  %v9881_v35 = vld [vmem:[#allocation11 + $0x118] sm:$0xf0] }
 0x24a   :  { %v3462_v54 = vadd.f32 %v3461_v30, %v3448_v49  ;;  %v12351_v49 = vld [vmem:[#allocation11 + $0x214] sm:$0xf] }
 0x24b   :  { %4295 = vmatpush.bf16.msrb.mxu3 %v9808_v40  ;;  %v3487_v11 = vpop.f32.mrf.mxu0 }
 0x24c   :  { %4376 = vmatpush.bf16.msrb.mxu1 %v9836_v62  ;;  %v10041_v62 = vld [vmem:[#allocation11 + $0x258] sm:$0xf0] }
 0x24d   :  { %4332 = vmatpush.bf16.msra.mxu2 %v10040_v51  ;;  %v10044_v21 = vor.u32 %v12359_v26, %v10041_v62  ;;  %v9913_v51 = vld [vmem:[#allocation11 + $0x158] sm:$0xf0]  ;;  %v9889_v62 = vld [vmem:[#allocation11 + $0x128] sm:$0xf0] }
 0x24e   :  { %4296 = vmatmul.bf16.vlgmr.msrb.gmra.mxu3 %v13542_v53 }
 0x24f   :  { %v3501_v19 = vpop.f32.mrf.mxu1 }
 0x250   :  { %4377 = vmatpush.bf16.msrb.mxu1 %v9828_v61  ;;  %v10007_v61 = vld [vmem:[#allocation11 + $0x210] sm:$0xf] }
 0x251   :  { %v3473_v14 = vpop.f32.mrf.mxu3  ;;  %4333 = vmatpush.bf16.msra.mxu2 %v10032_v48  ;;  %v10008_v50 = vor.u32 %v12352_v42, %v10007_v61  ;;  %v12376_v48 = vld [vmem:[#allocation11 + $0x2d4] sm:$0xf0]  ;;  %v10113_v61 = vld [vmem:[#allocation11 + $0x2e8] sm:$0xf0] }
 0x252   :  { %4366 = vmatmul.bf16.vlgmr.msrb.gmra.mxu0 %v13526_v23  ;;  %v3474_v44 = vadd.f32 %v3473_v14, %v3460_v13  ;;  %v10060_v23 = vor.u32 %v12363_v37, %v10057_v27  ;;  %v9921_v14 = vld [vmem:[#allocation11 + $0x168] sm:$0xf0]  ;;  %v12325_v37 = vld [vmem:[#allocation11 + $0x144] sm:$0xf] }
 0x253   :  { %v3489_v40 = vpop.f32.mrf.mxu0  ;;  %v10017_v13 = vld [vmem:[#allocation11 + $0x228] sm:$0xf0] }
 0x254   :  { %4378 = vmatpush.bf16.msrb.mxu1 %v9820_v8  ;;  %v3488_v31 = vadd.f32 %v3487_v11, %v3474_v44  ;;  %4414 = vmatpush.bf16.msra.mxu0 %v10060_v23  ;;  %v10036_v8 = vor.u32 %v12357_v2, %v10033_v4  ;;  %v10020_v28 = vor.u32 %v12353_v17, %v10017_v13  ;;  %v10111_v44 = vld [vmem:[#allocation11 + $0x2e0] sm:$0xf]  ;;  %v12349_v23 = vld [vmem:[#allocation11 + $0x204] sm:$0xf]  ;;  %v12370_v4 = vld [vmem:[#allocation11 + $0x2a4] sm:$0xf0] }
 0x255   :  { %4334 = vmatpush.bf16.msra.mxu2 %v10024_v60  ;;  %v10112_v30 = vor.u32 %v12378_v9, %v10111_v44  ;;  %v12323_v60 = vld [vmem:[#allocation11 + $0x134] sm:$0xf] }
 0x256   :  { %v3502_v1 = vadd.f32 %v3501_v19, %v3488_v31  ;;  %v9924_v19 = vor.u32 %v12329_v10, %v9921_v14  ;;  %v9916_v31 = vor.u32 %v12327_v29, %v9913_v51  ;;  %v12317_v10 = vld [vmem:[#allocation11 + $0x104] sm:$0xf] }
 0x257   :  { %v3503_v46 = vpop.f32.mrf.mxu1  ;;  %v3515_v34 = vpop.f32.mrf.mxu2  ;;  %v12373_v29 = vld [vmem:[#allocation11 + $0x2c4] sm:$0xf] }
 0x258   :  { %4379 = vmatpush.bf16.msrb.mxu1 %v9812_v25  ;;  %v3677_v56 = vmax.f32 %v3502_v1, 0.0  ;;  %4415 = vmatpush.bf16.msra.mxu0 %v10052_v63  ;;  %v10119_v25 = vld [vmem:[#allocation11 + $0x2f0] sm:$0xf]  ;;  %v9900_v63 = vor.u32 %v12323_v60, %v9897_v22  ;;  %v9985_v60 = vld [vmem:[#allocation11 + $0x1e8] sm:$0xf0] }
 0x259   :  { %v3475_v57 = vpop.f32.mrf.mxu3  ;;  %4335 = vmatpush.bf16.msra.mxu2 %v10016_v41  ;;  %v10120_v11 = vor.u32 %v12380_v20, %v10119_v25  ;;  %v12321_v41 = vld [vmem:[#allocation11 + $0x124] sm:$0xf]  ;;  %v12368_v25 = vld [vmem:[#allocation11 + $0x294] sm:$0xf0]  ;;  %v3516_v20 = vadd.f32 %v3515_v34, %v1722_v45  ;;  %v12366_v34 = vld [vmem:[#allocation11 + $0x284] sm:$0xf0] }
 0x25a   :  { %v3476_v15 = vadd.f32 %v3475_v57, %v3462_v54  ;;  %v10009_v54 = vld [vmem:[#allocation11 + $0x218] sm:$0xf0]  ;;  %v10103_v57 = vld [vmem:[#allocation11 + $0x2d0] sm:$0xf]  ;;  %v9892_v42 = vor.u32 %v12321_v41, %v9889_v62  ;;  %v12369_v22 = vld [vmem:[#allocation11 + $0x2a4] sm:$0xf] }
 0x25b   :  { %4344 = vmatpush.bf16.msra.mxu3 %v10120_v11  ;;  %v10012_v33 = vor.u32 %v12351_v49, %v10009_v54  ;;  %v10104_v27 = vor.u32 %v12376_v48, %v10103_v57  ;;  %v3543_v7 = vpop.f32.mrf.mxu0  ;;  %v9873_v11 = vld [vmem:[#allocation11 + $0x108] sm:$0xf0]  ;;  %v12343_v41 = vld [vmem:[#allocation11 + $0x1d4] sm:$0xf] }
 0x25c   :  { %v3490_v43 = vadd.f32 %v3489_v40, %v3476_v15  ;;  %4416 = vmatpush.bf16.msra.mxu0 %v10044_v21  ;;  %v9905_v15 = vld [vmem:[#allocation11 + $0x148] sm:$0xf0]  ;;  %v12377_v21 = vld [vmem:[#allocation11 + $0x2e4] sm:$0xf]  ;;  %v9876_v44 = vor.u32 %v12317_v10, %v9873_v11  ;;  %v12367_v62 = vld [vmem:[#allocation11 + $0x294] sm:$0xf] }
 0x25d   :  { %4336 = vmatpush.bf16.msra.mxu2 %v10008_v50  ;;  %v10001_v40 = vld [vmem:[#allocation11 + $0x208] sm:$0xf0]  ;;  %v9908_v1 = vor.u32 %v12325_v37, %v9905_v15  ;;  %v10116_v2 = vor.u32 %v12377_v21, %v10113_v61  ;;  %v10079_v50 = vld [vmem:[#allocation11 + $0x2a0] sm:$0xf]  ;;  %v12347_v37 = vld [vmem:[#allocation11 + $0x1f4] sm:$0xf] }
 0x25e   :  { %v3504_v18 = vadd.f32 %v3503_v46, %v3490_v43  ;;  %v10004_v43 = vor.u32 %v12349_v23, %v10001_v40  ;;  %v12374_v46 = vld [vmem:[#allocation11 + $0x2c4] sm:$0xf0]  ;;  %v10080_v3 = vor.u32 %v12370_v4, %v10079_v50  ;;  %v12371_v15 = vld [vmem:[#allocation11 + $0x2b4] sm:$0xf]  ;;  %v12337_v11 = vld [vmem:[#allocation11 + $0x1a4] sm:$0xf] }
 0x25f   :  { %4345 = vmatpush.bf16.msra.mxu3 %v10112_v30  ;;  %v3517_v6 = vpop.f32.mrf.mxu2  ;;  %v3557_v14 = vpop.f32.mrf.mxu1  ;;  %v10097_v30 = vld [vmem:[#allocation11 + $0x2c8] sm:$0xf0] }
 0x260   :  { %v3683_v58 = vmax.f32 %v3504_v18, 0.0  ;;  %4417 = vmatpush.bf16.msra.mxu0 %v10036_v8  ;;  %v10121_v18 = vld [vmem:[#allocation11 + $0x2f8] sm:$0xf0]  ;;  %v12375_v8 = vld [vmem:[#allocation11 + $0x2d4] sm:$0xf]  ;;  %v3518_v13 = vadd.f32 %v3517_v6, %v1722_v45  ;;  %v10100_v49 = vor.u32 %v12373_v29, %v10097_v30 }
 0x261   :  { %4337 = vmatpush.bf16.msra.mxu2 %v10000_v5  ;;  %v10124_v36 = vor.u32 %v12379_v52, %v10121_v18  ;;  %v10105_v5 = vld [vmem:[#allocation11 + $0x2d8] sm:$0xf0]  ;;  %v10081_v52 = vld [vmem:[#allocation11 + $0x2a8] sm:$0xf0]  ;;  %v12365_v6 = vld [vmem:[#allocation11 + $0x284] sm:$0xf] }
 0x262   :  { %v13550_v39 = vpack.c.bf16 %v3683_v58, %v3677_v56  ;;  %v10087_v56 = vld [vmem:[#allocation11 + $0x2b0] sm:$0xf]  ;;  %v12372_v58 = vld [vmem:[#allocation11 + $0x2b4] sm:$0xf0]  ;;  %v10108_v0 = vor.u32 %v12375_v8, %v10105_v5  ;;  %v12341_v8 = vld [vmem:[#allocation11 + $0x1c4] sm:$0xf] }
 0x263   :  { %4346 = vmatpush.bf16.msra.mxu3 %v10104_v27  ;;  %v10088_v26 = vor.u32 %v12372_v58, %v10087_v56  ;;  %v9993_v27 = vld [vmem:[#allocation11 + $0x1f8] sm:$0xf0]  ;;  %v9969_v5 = vld [vmem:[#allocation11 + $0x1c8] sm:$0xf0] }
 0x264   :  { %4324 = vmatmul.bf16.vlgmr.msra.gmra.mxu1 %v13550_v39  ;;  %4418 = vmatpush.bf16.msra.mxu0 %v10028_v32  ;;  %v10071_v32 = vld [vmem:[#allocation11 + $0x290] sm:$0xf]  ;;  %v9996_v40 = vor.u32 %v12347_v37, %v9993_v27 }
 0x265   :  { %4386 = vmatpush.bf16.msrb.mxu2 %v9932_v55  ;;  %4428 = vmatpush.bf16.msra.mxu1 %v10124_v36  ;;  %v9884_v55 = vor.u32 %v12319_v38, %v9881_v35 }
 0x268   :  { %4419 = vmatpush.bf16.msra.mxu0 %v10020_v28  ;;  %v10072_v28 = vor.u32 %v12368_v25, %v10071_v32  ;;  %v12339_v25 = vld [vmem:[#allocation11 + $0x1b4] sm:$0xf] }
 0x269   :  { %4387 = vmatpush.bf16.msrb.mxu2 %v9924_v19  ;;  %4429 = vmatpush.bf16.msra.mxu1 %v10116_v2 }
 0x26c   :  { %4420 = vmatpush.bf16.msra.mxu0 %v10012_v33  ;;  %v10063_v33 = vld [vmem:[#allocation11 + $0x280] sm:$0xf] }
 0x26d   :  { %4388 = vmatpush.bf16.msrb.mxu2 %v9916_v31  ;;  %4430 = vmatpush.bf16.msra.mxu1 %v10108_v0  ;;  %v3545_v31 = vpop.f32.mrf.mxu0  ;;  %v10064_v48 = vor.u32 %v12366_v34, %v10063_v33 }
 0x270   :  { %4421 = vmatpush.bf16.msra.mxu0 %v10004_v43 }
 0x271   :  { %v3529_v12 = vpop.f32.mrf.mxu3  ;;  %4389 = vmatpush.bf16.msrb.mxu2 %v9908_v1  ;;  %4431 = vmatpush.bf16.msra.mxu1 %v10100_v49  ;;  %v10089_v1 = vld [vmem:[#allocation11 + $0x2b8] sm:$0xf0]  ;;  %v12333_v49 = vld [vmem:[#allocation11 + $0x184] sm:$0xf] }
 0x272   :  { %v3530_v19 = vadd.f32 %v3529_v12, %v3516_v20  ;;  %v10092_v45 = vor.u32 %v12371_v15, %v10089_v1  ;;  %v3559_v12 = vpop.f32.mrf.mxu1  ;;  %v9961_v20 = vld [vmem:[#allocation11 + $0x1b8] sm:$0xf0] }
 0x273   :  { %v9964_v10 = vor.u32 %v12339_v25, %v9961_v20  ;;  %v12462_v25 = vld [vmem:[#allocation16 + $0x104] sm:$0xf0]  ;;  %v12459_v20 = vld [vmem:[#allocation16 + $0xf4] sm:$0xf] }
 0x274   :  { %4380 = vmatmul.bf16.vlgmr.msrb.gmra.mxu1 %v13542_v53  ;;  %v10095_v53 = vld [vmem:[#allocation11 + $0x2c0] sm:$0xf]  ;;  %v3544_v54 = vadd.f32 %v3543_v7, %v3530_v19  ;;  %v9972_v7 = vor.u32 %v12341_v8, %v9969_v5  ;;  %v12335_v19 = vld [vmem:[#allocation11 + $0x194] sm:$0xf]  ;;  %v10279_v8 = vld [vmem:[#allocation16 + $0x128] sm:$0xf] }
 0x275   :  { %v10096_v47 = vor.u32 %v12374_v46, %v10095_v53  ;;  %4390 = vmatpush.bf16.msrb.mxu2 %v9900_v63  ;;  %4432 = vmatpush.bf16.msra.mxu1 %v10092_v45  ;;  %v12345_v46 = vld [vmem:[#allocation11 + $0x1e4] sm:$0xf]  ;;  %v10084_v63 = vor.u32 %v12369_v22, %v10081_v52  ;;  %v3599_v4 = vpop.f32.mrf.mxu0 }
 0x276   :  { %v3558_v43 = vadd.f32 %v3557_v14, %v3544_v54  ;;  %v9953_v14 = vld [vmem:[#allocation11 + $0x1a8] sm:$0xf0]  ;;  %v12469_v5 = vld [vmem:[#allocation16 + $0x13c] sm:$0xf0] }
 0x277   :  { %4347 = vmatpush.bf16.msra.mxu3 %v10096_v47  ;;  %v3571_v51 = vpop.f32.mrf.mxu2  ;;  %v9988_v47 = vor.u32 %v12345_v46, %v9985_v60  ;;  %v9937_v54 = vld [vmem:[#allocation11 + $0x188] sm:$0xf0] }
 0x278   :  { %v3572_v18 = vadd.f32 %v3571_v51, %v3558_v43  ;;  %v9940_v33 = vor.u32 %v12333_v49, %v9937_v54 }
 0x279   :  { %4391 = vmatpush.bf16.msrb.mxu2 %v9892_v42  ;;  %v3531_v17 = vpop.f32.mrf.mxu3  ;;  %4433 = vmatpush.bf16.msra.mxu1 %v10084_v63  ;;  %v10073_v42 = vld [vmem:[#allocation11 + $0x298] sm:$0xf0]  ;;  %v12474_v63 = vld [vmem:[#allocation16 + $0x164] sm:$0xf0] }
 0x27a   :  { %v3532_v9 = vadd.f32 %v3531_v17, %v3518_v13  ;;  %v10076_v50 = vor.u32 %v12367_v62, %v10073_v42  ;;  %v9956_v17 = vor.u32 %v12337_v11, %v9953_v14  ;;  %v10305_v42 = vld [vmem:[#allocation16 + $0x170] sm:$0xf0]  ;;  %v10249_v11 = vld [vmem:[#allocation16 + $0x108] sm:$0xf0]  ;;  %v10255_v14 = vld [vmem:[#allocation16 + $0xf8] sm:$0xf] }
 0x27b   :  { %4348 = vmatpush.bf16.msra.mxu3 %v10088_v26  ;;  %v9977_v26 = vld [vmem:[#allocation11 + $0x1d8] sm:$0xf0] }
 0x27c   :  { %v3546_v57 = vadd.f32 %v3545_v31, %v3532_v9  ;;  %v9980_v61 = vor.u32 %v12343_v41, %v9977_v26  ;;  %v10303_v41 = vld [vmem:[#allocation16 + $0x158] sm:$0xf]  ;;  %v12475_v26 = vld [vmem:[#allocation16 + $0x16c] sm:$0xf0] }
 0x27d   :  { %4392 = vmatpush.bf16.msrb.mxu2 %v9884_v55  ;;  %4434 = vmatpush.bf16.msra.mxu1 %v10076_v50  ;;  %v3613_v55 = vpop.f32.mrf.mxu1  ;;  %v3601_v13 = vpop.f32.mrf.mxu0  ;;  %v10271_v50 = vld [vmem:[#allocation16 + $0x120] sm:$0xf] }
 0x27e   :  { %v3560_v53 = vadd.f32 %v3559_v12, %v3546_v57 }
 0x27f   :  { %4349 = vmatpush.bf16.msra.mxu3 %v10080_v3  ;;  %v3573_v36 = vpop.f32.mrf.mxu2  ;;  %v10065_v3 = vld [vmem:[#allocation11 + $0x288] sm:$0xf0] }
 0x280   :  { %v3574_v56 = vadd.f32 %v3573_v36, %v3560_v53  ;;  %v10068_v32 = vor.u32 %v12365_v6, %v10065_v3  ;;  %v12471_v36 = vld [vmem:[#allocation16 + $0x154] sm:$0xf]  ;;  %v10280_v6 = vor.u32 %v12469_v5, %v10279_v8  ;;  %v12466_v3 = vld [vmem:[#allocation16 + $0x12c] sm:$0xf] }
 0x281   :  { %4393 = vmatpush.bf16.msrb.mxu2 %v9876_v44  ;;  %v1723_v44 = vperm.slane %v13492_v16, 5  ;;  %v12435_v8 = vld [vmem:[#allocation16 + $0x34] sm:$0xf] }
 0x282   :  { %4435 = vmatpush.bf16.msra.mxu1 %v10068_v32  ;;  %v10247_v32 = vld [vmem:[#allocation16 + $0xf0] sm:$0xf] }
 0x283   :  { %4350 = vmatpush.bf16.msra.mxu3 %v10072_v28  ;;  %v9945_v28 = vld [vmem:[#allocation11 + $0x198] sm:$0xf0]  ;;  %v3600_v51 = vadd.f32 %v3599_v4, %v1723_v44  ;;  %v3602_v27 = vadd.f32 %v3601_v13, %v1723_v44  ;;  %v10252_v13 = vor.u32 %v12459_v20, %v10249_v11  ;;  %v10257_v44 = vld [vmem:[#allocation16 + $0x110] sm:$0xf0]  ;;  %v10127_v11 = vld [vmem:[#allocation16] sm:$0xf] }
 0x284   :  { %v9948_v9 = vor.u32 %v12335_v19, %v9945_v28  ;;  %v12468_v4 = vld [vmem:[#allocation16 + $0x134] sm:$0xf0]  ;;  %v12460_v28 = vld [vmem:[#allocation16 + $0xfc] sm:$0xf]  ;;  %v10161_v20 = vld [vmem:[#allocation16 + $0x50] sm:$0xf0] }
 0x285   :  { %v3615_v29 = vpop.f32.mrf.mxu1  ;;  %v3614_v31 = vadd.f32 %v3613_v55, %v3600_v51  ;;  %v10281_v55 = vld [vmem:[#allocation16 + $0x140] sm:$0xf0] }
 0x286   :  { %v12453_v51 = vld [vmem:[#allocation16 + $0xc4] sm:$0xf] }
 0x287   :  { %4351 = vmatpush.bf16.msra.mxu3 %v10064_v48 }
 0x289   :  { %v3655_v34 = vpop.f32.mrf.mxu0 }
 0x28b   :  { %4400 = vmatpush.bf16.msrb.mxu3 %v9996_v40 }
 0x28f   :  { %4401 = vmatpush.bf16.msrb.mxu3 %v9988_v47 }
 0x291   :  { %v3585_v23 = vpop.f32.mrf.mxu3  ;;  %v3657_v12 = vpop.f32.mrf.mxu0 }
 0x292   :  { %v3586_v58 = vadd.f32 %v3585_v23, %v3572_v18  ;;  %v3616_v23 = vadd.f32 %v3615_v29, %v3602_v27  ;;  %v10223_v29 = vld [vmem:[#allocation16 + $0xc0] sm:$0xf]  ;;  %v10233_v27 = vld [vmem:[#allocation16 + $0xe0] sm:$0xf0] }
 0x293   :  { %4402 = vmatpush.bf16.msrb.mxu3 %v9980_v61  ;;  %v3669_v37 = vpop.f32.mrf.mxu1  ;;  %v12472_v61 = vld [vmem:[#allocation16 + $0x15c] sm:$0xf] }
 0x294   :  { %v3678_v38 = vmax.f32 %v3586_v58, 0.0  ;;  %v10297_v58 = vld [vmem:[#allocation16 + $0x168] sm:$0xf0] }
 0x295   :  { %v10300_v62 = vor.u32 %v12471_v36, %v10297_v58  ;;  %v12441_v36 = vld [vmem:[#allocation16 + $0x64] sm:$0xf]  ;;  %v10177_v58 = vld [vmem:[#allocation16 + $0x78] sm:$0xf0] }
 0x297   :  { %4403 = vmatpush.bf16.msrb.mxu3 %v9972_v7  ;;  %v3627_v30 = vpop.f32.mrf.mxu2 }
 0x298   :  { %v3628_v48 = vadd.f32 %v3627_v30, %v3614_v31  ;;  %v12456_v30 = vld [vmem:[#allocation16 + $0xd4] sm:$0xf0]  ;;  %v10225_v31 = vld [vmem:[#allocation16 + $0xd8] sm:$0xf0] }
 0x299   :  { %v3587_v21 = vpop.f32.mrf.mxu3  ;;  %v10224_v54 = vor.u32 %v12456_v30, %v10223_v29 }
 0x29a   :  { %v3588_v2 = vadd.f32 %v3587_v21, %v3574_v56  ;;  %v10304_v21 = vor.u32 %v12475_v26, %v10303_v41  ;;  %v10183_v41 = vld [vmem:[#allocation16 + $0x68] sm:$0xf]  ;;  %v12445_v26 = vld [vmem:[#allocation16 + $0x7c] sm:$0xf0] }
 0x29b   :  { %4404 = vmatpush.bf16.msrb.mxu3 %v9964_v10  ;;  %v3671_v60 = vpop.f32.mrf.mxu1  ;;  %v10248_v10 = vor.u32 %v12462_v25, %v10247_v32  ;;  %v12436_v25 = vld [vmem:[#allocation16 + $0x3c] sm:$0xf] }
 0x29c   :  { %v3684_v35 = vmax.f32 %v3588_v2, 0.0  ;;  %v10308_v2 = vor.u32 %v12472_v61, %v10305_v42  ;;  %4819 = vmatpush.bf16.msrb.mxu0 %v10304_v21  ;;  %v10184_v21 = vor.u32 %v12445_v26, %v10183_v41  ;;  %v12442_v61 = vld [vmem:[#allocation16 + $0x6c] sm:$0xf]  ;;  %v10185_v42 = vld [vmem:[#allocation16 + $0x80] sm:$0xf0] }
 0x29d   :  { %v12417_v41 = vld [vmem:[#allocation14 + $0x124] sm:$0xf]  ;;  %v10465_v26 = vld [vmem:[#allocation14 + $0x138] sm:$0xf0] }
 0x29e   :  { %v3690_v0 = vpack.c.bf16 %v3684_v35, %v3678_v38  ;;  %v12465_v38 = vld [vmem:[#allocation16 + $0x124] sm:$0xf]  ;;  %v10272_v35 = vor.u32 %v12468_v4, %v10271_v50  ;;  %4833 = vmatpush.bf16.msrb.mxu1 %v10308_v2  ;;  %v13564_v2 = vld [vmem:[#allocation13] sm:$0x3] }
 0x29f   :  { %4405 = vmatpush.bf16.msrb.mxu3 %v9956_v17  ;;  %v3629_v16 = vpop.f32.mrf.mxu2  ;;  %v12463_v17 = vld [vmem:[#allocation16 + $0x10c] sm:$0xf0] }
 0x2a0   :  { %4338 = vmatmul.bf16.vlgmr.msra.gmra.mxu2 %v3690_v0  ;;  %4422 = vmatmul.bf16.vlgmr.msra.gmra.mxu0 %v3690_v0  ;;  %v3630_v40 = vadd.f32 %v3629_v16, %v3616_v23  ;;  %v10284_v0 = vor.u32 %v12466_v3, %v10281_v55  ;;  %v10256_v19 = vor.u32 %v12463_v17, %v10255_v14  ;;  %v10199_v16 = vld [vmem:[#allocation16 + $0x90] sm:$0xf]  ;;  %v12450_v23 = vld [vmem:[#allocation16 + $0xa4] sm:$0xf0]  ;;  %v3790_v55 = vperm.slane %v13564_v2, 0 }
 0x2a1   :  { %4820 = vmatpush.bf16.msrb.mxu0 %v10280_v6  ;;  %v10159_v6 = vld [vmem:[#allocation16 + $0x38] sm:$0xf]  ;;  %v12439_v3 = vld [vmem:[#allocation16 + $0x4c] sm:$0xf0]  ;;  %v12429_v17 = vld [vmem:[#allocation16 + $0x4] sm:$0xf] }
 0x2a2   :  { %4834 = vmatpush.bf16.msrb.mxu1 %v10284_v0  ;;  %v10160_v32 = vor.u32 %v12439_v3, %v10159_v6  ;;  %v12432_v14 = vld [vmem:[#allocation16 + $0x14] sm:$0xf0]  ;;  %v12414_v6 = vld [vmem:[#allocation14 + $0x104] sm:$0xf0] }
 0x2a3   :  { %4406 = vmatpush.bf16.msrb.mxu3 %v9948_v9  ;;  %v10260_v9 = vor.u32 %v12460_v28, %v10257_v44  ;;  %v10129_v28 = vld [vmem:[#allocation16 + $0x18] sm:$0xf0]  ;;  %v10135_v44 = vld [vmem:[#allocation16 + $0x8] sm:$0xf] }
 0x2a5   :  { %4821 = vmatpush.bf16.msrb.mxu0 %v10256_v19  ;;  %v10128_v19 = vor.u32 %v12432_v14, %v10127_v11  ;;  %v10239_v14 = vld [vmem:[#allocation16 + $0xd0] sm:$0xf] }
 0x2a6   :  { %4835 = vmatpush.bf16.msrb.mxu1 %v10260_v9  ;;  %v12433_v9 = vld [vmem:[#allocation16 + $0x1c] sm:$0xf0] }
 0x2a7   :  { %4407 = vmatpush.bf16.msrb.mxu3 %v9940_v33  ;;  %v10231_v33 = vld [vmem:[#allocation16 + $0xc8] sm:$0xf] }
 0x2b0   :  { %4394 = vmatmul.bf16.vlgmr.msrb.gmra.mxu2 %v13544_v59  ;;  %v10295_v59 = vld [vmem:[#allocation16 + $0x150] sm:$0xf] }
 0x2b1   :  { %v3641_v57 = vpop.f32.mrf.mxu3  ;;  %v10296_v56 = vor.u32 %v12474_v63, %v10295_v59  ;;  %v10175_v59 = vld [vmem:[#allocation16 + $0x60] sm:$0xf]  ;;  %v12444_v63 = vld [vmem:[#allocation16 + $0x74] sm:$0xf0] }
 0x2b2   :  { %v3642_v15 = vadd.f32 %v3641_v57, %v3628_v48  ;;  %v10228_v57 = vor.u32 %v12453_v51, %v10225_v31  ;;  %v10132_v51 = vor.u32 %v12429_v17, %v10129_v28  ;;  %v12430_v31 = vld [vmem:[#allocation16 + $0xc] sm:$0xf]  ;;  %v12458_v17 = vld [vmem:[#allocation16 + $0xe4] sm:$0xf0] }
 0x2b3   :  { %4791 = vmatpush.bf16.msra.mxu2 %v10296_v56  ;;  %v10176_v56 = vor.u32 %v12444_v63, %v10175_v59  ;;  %v12467_v59 = vld [vmem:[#allocation16 + $0x134] sm:$0xf]  ;;  %v10289_v63 = vld [vmem:[#allocation16 + $0x148] sm:$0xf0] }
 0x2b4   :  { %v3656_v1 = vadd.f32 %v3655_v34, %v3642_v15  ;;  %v12457_v34 = vld [vmem:[#allocation16 + $0xdc] sm:$0xf0] }
 0x2b5   :  { %v10232_v48 = vor.u32 %v12457_v34, %v10231_v33  ;;  %v10137_v33 = vld [vmem:[#allocation16 + $0x20] sm:$0xf0]  ;;  %v10311_v34 = vld [vmem:[#allocation16 + $0x160] sm:$0xf] }
 0x2b6   :  { %v3670_v53 = vadd.f32 %v3669_v37, %v3656_v1  ;;  %v12454_v37 = vld [vmem:[#allocation16 + $0xcc] sm:$0xf]  ;;  %v10200_v1 = vor.u32 %v12450_v23, %v10199_v16 }
 0x2b7   :  { %4792 = vmatpush.bf16.msra.mxu2 %v10272_v35  ;;  %v13558_v49 = vpop.f32.mrf.mxu2  ;;  %v10236_v15 = vor.u32 %v12454_v37, %v10233_v27  ;;  %4822 = vmatpush.bf16.msrb.mxu0 %v10232_v48  ;;  %v10151_v35 = vld [vmem:[#allocation16 + $0x30] sm:$0xf]  ;;  %v10140_v48 = vor.u32 %v12430_v31, %v10137_v33  ;;  %v12476_v37 = vld [vmem:[#allocation16 + $0x174] sm:$0xf0]  ;;  %v12473_v27 = vld [vmem:[#allocation16 + $0x164] sm:$0xf] }
 0x2b8   :  { %v3679_v22 = vmax.f32 %v3670_v53, 0.0  ;;  %v4284_v29 = vadd.f32 %v13558_v49, %v3790_v55  ;;  %v10312_v23 = vor.u32 %v12476_v37, %v10311_v34  ;;  %v12426_v49 = vld [vmem:[#allocation14 + $0x164] sm:$0xf0]  ;;  %v12405_v33 = vld [vmem:[#allocation14 + $0xc4] sm:$0xf] }
 0x2b9   :  { %v3643_v43 = vpop.f32.mrf.mxu3  ;;  %4836 = vmatpush.bf16.msrb.mxu1 %v10236_v15  ;;  %v10313_v15 = vld [vmem:[#allocation16 + $0x178] sm:$0xf0]  ;;  %v10215_v37 = vld [vmem:[#allocation16 + $0xa0] sm:$0xf] }
 0x2ba   :  { %v3644_v45 = vadd.f32 %v3643_v43, %v3630_v40  ;;  %v12447_v40 = vld [vmem:[#allocation16 + $0x94] sm:$0xf]  ;;  %v10201_v43 = vld [vmem:[#allocation16 + $0xa8] sm:$0xf0]  ;;  %v10417_v34 = vld [vmem:[#allocation14 + $0xd8] sm:$0xf0] }
 0x2bb   :  { %4793 = vmatpush.bf16.msra.mxu2 %v10248_v10  ;;  %v10204_v53 = vor.u32 %v12447_v40, %v10201_v43  ;;  %v10164_v10 = vor.u32 %v12436_v25, %v10161_v20  ;;  %v10316_v40 = vor.u32 %v12473_v27, %v10313_v15  ;;  %v12423_v43 = vld [vmem:[#allocation14 + $0x154] sm:$0xf]  ;;  %v10441_v25 = vld [vmem:[#allocation14 + $0x108] sm:$0xf0]  ;;  %v12452_v27 = vld [vmem:[#allocation16 + $0xb4] sm:$0xf0] }
 0x2bc   :  { %v3658_v46 = vadd.f32 %v3657_v12, %v3644_v45  ;;  %v10207_v45 = vld [vmem:[#allocation16 + $0x98] sm:$0xf]  ;;  %v12451_v12 = vld [vmem:[#allocation16 + $0xac] sm:$0xf0]  ;;  %v12449_v15 = vld [vmem:[#allocation16 + $0xa4] sm:$0xf] }
 0x2be   :  { %v3672_v47 = vadd.f32 %v3671_v60, %v3658_v46  ;;  %v10208_v46 = vor.u32 %v12451_v12, %v10207_v45  ;;  %v12448_v60 = vld [vmem:[#allocation16 + $0x9c] sm:$0xf] }
 0x2bf   :  { %4794 = vmatpush.bf16.msra.mxu2 %v10224_v54  ;;  %v13566_v50 = vpop.f32.mrf.mxu2  ;;  %v10136_v54 = vor.u32 %v12433_v9, %v10135_v44  ;;  %v10240_v44 = vor.u32 %v12458_v17, %v10239_v14  ;;  %v10241_v9 = vld [vmem:[#allocation16 + $0xe8] sm:$0xf0] }
 0x2c0   :  { %v3685_v52 = vmax.f32 %v3672_v47, 0.0  ;;  %v10209_v47 = vld [vmem:[#allocation16 + $0xb0] sm:$0xf0]  ;;  %4823 = vmatpush.bf16.msrb.mxu0 %v10208_v46  ;;  %v10287_v46 = vld [vmem:[#allocation16 + $0x130] sm:$0xf] }
 0x2c2   :  { %v3691_v18 = vpack.c.bf16 %v3685_v52, %v3679_v22  ;;  %v13560_v22 = vpop.f32.mrf.mxu0  ;;  %v10212_v52 = vor.u32 %v12448_v60, %v10209_v47  ;;  %v12470_v60 = vld [vmem:[#allocation16 + $0x144] sm:$0xf0] }
 0x2c3   :  { %4795 = vmatpush.bf16.msra.mxu2 %v10200_v1  ;;  %v10487_v1 = vld [vmem:[#allocation14 + $0x150] sm:$0xf] }
 0x2c4   :  { %4352 = vmatmul.bf16.vlgmr.msra.gmra.mxu3 %v3691_v18  ;;  %4436 = vmatmul.bf16.vlgmr.msra.gmra.mxu1 %v3691_v18  ;;  %v10488_v12 = vor.u32 %v12426_v49, %v10487_v1  ;;  %v10391_v1 = vld [vmem:[#allocation14 + $0x90] sm:$0xf]  ;;  %v12402_v49 = vld [vmem:[#allocation14 + $0xa4] sm:$0xf0] }
 0x2c5   :  { %4805 = vmatpush.bf16.msra.mxu3 %v10300_v62  ;;  %4837 = vmatpush.bf16.msrb.mxu1 %v10212_v52  ;;  %v10180_v62 = vor.u32 %v12441_v36, %v10177_v58  ;;  %v10288_v52 = vor.u32 %v12470_v60, %v10287_v46  ;;  %v10463_v36 = vld [vmem:[#allocation14 + $0x120] sm:$0xf]  ;;  %v12420_v58 = vld [vmem:[#allocation14 + $0x134] sm:$0xf0] }
 0x2c6   :  { %4824 = vmatpush.bf16.msrb.mxu0 %v10184_v21  ;;  %v10464_v21 = vor.u32 %v12420_v58, %v10463_v36  ;;  %v10193_v58 = vld [vmem:[#allocation16 + $0x88] sm:$0xf0] }
 0x2c7   :  { %4796 = vmatpush.bf16.msra.mxu2 %v10176_v56  ;;  %v10292_v56 = vor.u32 %v12467_v59, %v10289_v63  ;;  %v10191_v59 = vld [vmem:[#allocation16 + $0x70] sm:$0xf]  ;;  %v12443_v63 = vld [vmem:[#allocation16 + $0x74] sm:$0xf] }
 0x2ca   :  { %4825 = vmatpush.bf16.msrb.mxu0 %v10160_v32  ;;  %v12411_v32 = vld [vmem:[#allocation14 + $0xf4] sm:$0xf] }
 0x2ce   :  { %4826 = vmatpush.bf16.msrb.mxu0 %v10136_v54 }
 0x2d1   :  { %v4297_v4 = vpop.f32.mrf.mxu3 }
 0x2d2   :  { %v4298_v16 = vadd.f32 %v4297_v4, %v4284_v29  ;;  %5115 = vmatpush.bf16.msra.mxu0 %v10488_v12  ;;  %v12464_v4 = vld [vmem:[#allocation16 + $0x114] sm:$0xf0]  ;;  %v10415_v29 = vld [vmem:[#allocation14 + $0xc0] sm:$0xf]  ;;  %v12399_v12 = vld [vmem:[#allocation14 + $0x94] sm:$0xf] }
 0x2d4   :  { %4408 = vmatmul.bf16.vlgmr.msrb.gmra.mxu3 %v13550_v39  ;;  %v10273_v39 = vld [vmem:[#allocation16 + $0x138] sm:$0xf0] }
 0x2d5   :  { %v10276_v7 = vor.u32 %v12465_v38, %v10273_v39  ;;  %v10188_v38 = vor.u32 %v12442_v61, %v10185_v42  ;;  %v12438_v39 = vld [vmem:[#allocation16 + $0x44] sm:$0xf0]  ;;  %v10468_v61 = vor.u32 %v12417_v41, %v10465_v26  ;;  %v10263_v42 = vld [vmem:[#allocation16 + $0x100] sm:$0xf]  ;;  %v12396_v26 = vld [vmem:[#allocation14 + $0x74] sm:$0xf0] }
 0x2d6   :  { %v10152_v5 = vor.u32 %v12438_v39, %v10151_v35  ;;  %v4286_v35 = vadd.f32 %v13566_v50, %v3790_v55  ;;  %5116 = vmatpush.bf16.msra.mxu0 %v10464_v21  ;;  %v10444_v50 = vor.u32 %v12411_v32, %v10441_v25  ;;  %v10367_v41 = vld [vmem:[#allocation14 + $0x60] sm:$0xf]  ;;  %v10343_v32 = vld [vmem:[#allocation14 + $0x30] sm:$0xf]  ;;  %v12390_v25 = vld [vmem:[#allocation14 + $0x44] sm:$0xf0] }
 0x2d7   :  { %4806 = vmatpush.bf16.msra.mxu3 %v10276_v7  ;;  %4838 = vmatpush.bf16.msrb.mxu1 %v10188_v38  ;;  %v10153_v7 = vld [vmem:[#allocation16 + $0x48] sm:$0xf0]  ;;  %v12461_v38 = vld [vmem:[#allocation16 + $0x104] sm:$0xf] }
 0x2d8   :  { %v10156_v0 = vor.u32 %v12435_v8, %v10153_v7  ;;  %4797 = vmatpush.bf16.msra.mxu2 %v10152_v5  ;;  %v10264_v8 = vor.u32 %v12464_v4, %v10263_v42  ;;  %v10265_v5 = vld [vmem:[#allocation16 + $0x118] sm:$0xf0]  ;;  %v10439_v7 = vld [vmem:[#allocation14 + $0xf0] sm:$0xf]  ;;  %v10368_v42 = vor.u32 %v12396_v26, %v10367_v41  ;;  %v12393_v4 = vld [vmem:[#allocation14 + $0x64] sm:$0xf] }
 0x2d9   :  { %v4299_v45 = vpop.f32.mrf.mxu3  ;;  %v12844_v26 = vld [vmem:[#allocation2 + $0x28] sm:$0xff] }
 0x2da   :  { %v4300_v20 = vadd.f32 %v4299_v45, %v4286_v35  ;;  %v10392_v45 = vor.u32 %v12402_v49, %v10391_v1 }
 0x2db   :  { %4807 = vmatpush.bf16.msra.mxu3 %v10252_v13  ;;  %v13569_v13 = vpop.f32.mrf.mxu0  ;;  %4839 = vmatpush.bf16.msrb.mxu1 %v10164_v10 }
 0x2dc   :  { %4798 = vmatpush.bf16.msra.mxu2 %v10128_v19  ;;  %v12455_v19 = vld [vmem:[#allocation16 + $0xd4] sm:$0xf] }
 0x2dd   :  { %v10244_v54 = vor.u32 %v12455_v19, %v10241_v9  ;;  %v10143_v19 = vld [vmem:[#allocation16 + $0x10] sm:$0xf]  ;;  %v12431_v9 = vld [vmem:[#allocation16 + $0x14] sm:$0xf] }
 0x2df   :  { %4808 = vmatpush.bf16.msra.mxu3 %v10228_v57  ;;  %4840 = vmatpush.bf16.msrb.mxu1 %v10140_v48  ;;  %v10420_v48 = vor.u32 %v12405_v33, %v10417_v34 }
 0x2e0   :  { %4847 = vmatpush.bf16.msrb.mxu2 %v10312_v23  ;;  %v10216_v23 = vor.u32 %v12452_v27, %v10215_v37  ;;  %v10321_v37 = vld [vmem:[#allocation14 + $0x18] sm:$0xf0] }
 0x2e1   :  { %v13562_v18 = vpop.f32.mrf.mxu1 }
 0x2e3   :  { %4809 = vmatpush.bf16.msra.mxu3 %v10204_v53  ;;  %v10489_v53 = vld [vmem:[#allocation14 + $0x168] sm:$0xf0]  ;;  %v13581_v3 = vpop.f32.mrf.mxu0 }
 0x2e4   :  { %v10492_v47 = vor.u32 %v12423_v43, %v10489_v53  ;;  %4848 = vmatpush.bf16.msrb.mxu2 %v10288_v52  ;;  %v3791_v53 = vperm.slane %v13564_v2, 1 }
 0x2e6   :  { %5129 = vmatpush.bf16.msra.mxu1 %v10492_v47  ;;  %v4368_v35 = vadd.f32 %v13581_v3, %v3791_v53  ;;  %v10345_v3 = vld [vmem:[#allocation14 + $0x48] sm:$0xf0] }
 0x2e7   :  { %4810 = vmatpush.bf16.msra.mxu3 %v10180_v62  ;;  %v4312_v62 = vadd.f32 %v13560_v22, %v4298_v16  ;;  %v10268_v22 = vor.u32 %v12461_v38, %v10265_v5  ;;  %v10369_v38 = vld [vmem:[#allocation14 + $0x78] sm:$0xf0]  ;;  %v12440_v5 = vld [vmem:[#allocation16 + $0x54] sm:$0xf0] }
 0x2e8   :  { %4849 = vmatpush.bf16.msrb.mxu2 %v10264_v8  ;;  %v10167_v8 = vld [vmem:[#allocation16 + $0x40] sm:$0xf] }
 0x2e9   :  { %v13574_v30 = vpop.f32.mrf.mxu1  ;;  %v4326_v39 = vadd.f32 %v13562_v18, %v4312_v62 }
 0x2ea   :  { %5130 = vmatpush.bf16.msra.mxu1 %v10468_v61  ;;  %v10196_v61 = vor.u32 %v12443_v63, %v10193_v58 }
 0x2eb   :  { %4811 = vmatpush.bf16.msra.mxu3 %v10156_v0  ;;  %v10440_v0 = vor.u32 %v12414_v6, %v10439_v7  ;;  %v4369_v47 = vpop.f32.mrf.mxu0  ;;  %v12437_v7 = vld [vmem:[#allocation16 + $0x44] sm:$0xf] }
 0x2ec   :  { %4850 = vmatpush.bf16.msrb.mxu2 %v10240_v44  ;;  %v12434_v44 = vld [vmem:[#allocation16 + $0x24] sm:$0xf0]  ;;  %v4370_v27 = vadd.f32 %v4369_v47, %v3791_v53 }
 0x2ed   :  { %5117 = vmatpush.bf16.msra.mxu0 %v10440_v0  ;;  %v10169_v0 = vld [vmem:[#allocation16 + $0x58] sm:$0xf0] }
 0x2ee   :  { %5131 = vmatpush.bf16.msra.mxu1 %v10444_v50  ;;  %v12387_v50 = vld [vmem:[#allocation14 + $0x34] sm:$0xf] }
 0x2ef   :  { %4812 = vmatpush.bf16.msra.mxu3 %v10132_v51  ;;  %v12408_v51 = vld [vmem:[#allocation14 + $0xd4] sm:$0xf0] }
 0x2f0   :  { %v10416_v31 = vor.u32 %v12408_v51, %v10415_v29  ;;  %4851 = vmatpush.bf16.msrb.mxu2 %v10216_v23  ;;  %v10144_v29 = vor.u32 %v12434_v44, %v10143_v19  ;;  %v10145_v51 = vld [vmem:[#allocation16 + $0x28] sm:$0xf0]  ;;  %v10447_v19 = vld [vmem:[#allocation14 + $0xf8] sm:$0xf]  ;;  %v12415_v44 = vld [vmem:[#allocation14 + $0x10c] sm:$0xf0] }
 0x2f1   :  { %v13583_v10 = vpop.f32.mrf.mxu1  ;;  %v10148_v34 = vor.u32 %v12431_v9, %v10145_v51  ;;  %v10449_v51 = vld [vmem:[#allocation14 + $0x110] sm:$0xf0] }
 0x2f2   :  { %5118 = vmatpush.bf16.msra.mxu0 %v10416_v31  ;;  %5132 = vmatpush.bf16.msra.mxu1 %v10420_v48  ;;  %v4382_v6 = vadd.f32 %v13583_v10, %v4368_v35  ;;  %v12384_v31 = vld [vmem:[#allocation14 + $0x14] sm:$0xf0]  ;;  %v12381_v48 = vld [vmem:[#allocation14 + $0x4] sm:$0xf] }
 0x2f3   :  { %4861 = vmatpush.bf16.msrb.mxu3 %v10316_v40  ;;  %v10217_v40 = vld [vmem:[#allocation16 + $0xb8] sm:$0xf0] }
 0x2f4   :  { %v10220_v43 = vor.u32 %v12449_v15, %v10217_v40 }
 0x2f6   :  { %5119 = vmatpush.bf16.msra.mxu0 %v10392_v45 }
 0x2f7   :  { %4862 = vmatpush.bf16.msrb.mxu3 %v10292_v56 }
 0x2f9   :  { %v4383_v62 = vpop.f32.mrf.mxu1 }
 0x2fa   :  { %5120 = vmatpush.bf16.msra.mxu0 %v10368_v42  ;;  %v4384_v40 = vadd.f32 %v4383_v62, %v4370_v27  ;;  %v12424_v42 = vld [vmem:[#allocation14 + $0x15c] sm:$0xf]  ;;  %v12409_v27 = vld [vmem:[#allocation14 + $0xdc] sm:$0xf0] }
 0x2fb   :  { %4863 = vmatpush.bf16.msrb.mxu3 %v10268_v22  ;;  %v10168_v22 = vor.u32 %v12440_v5, %v10167_v8  ;;  %v12428_v8 = vld [vmem:[#allocation14 + $0x174] sm:$0xf0]  ;;  %v12425_v5 = vld [vmem:[#allocation14 + $0x164] sm:$0xf] }
 0x2ff   :  { %4864 = vmatpush.bf16.msrb.mxu3 %v10244_v54  ;;  %v10319_v54 = vld [vmem:[#allocation14] sm:$0xf] }
 0x303   :  { %4865 = vmatpush.bf16.msrb.mxu3 %v10220_v43 }
 0x307   :  { %4866 = vmatpush.bf16.msrb.mxu3 %v10196_v61  ;;  %v12427_v61 = vld [vmem:[#allocation14 + $0x16c] sm:$0xf0] }
 0x31d   :  { %v4423_v14 = vpop.f32.mrf.mxu0 }
 0x323   :  { %v4339_v57 = vpop.f32.mrf.mxu2 }
 0x324   :  { %v4340_v11 = vadd.f32 %v4339_v57, %v4326_v39  ;;  %v4314_v57 = vadd.f32 %v13569_v13, %v4300_v20  ;;  %v10393_v13 = vld [vmem:[#allocation14 + $0xa8] sm:$0xf0]  ;;  %v10372_v39 = vor.u32 %v12393_v4, %v10369_v38  ;;  %v10172_v20 = vor.u32 %v12437_v7, %v10169_v0  ;;  %v10497_v4 = vld [vmem:[#allocation14 + $0x170] sm:$0xf0]  ;;  %v10503_v38 = vld [vmem:[#allocation14 + $0x160] sm:$0xf] }
 0x325   :  { %v10396_v60 = vor.u32 %v12399_v12, %v10393_v13  ;;  %v10505_v7 = vld [vmem:[#allocation14 + $0x178] sm:$0xf0]  ;;  %v10500_v0 = vor.u32 %v12424_v42, %v10497_v4  ;;  %v12394_v42 = vld [vmem:[#allocation14 + $0x6c] sm:$0xf]  ;;  %v10377_v4 = vld [vmem:[#allocation14 + $0x80] sm:$0xf0] }
 0x326   :  { %v4328_v16 = vadd.f32 %v13574_v30, %v4314_v57  ;;  %v12446_v30 = vld [vmem:[#allocation16 + $0x84] sm:$0xf0]  ;;  %4867 = vmatpush.bf16.msrb.mxu3 %v10172_v20  ;;  %v10320_v57 = vor.u32 %v12384_v31, %v10319_v54  ;;  %v10504_v20 = vor.u32 %v12428_v8, %v10503_v38  ;;  %v10455_v54 = vld [vmem:[#allocation14 + $0x100] sm:$0xf]  ;;  %v12416_v31 = vld [vmem:[#allocation14 + $0x114] sm:$0xf0] }
 0x327   :  { %v10192_v56 = vor.u32 %v12446_v30, %v10191_v59  ;;  %5133 = vmatpush.bf16.msra.mxu1 %v10396_v60  ;;  %v10383_v38 = vld [vmem:[#allocation14 + $0x70] sm:$0xf]  ;;  %v10385_v8 = vld [vmem:[#allocation14 + $0x88] sm:$0xf0] }
 0x329   :  { %4852 = vmatpush.bf16.msrb.mxu2 %v10192_v56  ;;  %v12843_v56 = vld [vmem:[#allocation2 + $0x10] sm:$0xff] }
 0x32a   :  { %4868 = vmatpush.bf16.msrb.mxu3 %v10148_v34  ;;  %v10457_v34 = vld [vmem:[#allocation14 + $0x118] sm:$0xf0] }
 0x32b   :  { %v4341_v18 = vpop.f32.mrf.mxu2  ;;  %5134 = vmatpush.bf16.msra.mxu1 %v10372_v39 }
 0x32c   :  { %v4342_v46 = vadd.f32 %v4341_v18, %v4328_v16  ;;  %v10324_v16 = vor.u32 %v12381_v48, %v10321_v37  ;;  %v10423_v37 = vld [vmem:[#allocation14 + $0xc8] sm:$0xf] }
 0x32d   :  { %4853 = vmatpush.bf16.msrb.mxu2 %v10168_v22 }
 0x331   :  { %4854 = vmatpush.bf16.msrb.mxu2 %v10144_v29  ;;  %v12412_v29 = vld [vmem:[#allocation14 + $0xfc] sm:$0xf] }
 0x332   :  { %v10452_v48 = vor.u32 %v12412_v29, %v10449_v51  ;;  %v12386_v29 = vld [vmem:[#allocation14 + $0x24] sm:$0xf0]  ;;  %v12383_v51 = vld [vmem:[#allocation14 + $0x14] sm:$0xf] }
 0x333   :  { %v4395_v21 = vpop.f32.mrf.mxu2 }
 0x334   :  { %v4396_v18 = vadd.f32 %v4395_v21, %v4382_v6  ;;  %v10495_v21 = vld [vmem:[#allocation14 + $0x158] sm:$0xf] }
 0x335   :  { %v10496_v22 = vor.u32 %v12427_v61, %v10495_v21 }
 0x33b   :  { %v4397_v23 = vpop.f32.mrf.mxu2 }
 0x33c   :  { %v4398_v49 = vadd.f32 %v4397_v23, %v4384_v40  ;;  %v12406_v23 = vld [vmem:[#allocation14 + $0xcc] sm:$0xf]  ;;  %v10425_v40 = vld [vmem:[#allocation14 + $0xe0] sm:$0xf0] }
 0x341   :  { %v4437_v33 = vpop.f32.mrf.mxu1 }
 0x347   :  { %v4353_v55 = vpop.f32.mrf.mxu3 }
 0x348   :  { %v13585_v28 = vadd.f32 %v4353_v55, %v4340_v11  ;;  %v10344_v11 = vor.u32 %v12390_v25, %v10343_v32  ;;  %v10348_v55 = vor.u32 %v12387_v50, %v10345_v3  ;;  %v10471_v32 = vld [vmem:[#allocation14 + $0x128] sm:$0xf]  ;;  %v12421_v25 = vld [vmem:[#allocation14 + $0x13c] sm:$0xf0]  ;;  %v12418_v50 = vld [vmem:[#allocation14 + $0x12c] sm:$0xf] }
 0x349   :  { %v4439_v2 = vpop.f32.mrf.mxu1  ;;  %v10473_v3 = vld [vmem:[#allocation14 + $0x140] sm:$0xf0] }
 0x34a   :  { %7983 = vst [vmem:[#allocation25 + $0x8] sm:$0xff] %v13585_v28  ;;  %5121 = vmatpush.bf16.msra.mxu0 %v10344_v11  ;;  %5135 = vmatpush.bf16.msra.mxu1 %v10348_v55  ;;  %v10508_v11 = vor.u32 %v12425_v5, %v10505_v7  ;;  %v10481_v55 = vld [vmem:[#allocation14 + $0x148] sm:$0xf0]  ;;  %v10380_v7 = vor.u32 %v12394_v42, %v10377_v4  ;;  %v10583_v4 = vld [vmem:[#allocation19 + $0x90] sm:$0xf] }
 0x34e   :  { %5122 = vmatpush.bf16.msra.mxu0 %v10320_v57  ;;  %5136 = vmatpush.bf16.msra.mxu1 %v10324_v16  ;;  %v10448_v57 = vor.u32 %v12415_v44, %v10447_v19 }
 0x34f   :  { %v4355_v52 = vpop.f32.mrf.mxu3 }
 0x350   :  { %v13591_v36 = vadd.f32 %v4355_v52, %v4342_v46  ;;  %v4425_v46 = vpop.f32.mrf.mxu0 }
 0x352   :  { %7984 = vst [vmem:[#allocation25 + $0x20] sm:$0xff] %v13591_v36 }
 0x357   :  { %v4409_v17 = vpop.f32.mrf.mxu3 }
 0x358   :  { %v4410_v10 = vadd.f32 %v4409_v17, %v4396_v18  ;;  %v10479_v18 = vld [vmem:[#allocation14 + $0x130] sm:$0xf]  ;;  %v10476_v17 = vor.u32 %v12418_v50, %v10473_v3  ;;  %v12392_v50 = vld [vmem:[#allocation14 + $0x54] sm:$0xf0]  ;;  %v12389_v3 = vld [vmem:[#allocation14 + $0x44] sm:$0xf] }
 0x35a   :  { %v4424_v15 = vadd.f32 %v4423_v14, %v4410_v10  ;;  %v10472_v14 = vor.u32 %v12421_v25, %v10471_v32 }
 0x35c   :  { %v4438_v1 = vadd.f32 %v4437_v33, %v4424_v15  ;;  %v12413_v33 = vld [vmem:[#allocation14 + $0x104] sm:$0xf]  ;;  %v10456_v15 = vor.u32 %v12416_v31, %v10455_v54  ;;  %v10337_v54 = vld [vmem:[#allocation14 + $0x28] sm:$0xf0]  ;;  %v10679_v31 = vld [vmem:[#allocation19 + $0x150] sm:$0xf] }
 0x35d   :  { %v10460_v16 = vor.u32 %v12413_v33, %v10457_v34  ;;  %v12522_v33 = vld [vmem:[#allocation19 + $0x164] sm:$0xf0]  ;;  %v10871_v34 = vld [vmem:[#allocation19 + $0x2d0] sm:$0xf] }
 0x35e   :  { %v4442_v43 = vmax.f32 %v4438_v1, -4.0  ;;  %v10431_v1 = vld [vmem:[#allocation14 + $0xd0] sm:$0xf] }
 0x35f   :  { %v4411_v45 = vpop.f32.mrf.mxu3 }
 0x360   :  { %v4444_v12 = vmin.f32 %v4442_v43, 15.0  ;;  %v4412_v13 = vadd.f32 %v4411_v45, %v4398_v49  ;;  %v12410_v49 = vld [vmem:[#allocation14 + $0xe4] sm:$0xf0]  ;;  %v12407_v43 = vld [vmem:[#allocation14 + $0xd4] sm:$0xf] }
 0x361   :  { %v10433_v45 = vld [vmem:[#allocation14 + $0xe8] sm:$0xf0] }
 0x362   :  { %v4446_v60 = vmul.f32 1.442695, %v4444_v12  ;;  %v4426_v52 = vadd.f32 %v4425_v46, %v4412_v13  ;;  %v10424_v12 = vor.u32 %v12409_v27, %v10423_v37  ;;  %v10428_v13 = vor.u32 %v12406_v23, %v10425_v40  ;;  %v10399_v46 = vld [vmem:[#allocation14 + $0x98] sm:$0xf] }
 0x363   :  { %v11063_v23 = vld [vmem:[#allocation19 + $0x450] sm:$0xf]  ;;  %v10680_v40 = vor.u32 %v12522_v33, %v10679_v31  ;;  %v12714_v33 = vld [vmem:[#allocation19 + $0x764] sm:$0xf0] }
 0x364   :  { %12835 = vpow2.f32 %v4446_v60  ;;  %v4440_v53 = vadd.f32 %v4439_v2, %v4426_v52  ;;  %v12403_v60 = vld [vmem:[#allocation14 + $0xac] sm:$0xf0]  ;;  %v10432_v52 = vor.u32 %v12410_v49, %v10431_v1  ;;  %v10436_v2 = vor.u32 %v12407_v43, %v10433_v45  ;;  %v11255_v43 = vld [vmem:[#allocation19 + $0x5d0] sm:$0xf] }
 0x365   :  { %v12618_v49 = vld [vmem:[#allocation19 + $0x464] sm:$0xf0] }
 0x366   :  { %v4443_v47 = vmax.f32 %v4440_v53, -4.0  ;;  %v12400_v53 = vld [vmem:[#allocation14 + $0x9c] sm:$0xf]  ;;  %v12666_v45 = vld [vmem:[#allocation19 + $0x5e4] sm:$0xf0] }
 0x368   :  { %v4445_v59 = vmin.f32 %v4443_v47, 15.0  ;;  %v10401_v47 = vld [vmem:[#allocation14 + $0xb0] sm:$0xf0] }
 0x36a   :  { %v12836_v30 = vpop.eup %12835  ;;  %v4448_v63 = vmul.f32 1.442695, %v4445_v59  ;;  %v10407_v59 = vld [vmem:[#allocation14 + $0xa0] sm:$0xf] }
 0x36b   :  { %7985 = vst [vmem:[#allocation25 + $0x10] sm:$0xff] %v12836_v30  ;;  %v4450_v58 = vmul.f32 %v12843_v56, %v12836_v30  ;;  %v12404_v30 = vld [vmem:[#allocation14 + $0xb4] sm:$0xf0]  ;;  %v10409_v56 = vld [vmem:[#allocation14 + $0xb8] sm:$0xf0] }
 0x36c   :  { %12837 = vpow2.f32 %v4448_v63  ;;  %v12401_v63 = vld [vmem:[#allocation14 + $0xa4] sm:$0xf]  ;;  %v10408_v21 = vor.u32 %v12404_v30, %v10407_v59  ;;  %v12510_v59 = vld [vmem:[#allocation19 + $0x104] sm:$0xf0]  ;;  %v10823_v30 = vld [vmem:[#allocation19 + $0x270] sm:$0xf] }
 0x36d   :  { %v4452_v35 = vadd.f32 %v4450_v58, %v13585_v28  ;;  %v12422_v28 = vld [vmem:[#allocation14 + $0x144] sm:$0xf0]  ;;  %v10400_v58 = vor.u32 %v12403_v60, %v10399_v46  ;;  %v10412_v61 = vor.u32 %v12401_v63, %v10409_v56  ;;  %v12564_v46 = vld [vmem:[#allocation19 + $0x2b4] sm:$0xf0]  ;;  %v11064_v60 = vor.u32 %v12618_v49, %v11063_v23  ;;  %v12558_v63 = vld [vmem:[#allocation19 + $0x284] sm:$0xf0] }
 0x36e   :  { %v10480_v9 = vor.u32 %v12422_v28, %v10479_v18  ;;  %v10361_v18 = vld [vmem:[#allocation14 + $0x58] sm:$0xf0]  ;;  %v11423_v49 = vld [vmem:[#allocation19 + $0x720] sm:$0xf] }
 0x36f   :  { %v10364_v44 = vor.u32 %v12389_v3, %v10361_v18 }
 0x372   :  { %v12838_v41 = vpop.eup %12837 }
 0x373   :  { %v4451_v62 = vmul.f32 %v12844_v26, %v12838_v41  ;;  %7986 = vst [vmem:[#allocation25 + $0x28] sm:$0xff] %v12838_v41  ;;  %v10404_v41 = vor.u32 %v12400_v53, %v10401_v47  ;;  %v10375_v26 = vld [vmem:[#allocation14 + $0x68] sm:$0xf]  ;;  %v10631_v47 = vld [vmem:[#allocation19 + $0xf0] sm:$0xf] }
 0x374   :  { %v10632_v56 = vor.u32 %v12510_v59, %v10631_v47  ;;  %v12648_v47 = vld [vmem:[#allocation19 + $0x554] sm:$0xf0]  ;;  %v11399_v59 = vld [vmem:[#allocation19 + $0x6f0] sm:$0xf] }
 0x375   :  { %v4453_v39 = vadd.f32 %v4451_v62, %v13591_v36  ;;  %v12419_v36 = vld [vmem:[#allocation14 + $0x134] sm:$0xf]  ;;  %v12397_v62 = vld [vmem:[#allocation14 + $0x7c] sm:$0xf0] }
 0x376   :  { %v10484_v10 = vor.u32 %v12419_v36, %v10481_v55  ;;  %v10376_v5 = vor.u32 %v12397_v62, %v10375_v26  ;;  %v10327_v55 = vld [vmem:[#allocation14 + $0x8] sm:$0xf]  ;;  %v12504_v26 = vld [vmem:[#allocation19 + $0xd4] sm:$0xf0] }
 0x377   :  { %v13602_v6 = vpack.c.bf16 %v4453_v39, %v4452_v35  ;;  %v12398_v35 = vld [vmem:[#allocation14 + $0x84] sm:$0xf0]  ;;  %v12395_v39 = vld [vmem:[#allocation14 + $0x74] sm:$0xf] }
 0x378   :  { %v10384_v32 = vor.u32 %v12398_v35, %v10383_v38  ;;  %v10388_v25 = vor.u32 %v12395_v39, %v10385_v8  ;;  %v10799_v62 = vld [vmem:[#allocation19 + $0x240] sm:$0xf]  ;;  %v12498_v38 = vld [vmem:[#allocation19 + $0xa4] sm:$0xf0]  ;;  %v10775_v35 = vld [vmem:[#allocation19 + $0x210] sm:$0xf] }
 0x379   :  { %4799 = vmatmul.bf16.vlgmr.msra.gmra.mxu2 %v13602_v6  ;;  %4813 = vmatmul.bf16.vlgmr.msra.gmra.mxu3 %v13602_v6  ;;  %v12546_v39 = vld [vmem:[#allocation19 + $0x224] sm:$0xf0] }
 0x37a   :  { %4827 = vmatmul.bf16.vlgmr.msrb.gmra.mxu0 %v13602_v6  ;;  %4841 = vmatmul.bf16.vlgmr.msrb.gmra.mxu1 %v13602_v6  ;;  %v10776_v8 = vor.u32 %v12546_v39, %v10775_v35  ;;  %v11375_v35 = vld [vmem:[#allocation19 + $0x6c0] sm:$0xf]  ;;  %v12696_v39 = vld [vmem:[#allocation19 + $0x6d4] sm:$0xf0] }
 0x37b   :  { %5143 = vmatpush.bf16.msra.mxu2 %v10496_v22  ;;  %5157 = vmatpush.bf16.msra.mxu3 %v10500_v0  ;;  %v10351_v22 = vld [vmem:[#allocation14 + $0x38] sm:$0xf]  ;;  %v12391_v0 = vld [vmem:[#allocation14 + $0x4c] sm:$0xf0] }
 0x37c   :  { %5171 = vmatpush.bf16.msrb.mxu0 %v10504_v20  ;;  %5185 = vmatpush.bf16.msrb.mxu1 %v10508_v11  ;;  %v12388_v20 = vld [vmem:[#allocation14 + $0x3c] sm:$0xf]  ;;  %v10353_v11 = vld [vmem:[#allocation14 + $0x50] sm:$0xf0]  ;;  %v10352_v28 = vor.u32 %v12391_v0, %v10351_v22  ;;  %v10751_v22 = vld [vmem:[#allocation19 + $0x1e0] sm:$0xf] }
 0x37d   :  { %v10356_v36 = vor.u32 %v12388_v20, %v10353_v11  ;;  %v12540_v0 = vld [vmem:[#allocation19 + $0x1f4] sm:$0xf0]  ;;  %v10535_v20 = vld [vmem:[#allocation19 + $0x30] sm:$0xf]  ;;  %v12486_v11 = vld [vmem:[#allocation19 + $0x44] sm:$0xf0] }
 0x37e   :  { %v10536_v3 = vor.u32 %v12486_v11, %v10535_v20  ;;  %v12636_v20 = vld [vmem:[#allocation19 + $0x4f4] sm:$0xf0] }
 0x37f   :  { %5144 = vmatpush.bf16.msra.mxu2 %v10472_v14  ;;  %5158 = vmatpush.bf16.msra.mxu3 %v10476_v17  ;;  %v12385_v14 = vld [vmem:[#allocation14 + $0x1c] sm:$0xf0]  ;;  %v12382_v17 = vld [vmem:[#allocation14 + $0xc] sm:$0xf] }
 0x380   :  { %5172 = vmatpush.bf16.msrb.mxu0 %v10480_v9  ;;  %5186 = vmatpush.bf16.msrb.mxu1 %v10484_v10  ;;  %v10329_v9 = vld [vmem:[#allocation14 + $0x20] sm:$0xf0]  ;;  %v10335_v10 = vld [vmem:[#allocation14 + $0x10] sm:$0xf] }
 0x381   :  { %v10332_v37 = vor.u32 %v12382_v17, %v10329_v9  ;;  %v10336_v27 = vor.u32 %v12386_v29, %v10335_v10  ;;  %v12660_v17 = vld [vmem:[#allocation19 + $0x5b4] sm:$0xf0]  ;;  %v10703_v29 = vld [vmem:[#allocation19 + $0x180] sm:$0xf] }
 0x383   :  { %5145 = vmatpush.bf16.msra.mxu2 %v10448_v57  ;;  %5159 = vmatpush.bf16.msra.mxu3 %v10452_v48  ;;  %v12570_v57 = vld [vmem:[#allocation19 + $0x2e4] sm:$0xf0]  ;;  %v10328_v48 = vor.u32 %v12385_v14, %v10327_v55  ;;  %v11231_v55 = vld [vmem:[#allocation19 + $0x5a0] sm:$0xf] }
 0x384   :  { %5173 = vmatpush.bf16.msrb.mxu0 %v10456_v15  ;;  %5187 = vmatpush.bf16.msrb.mxu1 %v10460_v16  ;;  %v10340_v15 = vor.u32 %v12383_v51, %v10337_v54  ;;  %v10655_v16 = vld [vmem:[#allocation19 + $0x120] sm:$0xf]  ;;  %v10872_v1 = vor.u32 %v12570_v57, %v10871_v34  ;;  %v11232_v9 = vor.u32 %v12660_v17, %v11231_v55  ;;  %v12528_v51 = vld [vmem:[#allocation19 + $0x194] sm:$0xf0]  ;;  %v11447_v54 = vld [vmem:[#allocation19 + $0x750] sm:$0xf] }
 0x385   :  { %v10704_v31 = vor.u32 %v12528_v51, %v10703_v29  ;;  %v11639_v34 = vld [vmem:[#allocation19 + $0x8d0] sm:$0xf]  ;;  %v12762_v57 = vld [vmem:[#allocation19 + $0x8e4] sm:$0xf0]  ;;  %v12684_v29 = vld [vmem:[#allocation19 + $0x674] sm:$0xf0] }
 0x386   :  { %v11111_v17 = vld [vmem:[#allocation19 + $0x4b0] sm:$0xf]  ;;  %v11519_v51 = vld [vmem:[#allocation19 + $0x7e0] sm:$0xf] }
 0x387   :  { %5146 = vmatpush.bf16.msra.mxu2 %v10424_v12  ;;  %5160 = vmatpush.bf16.msra.mxu3 %v10428_v13  ;;  %v12516_v12 = vld [vmem:[#allocation19 + $0x134] sm:$0xf0]  ;;  %v10847_v13 = vld [vmem:[#allocation19 + $0x2a0] sm:$0xf] }
 0x388   :  { %5174 = vmatpush.bf16.msrb.mxu0 %v10432_v52  ;;  %5188 = vmatpush.bf16.msrb.mxu1 %v10436_v2  ;;  %v11256_v52 = vor.u32 %v12666_v45, %v11255_v43  ;;  %v10656_v2 = vor.u32 %v12516_v12, %v10655_v16  ;;  %v10848_v53 = vor.u32 %v12564_v46, %v10847_v13  ;;  %v11207_v16 = vld [vmem:[#allocation19 + $0x570] sm:$0xf]  ;;  %v12708_v43 = vld [vmem:[#allocation19 + $0x734] sm:$0xf0]  ;;  %v11615_v45 = vld [vmem:[#allocation19 + $0x8a0] sm:$0xf] }
 0x389   :  { %4855 = vmatmul.bf16.vlgmr.msrb.gmra.mxu2 %v13602_v6  ;;  %4869 = vmatmul.bf16.vlgmr.msrb.gmra.mxu3 %v13602_v6  ;;  %v10359_v6 = vld [vmem:[#allocation14 + $0x40] sm:$0xf]  ;;  %v11424_v12 = vor.u32 %v12708_v43, %v11423_v49  ;;  %v10991_v46 = vld [vmem:[#allocation19 + $0x3c0] sm:$0xf] }
 0x38a   :  { %5123 = vmatmul.bf16.vlgmr.msra.gmra.mxu0 %v13382_v24  ;;  %5137 = vmatmul.bf16.vlgmr.msra.gmra.mxu1 %v13382_v24  ;;  %v10360_v19 = vor.u32 %v12392_v50, %v10359_v6  ;;  %v10727_v6 = vld [vmem:[#allocation19 + $0x1b0] sm:$0xf]  ;;  %v12534_v50 = vld [vmem:[#allocation19 + $0x1c4] sm:$0xf0]  ;;  %v12756_v13 = vld [vmem:[#allocation19 + $0x8b4] sm:$0xf0] }
 0x38b   :  { %5147 = vmatpush.bf16.msra.mxu2 %v10400_v58  ;;  %5161 = vmatpush.bf16.msra.mxu3 %v10404_v41  ;;  %v10824_v58 = vor.u32 %v12558_v63, %v10823_v30  ;;  %v10607_v41 = vld [vmem:[#allocation19 + $0xc0] sm:$0xf]  ;;  %v10728_v18 = vor.u32 %v12534_v50, %v10727_v6  ;;  %v12702_v63 = vld [vmem:[#allocation19 + $0x704] sm:$0xf0]  ;;  %v11351_v6 = vld [vmem:[#allocation19 + $0x690] sm:$0xf] }
 0x38c   :  { %5175 = vmatpush.bf16.msrb.mxu0 %v10408_v21  ;;  %5189 = vmatpush.bf16.msrb.mxu1 %v10412_v61  ;;  %v12552_v21 = vld [vmem:[#allocation19 + $0x254] sm:$0xf0]  ;;  %v10608_v61 = vor.u32 %v12504_v26, %v10607_v41  ;;  %v11400_v41 = vor.u32 %v12702_v63, %v11399_v59  ;;  %v12690_v50 = vld [vmem:[#allocation19 + $0x6a4] sm:$0xf0] }
 0x38d   :  { %v10800_v42 = vor.u32 %v12552_v21, %v10799_v62  ;;  %v10967_v62 = vld [vmem:[#allocation19 + $0x390] sm:$0xf]  ;;  %v12594_v21 = vld [vmem:[#allocation19 + $0x3a4] sm:$0xf0] }
 0x38f   :  { %5148 = vmatpush.bf16.msra.mxu2 %v10376_v5  ;;  %5162 = vmatpush.bf16.msra.mxu3 %v10380_v7  ;;  %v10559_v5 = vld [vmem:[#allocation19 + $0x60] sm:$0xf]  ;;  %v12492_v7 = vld [vmem:[#allocation19 + $0x74] sm:$0xf0] }
 0x390   :  { %5176 = vmatpush.bf16.msrb.mxu0 %v10384_v32  ;;  %5190 = vmatpush.bf16.msrb.mxu1 %v10388_v25  ;;  %v10560_v32 = vor.u32 %v12492_v7, %v10559_v5  ;;  %v10752_v25 = vor.u32 %v12540_v0, %v10751_v22  ;;  %v12744_v5 = vld [vmem:[#allocation19 + $0x854] sm:$0xf0]  ;;  %v10943_v7 = vld [vmem:[#allocation19 + $0x360] sm:$0xf] }
 0x391   :  { %v12588_v22 = vld [vmem:[#allocation19 + $0x374] sm:$0xf0] }
 0x393   :  { %5149 = vmatpush.bf16.msra.mxu2 %v10352_v28  ;;  %5163 = vmatpush.bf16.msra.mxu3 %v10356_v36  ;;  %v11039_v28 = vld [vmem:[#allocation19 + $0x420] sm:$0xf]  ;;  %v12612_v36 = vld [vmem:[#allocation19 + $0x434] sm:$0xf0] }
 0x394   :  { %5177 = vmatpush.bf16.msrb.mxu0 %v10360_v19  ;;  %5191 = vmatpush.bf16.msrb.mxu1 %v10364_v44  ;;  %v11040_v14 = vor.u32 %v12612_v36, %v11039_v28  ;;  %v10511_v19 = vld [vmem:[#allocation19] sm:$0xf]  ;;  %v12480_v44 = vld [vmem:[#allocation19 + $0x14] sm:$0xf0]  ;;  %v12738_v28 = vld [vmem:[#allocation19 + $0x824] sm:$0xf0] }
 0x395   :  { %v10512_v10 = vor.u32 %v12480_v44, %v10511_v19  ;;  %v10919_v36 = vld [vmem:[#allocation19 + $0x330] sm:$0xf]  ;;  %v12630_v19 = vld [vmem:[#allocation19 + $0x4c4] sm:$0xf0] }
 0x397   :  { %5150 = vmatpush.bf16.msra.mxu2 %v10328_v48  ;;  %5164 = vmatpush.bf16.msra.mxu3 %v10332_v37  ;;  %v11448_v48 = vor.u32 %v12714_v33, %v11447_v54  ;;  %v11640_v37 = vor.u32 %v12762_v57, %v11639_v34  ;;  %v10895_v33 = vld [vmem:[#allocation19 + $0x300] sm:$0xf]  ;;  %v12576_v34 = vld [vmem:[#allocation19 + $0x314] sm:$0xf0] }
 0x398   :  { %5178 = vmatpush.bf16.msrb.mxu0 %v10336_v27  ;;  %5192 = vmatpush.bf16.msrb.mxu1 %v10340_v15  ;;  %v11015_v27 = vld [vmem:[#allocation19 + $0x3f0] sm:$0xf]  ;;  %v12606_v15 = vld [vmem:[#allocation19 + $0x404] sm:$0xf0] }
 0x399   :  { %v11016_v23 = vor.u32 %v12606_v15, %v11015_v27  ;;  %v12624_v27 = vld [vmem:[#allocation19 + $0x494] sm:$0xf0]  ;;  %v12519_v15 = vld [vmem:[#allocation19 + $0x154] sm:$0xf] }
 0x39a   :  { %5151 = vmatmul.bf16.vlgmr.msra.gmra.mxu2 %v13382_v24  ;;  %5165 = vmatmul.bf16.vlgmr.msra.gmra.mxu3 %v13382_v24 }
 0x39b   :  { %6985 = vmatpush.bf16.msrb.mxu2 %v10680_v40  ;;  %6999 = vmatpush.bf16.msrb.mxu3 %v10872_v1  ;;  %v12654_v40 = vld [vmem:[#allocation19 + $0x584] sm:$0xf0] }
 0x39c   :  { %5179 = vmatmul.bf16.vlgmr.msrb.gmra.mxu0 %v13382_v24  ;;  %5193 = vmatmul.bf16.vlgmr.msrb.gmra.mxu1 %v13382_v24  ;;  %v10584_v24 = vor.u32 %v12498_v38, %v10583_v4  ;;  %v11208_v1 = vor.u32 %v12654_v40, %v11207_v16  ;;  %v12642_v4 = vld [vmem:[#allocation19 + $0x524] sm:$0xf0]  ;;  %v12567_v40 = vld [vmem:[#allocation19 + $0x2d4] sm:$0xf] }
 0x39d   :  { %7013 = vmatpush.bf16.msra.mxu0 %v11064_v60  ;;  %7027 = vmatpush.bf16.msra.mxu1 %v11256_v52  ;;  %v12600_v60 = vld [vmem:[#allocation19 + $0x3d4] sm:$0xf0]  ;;  %v11616_v52 = vor.u32 %v12756_v13, %v11615_v45  ;;  %v11303_v45 = vld [vmem:[#allocation19 + $0x630] sm:$0xf] }
 0x39e   :  { %v11495_v13 = vld [vmem:[#allocation19 + $0x7b0] sm:$0xf] }
 0x39f   :  { %6986 = vmatpush.bf16.msrb.mxu2 %v10656_v2  ;;  %7000 = vmatpush.bf16.msrb.mxu3 %v10848_v53  ;;  %v10992_v2 = vor.u32 %v12600_v60, %v10991_v46  ;;  %v11183_v53 = vld [vmem:[#allocation19 + $0x540] sm:$0xf]  ;;  %v12726_v60 = vld [vmem:[#allocation19 + $0x7c4] sm:$0xf0] }
 0x3a0   :  { %v11184_v30 = vor.u32 %v12648_v47, %v11183_v53  ;;  %v10657_v53 = vld [vmem:[#allocation19 + $0x138] sm:$0xf0]  ;;  %v12561_v47 = vld [vmem:[#allocation19 + $0x2a4] sm:$0xf] }
 0x3a1   :  { %7014 = vmatpush.bf16.msra.mxu0 %v11040_v14  ;;  %7028 = vmatpush.bf16.msra.mxu1 %v11232_v9  ;;  %v12582_v14 = vld [vmem:[#allocation19 + $0x344] sm:$0xf0]  ;;  %v11112_v9 = vor.u32 %v12630_v19, %v11111_v17  ;;  %v12489_v17 = vld [vmem:[#allocation19 + $0x64] sm:$0xf]  ;;  %v10561_v19 = vld [vmem:[#allocation19 + $0x78] sm:$0xf0] }
 0x3a2   :  { %v10920_v44 = vor.u32 %v12582_v14, %v10919_v36 }
 0x3a3   :  { %6987 = vmatpush.bf16.msrb.mxu2 %v10632_v56  ;;  %7001 = vmatpush.bf16.msrb.mxu3 %v10824_v58  ;;  %v11591_v56 = vld [vmem:[#allocation19 + $0x870] sm:$0xf]  ;;  %v12750_v58 = vld [vmem:[#allocation19 + $0x884] sm:$0xf0] }
 0x3a4   :  { %v11592_v26 = vor.u32 %v12750_v58, %v11591_v56  ;;  %v11279_v56 = vld [vmem:[#allocation19 + $0x600] sm:$0xf]  ;;  %v12672_v58 = vld [vmem:[#allocation19 + $0x614] sm:$0xf0] }
 0x3a5   :  { %7015 = vmatpush.bf16.msra.mxu0 %v11016_v23  ;;  %7029 = vmatpush.bf16.msra.mxu1 %v11208_v1  ;;  %v10681_v23 = vld [vmem:[#allocation19 + $0x168] sm:$0xf0] }
 0x3a6   :  { %v10873_v1 = vld [vmem:[#allocation19 + $0x2e8] sm:$0xf0]  ;;  %v10684_v49 = vor.u32 %v12519_v15, %v10681_v23 }
 0x3a7   :  { %6988 = vmatpush.bf16.msrb.mxu2 %v10608_v61  ;;  %7002 = vmatpush.bf16.msrb.mxu3 %v10800_v42  ;;  %v11159_v61 = vld [vmem:[#allocation19 + $0x510] sm:$0xf]  ;;  %v10968_v42 = vor.u32 %v12594_v21, %v10967_v62  ;;  %v10876_v43 = vor.u32 %v12567_v40, %v10873_v1  ;;  %v12720_v62 = vld [vmem:[#allocation19 + $0x794] sm:$0xf0]  ;;  %v10729_v15 = vld [vmem:[#allocation19 + $0x1c8] sm:$0xf0] }
 0x3a8   :  { %v11160_v38 = vor.u32 %v12642_v4, %v11159_v61  ;;  %v12507_v4 = vld [vmem:[#allocation19 + $0xf4] sm:$0xf] }
 0x3a9   :  { %7016 = vmatpush.bf16.msra.mxu0 %v10992_v2  ;;  %7030 = vmatpush.bf16.msra.mxu1 %v11184_v30  ;;  %v12513_v2 = vld [vmem:[#allocation19 + $0x124] sm:$0xf]  ;;  %v10849_v30 = vld [vmem:[#allocation19 + $0x2b8] sm:$0xf0] }
 0x3aa   :  { %v10660_v59 = vor.u32 %v12513_v2, %v10657_v53  ;;  %v10852_v63 = vor.u32 %v12561_v47, %v10849_v30 }
 0x3ab   :  { %6989 = vmatpush.bf16.msrb.mxu2 %v10584_v24  ;;  %7003 = vmatpush.bf16.msrb.mxu3 %v10776_v8  ;;  %v11567_v24 = vld [vmem:[#allocation19 + $0x840] sm:$0xf]  ;;  %v11376_v8 = vor.u32 %v12696_v39, %v11375_v35  ;;  %v12555_v35 = vld [vmem:[#allocation19 + $0x274] sm:$0xf]  ;;  %v10825_v39 = vld [vmem:[#allocation19 + $0x288] sm:$0xf0] }
 0x3ac   :  { %v11568_v0 = vor.u32 %v12744_v5, %v11567_v24  ;;  %v12501_v5 = vld [vmem:[#allocation19 + $0xc4] sm:$0xf] }
 0x3ad   :  { %7017 = vmatpush.bf16.msra.mxu0 %v10968_v42  ;;  %7031 = vmatpush.bf16.msra.mxu1 %v11160_v38  ;;  %v10633_v38 = vld [vmem:[#allocation19 + $0x108] sm:$0xf0] }
 0x3ae   :  { %v10636_v24 = vor.u32 %v12507_v4, %v10633_v38  ;;  %v11257_v4 = vld [vmem:[#allocation19 + $0x5e8] sm:$0xf0] }
 0x3af   :  { %6990 = vmatpush.bf16.msrb.mxu2 %v10560_v32  ;;  %7004 = vmatpush.bf16.msrb.mxu3 %v10752_v25  ;;  %v10944_v32 = vor.u32 %v12588_v22, %v10943_v7  ;;  %v11135_v25 = vld [vmem:[#allocation19 + $0x4e0] sm:$0xf]  ;;  %v10609_v7 = vld [vmem:[#allocation19 + $0xd8] sm:$0xf0] }
 0x3b0   :  { %v11136_v11 = vor.u32 %v12636_v20, %v11135_v25  ;;  %v12549_v25 = vld [vmem:[#allocation19 + $0x244] sm:$0xf]  ;;  %v10801_v20 = vld [vmem:[#allocation19 + $0x258] sm:$0xf0] }
 0x3b1   :  { %7018 = vmatpush.bf16.msra.mxu0 %v10944_v32  ;;  %v10612_v32 = vor.u32 %v12501_v5, %v10609_v7 }
 0x3b2   :  { %7032 = vmatpush.bf16.msra.mxu1 %v11136_v11  ;;  %v10804_v11 = vor.u32 %v12549_v25, %v10801_v20  ;;  %v11041_v20 = vld [vmem:[#allocation19 + $0x438] sm:$0xf0] }
 0x3b3   :  { %6991 = vmatpush.bf16.msrb.mxu2 %v10536_v3  ;;  %7005 = vmatpush.bf16.msrb.mxu3 %v10728_v18  ;;  %v11352_v3 = vor.u32 %v12690_v50, %v11351_v6  ;;  %v11543_v18 = vld [vmem:[#allocation19 + $0x810] sm:$0xf] }
 0x3b4   :  { %v11544_v55 = vor.u32 %v12738_v28, %v11543_v18  ;;  %v10585_v18 = vld [vmem:[#allocation19 + $0xa8] sm:$0xf0]  ;;  %v12543_v28 = vld [vmem:[#allocation19 + $0x214] sm:$0xf] }
 0x3b5   :  { %7019 = vmatpush.bf16.msra.mxu0 %v10920_v44 }
 0x3b6   :  { %7033 = vmatpush.bf16.msra.mxu1 %v11112_v9 }
 0x3b7   :  { %6992 = vmatpush.bf16.msrb.mxu2 %v10512_v10  ;;  %7006 = vmatpush.bf16.msrb.mxu3 %v10704_v31  ;;  %v11327_v10 = vld [vmem:[#allocation19 + $0x660] sm:$0xf]  ;;  %v12732_v31 = vld [vmem:[#allocation19 + $0x7f4] sm:$0xf0] }
 0x3b8   :  { %v11328_v54 = vor.u32 %v12684_v29, %v11327_v10  ;;  %v11520_v57 = vor.u32 %v12732_v31, %v11519_v51  ;;  %v10564_v10 = vor.u32 %v12489_v17, %v10561_v19  ;;  %v12537_v29 = vld [vmem:[#allocation19 + $0x1e4] sm:$0xf]  ;;  %v10753_v51 = vld [vmem:[#allocation19 + $0x1f8] sm:$0xf0]  ;;  %v11017_v17 = vld [vmem:[#allocation19 + $0x408] sm:$0xf0] }
 0x3b9   :  { %v12651_v19 = vld [vmem:[#allocation19 + $0x574] sm:$0xf] }
 0x3bb   :  { %7041 = vmatpush.bf16.msra.mxu2 %v11448_v48  ;;  %7055 = vmatpush.bf16.msra.mxu3 %v11640_v37  ;;  %v10896_v48 = vor.u32 %v12576_v34, %v10895_v33  ;;  %v11087_v37 = vld [vmem:[#allocation19 + $0x480] sm:$0xf]  ;;  %v13624_v33 = vld [vmem:[#allocation17] sm:$0x3f] }
 0x3bc   :  { %v11088_v16 = vor.u32 %v12624_v27, %v11087_v37  ;;  %v12531_v37 = vld [vmem:[#allocation19 + $0x1b4] sm:$0xf]  ;;  %v5201_v40 = vperm.slane %v13624_v33, 0 }
 0x3bd   :  { %7020 = vmatpush.bf16.msra.mxu0 %v10896_v48  ;;  %v10537_v48 = vld [vmem:[#allocation19 + $0x48] sm:$0xf0] }
 0x3be   :  { %7034 = vmatpush.bf16.msra.mxu1 %v11088_v16  ;;  %v10732_v16 = vor.u32 %v12531_v37, %v10729_v15  ;;  %v10993_v37 = vld [vmem:[#allocation19 + $0x3d8] sm:$0xf0] }
 0x3bf   :  { %7042 = vmatpush.bf16.msra.mxu2 %v11424_v12  ;;  %7056 = vmatpush.bf16.msra.mxu3 %v11616_v52  ;;  %v12678_v12 = vld [vmem:[#allocation19 + $0x644] sm:$0xf0]  ;;  %v11496_v52 = vor.u32 %v12726_v60, %v11495_v13  ;;  %v10513_v13 = vld [vmem:[#allocation19 + $0x18] sm:$0xf0] }
 0x3c0   :  { %v11304_v46 = vor.u32 %v12678_v12, %v11303_v45  ;;  %v12477_v12 = vld [vmem:[#allocation19 + $0x4] sm:$0xf]  ;;  %v10705_v60 = vld [vmem:[#allocation19 + $0x198] sm:$0xf0] }
 0x3c1   :  { %7069 = vmatpush.bf16.msrb.mxu0 %v10684_v49  ;;  %v5202_v49 = vperm.slane %v13624_v33, 1  ;;  %v11185_v15 = vld [vmem:[#allocation19 + $0x558] sm:$0xf0] }
 0x3c2   :  { %7083 = vmatpush.bf16.msrb.mxu1 %v10876_v43 }
 0x3c3   :  { %7043 = vmatpush.bf16.msra.mxu2 %v11400_v41  ;;  %7057 = vmatpush.bf16.msra.mxu3 %v11592_v26  ;;  %v11471_v41 = vld [vmem:[#allocation19 + $0x780] sm:$0xf]  ;;  %v11280_v26 = vor.u32 %v12672_v58, %v11279_v56  ;;  %v12615_v58 = vld [vmem:[#allocation19 + $0x454] sm:$0xf] }
 0x3c4   :  { %v11472_v42 = vor.u32 %v12720_v62, %v11471_v41  ;;  %v11065_v62 = vld [vmem:[#allocation19 + $0x468] sm:$0xf0] }
 0x3c5   :  { %7070 = vmatpush.bf16.msrb.mxu0 %v10660_v59  ;;  %v11068_v7 = vor.u32 %v12615_v58, %v11065_v62 }
 0x3c6   :  { %7084 = vmatpush.bf16.msrb.mxu1 %v10852_v63 }
 0x3c7   :  { %7044 = vmatpush.bf16.msra.mxu2 %v11376_v8  ;;  %7058 = vmatpush.bf16.msra.mxu3 %v11568_v0  ;;  %v10828_v8 = vor.u32 %v12555_v35, %v10825_v39 }
 0x3c9   :  { %7071 = vmatpush.bf16.msrb.mxu0 %v10636_v24 }
 0x3ca   :  { %7085 = vmatpush.bf16.msrb.mxu1 %v10828_v8 }
 0x3cb   :  { %7045 = vmatpush.bf16.msra.mxu2 %v11352_v3  ;;  %7059 = vmatpush.bf16.msra.mxu3 %v11544_v55  ;;  %v12495_v3 = vld [vmem:[#allocation19 + $0x94] sm:$0xf]  ;;  %v10777_v55 = vld [vmem:[#allocation19 + $0x228] sm:$0xf0] }
 0x3cc   :  { %v10588_v36 = vor.u32 %v12495_v3, %v10585_v18  ;;  %v10780_v14 = vor.u32 %v12543_v28, %v10777_v55  ;;  %v11233_v3 = vld [vmem:[#allocation19 + $0x5b8] sm:$0xf0] }
 0x3cd   :  { %7072 = vmatpush.bf16.msrb.mxu0 %v10612_v32 }
 0x3ce   :  { %7086 = vmatpush.bf16.msrb.mxu1 %v10804_v11  ;;  %v12657_v11 = vld [vmem:[#allocation19 + $0x5a4] sm:$0xf] }
 0x3cf   :  { %7046 = vmatpush.bf16.msra.mxu2 %v11328_v54  ;;  %7060 = vmatpush.bf16.msra.mxu3 %v11520_v57  ;;  %v10756_v54 = vor.u32 %v12537_v29, %v10753_v51  ;;  %v12483_v57 = vld [vmem:[#allocation19 + $0x34] sm:$0xf]  ;;  %v11236_v55 = vor.u32 %v12657_v11, %v11233_v3  ;;  %v5206_v29 = vperm.slane %v13624_v33, 5  ;;  %v12597_v51 = vld [vmem:[#allocation19 + $0x3c4] sm:$0xf] }
 0x3d0   :  { %v10540_v27 = vor.u32 %v12483_v57, %v10537_v48  ;;  %v12711_v11 = vld [vmem:[#allocation19 + $0x754] sm:$0xf] }
 0x3d1   :  { %7073 = vmatpush.bf16.msrb.mxu0 %v10588_v36 }
 0x3d2   :  { %7087 = vmatpush.bf16.msrb.mxu1 %v10780_v14  ;;  %v12603_v14 = vld [vmem:[#allocation19 + $0x3f4] sm:$0xf] }
 0x3d3   :  { %7047 = vmatpush.bf16.msra.mxu2 %v11304_v46  ;;  %7061 = vmatpush.bf16.msra.mxu3 %v11496_v52  ;;  %v12525_v46 = vld [vmem:[#allocation19 + $0x184] sm:$0xf]  ;;  %v10516_v52 = vor.u32 %v12477_v12, %v10513_v13  ;;  %v11020_v57 = vor.u32 %v12603_v14, %v11017_v17 }
 0x3d4   :  { %v10708_v2 = vor.u32 %v12525_v46, %v10705_v60  ;;  %v12639_v60 = vld [vmem:[#allocation19 + $0x514] sm:$0xf] }
 0x3d5   :  { %7074 = vmatpush.bf16.msrb.mxu0 %v10564_v10  ;;  %v5205_v10 = vperm.slane %v13624_v33, 4 }
 0x3d6   :  { %7088 = vmatpush.bf16.msrb.mxu1 %v10756_v54 }
 0x3d7   :  { %7048 = vmatpush.bf16.msra.mxu2 %v11280_v26  ;;  %7062 = vmatpush.bf16.msra.mxu3 %v11472_v42  ;;  %v12663_v42 = vld [vmem:[#allocation19 + $0x5d4] sm:$0xf] }
 0x3d9   :  { %7075 = vmatpush.bf16.msrb.mxu0 %v10540_v27  ;;  %v12645_v27 = vld [vmem:[#allocation19 + $0x544] sm:$0xf] }
 0x3da   :  { %7089 = vmatpush.bf16.msrb.mxu1 %v10732_v16 }
 0x3dd   :  { %7076 = vmatpush.bf16.msrb.mxu0 %v10516_v52  ;;  %v11161_v52 = vld [vmem:[#allocation19 + $0x528] sm:$0xf0] }
 0x3de   :  { %7090 = vmatpush.bf16.msrb.mxu1 %v10708_v2  ;;  %v11164_v58 = vor.u32 %v12639_v60, %v11161_v52  ;;  %v12699_v60 = vld [vmem:[#allocation19 + $0x6f4] sm:$0xf]  ;;  %v11401_v52 = vld [vmem:[#allocation19 + $0x708] sm:$0xf0] }
 0x3f7   :  { %v13616_v21 = vpop.f32.mrf.mxu0  ;;  %v13618_v61 = vpop.f32.mrf.mxu1 }
 0x3fc   :  { %v4800_v22 = vpop.f32.mrf.mxu2  ;;  %v4814_v0 = vpop.f32.mrf.mxu3 }
 0x3ff   :  { %v13620_v6 = vpop.f32.mrf.mxu0  ;;  %v13622_v50 = vpop.f32.mrf.mxu1 }
 0x404   :  { %v4802_v44 = vpop.f32.mrf.mxu2  ;;  %v4816_v9 = vpop.f32.mrf.mxu3 }
 0x407   :  { %v5124_v31 = vpop.f32.mrf.mxu0  ;;  %v5138_v34 = vpop.f32.mrf.mxu1 }
 0x408   :  { %v5125_v23 = vadd.f32 %v5124_v31, %v4800_v22  ;;  %v5139_v1 = vadd.f32 %v5138_v34, %v4814_v0  ;;  %v11260_v22 = vor.u32 %v12663_v42, %v11257_v4  ;;  %v12609_v0 = vld [vmem:[#allocation19 + $0x424] sm:$0xf] }
 0x409   :  { %v11044_v36 = vor.u32 %v12609_v0, %v11041_v20 }
 0x40a   :  { %v5213_v53 = vadd.f32 %v5201_v40, %v5125_v23  ;;  %v5214_v30 = vadd.f32 %v5202_v49, %v5139_v1  ;;  %v10996_v1 = vor.u32 %v12597_v51, %v10993_v37  ;;  %v11617_v37 = vld [vmem:[#allocation19 + $0x8b8] sm:$0xf0] }
 0x40c   :  { %v4856_v43 = vpop.f32.mrf.mxu2  ;;  %v4870_v45 = vpop.f32.mrf.mxu3  ;;  %v5225_v38 = vmax.f32 %v5213_v53, 0.0  ;;  %v5226_v35 = vmax.f32 %v5214_v30, 0.0  ;;  %v5203_v53 = vperm.slane %v13624_v33, 2 }
 0x40f   :  { %v5126_v47 = vpop.f32.mrf.mxu0  ;;  %v5140_v59 = vpop.f32.mrf.mxu1 }
 0x410   :  { %v5127_v63 = vadd.f32 %v5126_v47, %v4802_v44  ;;  %v5141_v56 = vadd.f32 %v5140_v59, %v4816_v9  ;;  %v11209_v44 = vld [vmem:[#allocation19 + $0x588] sm:$0xf0]  ;;  %v5204_v59 = vperm.slane %v13624_v33, 3  ;;  %v10945_v33 = vld [vmem:[#allocation19 + $0x378] sm:$0xf0] }
 0x411   :  { %v11212_v48 = vor.u32 %v12651_v19, %v11209_v44  ;;  %v12579_v19 = vld [vmem:[#allocation19 + $0x334] sm:$0xf]  ;;  %v10921_v44 = vld [vmem:[#allocation19 + $0x348] sm:$0xf0] }
 0x412   :  { %v5219_v41 = vadd.f32 %v5201_v40, %v5127_v63  ;;  %v5220_v26 = vadd.f32 %v5202_v49, %v5141_v56  ;;  %v11188_v49 = vor.u32 %v12645_v27, %v11185_v15  ;;  %v10924_v27 = vor.u32 %v12579_v19, %v10921_v44 }
 0x414   :  { %v5231_v39 = vmax.f32 %v5219_v41, 0.0  ;;  %v5232_v24 = vmax.f32 %v5220_v26, 0.0  ;;  %v4858_v8 = vpop.f32.mrf.mxu2  ;;  %v4872_v5 = vpop.f32.mrf.mxu3 }
 0x416   :  { %v13628_v32 = vpack.c.bf16 %v5231_v39, %v5225_v38  ;;  %v13630_v25 = vpack.c.bf16 %v5232_v24, %v5226_v35  ;;  %v12585_v35 = vld [vmem:[#allocation19 + $0x364] sm:$0xf] }
 0x417   :  { %v10948_v3 = vor.u32 %v12585_v35, %v10945_v33  ;;  %v12741_v35 = vld [vmem:[#allocation19 + $0x844] sm:$0xf] }
 0x418   :  { %6993 = vmatmul.bf16.vlgmr.msrb.gmra.mxu2 %v13628_v32  ;;  %7007 = vmatmul.bf16.vlgmr.msrb.gmra.mxu3 %v13630_v25 }
 0x419   :  { %v5180_v18 = vpop.f32.mrf.mxu0  ;;  %v5194_v28 = vpop.f32.mrf.mxu1  ;;  %7097 = vmatpush.bf16.msrb.mxu2 %v11068_v7  ;;  %7111 = vmatpush.bf16.msrb.mxu3 %v11260_v22 }
 0x41a   :  { %v5181_v9 = vadd.f32 %v5180_v18, %v4856_v43  ;;  %v5195_v54 = vadd.f32 %v5194_v28, %v4870_v45  ;;  %v12591_v43 = vld [vmem:[#allocation19 + $0x394] sm:$0xf]  ;;  %v10969_v45 = vld [vmem:[#allocation19 + $0x3a8] sm:$0xf0] }
 0x41b   :  { %v10972_v56 = vor.u32 %v12591_v43, %v10969_v45  ;;  %v11449_v28 = vld [vmem:[#allocation19 + $0x768] sm:$0xf0]  ;;  %v12523_v43 = vld [vmem:[#allocation19 + $0x16c] sm:$0xf0] }
 0x41c   :  { %v5217_v16 = vadd.f32 %v5205_v10, %v5181_v9  ;;  %v5218_v12 = vadd.f32 %v5206_v29, %v5195_v54  ;;  %v12627_v9 = vld [vmem:[#allocation19 + $0x4b4] sm:$0xf]  ;;  %v11452_v54 = vor.u32 %v12711_v11, %v11449_v28  ;;  %v12571_v45 = vld [vmem:[#allocation19 + $0x2ec] sm:$0xf0]  ;;  %v11545_v28 = vld [vmem:[#allocation19 + $0x828] sm:$0xf0] }
 0x41d   :  { %7098 = vmatpush.bf16.msrb.mxu2 %v11044_v36  ;;  %7112 = vmatpush.bf16.msrb.mxu3 %v11236_v55  ;;  %v5152_v31 = vpop.f32.mrf.mxu2  ;;  %v5166_v34 = vpop.f32.mrf.mxu3  ;;  %v11641_v36 = vld [vmem:[#allocation19 + $0x8e8] sm:$0xf0]  ;;  %v12687_v11 = vld [vmem:[#allocation19 + $0x694] sm:$0xf] }
 0x41e   :  { %v5153_v2 = vadd.f32 %v5152_v31, %v13616_v21  ;;  %v5167_v47 = vadd.f32 %v5166_v34, %v13618_v61  ;;  %v5229_v41 = vmax.f32 %v5217_v16, 0.0  ;;  %v5230_v26 = vmax.f32 %v5218_v12, 0.0  ;;  %v12705_v34 = vld [vmem:[#allocation19 + $0x724] sm:$0xf] }
 0x41f   :  { %v12573_v16 = vld [vmem:[#allocation19 + $0x304] sm:$0xf] }
 0x420   :  { %v5215_v21 = vadd.f32 %v5203_v53, %v5153_v2  ;;  %v5216_v39 = vadd.f32 %v5204_v59, %v5167_v47  ;;  %v12747_v2 = vld [vmem:[#allocation19 + $0x874] sm:$0xf] }
 0x421   :  { %v5182_v23 = vpop.f32.mrf.mxu0  ;;  %v5196_v40 = vpop.f32.mrf.mxu1  ;;  %7099 = vmatpush.bf16.msrb.mxu2 %v11020_v57  ;;  %7113 = vmatpush.bf16.msrb.mxu3 %v11212_v48  ;;  %v11425_v57 = vld [vmem:[#allocation19 + $0x738] sm:$0xf0]  ;;  %v12753_v48 = vld [vmem:[#allocation19 + $0x8a4] sm:$0xf] }
 0x422   :  { %v5183_v13 = vadd.f32 %v5182_v23, %v4858_v8  ;;  %v5197_v46 = vadd.f32 %v5196_v40, %v4872_v5  ;;  %v12633_v8 = vld [vmem:[#allocation19 + $0x4e4] sm:$0xf]  ;;  %v11137_v5 = vld [vmem:[#allocation19 + $0x4f8] sm:$0xf0]  ;;  %v5228_v55 = vmax.f32 %v5216_v39, 0.0  ;;  %v11428_v12 = vor.u32 %v12705_v34, %v11425_v57 }
 0x423   :  { %v11140_v18 = vor.u32 %v12633_v8, %v11137_v5  ;;  %v10897_v23 = vld [vmem:[#allocation19 + $0x318] sm:$0xf0]  ;;  %v12621_v40 = vld [vmem:[#allocation19 + $0x484] sm:$0xf]  ;;  %v12511_v5 = vld [vmem:[#allocation19 + $0x10c] sm:$0xf0] }
 0x424   :  { %v5223_v30 = vadd.f32 %v5205_v10, %v5183_v13  ;;  %v5224_v63 = vadd.f32 %v5206_v29, %v5197_v46  ;;  %v11113_v10 = vld [vmem:[#allocation19 + $0x4c8] sm:$0xf0]  ;;  %v11620_v13 = vor.u32 %v12753_v48, %v11617_v37  ;;  %v10879_v46 = vld [vmem:[#allocation19 + $0x2d8] sm:$0xf]  ;;  %v10900_v47 = vor.u32 %v12573_v16, %v10897_v23  ;;  %v12499_v37 = vld [vmem:[#allocation19 + $0xac] sm:$0xf0] }
 0x425   :  { %7100 = vmatpush.bf16.msrb.mxu2 %v10996_v1  ;;  %7114 = vmatpush.bf16.msrb.mxu3 %v11188_v49  ;;  %v5154_v4 = vpop.f32.mrf.mxu2  ;;  %v5168_v38 = vpop.f32.mrf.mxu3  ;;  %v11116_v15 = vor.u32 %v12627_v9, %v11113_v10  ;;  %v11089_v1 = vld [vmem:[#allocation19 + $0x498] sm:$0xf0]  ;;  %v10687_v49 = vld [vmem:[#allocation19 + $0x158] sm:$0xf]  ;;  %v12681_v9 = vld [vmem:[#allocation19 + $0x664] sm:$0xf] }
 0x426   :  { %v5235_v62 = vmax.f32 %v5223_v30, 0.0  ;;  %v5236_v42 = vmax.f32 %v5224_v63, 0.0  ;;  %v5155_v24 = vadd.f32 %v5154_v4, %v13620_v6  ;;  %v5169_v61 = vadd.f32 %v5168_v38, %v13622_v50  ;;  %v12759_v6 = vld [vmem:[#allocation19 + $0x8d4] sm:$0xf]  ;;  %v12693_v4 = vld [vmem:[#allocation19 + $0x6c4] sm:$0xf] }
 0x427   :  { %v5227_v50 = vmax.f32 %v5215_v21, 0.0  ;;  %v11644_v31 = vor.u32 %v12759_v6, %v11641_v36  ;;  %v10688_v30 = vor.u32 %v12523_v43, %v10687_v49  ;;  %v10880_v63 = vor.u32 %v12571_v45, %v10879_v46  ;;  %v11377_v38 = vld [vmem:[#allocation19 + $0x6d8] sm:$0xf0]  ;;  %v10591_v48 = vld [vmem:[#allocation19 + $0x98] sm:$0xf] }
 0x428   :  { %v13642_v7 = vpack.c.bf16 %v5235_v62, %v5229_v41  ;;  %v13644_v22 = vpack.c.bf16 %v5236_v42, %v5230_v26  ;;  %v5221_v0 = vadd.f32 %v5203_v53, %v5155_v24  ;;  %v5222_v20 = vadd.f32 %v5204_v59, %v5169_v61  ;;  %v11593_v53 = vld [vmem:[#allocation19 + $0x888] sm:$0xf0]  ;;  %v10855_v62 = vld [vmem:[#allocation19 + $0x2a8] sm:$0xf]  ;;  %v12565_v42 = vld [vmem:[#allocation19 + $0x2bc] sm:$0xf0] }
 0x429   :  { %7101 = vmatpush.bf16.msrb.mxu2 %v10972_v56  ;;  %7115 = vmatpush.bf16.msrb.mxu3 %v11164_v58  ;;  %v11092_v59 = vor.u32 %v12621_v40, %v11089_v1  ;;  %v10663_v56 = vld [vmem:[#allocation19 + $0x128] sm:$0xf]  ;;  %v12517_v58 = vld [vmem:[#allocation19 + $0x13c] sm:$0xf0]  ;;  %v11404_v41 = vor.u32 %v12699_v60, %v11401_v52  ;;  %v11596_v26 = vor.u32 %v12747_v2, %v11593_v53  ;;  %v11569_v21 = vld [vmem:[#allocation19 + $0x858] sm:$0xf0] }
 0x42a   :  { %7049 = vmatmul.bf16.vlgmr.msra.gmra.mxu2 %v13642_v7  ;;  %7063 = vmatmul.bf16.vlgmr.msra.gmra.mxu3 %v13644_v22  ;;  %v5233_v14 = vmax.f32 %v5221_v0, 0.0  ;;  %v5234_v17 = vmax.f32 %v5222_v20, 0.0  ;;  %v10664_v39 = vor.u32 %v12517_v58, %v10663_v56  ;;  %v10856_v24 = vor.u32 %v12565_v42, %v10855_v62  ;;  %v10639_v61 = vld [vmem:[#allocation19 + $0xf8] sm:$0xf]  ;;  %v12559_v20 = vld [vmem:[#allocation19 + $0x28c] sm:$0xf0] }
 0x42b   :  { %v11380_v33 = vor.u32 %v12693_v4, %v11377_v38  ;;  %v11572_v8 = vor.u32 %v12741_v35, %v11569_v21  ;;  %v10831_v0 = vld [vmem:[#allocation19 + $0x278] sm:$0xf]  ;;  %v10640_v6 = vor.u32 %v12511_v5, %v10639_v61  ;;  %v11329_v10 = vld [vmem:[#allocation19 + $0x678] sm:$0xf0]  ;;  %v12675_v40 = vld [vmem:[#allocation19 + $0x634] sm:$0xf] }
 0x42c   :  { %v13648_v29 = vpack.c.bf16 %v5233_v14, %v5227_v50  ;;  %v13650_v51 = vpack.c.bf16 %v5234_v17, %v5228_v55  ;;  %v10832_v36 = vor.u32 %v12559_v20, %v10831_v0  ;;  %v10615_v50 = vld [vmem:[#allocation19 + $0xc8] sm:$0xf]  ;;  %v12505_v55 = vld [vmem:[#allocation19 + $0xdc] sm:$0xf0]  ;;  %v11332_v16 = vor.u32 %v12681_v9, %v11329_v10  ;;  %v11305_v1 = vld [vmem:[#allocation19 + $0x648] sm:$0xf0] }
 0x42d   :  { %7102 = vmatpush.bf16.msrb.mxu2 %v10948_v3  ;;  %7116 = vmatpush.bf16.msrb.mxu3 %v11140_v18  ;;  %v11353_v3 = vld [vmem:[#allocation19 + $0x6a8] sm:$0xf0]  ;;  %v12735_v18 = vld [vmem:[#allocation19 + $0x814] sm:$0xf]  ;;  %v10807_v14 = vld [vmem:[#allocation19 + $0x248] sm:$0xf]  ;;  %v10616_v34 = vor.u32 %v12505_v55, %v10615_v50  ;;  %v11308_v2 = vor.u32 %v12675_v40, %v11305_v1 }
 0x42e   :  { %7021 = vmatmul.bf16.vlgmr.msra.gmra.mxu0 %v13648_v29  ;;  %7035 = vmatmul.bf16.vlgmr.msra.gmra.mxu1 %v13650_v51  ;;  %v12553_v17 = vld [vmem:[#allocation19 + $0x25c] sm:$0xf0]  ;;  %v11356_v19 = vor.u32 %v12687_v11, %v11353_v3  ;;  %v11548_v44 = vor.u32 %v12735_v18, %v11545_v28  ;;  %v12723_v49 = vld [vmem:[#allocation19 + $0x7b4] sm:$0xf]  ;;  %v11497_v43 = vld [vmem:[#allocation19 + $0x7c8] sm:$0xf0] }
 0x42f   :  { %7125 = vmatpush.bf16.msra.mxu0 %v11452_v54  ;;  %7139 = vmatpush.bf16.msra.mxu1 %v11644_v31  ;;  %v12729_v54 = vld [vmem:[#allocation19 + $0x7e4] sm:$0xf]  ;;  %v11521_v31 = vld [vmem:[#allocation19 + $0x7f8] sm:$0xf0]  ;;  %v10808_v57 = vor.u32 %v12553_v17, %v10807_v14  ;;  %v10567_v46 = vld [vmem:[#allocation19 + $0x68] sm:$0xf]  ;;  %v11500_v53 = vor.u32 %v12723_v49, %v11497_v43 }
 0x430   :  { %v11524_v23 = vor.u32 %v12729_v54, %v11521_v31  ;;  %v12493_v45 = vld [vmem:[#allocation19 + $0x7c] sm:$0xf0]  ;;  %v10759_v60 = vld [vmem:[#allocation19 + $0x1e8] sm:$0xf]  ;;  %v11071_v56 = vld [vmem:[#allocation19 + $0x458] sm:$0xf] }
 0x431   :  { %7103 = vmatpush.bf16.msrb.mxu2 %v10924_v27  ;;  %7117 = vmatpush.bf16.msrb.mxu3 %v11116_v15  ;;  %v10783_v27 = vld [vmem:[#allocation19 + $0x218] sm:$0xf]  ;;  %v12547_v15 = vld [vmem:[#allocation19 + $0x22c] sm:$0xf0]  ;;  %v12541_v52 = vld [vmem:[#allocation19 + $0x1fc] sm:$0xf0] }
 0x432   :  { %v12619_v58 = vld [vmem:[#allocation19 + $0x46c] sm:$0xf0]  ;;  %v11263_v62 = vld [vmem:[#allocation19 + $0x5d8] sm:$0xf]  ;;  %v12613_v5 = vld [vmem:[#allocation19 + $0x43c] sm:$0xf0] }
 0x433   :  { %7126 = vmatpush.bf16.msra.mxu0 %v11428_v12  ;;  %7140 = vmatpush.bf16.msra.mxu1 %v11620_v13  ;;  %v10592_v12 = vor.u32 %v12499_v37, %v10591_v48  ;;  %v10784_v13 = vor.u32 %v12547_v15, %v10783_v27  ;;  %v12667_v42 = vld [vmem:[#allocation19 + $0x5ec] sm:$0xf0]  ;;  %v10543_v4 = vld [vmem:[#allocation19 + $0x38] sm:$0xf]  ;;  %v11072_v61 = vor.u32 %v12619_v58, %v11071_v56  ;;  %v11239_v0 = vld [vmem:[#allocation19 + $0x5a8] sm:$0xf] }
 0x434   :  { %v12487_v38 = vld [vmem:[#allocation19 + $0x4c] sm:$0xf0]  ;;  %v10735_v35 = vld [vmem:[#allocation19 + $0x1b8] sm:$0xf]  ;;  %v12661_v3 = vld [vmem:[#allocation19 + $0x5bc] sm:$0xf0] }
 0x435   :  { %7104 = vmatpush.bf16.msrb.mxu2 %v10900_v47  ;;  %7118 = vmatpush.bf16.msrb.mxu3 %v11092_v59  ;;  %v12669_v47 = vld [vmem:[#allocation19 + $0x604] sm:$0xf]  ;;  %v11281_v59 = vld [vmem:[#allocation19 + $0x618] sm:$0xf0]  ;;  %v12535_v21 = vld [vmem:[#allocation19 + $0x1cc] sm:$0xf0]  ;;  %v10544_v20 = vor.u32 %v12487_v38, %v10543_v4 }
 0x436   :  { %v10736_v11 = vor.u32 %v12535_v21, %v10735_v35  ;;  %v10519_v18 = vld [vmem:[#allocation19 + $0x8] sm:$0xf]  ;;  %v12481_v28 = vld [vmem:[#allocation19 + $0x1c] sm:$0xf0]  ;;  %v11455_v50 = vld [vmem:[#allocation19 + $0x758] sm:$0xf] }
 0x437   :  { %7127 = vmatpush.bf16.msra.mxu0 %v11404_v41  ;;  %7141 = vmatpush.bf16.msra.mxu1 %v11596_v26  ;;  %v10568_v41 = vor.u32 %v12493_v45, %v10567_v46  ;;  %v10760_v26 = vor.u32 %v12541_v52, %v10759_v60  ;;  %v12715_v55 = vld [vmem:[#allocation19 + $0x76c] sm:$0xf0]  ;;  %v11647_v14 = vld [vmem:[#allocation19 + $0x8d8] sm:$0xf]  ;;  %v10520_v10 = vor.u32 %v12481_v28, %v10519_v18  ;;  %v11431_v27 = vld [vmem:[#allocation19 + $0x728] sm:$0xf] }
 0x438   :  { %v12763_v17 = vld [vmem:[#allocation19 + $0x8ec] sm:$0xf0]  ;;  %v11023_v9 = vld [vmem:[#allocation19 + $0x3f8] sm:$0xf]  ;;  %v11456_v48 = vor.u32 %v12715_v55, %v11455_v50  ;;  %v12709_v15 = vld [vmem:[#allocation19 + $0x73c] sm:$0xf0] }
 0x439   :  { %7153 = vmatpush.bf16.msra.mxu2 %v10688_v30  ;;  %7167 = vmatpush.bf16.msra.mxu3 %v10880_v63  ;;  %v12717_v30 = vld [vmem:[#allocation19 + $0x784] sm:$0xf]  ;;  %v11473_v63 = vld [vmem:[#allocation19 + $0x798] sm:$0xf0]  ;;  %v12607_v31 = vld [vmem:[#allocation19 + $0x40c] sm:$0xf0]  ;;  %v11648_v37 = vor.u32 %v12763_v17, %v11647_v14  ;;  %v11432_v46 = vor.u32 %v12709_v15, %v11431_v27 }
 0x43a   :  { %7105 = vmatmul.bf16.vlgmr.msrb.gmra.mxu2 %v13648_v29  ;;  %7119 = vmatmul.bf16.vlgmr.msrb.gmra.mxu3 %v13650_v51  ;;  %v11024_v40 = vor.u32 %v12607_v31, %v11023_v9  ;;  %v10999_v49 = vld [vmem:[#allocation19 + $0x3c8] sm:$0xf]  ;;  %v12601_v43 = vld [vmem:[#allocation19 + $0x3dc] sm:$0xf0]  ;;  %v11407_v60 = vld [vmem:[#allocation19 + $0x6f8] sm:$0xf] }
 0x43b   :  { %7128 = vmatpush.bf16.msra.mxu0 %v11380_v33  ;;  %7142 = vmatpush.bf16.msra.mxu1 %v11572_v8  ;;  %v11264_v33 = vor.u32 %v12667_v42, %v11263_v62  ;;  %v11047_v8 = vld [vmem:[#allocation19 + $0x428] sm:$0xf]  ;;  %v12703_v52 = vld [vmem:[#allocation19 + $0x70c] sm:$0xf0]  ;;  %v11167_v56 = vld [vmem:[#allocation19 + $0x518] sm:$0xf] }
 0x43c   :  { %v12643_v58 = vld [vmem:[#allocation19 + $0x52c] sm:$0xf0]  ;;  %v11383_v62 = vld [vmem:[#allocation19 + $0x6c8] sm:$0xf]  ;;  %v12697_v42 = vld [vmem:[#allocation19 + $0x6dc] sm:$0xf0] }
 0x43d   :  { %7154 = vmatpush.bf16.msra.mxu2 %v10664_v39  ;;  %7168 = vmatpush.bf16.msra.mxu3 %v10856_v24  ;;  %v11284_v39 = vor.u32 %v12669_v47, %v11281_v59  ;;  %v11476_v24 = vor.u32 %v12717_v30, %v11473_v63  ;;  %v11000_v47 = vor.u32 %v12601_v43, %v10999_v49  ;;  %v10975_v30 = vld [vmem:[#allocation19 + $0x398] sm:$0xf]  ;;  %v12595_v63 = vld [vmem:[#allocation19 + $0x3ac] sm:$0xf0]  ;;  %v11575_v4 = vld [vmem:[#allocation19 + $0x848] sm:$0xf] }
 0x43e   :  { %7077 = vmatmul.bf16.vlgmr.msrb.gmra.mxu0 %v13628_v32  ;;  %7091 = vmatmul.bf16.vlgmr.msrb.gmra.mxu1 %v13630_v25  ;;  %v12745_v38 = vld [vmem:[#allocation19 + $0x85c] sm:$0xf0]  ;;  %v10976_v35 = vor.u32 %v12595_v63, %v10975_v30  ;;  %v11168_v21 = vor.u32 %v12643_v58, %v11167_v56  ;;  %v11119_v50 = vld [vmem:[#allocation19 + $0x4b8] sm:$0xf]  ;;  %v12631_v55 = vld [vmem:[#allocation19 + $0x4cc] sm:$0xf0] }
 0x43f   :  { %7129 = vmatpush.bf16.msra.mxu0 %v11356_v19  ;;  %7143 = vmatpush.bf16.msra.mxu1 %v11548_v44  ;;  %v11048_v19 = vor.u32 %v12613_v5, %v11047_v8  ;;  %v11240_v44 = vor.u32 %v12661_v3, %v11239_v0  ;;  %v11384_v8 = vor.u32 %v12697_v42, %v11383_v62  ;;  %v11359_v0 = vld [vmem:[#allocation19 + $0x698] sm:$0xf]  ;;  %v12739_v3 = vld [vmem:[#allocation19 + $0x82c] sm:$0xf0]  ;;  %v11527_v9 = vld [vmem:[#allocation19 + $0x7e8] sm:$0xf] }
 0x440   :  { %v11576_v5 = vor.u32 %v12745_v38, %v11575_v4  ;;  %v11120_v31 = vor.u32 %v12631_v55, %v11119_v50  ;;  %v12520_v27 = vld [vmem:[#allocation19 + $0x15c] sm:$0xf]  ;;  %v10689_v15 = vld [vmem:[#allocation19 + $0x170] sm:$0xf0]  ;;  %v11311_v49 = vld [vmem:[#allocation19 + $0x638] sm:$0xf] }
 0x441   :  { %7155 = vmatpush.bf16.msra.mxu2 %v10640_v6  ;;  %7169 = vmatpush.bf16.msra.mxu3 %v10832_v36  ;;  %v10711_v6 = vld [vmem:[#allocation19 + $0x188] sm:$0xf]  ;;  %v12529_v36 = vld [vmem:[#allocation19 + $0x19c] sm:$0xf0]  ;;  %v12679_v43 = vld [vmem:[#allocation19 + $0x64c] sm:$0xf0] }
 0x442   :  { %v10712_v54 = vor.u32 %v12529_v36, %v10711_v6  ;;  %v10927_v6 = vld [vmem:[#allocation19 + $0x338] sm:$0xf]  ;;  %v12583_v36 = vld [vmem:[#allocation19 + $0x34c] sm:$0xf0]  ;;  %v10857_v63 = vld [vmem:[#allocation19 + $0x2c0] sm:$0xf0] }
 0x443   :  { %7130 = vmatpush.bf16.msra.mxu0 %v11332_v16  ;;  %7144 = vmatpush.bf16.msra.mxu1 %v11524_v23  ;;  %v11623_v16 = vld [vmem:[#allocation19 + $0x8a8] sm:$0xf]  ;;  %v12757_v23 = vld [vmem:[#allocation19 + $0x8bc] sm:$0xf0]  ;;  %v12616_v62 = vld [vmem:[#allocation19 + $0x45c] sm:$0xf] }
 0x444   :  { %v11624_v45 = vor.u32 %v12757_v23, %v11623_v16  ;;  %v11287_v56 = vld [vmem:[#allocation19 + $0x608] sm:$0xf]  ;;  %v12673_v58 = vld [vmem:[#allocation19 + $0x61c] sm:$0xf0]  ;;  %v11073_v42 = vld [vmem:[#allocation19 + $0x470] sm:$0xf0] }
 0x445   :  { %7156 = vmatpush.bf16.msra.mxu2 %v10616_v34  ;;  %7170 = vmatpush.bf16.msra.mxu3 %v10808_v57  ;;  %v11215_v34 = vld [vmem:[#allocation19 + $0x578] sm:$0xf]  ;;  %v12655_v57 = vld [vmem:[#allocation19 + $0x58c] sm:$0xf0]  ;;  %v12664_v4 = vld [vmem:[#allocation19 + $0x5dc] sm:$0xf] }
 0x446   :  { %v11216_v1 = vor.u32 %v12655_v57, %v11215_v34  ;;  %v10903_v34 = vld [vmem:[#allocation19 + $0x308] sm:$0xf]  ;;  %v12577_v57 = vld [vmem:[#allocation19 + $0x31c] sm:$0xf0]  ;;  %v11265_v38 = vld [vmem:[#allocation19 + $0x5f0] sm:$0xf0] }
 0x447   :  { %7131 = vmatpush.bf16.msra.mxu0 %v11308_v2  ;;  %7145 = vmatpush.bf16.msra.mxu1 %v11500_v53  ;;  %v11599_v2 = vld [vmem:[#allocation19 + $0x878] sm:$0xf]  ;;  %v12751_v53 = vld [vmem:[#allocation19 + $0x88c] sm:$0xf0]  ;;  %v12502_v50 = vld [vmem:[#allocation19 + $0xcc] sm:$0xf] }
 0x448   :  { %v10617_v55 = vld [vmem:[#allocation19 + $0xe0] sm:$0xf0] }
 0x449   :  { %7157 = vmatpush.bf16.msra.mxu2 %v10592_v12  ;;  %7171 = vmatpush.bf16.msra.mxu3 %v10784_v13  ;;  %v11191_v12 = vld [vmem:[#allocation19 + $0x548] sm:$0xf]  ;;  %v12649_v13 = vld [vmem:[#allocation19 + $0x55c] sm:$0xf0] }
 0x44a   :  { %v11192_v59 = vor.u32 %v12649_v13, %v11191_v12  ;;  %v11503_v12 = vld [vmem:[#allocation19 + $0x7b8] sm:$0xf]  ;;  %v12727_v13 = vld [vmem:[#allocation19 + $0x7cc] sm:$0xf0] }
 0x44b   :  { %7132 = vmatpush.bf16.msra.mxu0 %v11284_v39  ;;  %7146 = vmatpush.bf16.msra.mxu1 %v11476_v24  ;;  %v10951_v39 = vld [vmem:[#allocation19 + $0x368] sm:$0xf]  ;;  %v12589_v24 = vld [vmem:[#allocation19 + $0x37c] sm:$0xf0]  ;;  %v11504_v30 = vor.u32 %v12727_v13, %v11503_v12 }
 0x44c   :  { %v10952_v18 = vor.u32 %v12589_v24, %v10951_v39  ;;  %v12508_v39 = vld [vmem:[#allocation19 + $0xfc] sm:$0xf]  ;;  %v11288_v24 = vor.u32 %v12673_v58, %v11287_v56 }
 0x44d   :  { %7158 = vmatpush.bf16.msra.mxu2 %v10568_v41  ;;  %7172 = vmatpush.bf16.msra.mxu3 %v10760_v26  ;;  %v11408_v41 = vor.u32 %v12703_v52, %v11407_v60  ;;  %v11600_v26 = vor.u32 %v12751_v53, %v11599_v2  ;;  %v10692_v60 = vor.u32 %v12520_v27, %v10689_v15  ;;  %v12514_v2 = vld [vmem:[#allocation19 + $0x12c] sm:$0xf]  ;;  %v10665_v53 = vld [vmem:[#allocation19 + $0x140] sm:$0xf0]  ;;  %v12544_v27 = vld [vmem:[#allocation19 + $0x21c] sm:$0xf] }
 0x44e   :  { %7133 = vmatmul.bf16.vlgmr.msra.gmra.mxu0 %v13642_v7  ;;  %7147 = vmatmul.bf16.vlgmr.msra.gmra.mxu1 %v13644_v22  ;;  %v10785_v15 = vld [vmem:[#allocation19 + $0x230] sm:$0xf0] }
 0x44f   :  { %7181 = vmatpush.bf16.msrb.mxu0 %v11072_v61  ;;  %7195 = vmatpush.bf16.msrb.mxu1 %v11264_v33  ;;  %v11143_v61 = vld [vmem:[#allocation19 + $0x4e8] sm:$0xf]  ;;  %v12637_v33 = vld [vmem:[#allocation19 + $0x4fc] sm:$0xf0]  ;;  %v10788_v13 = vor.u32 %v12544_v27, %v10785_v15  ;;  %v12574_v27 = vld [vmem:[#allocation19 + $0x30c] sm:$0xf] }
 0x450   :  { %v11144_v28 = vor.u32 %v12637_v33, %v11143_v61  ;;  %v10641_v33 = vld [vmem:[#allocation19 + $0x110] sm:$0xf0]  ;;  %v10905_v15 = vld [vmem:[#allocation19 + $0x320] sm:$0xf0] }
 0x451   :  { %7159 = vmatpush.bf16.msra.mxu2 %v10544_v20  ;;  %7173 = vmatpush.bf16.msra.mxu3 %v10736_v11  ;;  %v12691_v20 = vld [vmem:[#allocation19 + $0x6ac] sm:$0xf0]  ;;  %v11551_v11 = vld [vmem:[#allocation19 + $0x818] sm:$0xf] }
 0x452   :  { %v11360_v14 = vor.u32 %v12691_v20, %v11359_v0  ;;  %v11552_v17 = vor.u32 %v12739_v3, %v11551_v11  ;;  %v11076_v0 = vor.u32 %v12616_v62, %v11073_v42  ;;  %v11268_v20 = vor.u32 %v12664_v4, %v11265_v38  ;;  %v12610_v11 = vld [vmem:[#allocation19 + $0x42c] sm:$0xf]  ;;  %v11049_v3 = vld [vmem:[#allocation19 + $0x440] sm:$0xf0]  ;;  %v12532_v62 = vld [vmem:[#allocation19 + $0x1bc] sm:$0xf] }
 0x453   :  { %7182 = vmatpush.bf16.msrb.mxu0 %v11048_v19  ;;  %7196 = vmatpush.bf16.msrb.mxu1 %v11240_v44  ;;  %v11335_v19 = vld [vmem:[#allocation19 + $0x668] sm:$0xf]  ;;  %v12685_v44 = vld [vmem:[#allocation19 + $0x67c] sm:$0xf0]  ;;  %v10737_v42 = vld [vmem:[#allocation19 + $0x1d0] sm:$0xf0] }
 0x454   :  { %v11336_v16 = vor.u32 %v12685_v44, %v11335_v19  ;;  %v11052_v19 = vor.u32 %v12610_v11, %v11049_v3  ;;  %v12712_v11 = vld [vmem:[#allocation19 + $0x75c] sm:$0xf]  ;;  %v11457_v3 = vld [vmem:[#allocation19 + $0x770] sm:$0xf0] }
 0x455   :  { %7160 = vmatpush.bf16.msra.mxu2 %v10520_v10  ;;  %7174 = vmatpush.bf16.msra.mxu3 %v10712_v54  ;;  %v12733_v10 = vld [vmem:[#allocation19 + $0x7fc] sm:$0xf0]  ;;  %v10928_v54 = vor.u32 %v12583_v36, %v10927_v6  ;;  %v10644_v6 = vor.u32 %v12508_v39, %v10641_v33  ;;  %v12634_v39 = vld [vmem:[#allocation19 + $0x4ec] sm:$0xf]  ;;  %v10740_v33 = vor.u32 %v12532_v62, %v10737_v42  ;;  %v11385_v42 = vld [vmem:[#allocation19 + $0x6e0] sm:$0xf0] }
 0x456   :  { %v11528_v23 = vor.u32 %v12733_v10, %v11527_v9  ;;  %v12604_v9 = vld [vmem:[#allocation19 + $0x3fc] sm:$0xf]  ;;  %v11025_v10 = vld [vmem:[#allocation19 + $0x410] sm:$0xf0]  ;;  %v12694_v62 = vld [vmem:[#allocation19 + $0x6cc] sm:$0xf] }
 0x457   :  { %7183 = vmatpush.bf16.msrb.mxu0 %v11024_v40  ;;  %7197 = vmatpush.bf16.msrb.mxu1 %v11216_v1  ;;  %v12568_v40 = vld [vmem:[#allocation19 + $0x2dc] sm:$0xf]  ;;  %v10881_v1 = vld [vmem:[#allocation19 + $0x2f0] sm:$0xf0] }
 0x458   :  { %7161 = vmatmul.bf16.vlgmr.msra.gmra.mxu2 %v13628_v32  ;;  %7175 = vmatmul.bf16.vlgmr.msra.gmra.mxu3 %v13630_v25  ;;  %v10884_v52 = vor.u32 %v12568_v40, %v10881_v1  ;;  %v12598_v40 = vld [vmem:[#allocation19 + $0x3cc] sm:$0xf]  ;;  %v11001_v1 = vld [vmem:[#allocation19 + $0x3e0] sm:$0xf0] }
 0x459   :  { %7209 = vmatpush.bf16.msrb.mxu2 %v11456_v48  ;;  %7223 = vmatpush.bf16.msrb.mxu3 %v11648_v37  ;;  %v11095_v48 = vld [vmem:[#allocation19 + $0x488] sm:$0xf]  ;;  %v12625_v37 = vld [vmem:[#allocation19 + $0x49c] sm:$0xf0] }
 0x45b   :  { %7184 = vmatpush.bf16.msrb.mxu0 %v11000_v47  ;;  %7198 = vmatpush.bf16.msrb.mxu1 %v11192_v59  ;;  %v12562_v47 = vld [vmem:[#allocation19 + $0x2ac] sm:$0xf]  ;;  %v11312_v59 = vor.u32 %v12679_v43, %v11311_v49  ;;  %v11193_v43 = vld [vmem:[#allocation19 + $0x560] sm:$0xf0] }
 0x45c   :  { %v12646_v49 = vld [vmem:[#allocation19 + $0x54c] sm:$0xf] }
 0x45d   :  { %7210 = vmatpush.bf16.msrb.mxu2 %v11432_v46  ;;  %7224 = vmatpush.bf16.msrb.mxu3 %v11624_v45  ;;  %v10904_v46 = vor.u32 %v12577_v57, %v10903_v34  ;;  %v11096_v45 = vor.u32 %v12625_v37, %v11095_v48  ;;  %v10620_v34 = vor.u32 %v12502_v50, %v10617_v55  ;;  %v12496_v48 = vld [vmem:[#allocation19 + $0x9c] sm:$0xf]  ;;  %v10593_v37 = vld [vmem:[#allocation19 + $0xb0] sm:$0xf0] }
 0x45e   :  { %v10596_v12 = vor.u32 %v12496_v48, %v10593_v37  ;;  %v12580_v50 = vld [vmem:[#allocation19 + $0x33c] sm:$0xf]  ;;  %v10929_v55 = vld [vmem:[#allocation19 + $0x350] sm:$0xf0]  ;;  %v11625_v37 = vld [vmem:[#allocation19 + $0x8c0] sm:$0xf0] }
 0x45f   :  { %7185 = vmatpush.bf16.msrb.mxu0 %v10976_v35  ;;  %7199 = vmatpush.bf16.msrb.mxu1 %v11168_v21  ;;  %v10668_v35 = vor.u32 %v12514_v2, %v10665_v53  ;;  %v10860_v21 = vor.u32 %v12562_v47, %v10857_v63  ;;  %v11004_v2 = vor.u32 %v12598_v40, %v11001_v1  ;;  %v12592_v47 = vld [vmem:[#allocation19 + $0x39c] sm:$0xf]  ;;  %v11169_v63 = vld [vmem:[#allocation19 + $0x530] sm:$0xf0]  ;;  %v10695_v40 = vld [vmem:[#allocation19 + $0x160] sm:$0xf] }
 0x460   :  { %v11196_v53 = vor.u32 %v12646_v49, %v11193_v43  ;;  %v12524_v1 = vld [vmem:[#allocation19 + $0x174] sm:$0xf0]  ;;  %v10887_v49 = vld [vmem:[#allocation19 + $0x2e0] sm:$0xf] }
 0x461   :  { %7211 = vmatpush.bf16.msrb.mxu2 %v11408_v41  ;;  %7225 = vmatpush.bf16.msrb.mxu3 %v11600_v26  ;;  %v11479_v41 = vld [vmem:[#allocation19 + $0x788] sm:$0xf]  ;;  %v12721_v26 = vld [vmem:[#allocation19 + $0x79c] sm:$0xf0]  ;;  %v12572_v43 = vld [vmem:[#allocation19 + $0x2f4] sm:$0xf0] }
 0x462   :  { %v11480_v61 = vor.u32 %v12721_v26, %v11479_v41  ;;  %v12484_v41 = vld [vmem:[#allocation19 + $0x3c] sm:$0xf]  ;;  %v10545_v26 = vld [vmem:[#allocation19 + $0x50] sm:$0xf0] }
 0x463   :  { %7186 = vmatpush.bf16.msrb.mxu0 %v10952_v18  ;;  %7200 = vmatpush.bf16.msrb.mxu1 %v11144_v28  ;;  %v12658_v18 = vld [vmem:[#allocation19 + $0x5ac] sm:$0xf]  ;;  %v11241_v28 = vld [vmem:[#allocation19 + $0x5c0] sm:$0xf0] }
 0x464   :  { %v11244_v44 = vor.u32 %v12658_v18, %v11241_v28 }
 0x465   :  { %7212 = vmatpush.bf16.msrb.mxu2 %v11384_v8  ;;  %7226 = vmatpush.bf16.msrb.mxu3 %v11576_v5  ;;  %v12556_v8 = vld [vmem:[#allocation19 + $0x27c] sm:$0xf]  ;;  %v10833_v5 = vld [vmem:[#allocation19 + $0x290] sm:$0xf0] }
 0x466   :  { %v10836_v36 = vor.u32 %v12556_v8, %v10833_v5  ;;  %v12478_v8 = vld [vmem:[#allocation19 + $0xc] sm:$0xf]  ;;  %v10521_v5 = vld [vmem:[#allocation19 + $0x20] sm:$0xf0] }
 0x467   :  { %7187 = vmatpush.bf16.msrb.mxu0 %v10928_v54  ;;  %7201 = vmatpush.bf16.msrb.mxu1 %v11120_v31  ;;  %v12652_v54 = vld [vmem:[#allocation19 + $0x57c] sm:$0xf]  ;;  %v11217_v31 = vld [vmem:[#allocation19 + $0x590] sm:$0xf0] }
 0x469   :  { %7213 = vmatpush.bf16.msrb.mxu2 %v11360_v14  ;;  %7227 = vmatpush.bf16.msrb.mxu3 %v11552_v17  ;;  %v12550_v14 = vld [vmem:[#allocation19 + $0x24c] sm:$0xf]  ;;  %v10809_v17 = vld [vmem:[#allocation19 + $0x260] sm:$0xf0] }
 0x46a   :  { %v10812_v57 = vor.u32 %v12550_v14, %v10809_v17  ;;  %v12628_v14 = vld [vmem:[#allocation19 + $0x4bc] sm:$0xf]  ;;  %v11121_v17 = vld [vmem:[#allocation19 + $0x4d0] sm:$0xf0] }
 0x46b   :  { %7188 = vmatpush.bf16.msrb.mxu0 %v10904_v46  ;;  %7202 = vmatpush.bf16.msrb.mxu1 %v11096_v45  ;;  %v12490_v46 = vld [vmem:[#allocation19 + $0x6c] sm:$0xf]  ;;  %v10569_v45 = vld [vmem:[#allocation19 + $0x80] sm:$0xf0]  ;;  %v11124_v48 = vor.u32 %v12628_v14, %v11121_v17 }
 0x46c   :  { %v10572_v56 = vor.u32 %v12490_v46, %v10569_v45  ;;  %v12700_v46 = vld [vmem:[#allocation19 + $0x6fc] sm:$0xf]  ;;  %v10908_v45 = vor.u32 %v12574_v27, %v10905_v15 }
 0x46d   :  { %7214 = vmatpush.bf16.msrb.mxu2 %v11336_v16  ;;  %7228 = vmatpush.bf16.msrb.mxu3 %v11528_v23  ;;  %v11028_v16 = vor.u32 %v12604_v9, %v11025_v10  ;;  %v11220_v23 = vor.u32 %v12652_v54, %v11217_v31  ;;  %v11460_v9 = vor.u32 %v12712_v11, %v11457_v3  ;;  %v12706_v54 = vld [vmem:[#allocation19 + $0x72c] sm:$0xf]  ;;  %v11433_v31 = vld [vmem:[#allocation19 + $0x740] sm:$0xf0]  ;;  %v12736_v11 = vld [vmem:[#allocation19 + $0x81c] sm:$0xf] }
 0x46e   :  { %7189 = vmatmul.bf16.vlgmr.msrb.gmra.mxu0 %v13648_v29  ;;  %7203 = vmatmul.bf16.vlgmr.msrb.gmra.mxu1 %v13650_v51  ;;  %v11553_v3 = vld [vmem:[#allocation19 + $0x830] sm:$0xf0] }
 0x46f   :  { %7237 = vmatpush.bf16.msra.mxu0 %v10692_v60  ;;  %7251 = vmatpush.bf16.msra.mxu1 %v10884_v52  ;;  %v12538_v60 = vld [vmem:[#allocation19 + $0x1ec] sm:$0xf]  ;;  %v10761_v52 = vld [vmem:[#allocation19 + $0x200] sm:$0xf0]  ;;  %v11556_v17 = vor.u32 %v12736_v11, %v11553_v3  ;;  %v10527_v11 = vld [vmem:[#allocation19 + $0x10] sm:$0xf] }
 0x470   :  { %v10764_v58 = vor.u32 %v12538_v60, %v10761_v52  ;;  %v11409_v52 = vld [vmem:[#allocation19 + $0x710] sm:$0xf0]  ;;  %v12482_v3 = vld [vmem:[#allocation19 + $0x24] sm:$0xf0] }
 0x471   :  { %7215 = vmatpush.bf16.msrb.mxu2 %v11312_v59  ;;  %7229 = vmatpush.bf16.msrb.mxu3 %v11504_v30  ;;  %v10977_v59 = vld [vmem:[#allocation19 + $0x3b0] sm:$0xf0]  ;;  %v12640_v30 = vld [vmem:[#allocation19 + $0x51c] sm:$0xf] }
 0x472   :  { %v10980_v4 = vor.u32 %v12592_v47, %v10977_v59  ;;  %v11172_v38 = vor.u32 %v12640_v30, %v11169_v63  ;;  %v10696_v47 = vor.u32 %v12524_v1, %v10695_v40  ;;  %v10888_v59 = vor.u32 %v12572_v43, %v10887_v49  ;;  %v10671_v30 = vld [vmem:[#allocation19 + $0x130] sm:$0xf]  ;;  %v12518_v63 = vld [vmem:[#allocation19 + $0x144] sm:$0xf0]  ;;  %v12724_v40 = vld [vmem:[#allocation19 + $0x7bc] sm:$0xf] }
 0x473   :  { %7238 = vmatpush.bf16.msra.mxu0 %v10668_v35  ;;  %7252 = vmatpush.bf16.msra.mxu1 %v10860_v21  ;;  %v12586_v35 = vld [vmem:[#allocation19 + $0x36c] sm:$0xf]  ;;  %v10953_v21 = vld [vmem:[#allocation19 + $0x380] sm:$0xf0]  ;;  %v11505_v1 = vld [vmem:[#allocation19 + $0x7d0] sm:$0xf0] }
 0x474   :  { %v10956_v18 = vor.u32 %v12586_v35, %v10953_v21  ;;  %v10672_v35 = vor.u32 %v12518_v63, %v10671_v30  ;;  %v11079_v30 = vld [vmem:[#allocation19 + $0x460] sm:$0xf]  ;;  %v12620_v63 = vld [vmem:[#allocation19 + $0x474] sm:$0xf0] }
 0x475   :  { %7216 = vmatpush.bf16.msrb.mxu2 %v11288_v24  ;;  %7230 = vmatpush.bf16.msrb.mxu3 %v11480_v61  ;;  %v11145_v24 = vld [vmem:[#allocation19 + $0x500] sm:$0xf0]  ;;  %v10548_v61 = vor.u32 %v12484_v41, %v10545_v26  ;;  %v11412_v41 = vor.u32 %v12700_v46, %v11409_v52  ;;  %v10767_v46 = vld [vmem:[#allocation19 + $0x1f0] sm:$0xf]  ;;  %v11508_v52 = vor.u32 %v12724_v40, %v11505_v1  ;;  %v12602_v1 = vld [vmem:[#allocation19 + $0x3e4] sm:$0xf0] }
 0x476   :  { %v11148_v28 = vor.u32 %v12634_v39, %v11145_v24  ;;  %v10647_v39 = vld [vmem:[#allocation19 + $0x100] sm:$0xf]  ;;  %v12512_v24 = vld [vmem:[#allocation19 + $0x114] sm:$0xf0]  ;;  %v11007_v40 = vld [vmem:[#allocation19 + $0x3d0] sm:$0xf] }
 0x477   :  { %7239 = vmatpush.bf16.msra.mxu0 %v10644_v6  ;;  %7253 = vmatpush.bf16.msra.mxu1 %v10836_v36  ;;  %v12760_v6 = vld [vmem:[#allocation19 + $0x8dc] sm:$0xf]  ;;  %v11649_v36 = vld [vmem:[#allocation19 + $0x8f0] sm:$0xf0] }
 0x478   :  { %7217 = vmatmul.bf16.vlgmr.msrb.gmra.mxu2 %v13642_v7  ;;  %7231 = vmatmul.bf16.vlgmr.msrb.gmra.mxu3 %v13644_v22  ;;  %v11652_v10 = vor.u32 %v12760_v6, %v11649_v36  ;;  %v10623_v6 = vld [vmem:[#allocation19 + $0xd0] sm:$0xf]  ;;  %v12506_v36 = vld [vmem:[#allocation19 + $0xe4] sm:$0xf0] }
 0x479   :  { %7265 = vmatpush.bf16.msra.mxu2 %v11076_v0  ;;  %7279 = vmatpush.bf16.msra.mxu3 %v11268_v20  ;;  %v12526_v0 = vld [vmem:[#allocation19 + $0x18c] sm:$0xf]  ;;  %v10713_v20 = vld [vmem:[#allocation19 + $0x1a0] sm:$0xf0] }
 0x47b   :  { %7240 = vmatpush.bf16.msra.mxu0 %v10620_v34  ;;  %7254 = vmatpush.bf16.msra.mxu1 %v10812_v57  ;;  %v12754_v34 = vld [vmem:[#allocation19 + $0x8ac] sm:$0xf]  ;;  %v10932_v57 = vor.u32 %v12580_v50, %v10929_v55  ;;  %v10815_v50 = vld [vmem:[#allocation19 + $0x250] sm:$0xf]  ;;  %v12554_v55 = vld [vmem:[#allocation19 + $0x264] sm:$0xf0] }
 0x47d   :  { %7266 = vmatpush.bf16.msra.mxu2 %v11052_v19  ;;  %7280 = vmatpush.bf16.msra.mxu3 %v11244_v44  ;;  %v10524_v19 = vor.u32 %v12478_v8, %v10521_v5  ;;  %v10716_v44 = vor.u32 %v12526_v0, %v10713_v20  ;;  %v11388_v8 = vor.u32 %v12694_v62, %v11385_v42  ;;  %v12688_v0 = vld [vmem:[#allocation19 + $0x69c] sm:$0xf]  ;;  %v11361_v20 = vld [vmem:[#allocation19 + $0x6b0] sm:$0xf0]  ;;  %v10551_v62 = vld [vmem:[#allocation19 + $0x40] sm:$0xf] }
 0x47e   :  { %v11364_v14 = vor.u32 %v12688_v0, %v11361_v20  ;;  %v12488_v42 = vld [vmem:[#allocation19 + $0x54] sm:$0xf0]  ;;  %v12662_v20 = vld [vmem:[#allocation19 + $0x5c4] sm:$0xf0] }
 0x47f   :  { %7241 = vmatpush.bf16.msra.mxu0 %v10596_v12  ;;  %7255 = vmatpush.bf16.msra.mxu1 %v10788_v13  ;;  %v11436_v12 = vor.u32 %v12706_v54, %v11433_v31  ;;  %v11628_v13 = vor.u32 %v12754_v34, %v11625_v37  ;;  %v10624_v54 = vor.u32 %v12506_v36, %v10623_v6  ;;  %v10599_v34 = vld [vmem:[#allocation19 + $0xa0] sm:$0xf]  ;;  %v12548_v37 = vld [vmem:[#allocation19 + $0x234] sm:$0xf0] }
 0x480   :  { %v10816_v31 = vor.u32 %v12554_v55, %v10815_v50  ;;  %v11463_v6 = vld [vmem:[#allocation19 + $0x760] sm:$0xf]  ;;  %v12716_v36 = vld [vmem:[#allocation19 + $0x774] sm:$0xf0] }
 0x481   :  { %7267 = vmatpush.bf16.msra.mxu2 %v11028_v16  ;;  %7281 = vmatpush.bf16.msra.mxu3 %v11220_v23  ;;  %v12622_v16 = vld [vmem:[#allocation19 + $0x48c] sm:$0xf]  ;;  %v11097_v23 = vld [vmem:[#allocation19 + $0x4a0] sm:$0xf0]  ;;  %v11655_v50 = vld [vmem:[#allocation19 + $0x8e0] sm:$0xf] }
 0x482   :  { %v11100_v60 = vor.u32 %v12622_v16, %v11097_v23  ;;  %v12676_v16 = vld [vmem:[#allocation19 + $0x63c] sm:$0xf]  ;;  %v11313_v23 = vld [vmem:[#allocation19 + $0x650] sm:$0xf0]  ;;  %v12764_v55 = vld [vmem:[#allocation19 + $0x8f4] sm:$0xf0] }
 0x483   :  { %7242 = vmatpush.bf16.msra.mxu0 %v10572_v56  ;;  %7256 = vmatpush.bf16.msra.mxu1 %v10764_v58  ;;  %v10863_v56 = vld [vmem:[#allocation19 + $0x2b0] sm:$0xf]  ;;  %v12566_v58 = vld [vmem:[#allocation19 + $0x2c4] sm:$0xf0] }
 0x484   :  { %v10864_v21 = vor.u32 %v12566_v58, %v10863_v56 }
 0x485   :  { %7268 = vmatpush.bf16.msra.mxu2 %v11004_v2  ;;  %7282 = vmatpush.bf16.msra.mxu3 %v11196_v53  ;;  %v12748_v2 = vld [vmem:[#allocation19 + $0x87c] sm:$0xf]  ;;  %v11601_v53 = vld [vmem:[#allocation19 + $0x890] sm:$0xf0] }
 0x486   :  { %v11604_v26 = vor.u32 %v12748_v2, %v11601_v53  ;;  %v12670_v2 = vld [vmem:[#allocation19 + $0x60c] sm:$0xf]  ;;  %v11289_v53 = vld [vmem:[#allocation19 + $0x620] sm:$0xf0] }
 0x487   :  { %7243 = vmatpush.bf16.msra.mxu0 %v10548_v61  ;;  %7257 = vmatpush.bf16.msra.mxu1 %v10740_v33  ;;  %v10839_v61 = vld [vmem:[#allocation19 + $0x280] sm:$0xf]  ;;  %v12560_v33 = vld [vmem:[#allocation19 + $0x294] sm:$0xf0] }
 0x489   :  { %7269 = vmatpush.bf16.msra.mxu2 %v10980_v4  ;;  %7283 = vmatpush.bf16.msra.mxu3 %v11172_v38  ;;  %v12742_v4 = vld [vmem:[#allocation19 + $0x84c] sm:$0xf]  ;;  %v11577_v38 = vld [vmem:[#allocation19 + $0x860] sm:$0xf0] }
 0x48a   :  { %v11580_v5 = vor.u32 %v12742_v4, %v11577_v38  ;;  %v10743_v4 = vld [vmem:[#allocation19 + $0x1c0] sm:$0xf]  ;;  %v12536_v38 = vld [vmem:[#allocation19 + $0x1d4] sm:$0xf0] }
 0x48b   :  { %7244 = vmatpush.bf16.msra.mxu0 %v10524_v19  ;;  %7258 = vmatpush.bf16.msra.mxu1 %v10716_v44  ;;  %v12682_v19 = vld [vmem:[#allocation19 + $0x66c] sm:$0xf]  ;;  %v11337_v44 = vld [vmem:[#allocation19 + $0x680] sm:$0xf0]  ;;  %v10744_v0 = vor.u32 %v12536_v38, %v10743_v4 }
 0x48c   :  { %v11340_v27 = vor.u32 %v12682_v19, %v11337_v44  ;;  %v11031_v19 = vld [vmem:[#allocation19 + $0x400] sm:$0xf]  ;;  %v10528_v44 = vor.u32 %v12482_v3, %v10527_v11  ;;  %v12740_v11 = vld [vmem:[#allocation19 + $0x834] sm:$0xf0] }
 0x48d   :  { %7270 = vmatpush.bf16.msra.mxu2 %v10956_v18  ;;  %7284 = vmatpush.bf16.msra.mxu3 %v11148_v28  ;;  %v10648_v18 = vor.u32 %v12512_v24, %v10647_v39  ;;  %v10840_v28 = vor.u32 %v12560_v33, %v10839_v61  ;;  %v11080_v39 = vor.u32 %v12620_v63, %v11079_v30  ;;  %v11055_v61 = vld [vmem:[#allocation19 + $0x430] sm:$0xf]  ;;  %v12614_v33 = vld [vmem:[#allocation19 + $0x444] sm:$0xf0]  ;;  %v11175_v30 = vld [vmem:[#allocation19 + $0x520] sm:$0xf] }
 0x48e   :  { %7245 = vmatmul.bf16.vlgmr.msra.gmra.mxu0 %v13628_v32  ;;  %7259 = vmatmul.bf16.vlgmr.msra.gmra.mxu1 %v13630_v25  ;;  %v12644_v63 = vld [vmem:[#allocation19 + $0x534] sm:$0xf0] }
 0x48f   :  { %7293 = vmatpush.bf16.msrb.mxu0 %v11460_v9  ;;  %7307 = vmatpush.bf16.msrb.mxu1 %v11652_v10  ;;  %v12730_v9 = vld [vmem:[#allocation19 + $0x7ec] sm:$0xf]  ;;  %v11529_v10 = vld [vmem:[#allocation19 + $0x800] sm:$0xf0]  ;;  %v11176_v38 = vor.u32 %v12644_v63, %v11175_v30 }
 0x490   :  { %v11532_v15 = vor.u32 %v12730_v9, %v11529_v10  ;;  %v12608_v10 = vld [vmem:[#allocation19 + $0x414] sm:$0xf0] }
 0x491   :  { %7271 = vmatpush.bf16.msra.mxu2 %v10932_v57  ;;  %7285 = vmatpush.bf16.msra.mxu3 %v11124_v48  ;;  %v12500_v57 = vld [vmem:[#allocation19 + $0xb4] sm:$0xf0]  ;;  %v10791_v48 = vld [vmem:[#allocation19 + $0x220] sm:$0xf] }
 0x492   :  { %v10600_v49 = vor.u32 %v12500_v57, %v10599_v34  ;;  %v10792_v43 = vor.u32 %v12548_v37, %v10791_v48  ;;  %v11464_v34 = vor.u32 %v12716_v36, %v11463_v6  ;;  %v11656_v57 = vor.u32 %v12764_v55, %v11655_v50  ;;  %v11439_v48 = vld [vmem:[#allocation19 + $0x730] sm:$0xf]  ;;  %v12710_v37 = vld [vmem:[#allocation19 + $0x744] sm:$0xf0]  ;;  %v12584_v6 = vld [vmem:[#allocation19 + $0x354] sm:$0xf0] }
 0x493   :  { %7294 = vmatpush.bf16.msrb.mxu0 %v11436_v12  ;;  %7308 = vmatpush.bf16.msrb.mxu1 %v11628_v13  ;;  %v10575_v12 = vld [vmem:[#allocation19 + $0x70] sm:$0xf]  ;;  %v12494_v13 = vld [vmem:[#allocation19 + $0x84] sm:$0xf0]  ;;  %v11127_v36 = vld [vmem:[#allocation19 + $0x4c0] sm:$0xf] }
 0x494   :  { %v10576_v56 = vor.u32 %v12494_v13, %v10575_v12  ;;  %v11440_v12 = vor.u32 %v12710_v37, %v11439_v48  ;;  %v12632_v50 = vld [vmem:[#allocation19 + $0x4d4] sm:$0xf0]  ;;  %v12626_v37 = vld [vmem:[#allocation19 + $0x4a4] sm:$0xf0] }
 0x495   :  { %7272 = vmatpush.bf16.msra.mxu2 %v10908_v45  ;;  %7286 = vmatpush.bf16.msra.mxu3 %v11100_v60  ;;  %v12542_v45 = vld [vmem:[#allocation19 + $0x204] sm:$0xf0]  ;;  %v11316_v60 = vor.u32 %v12676_v16, %v11313_v23  ;;  %v11032_v16 = vor.u32 %v12608_v10, %v11031_v19 }
 0x496   :  { %v10768_v58 = vor.u32 %v12542_v45, %v10767_v46  ;;  %v11415_v46 = vld [vmem:[#allocation19 + $0x700] sm:$0xf]  ;;  %v12704_v45 = vld [vmem:[#allocation19 + $0x714] sm:$0xf0]  ;;  %v12686_v19 = vld [vmem:[#allocation19 + $0x684] sm:$0xf0] }
 0x497   :  { %7295 = vmatpush.bf16.msrb.mxu0 %v11412_v41  ;;  %7309 = vmatpush.bf16.msrb.mxu1 %v11604_v26  ;;  %v11271_v41 = vld [vmem:[#allocation19 + $0x5e0] sm:$0xf]  ;;  %v12668_v26 = vld [vmem:[#allocation19 + $0x5f4] sm:$0xf0] }
 0x498   :  { %7273 = vmatmul.bf16.vlgmr.msra.gmra.mxu2 %v13648_v29  ;;  %7287 = vmatmul.bf16.vlgmr.msra.gmra.mxu3 %v13650_v51  ;;  %v11272_v24 = vor.u32 %v12668_v26, %v11271_v41  ;;  %v11391_v41 = vld [vmem:[#allocation19 + $0x6d0] sm:$0xf]  ;;  %v12698_v26 = vld [vmem:[#allocation19 + $0x6e4] sm:$0xf0] }
 0x499   :  { %7321 = vmatpush.bf16.msrb.mxu2 %v10696_v47  ;;  %7335 = vmatpush.bf16.msrb.mxu3 %v10888_v59  ;;  %v12718_v47 = vld [vmem:[#allocation19 + $0x78c] sm:$0xf]  ;;  %v11481_v59 = vld [vmem:[#allocation19 + $0x7a0] sm:$0xf0] }
 0x49b   :  { %7296 = vmatpush.bf16.msrb.mxu0 %v11388_v8  ;;  %7310 = vmatpush.bf16.msrb.mxu1 %v11580_v5  ;;  %v11247_v8 = vld [vmem:[#allocation19 + $0x5b0] sm:$0xf]  ;;  %v10552_v5 = vor.u32 %v12488_v42, %v10551_v62  ;;  %v12746_v42 = vld [vmem:[#allocation19 + $0x864] sm:$0xf0]  ;;  %v13676_v48 = vpop.f32.mrf.mxu3 }
 0x49c   :  { %v11583_v62 = vld [vmem:[#allocation19 + $0x850] sm:$0xf] }
 0x49d   :  { %7322 = vmatpush.bf16.msrb.mxu2 %v10672_v35  ;;  %7336 = vmatpush.bf16.msrb.mxu3 %v10864_v21  ;;  %v11292_v35 = vor.u32 %v12670_v2, %v11289_v53  ;;  %v11484_v21 = vor.u32 %v12718_v47, %v11481_v59  ;;  %v11008_v2 = vor.u32 %v12602_v1, %v11007_v40  ;;  %v10983_v47 = vld [vmem:[#allocation19 + $0x3a0] sm:$0xf]  ;;  %v12596_v59 = vld [vmem:[#allocation19 + $0x3b4] sm:$0xf0]  ;;  %v12569_v40 = vld [vmem:[#allocation19 + $0x2e4] sm:$0xf] }
 0x49e   :  { %v10984_v4 = vor.u32 %v12596_v59, %v10983_v47  ;;  %v10889_v1 = vld [vmem:[#allocation19 + $0x2f8] sm:$0xf0]  ;;  %v10673_v47 = vld [vmem:[#allocation19 + $0x148] sm:$0xf0]  ;;  %v12563_v59 = vld [vmem:[#allocation19 + $0x2b4] sm:$0xf] }
 0x49f   :  { %7297 = vmatpush.bf16.msrb.mxu0 %v11364_v14  ;;  %7311 = vmatpush.bf16.msrb.mxu1 %v11556_v17  ;;  %v11056_v14 = vor.u32 %v12614_v33, %v11055_v61  ;;  %v11248_v17 = vor.u32 %v12662_v20, %v11247_v8  ;;  %v11392_v61 = vor.u32 %v12698_v26, %v11391_v41  ;;  %v11367_v8 = vld [vmem:[#allocation19 + $0x6a0] sm:$0xf]  ;;  %v12674_v41 = vld [vmem:[#allocation19 + $0x624] sm:$0xf0] }
 0x4a0   :  { %v11584_v33 = vor.u32 %v12746_v42, %v11583_v62  ;;  %v11559_v20 = vld [vmem:[#allocation19 + $0x820] sm:$0xf]  ;;  %v11487_v62 = vld [vmem:[#allocation19 + $0x790] sm:$0xf]  ;;  %v12722_v42 = vld [vmem:[#allocation19 + $0x7a4] sm:$0xf0] }
 0x4a1   :  { %7323 = vmatpush.bf16.msrb.mxu2 %v10648_v18  ;;  %7337 = vmatpush.bf16.msrb.mxu3 %v10840_v28  ;;  %v10719_v18 = vld [vmem:[#allocation19 + $0x190] sm:$0xf]  ;;  %v12530_v28 = vld [vmem:[#allocation19 + $0x1a4] sm:$0xf0] }
 0x4a2   :  { %v10720_v9 = vor.u32 %v12530_v28, %v10719_v18  ;;  %v10935_v28 = vld [vmem:[#allocation19 + $0x340] sm:$0xf] }
 0x4a3   :  { %7298 = vmatpush.bf16.msrb.mxu0 %v11340_v27  ;;  %7312 = vmatpush.bf16.msrb.mxu1 %v11532_v15  ;;  %v11631_v27 = vld [vmem:[#allocation19 + $0x8b0] sm:$0xf]  ;;  %v12758_v15 = vld [vmem:[#allocation19 + $0x8c4] sm:$0xf0]  ;;  %v10936_v10 = vor.u32 %v12584_v6, %v10935_v28  ;;  %v12611_v6 = vld [vmem:[#allocation19 + $0x434] sm:$0xf] }
 0x4a4   :  { %v11632_v13 = vor.u32 %v12758_v15, %v11631_v27  ;;  %v12521_v27 = vld [vmem:[#allocation19 + $0x164] sm:$0xf]  ;;  %v10697_v15 = vld [vmem:[#allocation19 + $0x178] sm:$0xf0] }
 0x4a5   :  { %7324 = vmatpush.bf16.msrb.mxu2 %v10624_v54  ;;  %7338 = vmatpush.bf16.msrb.mxu3 %v10816_v31  ;;  %v11223_v54 = vld [vmem:[#allocation19 + $0x580] sm:$0xf]  ;;  %v12656_v31 = vld [vmem:[#allocation19 + $0x594] sm:$0xf0] }
 0x4a6   :  { %v11224_v23 = vor.u32 %v12656_v31, %v11223_v54  ;;  %v11128_v54 = vor.u32 %v12632_v50, %v11127_v36  ;;  %v10911_v31 = vld [vmem:[#allocation19 + $0x310] sm:$0xf]  ;;  %v11057_v36 = vld [vmem:[#allocation19 + $0x448] sm:$0xf0]  ;;  %v12659_v50 = vld [vmem:[#allocation19 + $0x5b4] sm:$0xf] }
 0x4a7   :  { %7299 = vmatpush.bf16.msrb.mxu0 %v11316_v60  ;;  %7313 = vmatpush.bf16.msrb.mxu1 %v11508_v52  ;;  %v11607_v60 = vld [vmem:[#allocation19 + $0x880] sm:$0xf]  ;;  %v12752_v52 = vld [vmem:[#allocation19 + $0x894] sm:$0xf0] }
 0x4a9   :  { %7325 = vmatpush.bf16.msrb.mxu2 %v10600_v49  ;;  %7339 = vmatpush.bf16.msrb.mxu3 %v10792_v43  ;;  %v11199_v49 = vld [vmem:[#allocation19 + $0x550] sm:$0xf]  ;;  %v12650_v43 = vld [vmem:[#allocation19 + $0x564] sm:$0xf0] }
 0x4aa   :  { %v11200_v53 = vor.u32 %v12650_v43, %v11199_v49  ;;  %v11319_v49 = vld [vmem:[#allocation19 + $0x640] sm:$0xf]  ;;  %v12680_v43 = vld [vmem:[#allocation19 + $0x654] sm:$0xf0] }
 0x4ab   :  { %7300 = vmatpush.bf16.msrb.mxu0 %v11292_v35  ;;  %7314 = vmatpush.bf16.msrb.mxu1 %v11484_v21  ;;  %v10959_v35 = vld [vmem:[#allocation19 + $0x370] sm:$0xf]  ;;  %v12590_v21 = vld [vmem:[#allocation19 + $0x384] sm:$0xf0]  ;;  %v11320_v30 = vor.u32 %v12680_v43, %v11319_v49  ;;  %v13680_v26 = vpop.f32.mrf.mxu0  ;;  %v12497_v49 = vld [vmem:[#allocation19 + $0xa4] sm:$0xf] }
 0x4ac   :  { %v10960_v3 = vor.u32 %v12590_v21, %v10959_v35  ;;  %v12665_v35 = vld [vmem:[#allocation19 + $0x5e4] sm:$0xf]  ;;  %v11273_v21 = vld [vmem:[#allocation19 + $0x5f8] sm:$0xf0] }
 0x4ad   :  { %7326 = vmatpush.bf16.msrb.mxu2 %v10576_v56  ;;  %7340 = vmatpush.bf16.msrb.mxu3 %v10768_v58  ;;  %v11416_v56 = vor.u32 %v12704_v45, %v11415_v46  ;;  %v11608_v58 = vor.u32 %v12752_v52, %v11607_v60  ;;  %v10700_v52 = vor.u32 %v12521_v27, %v10697_v15  ;;  %v11033_v27 = vld [vmem:[#allocation19 + $0x418] sm:$0xf0]  ;;  %v12653_v15 = vld [vmem:[#allocation19 + $0x584] sm:$0xf] }
 0x4ae   :  { %7301 = vmatmul.bf16.vlgmr.msrb.gmra.mxu0 %v13642_v7  ;;  %7315 = vmatmul.bf16.vlgmr.msrb.gmra.mxu1 %v13644_v22  ;;  %v11276_v28 = vor.u32 %v12665_v35, %v11273_v21  ;;  %v10601_v43 = vld [vmem:[#allocation19 + $0xb8] sm:$0xf0]  ;;  %v12593_v35 = vld [vmem:[#allocation19 + $0x3a4] sm:$0xf] }
 0x4af   :  { %7349 = vmatpush.bf16.msra.mxu0 %v11080_v39  ;;  %7363 = vmatpush.bf16.msra.mxu1 %v11272_v24  ;;  %v11151_v39 = vld [vmem:[#allocation19 + $0x4f0] sm:$0xf]  ;;  %v12638_v24 = vld [vmem:[#allocation19 + $0x504] sm:$0xf0]  ;;  %v10985_v21 = vld [vmem:[#allocation19 + $0x3b8] sm:$0xf0] }
 0x4b0   :  { %v11152_v18 = vor.u32 %v12638_v24, %v11151_v39 }
 0x4b1   :  { %7327 = vmatpush.bf16.msrb.mxu2 %v10552_v5  ;;  %7341 = vmatpush.bf16.msrb.mxu3 %v10744_v0  ;;  %v13674_v5 = vpop.f32.mrf.mxu2  ;;  %v12692_v0 = vld [vmem:[#allocation19 + $0x6b4] sm:$0xf0] }
 0x4b2   :  { %v11368_v55 = vor.u32 %v12692_v0, %v11367_v8  ;;  %v11488_v8 = vor.u32 %v12722_v42, %v11487_v62  ;;  %v10649_v0 = vld [vmem:[#allocation19 + $0x118] sm:$0xf0]  ;;  %v10769_v62 = vld [vmem:[#allocation19 + $0x208] sm:$0xf0] }
 0x4b3   :  { %7350 = vmatpush.bf16.msra.mxu0 %v11056_v14  ;;  %7364 = vmatpush.bf16.msra.mxu1 %v11248_v17  ;;  %v11560_v14 = vor.u32 %v12740_v11, %v11559_v20  ;;  %v11343_v17 = vld [vmem:[#allocation19 + $0x670] sm:$0xf]  ;;  %v12557_v20 = vld [vmem:[#allocation19 + $0x284] sm:$0xf]  ;;  %v10841_v11 = vld [vmem:[#allocation19 + $0x298] sm:$0xf0] }
 0x4b5   :  { %7328 = vmatpush.bf16.msrb.mxu2 %v10528_v44  ;;  %7342 = vmatpush.bf16.msrb.mxu3 %v10720_v9  ;;  %v11535_v44 = vld [vmem:[#allocation19 + $0x7f0] sm:$0xf]  ;;  %v12734_v9 = vld [vmem:[#allocation19 + $0x804] sm:$0xf0] }
 0x4b7   :  { %7351 = vmatpush.bf16.msra.mxu0 %v11032_v16  ;;  %7365 = vmatpush.bf16.msra.mxu1 %v11224_v23  ;;  %v11344_v16 = vor.u32 %v12686_v19, %v11343_v17  ;;  %v11536_v23 = vor.u32 %v12734_v9, %v11535_v44  ;;  %v10844_v19 = vor.u32 %v12557_v20, %v10841_v11  ;;  %v12503_v44 = vld [vmem:[#allocation19 + $0xd4] sm:$0xf]  ;;  %v10625_v9 = vld [vmem:[#allocation19 + $0xe8] sm:$0xf0]  ;;  %v10553_v20 = vld [vmem:[#allocation19 + $0x58] sm:$0xf0] }
 0x4b8   :  { %7329 = vmatmul.bf16.vlgmr.msrb.gmra.mxu2 %v13628_v32  ;;  %7343 = vmatmul.bf16.vlgmr.msrb.gmra.mxu3 %v13630_v25  ;;  %v12533_v11 = vld [vmem:[#allocation19 + $0x1c4] sm:$0xf] }
 0x4b9   :  { %7377 = vmatpush.bf16.msra.mxu2 %v11464_v34  ;;  %7391 = vmatpush.bf16.msra.mxu3 %v11656_v57  ;;  %v12578_v34 = vld [vmem:[#allocation19 + $0x324] sm:$0xf0]  ;;  %v11103_v57 = vld [vmem:[#allocation19 + $0x490] sm:$0xf]  ;;  %v13678_v60 = vpop.f32.mrf.mxu2 }
 0x4ba   :  { %v10912_v46 = vor.u32 %v12578_v34, %v10911_v31  ;;  %v11104_v45 = vor.u32 %v12626_v37, %v11103_v57  ;;  %v11060_v34 = vor.u32 %v12611_v6, %v11057_v36  ;;  %v12605_v37 = vld [vmem:[#allocation19 + $0x404] sm:$0xf]  ;;  %v10988_v6 = vor.u32 %v12593_v35, %v10985_v21  ;;  %v10913_v35 = vld [vmem:[#allocation19 + $0x328] sm:$0xf0]  ;;  %v12623_v21 = vld [vmem:[#allocation19 + $0x494] sm:$0xf] }
 0x4bb   :  { %7352 = vmatpush.bf16.msra.mxu0 %v11008_v2  ;;  %7366 = vmatpush.bf16.msra.mxu1 %v11200_v53  ;;  %v10892_v2 = vor.u32 %v12569_v40, %v10889_v1  ;;  %v12515_v53 = vld [vmem:[#allocation19 + $0x134] sm:$0xf]  ;;  %v10628_v40 = vor.u32 %v12503_v44, %v10625_v9 }
 0x4bc   :  { %v10676_v39 = vor.u32 %v12515_v53, %v10673_v47  ;;  %v12647_v53 = vld [vmem:[#allocation19 + $0x554] sm:$0xf]  ;;  %v11201_v47 = vld [vmem:[#allocation19 + $0x568] sm:$0xf0] }
 0x4bd   :  { %7378 = vmatpush.bf16.msra.mxu2 %v11440_v12  ;;  %7392 = vmatpush.bf16.msra.mxu3 %v11632_v13  ;;  %v11511_v12 = vld [vmem:[#allocation19 + $0x7c0] sm:$0xf]  ;;  %v12728_v13 = vld [vmem:[#allocation19 + $0x7d4] sm:$0xf0] }
 0x4be   :  { %v11512_v63 = vor.u32 %v12728_v13, %v11511_v12  ;;  %v12545_v12 = vld [vmem:[#allocation19 + $0x224] sm:$0xf]  ;;  %v10793_v13 = vld [vmem:[#allocation19 + $0x238] sm:$0xf0] }
 0x4bf   :  { %7353 = vmatpush.bf16.msra.mxu0 %v10984_v4  ;;  %7367 = vmatpush.bf16.msra.mxu1 %v11176_v38  ;;  %v12617_v4 = vld [vmem:[#allocation19 + $0x464] sm:$0xf]  ;;  %v11081_v38 = vld [vmem:[#allocation19 + $0x478] sm:$0xf0] }
 0x4c1   :  { %7379 = vmatpush.bf16.msra.mxu2 %v11416_v56  ;;  %7393 = vmatpush.bf16.msra.mxu3 %v11608_v58  ;;  %v10865_v56 = vld [vmem:[#allocation19 + $0x2c8] sm:$0xf0]  ;;  %v11295_v58 = vld [vmem:[#allocation19 + $0x610] sm:$0xf]  ;;  %v13688_v31 = vpop.f32.mrf.mxu2 }
 0x4c2   :  { %v10868_v24 = vor.u32 %v12563_v59, %v10865_v56  ;;  %v12491_v56 = vld [vmem:[#allocation19 + $0x74] sm:$0xf] }
 0x4c3   :  { %7354 = vmatpush.bf16.msra.mxu0 %v10960_v3  ;;  %7368 = vmatpush.bf16.msra.mxu1 %v11152_v18  ;;  %v13682_v3 = vpop.f32.mrf.mxu3  ;;  %v11084_v18 = vor.u32 %v12617_v4, %v11081_v38  ;;  %v11204_v38 = vor.u32 %v12647_v53, %v11201_v47 }
 0x4c5   :  { %7380 = vmatpush.bf16.msra.mxu2 %v11392_v61  ;;  %7394 = vmatpush.bf16.msra.mxu3 %v11584_v33  ;;  %v12509_v61 = vld [vmem:[#allocation19 + $0x104] sm:$0xf]  ;;  %v11296_v33 = vor.u32 %v12674_v41, %v11295_v58  ;;  %v10577_v58 = vld [vmem:[#allocation19 + $0x88] sm:$0xf0]  ;;  %v12539_v41 = vld [vmem:[#allocation19 + $0x1f4] sm:$0xf] }
 0x4c6   :  { %v10652_v17 = vor.u32 %v12509_v61, %v10649_v0  ;;  %v12485_v0 = vld [vmem:[#allocation19 + $0x44] sm:$0xf] }
 0x4c7   :  { %7355 = vmatpush.bf16.msra.mxu0 %v10936_v10  ;;  %7369 = vmatpush.bf16.msra.mxu1 %v11128_v54  ;;  %v12551_v10 = vld [vmem:[#allocation19 + $0x254] sm:$0xf]  ;;  %v10817_v54 = vld [vmem:[#allocation19 + $0x268] sm:$0xf0]  ;;  %v10556_v44 = vor.u32 %v12485_v0, %v10553_v20  ;;  %v12701_v0 = vld [vmem:[#allocation19 + $0x704] sm:$0xf] }
 0x4c8   :  { %v10820_v1 = vor.u32 %v12551_v10, %v10817_v54  ;;  %v12479_v10 = vld [vmem:[#allocation19 + $0x14] sm:$0xf]  ;;  %v10529_v54 = vld [vmem:[#allocation19 + $0x28] sm:$0xf0] }
 0x4c9   :  { %7381 = vmatpush.bf16.msra.mxu2 %v11368_v55  ;;  %7395 = vmatpush.bf16.msra.mxu3 %v11560_v14  ;;  %v11249_v55 = vld [vmem:[#allocation19 + $0x5c8] sm:$0xf0]  ;;  %v13686_v14 = vpop.f32.mrf.mxu1  ;;  %v13698_v61 = vpop.f32.mrf.mxu2 }
 0x4ca   :  { %v11252_v57 = vor.u32 %v12659_v50, %v11249_v55  ;;  %v12587_v50 = vld [vmem:[#allocation19 + $0x374] sm:$0xf]  ;;  %v10961_v55 = vld [vmem:[#allocation19 + $0x388] sm:$0xf0] }
 0x4cb   :  { %7356 = vmatpush.bf16.msra.mxu0 %v10912_v46  ;;  %7370 = vmatpush.bf16.msra.mxu1 %v11104_v45  ;;  %v11036_v46 = vor.u32 %v12605_v37, %v11033_v27  ;;  %v13694_v59 = vpop.f32.mrf.mxu3  ;;  %v12713_v37 = vld [vmem:[#allocation19 + $0x764] sm:$0xf]  ;;  %v11465_v27 = vld [vmem:[#allocation19 + $0x778] sm:$0xf0] }
 0x4cc   :  { %v11468_v53 = vor.u32 %v12713_v37, %v11465_v27  ;;  %v11585_v37 = vld [vmem:[#allocation19 + $0x868] sm:$0xf0] }
 0x4cd   :  { %7382 = vmatpush.bf16.msra.mxu2 %v11344_v16  ;;  %7396 = vmatpush.bf16.msra.mxu3 %v11536_v23  ;;  %v11225_v16 = vld [vmem:[#allocation19 + $0x598] sm:$0xf0]  ;;  %v13690_v23 = vpop.f32.mrf.mxu0 }
 0x4ce   :  { %7357 = vmatmul.bf16.vlgmr.msra.gmra.mxu0 %v13648_v29  ;;  %7371 = vmatmul.bf16.vlgmr.msra.gmra.mxu1 %v13650_v51  ;;  %v11228_v45 = vor.u32 %v12653_v15, %v11225_v16  ;;  %v10964_v16 = vor.u32 %v12587_v50, %v10961_v55  ;;  %v12772_v50 = vld [vmem:[#allocation22 + $0x38] sm:$0xff] }
 0x4cf   :  { %7405 = vmatpush.bf16.msrb.mxu0 %v10700_v52  ;;  %7419 = vmatpush.bf16.msrb.mxu1 %v10892_v2  ;;  %v12599_v52 = vld [vmem:[#allocation19 + $0x3d4] sm:$0xf]  ;;  %v11009_v2 = vld [vmem:[#allocation19 + $0x3e8] sm:$0xf0]  ;;  %v12780_v55 = vld [vmem:[#allocation22 + $0x78] sm:$0xff] }
 0x4d0   :  { %v11012_v4 = vor.u32 %v12599_v52, %v11009_v2  ;;  %v10532_v52 = vor.u32 %v12479_v10, %v10529_v54  ;;  %v12695_v10 = vld [vmem:[#allocation19 + $0x6d4] sm:$0xf] }
 0x4d1   :  { %7383 = vmatpush.bf16.msra.mxu2 %v11320_v30  ;;  %7397 = vmatpush.bf16.msra.mxu3 %v11512_v63  ;;  %v10604_v30 = vor.u32 %v12497_v49, %v10601_v43  ;;  %v10796_v63 = vor.u32 %v12545_v12, %v10793_v13  ;;  %v13696_v42 = vpop.f32.mrf.mxu1  ;;  %v11657_v49 = vld [vmem:[#allocation19 + $0x8f8] sm:$0xf0]  ;;  %v12581_v43 = vld [vmem:[#allocation19 + $0x344] sm:$0xf] }
 0x4d2   :  { %v10937_v12 = vld [vmem:[#allocation19 + $0x358] sm:$0xf0]  ;;  %v12629_v13 = vld [vmem:[#allocation19 + $0x4c4] sm:$0xf] }
 0x4d3   :  { %7406 = vmatpush.bf16.msrb.mxu0 %v10676_v39  ;;  %7420 = vmatpush.bf16.msrb.mxu1 %v10868_v24  ;;  %v12641_v39 = vld [vmem:[#allocation19 + $0x524] sm:$0xf]  ;;  %v11177_v24 = vld [vmem:[#allocation19 + $0x538] sm:$0xf0]  ;;  %v13702_v15 = vpop.f32.mrf.mxu3 }
 0x4d4   :  { %v11180_v36 = vor.u32 %v12641_v39, %v11177_v24  ;;  %v11105_v39 = vld [vmem:[#allocation19 + $0x4a8] sm:$0xf0] }
 0x4d5   :  { %7384 = vmatpush.bf16.msra.mxu2 %v11296_v33  ;;  %7398 = vmatpush.bf16.msra.mxu3 %v11488_v8  ;;  %v10580_v33 = vor.u32 %v12491_v56, %v10577_v58  ;;  %v10772_v8 = vor.u32 %v12539_v41, %v10769_v62  ;;  %v13706_v56 = vpop.f32.mrf.mxu2  ;;  %v10940_v58 = vor.u32 %v12581_v43, %v10937_v12  ;;  %v12755_v62 = vld [vmem:[#allocation19 + $0x8b4] sm:$0xf]  ;;  %v12689_v43 = vld [vmem:[#allocation19 + $0x6a4] sm:$0xf] }
 0x4d7   :  { %7407 = vmatpush.bf16.msrb.mxu0 %v10652_v17  ;;  %7421 = vmatpush.bf16.msrb.mxu1 %v10844_v19  ;;  %v12635_v17 = vld [vmem:[#allocation19 + $0x4f4] sm:$0xf]  ;;  %v11153_v19 = vld [vmem:[#allocation19 + $0x508] sm:$0xf0] }
 0x4d8   :  { %7385 = vmatmul.bf16.vlgmr.msra.gmra.mxu2 %v13642_v7  ;;  %7399 = vmatmul.bf16.vlgmr.msra.gmra.mxu3 %v13644_v22 }
 0x4d9   :  { %7433 = vmatpush.bf16.msrb.mxu2 %v11084_v18  ;;  %7447 = vmatpush.bf16.msrb.mxu3 %v11276_v28  ;;  %v10745_v18 = vld [vmem:[#allocation19 + $0x1d8] sm:$0xf0]  ;;  %v13700_v28 = vpop.f32.mrf.mxu0 }
 0x4da   :  { %v10748_v9 = vor.u32 %v12533_v11, %v10745_v18  ;;  %v11108_v11 = vor.u32 %v12623_v21, %v11105_v39  ;;  %v11417_v18 = vld [vmem:[#allocation19 + $0x718] sm:$0xf0]  ;;  %v12769_v39 = vld [vmem:[#allocation22 + $0x20] sm:$0xff] }
 0x4db   :  { %7408 = vmatpush.bf16.msrb.mxu0 %v10628_v40  ;;  %7422 = vmatpush.bf16.msrb.mxu1 %v10820_v1  ;;  %v11156_v40 = vor.u32 %v12635_v17, %v11153_v19  ;;  %v12761_v1 = vld [vmem:[#allocation19 + $0x8e4] sm:$0xf]  ;;  %v13710_v17 = vpop.f32.mrf.mxu3 }
 0x4dc   :  { %v11660_v47 = vor.u32 %v12761_v1, %v11657_v49  ;;  %v13712_v19 = vld [vmem:[#allocation20] sm:$0x3f] }
 0x4dd   :  { %7434 = vmatpush.bf16.msrb.mxu2 %v11060_v34  ;;  %7448 = vmatpush.bf16.msrb.mxu3 %v11252_v57  ;;  %v12527_v34 = vld [vmem:[#allocation19 + $0x194] sm:$0xf]  ;;  %v10721_v57 = vld [vmem:[#allocation19 + $0x1a8] sm:$0xf0]  ;;  %v5533_v27 = vperm.slane %v13712_v19, 0 }
 0x4de   :  { %v10724_v2 = vor.u32 %v12527_v34, %v10721_v57  ;;  %v11393_v34 = vld [vmem:[#allocation19 + $0x6e8] sm:$0xf0]  ;;  %v12743_v57 = vld [vmem:[#allocation19 + $0x854] sm:$0xf] }
 0x4df   :  { %7409 = vmatpush.bf16.msrb.mxu0 %v10604_v30  ;;  %7423 = vmatpush.bf16.msrb.mxu1 %v10796_v63  ;;  %v12707_v30 = vld [vmem:[#allocation19 + $0x734] sm:$0xf]  ;;  %v11441_v63 = vld [vmem:[#allocation19 + $0x748] sm:$0xf0]  ;;  %v11396_v1 = vor.u32 %v12695_v10, %v11393_v34  ;;  %v11588_v49 = vor.u32 %v12743_v57, %v11585_v37  ;;  %v6997_v12 = vadd.f32 %v13678_v60, %v5533_v27 }
 0x4e0   :  { %v12671_v34 = vld [vmem:[#allocation19 + $0x614] sm:$0xf]  ;;  %v11297_v37 = vld [vmem:[#allocation19 + $0x628] sm:$0xf0] }
 0x4e1   :  { %7435 = vmatpush.bf16.msrb.mxu2 %v11036_v46  ;;  %7449 = vmatpush.bf16.msrb.mxu3 %v11228_v45  ;;  %v11129_v46 = vld [vmem:[#allocation19 + $0x4d8] sm:$0xf0]  ;;  %v13704_v45 = vpop.f32.mrf.mxu1  ;;  %v7080_v24 = vpop.f32.mrf.mxu0 }
 0x4e2   :  { %v11132_v41 = vor.u32 %v12629_v13, %v11129_v46  ;;  %v11369_v46 = vld [vmem:[#allocation19 + $0x6b8] sm:$0xf0] }
 0x4e3   :  { %7410 = vmatpush.bf16.msrb.mxu0 %v10580_v33  ;;  %7424 = vmatpush.bf16.msrb.mxu1 %v10772_v8  ;;  %v11444_v33 = vor.u32 %v12707_v30, %v11441_v63  ;;  %v12778_v30 = vld [vmem:[#allocation22 + $0x68] sm:$0xff]  ;;  %v6995_v63 = vadd.f32 %v13674_v5, %v5533_v27  ;;  %v11372_v60 = vor.u32 %v12689_v43, %v11369_v46 }
 0x4e5   :  { %7436 = vmatpush.bf16.msrb.mxu2 %v11012_v4  ;;  %7450 = vmatpush.bf16.msrb.mxu3 %v11204_v38  ;;  %v11633_v4 = vld [vmem:[#allocation19 + $0x8c8] sm:$0xf0]  ;;  %v12575_v38 = vld [vmem:[#allocation19 + $0x314] sm:$0xf]  ;;  %v7009_v5 = vadd.f32 %v13676_v48, %v6995_v63  ;;  %v12768_v48 = vld [vmem:[#allocation22 + $0x18] sm:$0xff] }
 0x4e6   :  { %v11636_v8 = vor.u32 %v12755_v62, %v11633_v4  ;;  %v10916_v20 = vor.u32 %v12575_v38, %v10913_v35  ;;  %v12683_v62 = vld [vmem:[#allocation19 + $0x674] sm:$0xf]  ;;  %v11345_v4 = vld [vmem:[#allocation19 + $0x688] sm:$0xf0] }
 0x4e7   :  { %7411 = vmatpush.bf16.msrb.mxu0 %v10556_v44  ;;  %7425 = vmatpush.bf16.msrb.mxu1 %v10748_v9  ;;  %v11420_v44 = vor.u32 %v12701_v0, %v11417_v18  ;;  %v12731_v38 = vld [vmem:[#allocation19 + $0x7f4] sm:$0xf]  ;;  %v11537_v35 = vld [vmem:[#allocation19 + $0x808] sm:$0xf0]  ;;  %v7023_v18 = vadd.f32 %v13680_v26, %v7009_v5 }
 0x4e8   :  { %v12794_v5 = vld [vmem:[#allocation22 + $0xe8] sm:$0xff] }
 0x4e9   :  { %7437 = vmatpush.bf16.msrb.mxu2 %v10988_v6  ;;  %7451 = vmatpush.bf16.msrb.mxu3 %v11180_v36  ;;  %v12749_v6 = vld [vmem:[#allocation19 + $0x884] sm:$0xf]  ;;  %v11609_v36 = vld [vmem:[#allocation19 + $0x898] sm:$0xf0]  ;;  %v7094_v54 = vpop.f32.mrf.mxu1  ;;  %v13717_v13 = vpop.f32.mrf.mxu0  ;;  %v7037_v26 = vadd.f32 %v13686_v14, %v7023_v18 }
 0x4ea   :  { %v11612_v9 = vor.u32 %v12749_v6, %v11609_v36  ;;  %v11321_v6 = vld [vmem:[#allocation19 + $0x658] sm:$0xf0]  ;;  %v12725_v36 = vld [vmem:[#allocation19 + $0x7c4] sm:$0xf] }
 0x4eb   :  { %7412 = vmatpush.bf16.msrb.mxu0 %v10532_v52  ;;  %7426 = vmatpush.bf16.msrb.mxu1 %v10724_v2  ;;  %v12737_v52 = vld [vmem:[#allocation19 + $0x824] sm:$0xf]  ;;  %v11561_v2 = vld [vmem:[#allocation19 + $0x838] sm:$0xf0]  ;;  %v7051_v14 = vadd.f32 %v13688_v31, %v7037_v26  ;;  %v12782_v26 = vld [vmem:[#allocation22 + $0x88] sm:$0xff] }
 0x4ec   :  { %v12787_v31 = vld [vmem:[#allocation22 + $0xb0] sm:$0xff] }
 0x4ed   :  { %7438 = vmatpush.bf16.msrb.mxu2 %v10964_v16  ;;  %7452 = vmatpush.bf16.msrb.mxu3 %v11156_v40  ;;  %v5534_v16 = vperm.slane %v13712_v19, 1  ;;  %v7108_v40 = vpop.f32.mrf.mxu2 }
 0x4ee   :  { %7413 = vmatmul.bf16.vlgmr.msrb.gmra.mxu0 %v13628_v32  ;;  %7427 = vmatmul.bf16.vlgmr.msrb.gmra.mxu1 %v13630_v25  ;;  %v12771_v32 = vld [vmem:[#allocation22 + $0x30] sm:$0xff] }
 0x4ef   :  { %7461 = vmatpush.bf16.msra.mxu0 %v11468_v53  ;;  %7475 = vmatpush.bf16.msra.mxu1 %v11660_v47  ;;  %v12779_v25 = vld [vmem:[#allocation22 + $0x70] sm:$0xff]  ;;  %v7081_v53 = vadd.f32 %v7080_v24, %v5534_v16  ;;  %v12770_v47 = vld [vmem:[#allocation22 + $0x28] sm:$0xff]  ;;  %v12777_v24 = vld [vmem:[#allocation22 + $0x60] sm:$0xff] }
 0x4f1   :  { %7439 = vmatpush.bf16.msrb.mxu2 %v10940_v58  ;;  %7453 = vmatpush.bf16.msrb.mxu3 %v11132_v41  ;;  %v7079_v58 = vadd.f32 %v13700_v28, %v5534_v16  ;;  %v11564_v41 = vor.u32 %v12737_v52, %v11561_v2  ;;  %v7095_v21 = vadd.f32 %v7094_v54, %v7081_v53  ;;  %v12767_v16 = vld [vmem:[#allocation22 + $0x10] sm:$0xff]  ;;  %v12788_v52 = vld [vmem:[#allocation22 + $0xb8] sm:$0xff] }
 0x4f2   :  { %v12796_v2 = vld [vmem:[#allocation22 + $0xf8] sm:$0xff] }
 0x4f3   :  { %7462 = vmatpush.bf16.msra.mxu0 %v11444_v33  ;;  %7476 = vmatpush.bf16.msra.mxu1 %v11636_v8  ;;  %v7093_v33 = vadd.f32 %v13704_v45, %v7079_v58  ;;  %v7148_v8 = vpop.f32.mrf.mxu1  ;;  %v7065_v58 = vadd.f32 %v13694_v59, %v7051_v14 }
 0x4f5   :  { %7440 = vmatpush.bf16.msrb.mxu2 %v10916_v20  ;;  %7454 = vmatpush.bf16.msrb.mxu3 %v11108_v11  ;;  %v13727_v0 = vpop.f32.mrf.mxu2  ;;  %v11540_v20 = vor.u32 %v12731_v38, %v11537_v35  ;;  %v12677_v11 = vld [vmem:[#allocation19 + $0x644] sm:$0xf]  ;;  %v7489_v38 = vmax.f32 %v7065_v58, 0.0 }
 0x4f6   :  { %v11324_v10 = vor.u32 %v12677_v11, %v11321_v6 }
 0x4f7   :  { %7463 = vmatpush.bf16.msra.mxu0 %v11420_v44  ;;  %7477 = vmatpush.bf16.msra.mxu1 %v11612_v9  ;;  %v7107_v44 = vadd.f32 %v13706_v56, %v7093_v33  ;;  %v7136_v9 = vpop.f32.mrf.mxu0 }
 0x4f8   :  { %7441 = vmatmul.bf16.vlgmr.msrb.gmra.mxu2 %v13648_v29  ;;  %7455 = vmatmul.bf16.vlgmr.msrb.gmra.mxu3 %v13650_v51  ;;  %v7011_v29 = vadd.f32 %v13682_v3, %v6997_v12  ;;  %v7122_v51 = vpop.f32.mrf.mxu3  ;;  %v11348_v3 = vor.u32 %v12683_v62, %v11345_v4  ;;  %v12773_v62 = vld [vmem:[#allocation22 + $0x40] sm:$0xff]  ;;  %v5535_v4 = vperm.slane %v13712_v19, 2 }
 0x4f9   :  { %7895 = vmatpush.bf16.msra.mxu2 %v12772_v50  ;;  %7909 = vmatpush.bf16.msra.mxu3 %v12780_v55  ;;  %v11513_v50 = vld [vmem:[#allocation19 + $0x7d8] sm:$0xf0]  ;;  %v7109_v55 = vadd.f32 %v7108_v40, %v7095_v21  ;;  %v7121_v40 = vadd.f32 %v13710_v17, %v7107_v44  ;;  %v12786_v21 = vld [vmem:[#allocation22 + $0xa8] sm:$0xff] }
 0x4fa   :  { %v7025_v28 = vadd.f32 %v13690_v23, %v7011_v29  ;;  %v12776_v23 = vld [vmem:[#allocation22 + $0x58] sm:$0xff]  ;;  %v11516_v54 = vor.u32 %v12725_v36, %v11513_v50 }
 0x4fb   :  { %7464 = vmatpush.bf16.msra.mxu0 %v11396_v1  ;;  %7478 = vmatpush.bf16.msra.mxu1 %v11588_v49  ;;  %v7123_v27 = vadd.f32 %v7122_v51, %v7109_v55  ;;  %v11300_v49 = vor.u32 %v12671_v34, %v11297_v37  ;;  %v7150_v12 = vpop.f32.mrf.mxu1  ;;  %v7135_v53 = vadd.f32 %v13717_v13, %v7121_v40  ;;  %v12765_v13 = vld [vmem:[#allocation22] sm:$0xff]  ;;  %v12784_v36 = vld [vmem:[#allocation22 + $0x98] sm:$0xff]  ;;  %v12790_v37 = vld [vmem:[#allocation22 + $0xc8] sm:$0xff] }
 0x4fc   :  { %v7039_v45 = vadd.f32 %v13696_v42, %v7025_v28  ;;  %v12775_v42 = vld [vmem:[#allocation22 + $0x50] sm:$0xff]  ;;  %v12792_v55 = vld [vmem:[#allocation22 + $0xd8] sm:$0xff] }
 0x4fd   :  { %7896 = vmatpush.bf16.msra.mxu2 %v12771_v32  ;;  %7910 = vmatpush.bf16.msra.mxu3 %v12779_v25  ;;  %v12719_v32 = vld [vmem:[#allocation19 + $0x794] sm:$0xf]  ;;  %v11489_v25 = vld [vmem:[#allocation19 + $0x7a8] sm:$0xf0]  ;;  %v7137_v1 = vadd.f32 %v7136_v9, %v7123_v27  ;;  %v7164_v46 = vpop.f32.mrf.mxu2 }
 0x4fe   :  { %v7053_v56 = vadd.f32 %v13698_v61, %v7039_v45  ;;  %v11492_v43 = vor.u32 %v12719_v32, %v11489_v25  ;;  %v12783_v45 = vld [vmem:[#allocation22 + $0x90] sm:$0xff] }
 0x4ff   :  { %7465 = vmatpush.bf16.msra.mxu0 %v11372_v60  ;;  %7479 = vmatpush.bf16.msra.mxu1 %v11564_v41  ;;  %v7190_v17 = vpop.f32.mrf.mxu0  ;;  %v7151_v63 = vadd.f32 %v7150_v12, %v7137_v1  ;;  %v12795_v60 = vld [vmem:[#allocation22 + $0xf0] sm:$0xff]  ;;  %v7149_v41 = vadd.f32 %v7148_v8, %v7135_v53 }
 0x500   :  { %v13733_v57 = vpop.f32.mrf.mxu3  ;;  %v7067_v61 = vadd.f32 %v13702_v15, %v7053_v56  ;;  %v12789_v56 = vld [vmem:[#allocation22 + $0xc0] sm:$0xff] }
 0x501   :  { %7897 = vmatpush.bf16.msra.mxu2 %v12770_v47  ;;  %7911 = vmatpush.bf16.msra.mxu3 %v12778_v30  ;;  %v12766_v47 = vld [vmem:[#allocation22 + $0x8] sm:$0xff]  ;;  %v7496_v15 = vmax.f32 %v7151_v63, 0.0 }
 0x502   :  { %v12774_v30 = vld [vmem:[#allocation22 + $0x48] sm:$0xff]  ;;  %v7495_v29 = vmax.f32 %v7067_v61, 0.0 }
 0x503   :  { %7466 = vmatpush.bf16.msra.mxu0 %v11348_v3  ;;  %7480 = vmatpush.bf16.msra.mxu1 %v11540_v20  ;;  %v7204_v59 = vpop.f32.mrf.mxu1  ;;  %v12793_v20 = vld [vmem:[#allocation22 + $0xe0] sm:$0xff] }
 0x504   :  { %v7501_v28 = vpack.c.bf16 %v7495_v29, %v7489_v38 }
 0x505   :  { %7898 = vmatpush.bf16.msra.mxu2 %v12769_v39  ;;  %7912 = vmatpush.bf16.msra.mxu3 %v12777_v24  ;;  %v7218_v35 = vpop.f32.mrf.mxu2  ;;  %v7490_v39 = vmax.f32 %v7149_v41, 0.0  ;;  %v7165_v24 = vadd.f32 %v7164_v46, %v5535_v4  ;;  %v12804_v46 = vld [vmem:[#allocation22 + $0x138] sm:$0xff] }
 0x507   :  { %7467 = vmatpush.bf16.msra.mxu0 %v11324_v10  ;;  %7481 = vmatpush.bf16.msra.mxu1 %v11516_v54  ;;  %v7502_v33 = vpack.c.bf16 %v7496_v15, %v7490_v39  ;;  %v7192_v8 = vpop.f32.mrf.mxu0  ;;  %v12791_v10 = vld [vmem:[#allocation22 + $0xd0] sm:$0xff] }
 0x508   :  { %v7178_v51 = vpop.f32.mrf.mxu3 }
 0x509   :  { %7899 = vmatpush.bf16.msra.mxu2 %v12768_v48  ;;  %7913 = vmatpush.bf16.msra.mxu3 %v12776_v23  ;;  %v7179_v3 = vadd.f32 %v7178_v51, %v7165_v24  ;;  %v12801_v51 = vld [vmem:[#allocation22 + $0x120] sm:$0xff] }
 0x50b   :  { %7468 = vmatpush.bf16.msra.mxu0 %v11300_v49  ;;  %7482 = vmatpush.bf16.msra.mxu1 %v11492_v43  ;;  %v7193_v6 = vadd.f32 %v7192_v8, %v7179_v3  ;;  %v7206_v48 = vpop.f32.mrf.mxu1  ;;  %v5536_v49 = vperm.slane %v13712_v19, 3  ;;  %v12797_v8 = vld [vmem:[#allocation22 + $0x100] sm:$0xff] }
 0x50d   :  { %7900 = vmatpush.bf16.msra.mxu2 %v12767_v16  ;;  %7914 = vmatpush.bf16.msra.mxu3 %v12775_v42  ;;  %v7220_v23 = vpop.f32.mrf.mxu2  ;;  %v12781_v16 = vld [vmem:[#allocation22 + $0x80] sm:$0xff] }
 0x50e   :  { %7469 = vmatmul.bf16.vlgmr.msra.gmra.mxu0 %v13642_v7  ;;  %7483 = vmatmul.bf16.vlgmr.msra.gmra.mxu1 %v13644_v22  ;;  %v7163_v7 = vadd.f32 %v13727_v0, %v5535_v4  ;;  %v12785_v22 = vld [vmem:[#allocation22 + $0xa0] sm:$0xff]  ;;  %v7207_v0 = vadd.f32 %v7206_v48, %v7193_v6 }
 0x50f   :  { %7923 = vmatpush.bf16.msrb.mxu0 %v12788_v52  ;;  %7937 = vmatpush.bf16.msrb.mxu1 %v12796_v2  ;;  %v7246_v32 = vpop.f32.mrf.mxu0 }
 0x510   :  { %v7232_v11 = vpop.f32.mrf.mxu3  ;;  %v7177_v18 = vadd.f32 %v13733_v57, %v7163_v7  ;;  %v7221_v9 = vadd.f32 %v7220_v23, %v7207_v0  ;;  %v7247_v52 = vadd.f32 %v7246_v32, %v5536_v49  ;;  %v12798_v7 = vld [vmem:[#allocation22 + $0x108] sm:$0xff]  ;;  %v12812_v23 = vld [vmem:[#allocation22 + $0x178] sm:$0xff] }
 0x511   :  { %7901 = vmatpush.bf16.msra.mxu2 %v12766_v47  ;;  %7915 = vmatpush.bf16.msra.mxu3 %v12774_v30  ;;  %v12803_v30 = vld [vmem:[#allocation22 + $0x130] sm:$0xff] }
 0x512   :  { %v7191_v50 = vadd.f32 %v7190_v17, %v7177_v18 }
 0x513   :  { %7924 = vmatpush.bf16.msrb.mxu0 %v12787_v31  ;;  %7938 = vmatpush.bf16.msrb.mxu1 %v12795_v60  ;;  %v7260_v25 = vpop.f32.mrf.mxu1  ;;  %v12802_v31 = vld [vmem:[#allocation22 + $0x128] sm:$0xff] }
 0x514   :  { %v7205_v44 = vadd.f32 %v7204_v59, %v7191_v50  ;;  %v7261_v53 = vadd.f32 %v7260_v25, %v7247_v52  ;;  %v12806_v52 = vld [vmem:[#allocation22 + $0x148] sm:$0xff] }
 0x515   :  { %7902 = vmatpush.bf16.msra.mxu2 %v12765_v13  ;;  %7916 = vmatpush.bf16.msra.mxu3 %v12773_v62 }
 0x516   :  { %v7219_v54 = vadd.f32 %v7218_v35, %v7205_v44 }
 0x517   :  { %7925 = vmatpush.bf16.msrb.mxu0 %v12786_v21  ;;  %7939 = vmatpush.bf16.msrb.mxu1 %v12794_v5  ;;  %v7248_v14 = vpop.f32.mrf.mxu0  ;;  %v12800_v21 = vld [vmem:[#allocation22 + $0x118] sm:$0xff] }
 0x518   :  { %7903 = vmatmul.bf16.vlgmr.msra.gmra.mxu2 %v7501_v28  ;;  %7917 = vmatmul.bf16.vlgmr.msra.gmra.mxu3 %v7502_v33  ;;  %v7234_v34 = vpop.f32.mrf.mxu3  ;;  %v7233_v27 = vadd.f32 %v7232_v11, %v7219_v54  ;;  %v7249_v47 = vadd.f32 %v7248_v14, %v5536_v49  ;;  %v12799_v28 = vld [vmem:[#allocation22 + $0x110] sm:$0xff]  ;;  %v12808_v14 = vld [vmem:[#allocation22 + $0x158] sm:$0xff] }
 0x519   :  { %v7235_v57 = vadd.f32 %v7234_v34, %v7221_v9  ;;  %7951 = vmatpush.bf16.msrb.mxu2 %v12804_v46  ;;  %7965 = vmatpush.bf16.msrb.mxu3 %v12812_v23  ;;  %v12807_v46 = vld [vmem:[#allocation22 + $0x150] sm:$0xff] }
 0x51a   :  { %v7491_v40 = vmax.f32 %v7233_v27, 0.0 }
 0x51b   :  { %7926 = vmatpush.bf16.msrb.mxu0 %v12785_v22  ;;  %7940 = vmatpush.bf16.msrb.mxu1 %v12793_v20  ;;  %v7497_v42 = vmax.f32 %v7235_v57, 0.0  ;;  %v7274_v43 = vpop.f32.mrf.mxu2  ;;  %v7262_v12 = vpop.f32.mrf.mxu1  ;;  %v5537_v20 = vperm.slane %v13712_v19, 4 }
 0x51c   :  { %v7275_v61 = vadd.f32 %v7274_v43, %v7261_v53  ;;  %v7263_v60 = vadd.f32 %v7262_v12, %v7249_v47 }
 0x51d   :  { %v7503_v1 = vpack.c.bf16 %v7497_v42, %v7491_v40  ;;  %7952 = vmatpush.bf16.msrb.mxu2 %v12803_v30  ;;  %v5538_v30 = vperm.slane %v13712_v19, 5 }
 0x51f   :  { %7927 = vmatpush.bf16.msrb.mxu0 %v12784_v36  ;;  %7941 = vmatpush.bf16.msrb.mxu1 %v12792_v55 }
 0x520   :  { %v7288_v2 = vpop.f32.mrf.mxu3 }
 0x521   :  { %v7289_v41 = vadd.f32 %v7288_v2, %v7275_v61  ;;  %7953 = vmatpush.bf16.msrb.mxu2 %v12802_v31  ;;  %v12805_v2 = vld [vmem:[#allocation22 + $0x140] sm:$0xff] }
 0x523   :  { %7928 = vmatpush.bf16.msrb.mxu0 %v12783_v45  ;;  %7942 = vmatpush.bf16.msrb.mxu1 %v12791_v10  ;;  %v7276_v17 = vpop.f32.mrf.mxu2  ;;  %v12811_v10 = vld [vmem:[#allocation22 + $0x170] sm:$0xff] }
 0x524   :  { %v7277_v13 = vadd.f32 %v7276_v17, %v7263_v60  ;;  %7966 = vmatpush.bf16.msrb.mxu3 %v12811_v10 }
 0x525   :  { %7954 = vmatpush.bf16.msrb.mxu2 %v12801_v51 }
 0x527   :  { %7929 = vmatpush.bf16.msrb.mxu0 %v12782_v26  ;;  %7943 = vmatpush.bf16.msrb.mxu1 %v12790_v37  ;;  %v12810_v37 = vld [vmem:[#allocation22 + $0x168] sm:$0xff] }
 0x528   :  { %v7290_v29 = vpop.f32.mrf.mxu3  ;;  %7967 = vmatpush.bf16.msrb.mxu3 %v12810_v37 }
 0x529   :  { %v7291_v15 = vadd.f32 %v7290_v29, %v7277_v13  ;;  %7955 = vmatpush.bf16.msrb.mxu2 %v12800_v21 }
 0x52b   :  { %7930 = vmatpush.bf16.msrb.mxu0 %v12781_v16  ;;  %7944 = vmatpush.bf16.msrb.mxu1 %v12789_v56  ;;  %v7302_v63 = vpop.f32.mrf.mxu0  ;;  %v7316_v58 = vpop.f32.mrf.mxu1  ;;  %v12809_v16 = vld [vmem:[#allocation22 + $0x160] sm:$0xff] }
 0x52c   :  { %v7303_v62 = vadd.f32 %v7302_v63, %v7289_v41  ;;  %7968 = vmatpush.bf16.msrb.mxu3 %v12809_v16 }
 0x52d   :  { %7956 = vmatpush.bf16.msrb.mxu2 %v12799_v28 }
 0x52e   :  { %7931 = vmatmul.bf16.vlgmr.msrb.gmra.mxu0 %v7503_v1  ;;  %v7317_v38 = vadd.f32 %v7316_v58, %v7303_v62 }
 0x530   :  { %v7492_v24 = vmax.f32 %v7317_v38, 0.0  ;;  %7969 = vmatpush.bf16.msrb.mxu3 %v12808_v14 }
 0x531   :  { %7957 = vmatpush.bf16.msrb.mxu2 %v12798_v7 }
 0x533   :  { %v7304_v4 = vpop.f32.mrf.mxu0  ;;  %v7318_v35 = vpop.f32.mrf.mxu1 }
 0x534   :  { %v7305_v59 = vadd.f32 %v7304_v4, %v7291_v15  ;;  %7970 = vmatpush.bf16.msrb.mxu3 %v12807_v46 }
 0x535   :  { %7958 = vmatpush.bf16.msrb.mxu2 %v12797_v8 }
 0x536   :  { %v7319_v39 = vadd.f32 %v7318_v35, %v7305_v59 }
 0x538   :  { %v7498_v5 = vmax.f32 %v7319_v39, 0.0  ;;  %7971 = vmatpush.bf16.msrb.mxu3 %v12806_v52 }
 0x53a   :  { %v7504_v33 = vpack.c.bf16 %v7498_v5, %v7492_v24 }
 0x53b   :  { %v7330_v22 = vpop.f32.mrf.mxu2  ;;  %v7344_v3 = vpop.f32.mrf.mxu3 }
 0x53c   :  { %7945 = vmatmul.bf16.vlgmr.msrb.gmra.mxu1 %v7504_v33  ;;  %v7331_v36 = vadd.f32 %v7330_v22, %v5537_v20  ;;  %7972 = vmatpush.bf16.msrb.mxu3 %v12805_v2 }
 0x53e   :  { %v7345_v55 = vadd.f32 %v7344_v3, %v7331_v36 }
 0x543   :  { %v7332_v18 = vpop.f32.mrf.mxu2  ;;  %v7346_v6 = vpop.f32.mrf.mxu3 }
 0x544   :  { %v7333_v48 = vadd.f32 %v7332_v18, %v5537_v20  ;;  %v12834_v20 = vld [vmem:[#allocation23] ss:$0 sm:$0xff] }
 0x546   :  { %v7347_v54 = vadd.f32 %v7346_v6, %v7333_v48 }
 0x54b   :  { %v7358_v11 = vpop.f32.mrf.mxu0  ;;  %v7372_v50 = vpop.f32.mrf.mxu1 }
 0x54c   :  { %v7359_v0 = vadd.f32 %v7358_v11, %v7345_v55 }
 0x54e   :  { %v7373_v34 = vadd.f32 %v7372_v50, %v7359_v0 }
 0x553   :  { %v7360_v45 = vpop.f32.mrf.mxu0  ;;  %v7374_v32 = vpop.f32.mrf.mxu1 }
 0x554   :  { %v7361_v26 = vadd.f32 %v7360_v45, %v7347_v54 }
 0x556   :  { %v7375_v25 = vadd.f32 %v7374_v32, %v7361_v26 }
 0x55b   :  { %v7386_v44 = vpop.f32.mrf.mxu2  ;;  %v7400_v9 = vpop.f32.mrf.mxu3 }
 0x55c   :  { %v7387_v57 = vadd.f32 %v7386_v44, %v7373_v34 }
 0x55e   :  { %v7401_v42 = vadd.f32 %v7400_v9, %v7387_v57 }
 0x560   :  { %v7493_v49 = vmax.f32 %v7401_v42, 0.0 }
 0x563   :  { %v7388_v27 = vpop.f32.mrf.mxu2  ;;  %v7402_v40 = vpop.f32.mrf.mxu3 }
 0x564   :  { %v7389_v56 = vadd.f32 %v7388_v27, %v7375_v25 }
 0x566   :  { %v7403_v1 = vadd.f32 %v7402_v40, %v7389_v56 }
 0x568   :  { %v7499_v43 = vmax.f32 %v7403_v1, 0.0 }
 0x56a   :  { %v7505_v12 = vpack.c.bf16 %v7499_v43, %v7493_v49 }
 0x56b   :  { %v7414_v53 = vpop.f32.mrf.mxu0  ;;  %v7428_v47 = vpop.f32.mrf.mxu1 }
 0x56c   :  { %7959 = vmatmul.bf16.vlgmr.msrb.gmra.mxu2 %v7505_v12  ;;  %v7415_v58 = vadd.f32 %v7414_v53, %v5538_v30 }
 0x56e   :  { %v7429_v60 = vadd.f32 %v7428_v47, %v7415_v58 }
 0x573   :  { %v7416_v17 = vpop.f32.mrf.mxu0  ;;  %v7430_v63 = vpop.f32.mrf.mxu1 }
 0x574   :  { %v7417_v41 = vadd.f32 %v7416_v17, %v5538_v30 }
 0x576   :  { %v7431_v15 = vadd.f32 %v7430_v63, %v7417_v41 }
 0x57b   :  { %v7442_v61 = vpop.f32.mrf.mxu2  ;;  %v7456_v31 = vpop.f32.mrf.mxu3 }
 0x57c   :  { %v7443_v13 = vadd.f32 %v7442_v61, %v7429_v60 }
 0x57e   :  { %v7457_v4 = vadd.f32 %v7456_v31, %v7443_v13 }
 0x583   :  { %v7444_v62 = vpop.f32.mrf.mxu2  ;;  %v7458_v35 = vpop.f32.mrf.mxu3 }
 0x584   :  { %v7445_v38 = vadd.f32 %v7444_v62, %v7431_v15 }
 0x586   :  { %v7459_v21 = vadd.f32 %v7458_v35, %v7445_v38 }
 0x58b   :  { %v7470_v29 = vpop.f32.mrf.mxu0  ;;  %v7484_v51 = vpop.f32.mrf.mxu1 }
 0x58c   :  { %v7471_v59 = vadd.f32 %v7470_v29, %v7457_v4 }
 0x58e   :  { %v7485_v24 = vadd.f32 %v7484_v51, %v7471_v59 }
 0x590   :  { %v7494_v33 = vmax.f32 %v7485_v24, 0.0 }
 0x593   :  { %v7472_v39 = vpop.f32.mrf.mxu0  ;;  %v7486_v5 = vpop.f32.mrf.mxu1 }
 0x594   :  { %v7473_v19 = vadd.f32 %v7472_v39, %v7459_v21 }
 0x596   :  { %v7487_v28 = vadd.f32 %v7486_v5, %v7473_v19 }
 0x598   :  { %v7500_v7 = vmax.f32 %v7487_v28, 0.0 }
 0x59a   :  { %v7506_v8 = vpack.c.bf16 %v7500_v7, %v7494_v33 }
 0x59b   :  { %v7904_v22 = vpop.f32.mrf.mxu2  ;;  %v7918_v3 = vpop.f32.mrf.mxu3 }
 0x59c   :  { %7973 = vmatmul.bf16.vlgmr.msrb.gmra.mxu3 %v7506_v8  ;;  %v7905_v18 = vadd.f32 %v12834_v20, %v7904_v22 }
 0x59e   :  { %v7919_v55 = vadd.f32 %v7918_v3, %v7905_v18 }
 0x5a3   :  { %v7906_v11 = vpop.f32.mrf.mxu2  ;;  %v7920_v36 = vpop.f32.mrf.mxu3 }
 0x5a4   :  { %v7907_v0 = vadd.f32 %v12834_v20, %v7906_v11 }
 0x5a6   :  { %v7921_v54 = vadd.f32 %v7920_v36, %v7907_v0 }
 0x5ab   :  { %v7932_v6 = vpop.f32.mrf.mxu0 }
 0x5ac   :  { %v7933_v23 = vadd.f32 %v7932_v6, %v7919_v55 }
 0x5b3   :  { %v7934_v9 = vpop.f32.mrf.mxu0 }
 0x5b4   :  { %v7935_v57 = vadd.f32 %v7934_v9, %v7921_v54 }
 0x5b9   :  { %v7946_v50 = vpop.f32.mrf.mxu1 }
 0x5ba   :  { %v7947_v45 = vadd.f32 %v7946_v50, %v7933_v23 }
 0x5c1   :  { %v7948_v26 = vpop.f32.mrf.mxu1 }
 0x5c2   :  { %v7949_v32 = vadd.f32 %v7948_v26, %v7935_v57 }
 0x5ef   :  { %v7960_v48 = vpop.f32.mrf.mxu2 }
 0x5f0   :  { %v7961_v44 = vadd.f32 %v7960_v48, %v7947_v45 }
 0x5f7   :  { %v7962_v37 = vpop.f32.mrf.mxu2 }
 0x5f8   :  { %v7963_v25 = vadd.f32 %v7962_v37, %v7949_v32 }
 0x61f   :  { %v7974_v10 = vpop.f32.mrf.mxu3 }
 0x620   :  { %v7975_v34 = vadd.f32 %v7974_v10, %v7961_v44 }
 0x622   :  { %12839 = vtanh.f32 %v7975_v34 }
 0x627   :  { %v7976_v27 = vpop.f32.mrf.mxu3 }
 0x628   :  { %v12840_v16 = vpop.eup %12839  ;;  %v7977_v42 = vadd.f32 %v7976_v27, %v7963_v25 }
 0x629   :  { %7981 = vst [vmem:[#allocation25] sm:$0xff] %v12840_v16 }
 0x62a   :  { %12841 = vtanh.f32 %v7977_v42 }
 0x630   :  { %v12842_v56 = vpop.eup %12841 }
 0x631   :  { %7982 = vst [vmem:[#allocation25 + $0x18] sm:$0xff] %v12842_v56 }
 0x632   :  { %7999 = dma.vmem_to_hbm [thread:$0]  %s7992_s13, 768, %s7994_s25, [#allocation4], %s13224_s21, %s13224_s21, %s13225_s22  }
 0x633   :  { %13221 = dma.done.wait [#allocation4], 768  }
 0x634   :  { %13222 = vsyncadd [#allocation4], 4294966528 }
 0x635   :  { %8004 = vsyncpa [#allocation3], 1 }
 0x636   :  { %8005 = vsyncpa [#allocation6], 1 }
 0x637   :  { %8006 = vsyncpa [#allocation9], 1 }
 0x638   :  { %8007 = vsyncpa [#allocation12], 1 }
 0x639   :  { %8008 = vsyncpa [#allocation15], 1 }
 0x63a   :  { %8009 = vsyncpa [#allocation18], 1 }
 0x63b   :  { %8010 = vsyncpa [#allocation21], 1 }
 0x63c   :  { %8011 = vsyncpa [#allocation24], 1 }
 0x63d   :  { %8012 = vsyncpa [#allocation4], 1 }

</bundles_post_ra>
